<compile_context>
chip_gen: v7x
topology: tpu7x:2x2x1
jax: 0.10.0
libtpu: 0.0.40
codegen_flags: <defaults>
</compile_context>

<pallas_src>
import functools

import jax
import jax.numpy as jnp
from jax.experimental import pallas as pl
from jax.experimental.pallas import tpu as pltpu

OCP = 128  # lane-dense (padded) output-channel width for the conv layers


# ----------------------------- Pallas kernels ------------------------------

def _conv_bn_lrelu_kernel(ys_ref, w_ref, g_ref, b_ref, o_ref, *, oh, ow, use_bn):
    """Fused 4x4/stride-2/pad-1 conv + (optional) BatchNorm + LeakyReLU(0.2).

    ys_ref : (nb, oh+1, ow+1, 4*ic) space-to-depth form of the padded input,
             ys[n, i, j, (a*2+b)*ic + c] == x_pad[n, 2*i+a, 2*j+b, c].
    w_ref  : (4, 4*ic, OCP) one weight matrix per 2x2 tap (u, v); OC padded
             with zeros up to OCP for lane-dense stores.
    o_ref  : (nb*oh*ow, OCP) output, row order (n, oh, ow).
    """
    c4 = ys_ref.shape[3]
    m = o_ref.shape[0]
    ocp = o_ref.shape[1]

    taps = ((0, 0), (0, 1), (1, 0), (1, 1))
    acc = jnp.zeros((m, ocp), jnp.float32)
    # A 4x4 stride-2 conv on x is a 2x2 stride-1 conv on the space-to-depth
    # grid: every tap is a contiguous static slice -> no im2col in HBM.
    for t in range(4):
        u, v = taps[t]
        patch = ys_ref[:, u:u + oh, v:v + ow, :]            # (nb, oh, ow, c4)
        patch = patch.reshape(m, c4).astype(jnp.bfloat16)   # bf16 MXU inputs
        acc = acc + jnp.dot(patch, w_ref[t],
                            preferred_element_type=jnp.float32)

    y = acc
    if use_bn:
        # train-mode BatchNorm2d: biased batch stats over the N*H*W axis.
        mean = jnp.mean(y, axis=0, keepdims=True)
        var = jnp.mean(jnp.square(y - mean), axis=0, keepdims=True)
        y = (y - mean) * jax.lax.rsqrt(var + 1e-5) * g_ref[...] + b_ref[...]
    o_ref[...] = jnp.where(y >= 0, y, 0.2 * y)


def _final_kernel(p_ref, w4_ref, g_ref, b_ref, w5_ref, o_ref, *, n):
    """Fused conv4 (matmul) + BN + LeakyReLU + conv5 (4x4 valid) + Sigmoid."""
    y = jnp.dot(p_ref[...], w4_ref[...],
                preferred_element_type=jnp.float32)          # (n*16, ndf*8)
    mean = jnp.mean(y, axis=0, keepdims=True)
    var = jnp.mean(jnp.square(y - mean), axis=0, keepdims=True)
    y = (y - mean) * jax.lax.rsqrt(var + 1e-5) * g_ref[...] + b_ref[...]
    y = jnp.where(y >= 0, y, 0.2 * y)

    # conv5: 4x4 valid conv on a 4x4 map == full contraction per image.
    s = y.shape[0] // n
    prod = y.reshape(n, s, y.shape[1]) * w5_ref[...]         # (n, 16, ndf*8)
    r = jnp.sum(prod, axis=2)                                # (n, 16)
    r = jnp.sum(r, axis=1, keepdims=True)                    # (n, 1)
    o_ref[...] = 0.5 * (jnp.tanh(0.5 * r) + 1.0)             # stable sigmoid


# ------------------------- pallas_call wrappers -----------------------------

def conv_s2d_layer(ys, w_taps, gamma, beta, *, oh, ow, use_bn, split_batch=False):
    n, hs, ws, c4 = ys.shape
    ocp = w_taps.shape[-1]
    m = n * oh * ow

    if split_batch and (not use_bn) and n > 1:
        # one grid step per image -> parallel axis for megacore (v7x).
        grid = (n,)
        ys_spec = pl.BlockSpec((1, hs, ws, c4), lambda i: (i, 0, 0, 0))
        out_spec = pl.BlockSpec((oh * ow, ocp), lambda i: (i, 0))
        dims = ("parallel",)
    else:
        grid = (1,)
        ys_spec = pl.BlockSpec((n, hs, ws, c4), lambda i: (0, 0, 0, 0))
        out_spec = pl.BlockSpec((m, ocp), lambda i: (0, 0))
        dims = ("arbitrary",)

    kernel = functools.partial(_conv_bn_lrelu_kernel, oh=oh, ow=ow, use_bn=use_bn)
    return pl.pallas_call(
        kernel,
        out_shape=jax.ShapeDtypeStruct((m, ocp), jnp.float32),
        grid_spec=pltpu.PrefetchScalarGridSpec(
            num_scalar_prefetch=0,
            grid=grid,
            in_specs=[
                ys_spec,
                pl.BlockSpec((4, c4, ocp), lambda i: (0, 0, 0)),
                pl.BlockSpec((1, ocp), lambda i: (0, 0)),
                pl.BlockSpec((1, ocp), lambda i: (0, 0)),
            ],
            out_specs=out_spec),
        compiler_params=pltpu.CompilerParams(dimension_semantics=dims),
    )(ys, w_taps, gamma, beta)


def final_layer(p4, w4, g4, b4, w5, *, n):
    m, k = p4.shape
    oc = w4.shape[1]
    s = m // n
    return pl.pallas_call(
        functools.partial(_final_kernel, n=n),
        out_shape=jax.ShapeDtypeStruct((n, 1), jnp.float32),
        grid_spec=pltpu.PrefetchScalarGridSpec(
            num_scalar_prefetch=0,
            grid=(1,),
            in_specs=[
                pl.BlockSpec((m, k), lambda i: (0, 0)),
                pl.BlockSpec((k, oc), lambda i: (0, 0)),
                pl.BlockSpec((1, oc), lambda i: (0, 0)),
                pl.BlockSpec((1, oc), lambda i: (0, 0)),
                pl.BlockSpec((s, oc), lambda i: (0, 0)),
            ],
            out_specs=pl.BlockSpec((n, 1), lambda i: (0, 0))),
        compiler_params=pltpu.CompilerParams(dimension_semantics=("arbitrary",)),
    )(p4, w4, g4, b4, w5)


# ------------------------------ JAX glue ------------------------------------

def space_to_depth_pad(x):
    """(N, H, W, C) -> (N, H//2+1, W//2+1, 4*C): pad-1 then 2x2 space-to-depth."""
    n, h, w, c = x.shape
    xp = jnp.pad(x, ((0, 0), (1, 1), (1, 1), (0, 0)))
    hs, ws = (h + 2) // 2, (w + 2) // 2
    y = xp.reshape(n, hs, 2, ws, 2, c)
    y = jnp.transpose(y, (0, 1, 3, 2, 4, 5)).reshape(n, hs, ws, 4 * c)
    return y


def im2col(x, k, stride, pad):
    """Tiny im2col (used only for the 4x4 layer-4 input, 32x512 = 64 KiB)."""
    n, h, w, c = x.shape
    xp = jnp.pad(x, ((0, 0), (pad, pad), (pad, pad), (0, 0)))
    oh = (h + 2 * pad - k) // stride + 1
    ow = (w + 2 * pad - k) // stride + 1
    cols = []
    for i in range(k):
        for j in range(k):
            cols.append(xp[:, i:i + stride * oh:stride, j:j + stride * ow:stride, :])
    return jnp.stack(cols, axis=3).reshape(n * oh * ow, k * k * c)


def _conv_w_s2d_taps(w_oihw, ocp=OCP):
    """(OC, IC, 4, 4) torch conv weight -> (4, 4*IC, ocp) per-tap bf16 matrices."""
    oc, ic, _, _ = w_oihw.shape
    w = jnp.transpose(w_oihw, (2, 3, 1, 0))                 # (KH, KW, IC, OC)
    taps = []
    for u in range(2):
        for v in range(2):
            blk = w[2 * u:2 * u + 2, 2 * v:2 * v + 2]       # [a, b, ic, oc]
            taps.append(blk.reshape(4 * ic, oc))
    t = jnp.stack(taps, axis=0)                             # (4, 4*IC, OC)
    t = jnp.pad(t, ((0, 0), (0, 0), (0, ocp - oc)))         # lane-dense OC pad
    return t.astype(jnp.bfloat16)


def _conv_w_matrix(w_oihw):
    """(OC, IC, KH, KW) -> (KH*KW*IC, OC) matching im2col's (kh, kw, c) order."""
    oc, ic, kh, kw = w_oihw.shape
    return jnp.transpose(w_oihw, (2, 3, 1, 0)).reshape(kh * kw * ic, oc).astype(jnp.bfloat16)


def _pad_bn(p, ocp=OCP, fill=0.0):
    oc = p.shape[0]
    return jnp.pad(p, (0, ocp - oc), constant_values=fill).reshape(1, ocp).astype(jnp.float32)


def init_params(key, nc, ndf):
    ks = jax.random.split(key, 8)

    def conv_w(k, oc, ic, kk=4):
        return 0.02 * jax.random.normal(k, (oc, ic, kk, kk), jnp.float32)

    w5 = conv_w(ks[4], 1, ndf * 8)                          # (1, ndf*8, 4, 4)
    return {
        "w1": _conv_w_s2d_taps(conv_w(ks[0], ndf, nc)),
        "w2": _conv_w_s2d_taps(conv_w(ks[1], ndf * 2, ndf)),
        "w3": _conv_w_s2d_taps(conv_w(ks[2], ndf * 4, ndf * 2)),
        "w4": _conv_w_matrix(conv_w(ks[3], ndf * 8, ndf * 4)),              # (512, ndf*8)
        # conv5 weight as (16, ndf*8): w5m[kh*4+kw, c] = w5[0, c, kh, kw]
        "w5": jnp.transpose(w5[0], (1, 2, 0)).reshape(16, ndf * 8).astype(jnp.float32),
        "g2": _pad_bn(1.0 + 0.02 * jax.random.normal(ks[5], (ndf * 2,)), fill=1.0),
        "b2": _pad_bn(jnp.zeros((ndf * 2,))),
        "g3": _pad_bn(1.0 + 0.02 * jax.random.normal(ks[6], (ndf * 4,)), fill=1.0),
        "b3": _pad_bn(jnp.zeros((ndf * 4,))),
        "g4": (1.0 + 0.02 * jax.random.normal(ks[7], (ndf * 8,))).reshape(1, ndf * 8).astype(jnp.float32),
        "b4": jnp.zeros((1, ndf * 8), jnp.float32),
    }


def make_discriminator_forward(nc, ndf):
    del nc  # implied by the input / weight shapes
    ones_g = jnp.ones((1, OCP), jnp.float32)
    zeros_b = jnp.zeros((1, OCP), jnp.float32)

    @jax.jit
    def forward(x_nchw, params):
        n, _, h, w = x_nchw.shape
        x = jnp.transpose(x_nchw, (0, 2, 3, 1)).astype(jnp.float32)      # NHWC

        # conv1 (4,2,1) + LeakyReLU
        oh, ow = h // 2, w // 2
        y = conv_s2d_layer(space_to_depth_pad(x), params["w1"], ones_g, zeros_b,
                           oh=oh, ow=ow, use_bn=False, split_batch=True)
        x = y[:, :ndf].reshape(n, oh, ow, ndf)

        # conv2 (4,2,1) + BN + LeakyReLU
        h, w = oh, ow
        oh, ow = h // 2, w // 2
        y = conv_s2d_layer(space_to_depth_pad(x), params["w2"], params["g2"], params["b2"],
                           oh=oh, ow=ow, use_bn=True)
        x = y[:, :ndf * 2].reshape(n, oh, ow, ndf * 2)

        # conv3 (4,2,1) + BN + LeakyReLU
        h, w = oh, ow
        oh, ow = h // 2, w // 2
        y = conv_s2d_layer(space_to_depth_pad(x), params["w3"], params["g3"], params["b3"],
                           oh=oh, ow=ow, use_bn=True)
        x = y[:, :ndf * 4].reshape(n, oh, ow, ndf * 4)

        # conv4 (4,2,1) + BN + LeakyReLU + conv5 (4,1,0) + Sigmoid in ONE kernel
        p4 = im2col(x, 4, 2, 1).astype(jnp.bfloat16)                      # (n*16, 512)
        out = final_layer(p4, params["w4"], params["g4"], params["b4"], params["w5"], n=n)
        return out                                                        # (N, 1)

    return forward


if __name__ == "__main__":
    # DCGAN discriminator needs 64x64 spatial input so the final 4x4/s1/p0 conv
    # yields 1x1.  Small channel counts: nc=3, ndf=8, batch=2.
    nc, ndf = 3, 8
    key = jax.random.PRNGKey(0)
    k_x, k_p = jax.random.split(key)
    x = jax.random.normal(k_x, (2, nc, 64, 64), jnp.float32)   # NCHW, like PyTorch
    params = init_params(k_p, nc, ndf)

    forward = make_discriminator_forward(nc, ndf)
    out = jax.block_until_ready(forward(x, params))
    assert out.shape == (2, 1), out.shape
    assert bool(jnp.all(jnp.isfinite(out)))
    assert bool(jnp.all((out >= 0.0) & (out <= 1.0)))
    print("KERNEL_OK")
</pallas_src>

<mosaic_0001>
module attributes {stable_mosaic.version = 11 : i64} {
  func.func @_conv_bn_lrelu_kernel(%arg0: i32, %arg1: memref<1x33x33x12xf32, #tpu.memory_space<vmem>>, %arg2: memref<4x12x128xbf16, #tpu.memory_space<vmem>>, %arg3: memref<1x128xf32, #tpu.memory_space<vmem>>, %arg4: memref<1x128xf32, #tpu.memory_space<vmem>>, %arg5: memref<1024x128xf32, #tpu.memory_space<vmem>>) attributes {dimension_semantics = [#tpu.dimension_semantics<parallel>], iteration_bounds = array<i64: 2>, scalar_prefetch = 0 : i64, scratch_operands = 0 : i64, tpu.core_type = #tpu.core_type<tc>, window_params = [{transform_indices = @transform_0, window_bounds = array<i64: 1, 33, 33, 12>}, {pipeline_mode = #tpu.pipeline_mode<synchronous>, transform_indices = @transform_1, window_bounds = array<i64: 4, 12, 128>}, {pipeline_mode = #tpu.pipeline_mode<synchronous>, transform_indices = @transform_2, window_bounds = array<i64: 1, 128>}, {pipeline_mode = #tpu.pipeline_mode<synchronous>, transform_indices = @transform_3, window_bounds = array<i64: 1, 128>}, {transform_indices = @transform_4, window_bounds = array<i64: 1024, 128>}]} {
    %cst = arith.constant 0.000000e+00 : f32
    %0 = vector.broadcast %cst : f32 to vector<1024x128xf32>
    %c0 = arith.constant 0 : index
    %c0_0 = arith.constant 0 : index
    %c0_1 = arith.constant 0 : index
    %c0_2 = arith.constant 0 : index
    %1 = vector.load %arg1[%c0, %c0_0, %c0_1, %c0_2] : memref<1x33x33x12xf32, #tpu.memory_space<vmem>>, vector<1x32x32x12xf32>
    %2 = vector.shape_cast %1 : vector<1x32x32x12xf32> to vector<1024x12xf32>
    %3 = arith.truncf %2 : vector<1024x12xf32> to vector<1024x12xbf16>
    %c0_3 = arith.constant 0 : index
    %c0_4 = arith.constant 0 : index
    %c0_5 = arith.constant 0 : index
    %4 = vector.load %arg2[%c0_3, %c0_4, %c0_5] : memref<4x12x128xbf16, #tpu.memory_space<vmem>>, vector<1x12x128xbf16>
    %5 = vector.shape_cast %4 : vector<1x12x128xbf16> to vector<12x128xbf16>
    %cst_6 = arith.constant dense<0.000000e+00> : vector<1024x128xf32>
    %6 = tpu.matmul %3, %5, %cst_6 {dimension_numbers = #tpu.dot_dimension_numbers<[1], [0], [0], [1], [0, 0, 1, 1], [], []>} : vector<1024x12xbf16>, vector<12x128xbf16>, vector<1024x128xf32> -> vector<1024x128xf32>
    %7 = arith.addf %0, %6 : vector<1024x128xf32>
    %c0_7 = arith.constant 0 : index
    %c0_8 = arith.constant 0 : index
    %c1 = arith.constant 1 : index
    %c0_9 = arith.constant 0 : index
    %8 = vector.load %arg1[%c0_7, %c0_8, %c1, %c0_9] : memref<1x33x33x12xf32, #tpu.memory_space<vmem>>, vector<1x32x32x12xf32>
    %9 = vector.shape_cast %8 : vector<1x32x32x12xf32> to vector<1024x12xf32>
    %10 = arith.truncf %9 : vector<1024x12xf32> to vector<1024x12xbf16>
    %c1_10 = arith.constant 1 : index
    %c0_11 = arith.constant 0 : index
    %c0_12 = arith.constant 0 : index
    %11 = vector.load %arg2[%c1_10, %c0_11, %c0_12] : memref<4x12x128xbf16, #tpu.memory_space<vmem>>, vector<1x12x128xbf16>
    %12 = vector.shape_cast %11 : vector<1x12x128xbf16> to vector<12x128xbf16>
    %cst_13 = arith.constant dense<0.000000e+00> : vector<1024x128xf32>
    %13 = tpu.matmul %10, %12, %cst_13 {dimension_numbers = #tpu.dot_dimension_numbers<[1], [0], [0], [1], [0, 0, 1, 1], [], []>} : vector<1024x12xbf16>, vector<12x128xbf16>, vector<1024x128xf32> -> vector<1024x128xf32>
    %14 = arith.addf %7, %13 : vector<1024x128xf32>
    %c0_14 = arith.constant 0 : index
    %c1_15 = arith.constant 1 : index
    %c0_16 = arith.constant 0 : index
    %c0_17 = arith.constant 0 : index
    %15 = vector.load %arg1[%c0_14, %c1_15, %c0_16, %c0_17] : memref<1x33x33x12xf32, #tpu.memory_space<vmem>>, vector<1x32x32x12xf32>
    %16 = vector.shape_cast %15 : vector<1x32x32x12xf32> to vector<1024x12xf32>
    %17 = arith.truncf %16 : vector<1024x12xf32> to vector<1024x12xbf16>
    %c2 = arith.constant 2 : index
    %c0_18 = arith.constant 0 : index
    %c0_19 = arith.constant 0 : index
    %18 = vector.load %arg2[%c2, %c0_18, %c0_19] : memref<4x12x128xbf16, #tpu.memory_space<vmem>>, vector<1x12x128xbf16>
    %19 = vector.shape_cast %18 : vector<1x12x128xbf16> to vector<12x128xbf16>
    %cst_20 = arith.constant dense<0.000000e+00> : vector<1024x128xf32>
    %20 = tpu.matmul %17, %19, %cst_20 {dimension_numbers = #tpu.dot_dimension_numbers<[1], [0], [0], [1], [0, 0, 1, 1], [], []>} : vector<1024x12xbf16>, vector<12x128xbf16>, vector<1024x128xf32> -> vector<1024x128xf32>
    %21 = arith.addf %14, %20 : vector<1024x128xf32>
    %c0_21 = arith.constant 0 : index
    %c1_22 = arith.constant 1 : index
    %c1_23 = arith.constant 1 : index
    %c0_24 = arith.constant 0 : index
    %22 = vector.load %arg1[%c0_21, %c1_22, %c1_23, %c0_24] : memref<1x33x33x12xf32, #tpu.memory_space<vmem>>, vector<1x32x32x12xf32>
    %23 = vector.shape_cast %22 : vector<1x32x32x12xf32> to vector<1024x12xf32>
    %24 = arith.truncf %23 : vector<1024x12xf32> to vector<1024x12xbf16>
    %c3 = arith.constant 3 : index
    %c0_25 = arith.constant 0 : index
    %c0_26 = arith.constant 0 : index
    %25 = vector.load %arg2[%c3, %c0_25, %c0_26] : memref<4x12x128xbf16, #tpu.memory_space<vmem>>, vector<1x12x128xbf16>
    %26 = vector.shape_cast %25 : vector<1x12x128xbf16> to vector<12x128xbf16>
    %cst_27 = arith.constant dense<0.000000e+00> : vector<1024x128xf32>
    %27 = tpu.matmul %24, %26, %cst_27 {dimension_numbers = #tpu.dot_dimension_numbers<[1], [0], [0], [1], [0, 0, 1, 1], [], []>} : vector<1024x12xbf16>, vector<12x128xbf16>, vector<1024x128xf32> -> vector<1024x128xf32>
    %28 = arith.addf %21, %27 : vector<1024x128xf32>
    %cst_28 = arith.constant 0.000000e+00 : f32
    %29 = vector.broadcast %cst_28 : f32 to vector<1024x128xf32>
    %30 = arith.cmpf oge, %28, %29 : vector<1024x128xf32>
    %cst_29 = arith.constant 2.000000e-01 : f32
    %31 = vector.broadcast %cst_29 : f32 to vector<1024x128xf32>
    %32 = arith.mulf %31, %28 : vector<1024x128xf32>
    %33 = arith.select %30, %28, %32 : vector<1024x128xi1>, vector<1024x128xf32>
    %c0_30 = arith.constant 0 : index
    %c0_31 = arith.constant 0 : index
    %34 = vector.load %arg5[%c0_30, %c0_31] : memref<1024x128xf32, #tpu.memory_space<vmem>>, vector<1024x128xf32>
    tpu.vector_store %arg5[%c0_30, %c0_31], %33 {strides = array<i32>} : memref<1024x128xf32, #tpu.memory_space<vmem>>, vector<1024x128xf32>,
    return
  }
  func.func @transform_0(%arg0: i32) -> (i32, i32, i32, i32) {
    %c0_i32 = arith.constant 0 : i32
    %c0_i32_0 = arith.constant 0 : i32
    %c0_i32_1 = arith.constant 0 : i32
    %c0_i32_2 = arith.constant 0 : i32
    return %arg0, %c0_i32, %c0_i32_0, %c0_i32_1 : i32, i32, i32, i32
  }
  func.func @transform_1(%arg0: i32) -> (i32, i32, i32) {
    %c0_i32 = arith.constant 0 : i32
    %c0_i32_0 = arith.constant 0 : i32
    %c0_i32_1 = arith.constant 0 : i32
    %c0_i32_2 = arith.constant 0 : i32
    return %c0_i32, %c0_i32_0, %c0_i32_1 : i32, i32, i32
  }
  func.func @transform_2(%arg0: i32) -> (i32, i32) {
    %c0_i32 = arith.constant 0 : i32
    %c0_i32_0 = arith.constant 0 : i32
    %c0_i32_1 = arith.constant 0 : i32
    return %c0_i32, %c0_i32_0 : i32, i32
  }
  func.func @transform_3(%arg0: i32) -> (i32, i32) {
    %c0_i32 = arith.constant 0 : i32
    %c0_i32_0 = arith.constant 0 : i32
    %c0_i32_1 = arith.constant 0 : i32
    return %c0_i32, %c0_i32_0 : i32, i32
  }
  func.func @transform_4(%arg0: i32) -> (i32, i32) {
    %c0_i32 = arith.constant 0 : i32
    %c0_i32_0 = arith.constant 0 : i32
    return %arg0, %c0_i32 : i32, i32
  }
}

module attributes {stable_mosaic.version = 11 : i64} {
  func.func @_conv_bn_lrelu_kernel(%arg0: i32, %arg1: memref<2x17x17x32xf32, #tpu.memory_space<vmem>>, %arg2: memref<4x32x128xbf16, #tpu.memory_space<vmem>>, %arg3: memref<1x128xf32, #tpu.memory_space<vmem>>, %arg4: memref<1x128xf32, #tpu.memory_space<vmem>>, %arg5: memref<512x128xf32, #tpu.memory_space<vmem>>) attributes {dimension_semantics = [#tpu.dimension_semantics<arbitrary>], iteration_bounds = array<i64: 1>, scalar_prefetch = 0 : i64, scratch_operands = 0 : i64, tpu.core_type = #tpu.core_type<tc>, window_params = [{pipeline_mode = #tpu.pipeline_mode<synchronous>, transform_indices = @transform_0, window_bounds = array<i64: 2, 17, 17, 32>}, {pipeline_mode = #tpu.pipeline_mode<synchronous>, transform_indices = @transform_1, window_bounds = array<i64: 4, 32, 128>}, {pipeline_mode = #tpu.pipeline_mode<synchronous>, transform_indices = @transform_2, window_bounds = array<i64: 1, 128>}, {pipeline_mode = #tpu.pipeline_mode<synchronous>, transform_indices = @transform_3, window_bounds = array<i64: 1, 128>}, {pipeline_mode = #tpu.pipeline_mode<synchronous>, transform_indices = @transform_4, window_bounds = array<i64: 512, 128>}]} {
    %cst = arith.constant 0.000000e+00 : f32
    %0 = vector.broadcast %cst : f32 to vector<512x128xf32>
    %c0 = arith.constant 0 : index
    %c0_0 = arith.constant 0 : index
    %c0_1 = arith.constant 0 : index
    %c0_2 = arith.constant 0 : index
    %1 = vector.load %arg1[%c0, %c0_0, %c0_1, %c0_2] : memref<2x17x17x32xf32, #tpu.memory_space<vmem>>, vector<2x16x16x32xf32>
    %2 = vector.shape_cast %1 : vector<2x16x16x32xf32> to vector<512x32xf32>
    %3 = arith.truncf %2 : vector<512x32xf32> to vector<512x32xbf16>
    %c0_3 = arith.constant 0 : index
    %c0_4 = arith.constant 0 : index
    %c0_5 = arith.constant 0 : index
    %4 = vector.load %arg2[%c0_3, %c0_4, %c0_5] : memref<4x32x128xbf16, #tpu.memory_space<vmem>>, vector<1x32x128xbf16>
    %5 = vector.shape_cast %4 : vector<1x32x128xbf16> to vector<32x128xbf16>
    %cst_6 = arith.constant dense<0.000000e+00> : vector<512x128xf32>
    %6 = tpu.matmul %3, %5, %cst_6 {dimension_numbers = #tpu.dot_dimension_numbers<[1], [0], [0], [1], [0, 0, 1, 1], [], []>} : vector<512x32xbf16>, vector<32x128xbf16>, vector<512x128xf32> -> vector<512x128xf32>
    %7 = arith.addf %0, %6 : vector<512x128xf32>
    %c0_7 = arith.constant 0 : index
    %c0_8 = arith.constant 0 : index
    %c1 = arith.constant 1 : index
    %c0_9 = arith.constant 0 : index
    %8 = vector.load %arg1[%c0_7, %c0_8, %c1, %c0_9] : memref<2x17x17x32xf32, #tpu.memory_space<vmem>>, vector<2x16x16x32xf32>
    %9 = vector.shape_cast %8 : vector<2x16x16x32xf32> to vector<512x32xf32>
    %10 = arith.truncf %9 : vector<512x32xf32> to vector<512x32xbf16>
    %c1_10 = arith.constant 1 : index
    %c0_11 = arith.constant 0 : index
    %c0_12 = arith.constant 0 : index
    %11 = vector.load %arg2[%c1_10, %c0_11, %c0_12] : memref<4x32x128xbf16, #tpu.memory_space<vmem>>, vector<1x32x128xbf16>
    %12 = vector.shape_cast %11 : vector<1x32x128xbf16> to vector<32x128xbf16>
    %cst_13 = arith.constant dense<0.000000e+00> : vector<512x128xf32>
    %13 = tpu.matmul %10, %12, %cst_13 {dimension_numbers = #tpu.dot_dimension_numbers<[1], [0], [0], [1], [0, 0, 1, 1], [], []>} : vector<512x32xbf16>, vector<32x128xbf16>, vector<512x128xf32> -> vector<512x128xf32>
    %14 = arith.addf %7, %13 : vector<512x128xf32>
    %c0_14 = arith.constant 0 : index
    %c1_15 = arith.constant 1 : index
    %c0_16 = arith.constant 0 : index
    %c0_17 = arith.constant 0 : index
    %15 = vector.load %arg1[%c0_14, %c1_15, %c0_16, %c0_17] : memref<2x17x17x32xf32, #tpu.memory_space<vmem>>, vector<2x16x16x32xf32>
    %16 = vector.shape_cast %15 : vector<2x16x16x32xf32> to vector<512x32xf32>
    %17 = arith.truncf %16 : vector<512x32xf32> to vector<512x32xbf16>
    %c2 = arith.constant 2 : index
    %c0_18 = arith.constant 0 : index
    %c0_19 = arith.constant 0 : index
    %18 = vector.load %arg2[%c2, %c0_18, %c0_19] : memref<4x32x128xbf16, #tpu.memory_space<vmem>>, vector<1x32x128xbf16>
    %19 = vector.shape_cast %18 : vector<1x32x128xbf16> to vector<32x128xbf16>
    %cst_20 = arith.constant dense<0.000000e+00> : vector<512x128xf32>
    %20 = tpu.matmul %17, %19, %cst_20 {dimension_numbers = #tpu.dot_dimension_numbers<[1], [0], [0], [1], [0, 0, 1, 1], [], []>} : vector<512x32xbf16>, vector<32x128xbf16>, vector<512x128xf32> -> vector<512x128xf32>
    %21 = arith.addf %14, %20 : vector<512x128xf32>
    %c0_21 = arith.constant 0 : index
    %c1_22 = arith.constant 1 : index
    %c1_23 = arith.constant 1 : index
    %c0_24 = arith.constant 0 : index
    %22 = vector.load %arg1[%c0_21, %c1_22, %c1_23, %c0_24] : memref<2x17x17x32xf32, #tpu.memory_space<vmem>>, vector<2x16x16x32xf32>
    %23 = vector.shape_cast %22 : vector<2x16x16x32xf32> to vector<512x32xf32>
    %24 = arith.truncf %23 : vector<512x32xf32> to vector<512x32xbf16>
    %c3 = arith.constant 3 : index
    %c0_25 = arith.constant 0 : index
    %c0_26 = arith.constant 0 : index
    %25 = vector.load %arg2[%c3, %c0_25, %c0_26] : memref<4x32x128xbf16, #tpu.memory_space<vmem>>, vector<1x32x128xbf16>
    %26 = vector.shape_cast %25 : vector<1x32x128xbf16> to vector<32x128xbf16>
    %cst_27 = arith.constant dense<0.000000e+00> : vector<512x128xf32>
    %27 = tpu.matmul %24, %26, %cst_27 {dimension_numbers = #tpu.dot_dimension_numbers<[1], [0], [0], [1], [0, 0, 1, 1], [], []>} : vector<512x32xbf16>, vector<32x128xbf16>, vector<512x128xf32> -> vector<512x128xf32>
    %28 = arith.addf %21, %27 : vector<512x128xf32>
    %cst_28 = arith.constant dense<0.000000e+00> : vector<128xf32>
    %29 = vector.multi_reduction <add>, %28, %cst_28 [0] : vector<512x128xf32> to vector<128xf32>
    %30 = vector.shape_cast %29 : vector<128xf32> to vector<1x128xf32>
    %cst_29 = arith.constant 5.120000e+02 : f32
    %31 = vector.broadcast %cst_29 : f32 to vector<1x128xf32>
    %32 = arith.divf %30, %31 : vector<1x128xf32>
    %33 = vector.broadcast %32 : vector<1x128xf32> to vector<512x128xf32>
    %34 = arith.subf %28, %33 : vector<512x128xf32>
    %35 = arith.mulf %34, %34 : vector<512x128xf32>
    %cst_30 = arith.constant dense<0.000000e+00> : vector<128xf32>
    %36 = vector.multi_reduction <add>, %35, %cst_30 [0] : vector<512x128xf32> to vector<128xf32>
    %37 = vector.shape_cast %36 : vector<128xf32> to vector<1x128xf32>
    %cst_31 = arith.constant 5.120000e+02 : f32
    %38 = vector.broadcast %cst_31 : f32 to vector<1x128xf32>
    %39 = arith.divf %37, %38 : vector<1x128xf32>
    %40 = vector.broadcast %32 : vector<1x128xf32> to vector<512x128xf32>
    %41 = arith.subf %28, %40 : vector<512x128xf32>
    %cst_32 = arith.constant 9.99999974E-6 : f32
    %42 = vector.broadcast %cst_32 : f32 to vector<1x128xf32>
    %43 = arith.addf %39, %42 : vector<1x128xf32>
    %44 = math.rsqrt %43 : vector<1x128xf32>
    %45 = vector.broadcast %44 : vector<1x128xf32> to vector<512x128xf32>
    %46 = arith.mulf %41, %45 : vector<512x128xf32>
    %c0_33 = arith.constant 0 : index
    %c0_34 = arith.constant 0 : index
    %47 = vector.load %arg3[%c0_33, %c0_34] : memref<1x128xf32, #tpu.memory_space<vmem>>, vector<1x128xf32>
    %48 = vector.broadcast %47 : vector<1x128xf32> to vector<512x128xf32>
    %49 = arith.mulf %46, %48 : vector<512x128xf32>
    %c0_35 = arith.constant 0 : index
    %c0_36 = arith.constant 0 : index
    %50 = vector.load %arg4[%c0_35, %c0_36] : memref<1x128xf32, #tpu.memory_space<vmem>>, vector<1x128xf32>
    %51 = vector.broadcast %50 : vector<1x128xf32> to vector<512x128xf32>
    %52 = arith.addf %49, %51 : vector<512x128xf32>
    %cst_37 = arith.constant 0.000000e+00 : f32
    %53 = vector.broadcast %cst_37 : f32 to vector<512x128xf32>
    %54 = arith.cmpf oge, %52, %53 : vector<512x128xf32>
    %cst_38 = arith.constant 2.000000e-01 : f32
    %55 = vector.broadcast %cst_38 : f32 to vector<512x128xf32>
    %56 = arith.mulf %55, %52 : vector<512x128xf32>
    %57 = arith.select %54, %52, %56 : vector<512x128xi1>, vector<512x128xf32>
    %c0_39 = arith.constant 0 : index
    %c0_40 = arith.constant 0 : index
    %58 = vector.load %arg5[%c0_39, %c0_40] : memref<512x128xf32, #tpu.memory_space<vmem>>, vector<512x128xf32>
    tpu.vector_store %arg5[%c0_39, %c0_40], %57 {strides = array<i32>} : memref<512x128xf32, #tpu.memory_space<vmem>>, vector<512x128xf32>,
    return
  }
  func.func @transform_0(%arg0: i32) -> (i32, i32, i32, i32) {
    %c0_i32 = arith.constant 0 : i32
    %c0_i32_0 = arith.constant 0 : i32
    %c0_i32_1 = arith.constant 0 : i32
    %c0_i32_2 = arith.constant 0 : i32
    %c0_i32_3 = arith.constant 0 : i32
    return %c0_i32, %c0_i32_0, %c0_i32_1, %c0_i32_2 : i32, i32, i32, i32
  }
  func.func @transform_1(%arg0: i32) -> (i32, i32, i32) {
    %c0_i32 = arith.constant 0 : i32
    %c0_i32_0 = arith.constant 0 : i32
    %c0_i32_1 = arith.constant 0 : i32
    %c0_i32_2 = arith.constant 0 : i32
    return %c0_i32, %c0_i32_0, %c0_i32_1 : i32, i32, i32
  }
  func.func @transform_2(%arg0: i32) -> (i32, i32) {
    %c0_i32 = arith.constant 0 : i32
    %c0_i32_0 = arith.constant 0 : i32
    %c0_i32_1 = arith.constant 0 : i32
    return %c0_i32, %c0_i32_0 : i32, i32
  }
  func.func @transform_3(%arg0: i32) -> (i32, i32) {
    %c0_i32 = arith.constant 0 : i32
    %c0_i32_0 = arith.constant 0 : i32
    %c0_i32_1 = arith.constant 0 : i32
    return %c0_i32, %c0_i32_0 : i32, i32
  }
  func.func @transform_4(%arg0: i32) -> (i32, i32) {
    %c0_i32 = arith.constant 0 : i32
    %c0_i32_0 = arith.constant 0 : i32
    %c0_i32_1 = arith.constant 0 : i32
    return %c0_i32, %c0_i32_0 : i32, i32
  }
}

module attributes {stable_mosaic.version = 11 : i64} {
  func.func @_conv_bn_lrelu_kernel(%arg0: i32, %arg1: memref<2x9x9x64xf32, #tpu.memory_space<vmem>>, %arg2: memref<4x64x128xbf16, #tpu.memory_space<vmem>>, %arg3: memref<1x128xf32, #tpu.memory_space<vmem>>, %arg4: memref<1x128xf32, #tpu.memory_space<vmem>>, %arg5: memref<128x128xf32, #tpu.memory_space<vmem>>) attributes {dimension_semantics = [#tpu.dimension_semantics<arbitrary>], iteration_bounds = array<i64: 1>, scalar_prefetch = 0 : i64, scratch_operands = 0 : i64, tpu.core_type = #tpu.core_type<tc>, window_params = [{pipeline_mode = #tpu.pipeline_mode<synchronous>, transform_indices = @transform_0, window_bounds = array<i64: 2, 9, 9, 64>}, {pipeline_mode = #tpu.pipeline_mode<synchronous>, transform_indices = @transform_1, window_bounds = array<i64: 4, 64, 128>}, {pipeline_mode = #tpu.pipeline_mode<synchronous>, transform_indices = @transform_2, window_bounds = array<i64: 1, 128>}, {pipeline_mode = #tpu.pipeline_mode<synchronous>, transform_indices = @transform_3, window_bounds = array<i64: 1, 128>}, {pipeline_mode = #tpu.pipeline_mode<synchronous>, transform_indices = @transform_4, window_bounds = array<i64: 128, 128>}]} {
    %cst = arith.constant 0.000000e+00 : f32
    %0 = vector.broadcast %cst : f32 to vector<128x128xf32>
    %c0 = arith.constant 0 : index
    %c0_0 = arith.constant 0 : index
    %c0_1 = arith.constant 0 : index
    %c0_2 = arith.constant 0 : index
    %1 = vector.load %arg1[%c0, %c0_0, %c0_1, %c0_2] : memref<2x9x9x64xf32, #tpu.memory_space<vmem>>, vector<2x8x8x64xf32>
    %2 = vector.shape_cast %1 : vector<2x8x8x64xf32> to vector<128x64xf32>
    %3 = arith.truncf %2 : vector<128x64xf32> to vector<128x64xbf16>
    %c0_3 = arith.constant 0 : index
    %c0_4 = arith.constant 0 : index
    %c0_5 = arith.constant 0 : index
    %4 = vector.load %arg2[%c0_3, %c0_4, %c0_5] : memref<4x64x128xbf16, #tpu.memory_space<vmem>>, vector<1x64x128xbf16>
    %5 = vector.shape_cast %4 : vector<1x64x128xbf16> to vector<64x128xbf16>
    %cst_6 = arith.constant dense<0.000000e+00> : vector<128x128xf32>
    %6 = tpu.matmul %3, %5, %cst_6 {dimension_numbers = #tpu.dot_dimension_numbers<[1], [0], [0], [1], [0, 0, 1, 1], [], []>} : vector<128x64xbf16>, vector<64x128xbf16>, vector<128x128xf32> -> vector<128x128xf32>
    %7 = arith.addf %0, %6 : vector<128x128xf32>
    %c0_7 = arith.constant 0 : index
    %c0_8 = arith.constant 0 : index
    %c1 = arith.constant 1 : index
    %c0_9 = arith.constant 0 : index
    %8 = vector.load %arg1[%c0_7, %c0_8, %c1, %c0_9] : memref<2x9x9x64xf32, #tpu.memory_space<vmem>>, vector<2x8x8x64xf32>
    %9 = vector.shape_cast %8 : vector<2x8x8x64xf32> to vector<128x64xf32>
    %10 = arith.truncf %9 : vector<128x64xf32> to vector<128x64xbf16>
    %c1_10 = arith.constant 1 : index
    %c0_11 = arith.constant 0 : index
    %c0_12 = arith.constant 0 : index
    %11 = vector.load %arg2[%c1_10, %c0_11, %c0_12] : memref<4x64x128xbf16, #tpu.memory_space<vmem>>, vector<1x64x128xbf16>
    %12 = vector.shape_cast %11 : vector<1x64x128xbf16> to vector<64x128xbf16>
    %cst_13 = arith.constant dense<0.000000e+00> : vector<128x128xf32>
    %13 = tpu.matmul %10, %12, %cst_13 {dimension_numbers = #tpu.dot_dimension_numbers<[1], [0], [0], [1], [0, 0, 1, 1], [], []>} : vector<128x64xbf16>, vector<64x128xbf16>, vector<128x128xf32> -> vector<128x128xf32>
    %14 = arith.addf %7, %13 : vector<128x128xf32>
    %c0_14 = arith.constant 0 : index
    %c1_15 = arith.constant 1 : index
    %c0_16 = arith.constant 0 : index
    %c0_17 = arith.constant 0 : index
    %15 = vector.load %arg1[%c0_14, %c1_15, %c0_16, %c0_17] : memref<2x9x9x64xf32, #tpu.memory_space<vmem>>, vector<2x8x8x64xf32>
    %16 = vector.shape_cast %15 : vector<2x8x8x64xf32> to vector<128x64xf32>
    %17 = arith.truncf %16 : vector<128x64xf32> to vector<128x64xbf16>
    %c2 = arith.constant 2 : index
    %c0_18 = arith.constant 0 : index
    %c0_19 = arith.constant 0 : index
    %18 = vector.load %arg2[%c2, %c0_18, %c0_19] : memref<4x64x128xbf16, #tpu.memory_space<vmem>>, vector<1x64x128xbf16>
    %19 = vector.shape_cast %18 : vector<1x64x128xbf16> to vector<64x128xbf16>
    %cst_20 = arith.constant dense<0.000000e+00> : vector<128x128xf32>
    %20 = tpu.matmul %17, %19, %cst_20 {dimension_numbers = #tpu.dot_dimension_numbers<[1], [0], [0], [1], [0, 0, 1, 1], [], []>} : vector<128x64xbf16>, vector<64x128xbf16>, vector<128x128xf32> -> vector<128x128xf32>
    %21 = arith.addf %14, %20 : vector<128x128xf32>
    %c0_21 = arith.constant 0 : index
    %c1_22 = arith.constant 1 : index
    %c1_23 = arith.constant 1 : index
    %c0_24 = arith.constant 0 : index
    %22 = vector.load %arg1[%c0_21, %c1_22, %c1_23, %c0_24] : memref<2x9x9x64xf32, #tpu.memory_space<vmem>>, vector<2x8x8x64xf32>
    %23 = vector.shape_cast %22 : vector<2x8x8x64xf32> to vector<128x64xf32>
    %24 = arith.truncf %23 : vector<128x64xf32> to vector<128x64xbf16>
    %c3 = arith.constant 3 : index
    %c0_25 = arith.constant 0 : index
    %c0_26 = arith.constant 0 : index
    %25 = vector.load %arg2[%c3, %c0_25, %c0_26] : memref<4x64x128xbf16, #tpu.memory_space<vmem>>, vector<1x64x128xbf16>
    %26 = vector.shape_cast %25 : vector<1x64x128xbf16> to vector<64x128xbf16>
    %cst_27 = arith.constant dense<0.000000e+00> : vector<128x128xf32>
    %27 = tpu.matmul %24, %26, %cst_27 {dimension_numbers = #tpu.dot_dimension_numbers<[1], [0], [0], [1], [0, 0, 1, 1], [], []>} : vector<128x64xbf16>, vector<64x128xbf16>, vector<128x128xf32> -> vector<128x128xf32>
    %28 = arith.addf %21, %27 : vector<128x128xf32>
    %cst_28 = arith.constant dense<0.000000e+00> : vector<128xf32>
    %29 = vector.multi_reduction <add>, %28, %cst_28 [0] : vector<128x128xf32> to vector<128xf32>
    %30 = vector.shape_cast %29 : vector<128xf32> to vector<1x128xf32>
    %cst_29 = arith.constant 1.280000e+02 : f32
    %31 = vector.broadcast %cst_29 : f32 to vector<1x128xf32>
    %32 = arith.divf %30, %31 : vector<1x128xf32>
    %33 = vector.broadcast %32 : vector<1x128xf32> to vector<128x128xf32>
    %34 = arith.subf %28, %33 : vector<128x128xf32>
    %35 = arith.mulf %34, %34 : vector<128x128xf32>
    %cst_30 = arith.constant dense<0.000000e+00> : vector<128xf32>
    %36 = vector.multi_reduction <add>, %35, %cst_30 [0] : vector<128x128xf32> to vector<128xf32>
    %37 = vector.shape_cast %36 : vector<128xf32> to vector<1x128xf32>
    %cst_31 = arith.constant 1.280000e+02 : f32
    %38 = vector.broadcast %cst_31 : f32 to vector<1x128xf32>
    %39 = arith.divf %37, %38 : vector<1x128xf32>
    %40 = vector.broadcast %32 : vector<1x128xf32> to vector<128x128xf32>
    %41 = arith.subf %28, %40 : vector<128x128xf32>
    %cst_32 = arith.constant 9.99999974E-6 : f32
    %42 = vector.broadcast %cst_32 : f32 to vector<1x128xf32>
    %43 = arith.addf %39, %42 : vector<1x128xf32>
    %44 = math.rsqrt %43 : vector<1x128xf32>
    %45 = vector.broadcast %44 : vector<1x128xf32> to vector<128x128xf32>
    %46 = arith.mulf %41, %45 : vector<128x128xf32>
    %c0_33 = arith.constant 0 : index
    %c0_34 = arith.constant 0 : index
    %47 = vector.load %arg3[%c0_33, %c0_34] : memref<1x128xf32, #tpu.memory_space<vmem>>, vector<1x128xf32>
    %48 = vector.broadcast %47 : vector<1x128xf32> to vector<128x128xf32>
    %49 = arith.mulf %46, %48 : vector<128x128xf32>
    %c0_35 = arith.constant 0 : index
    %c0_36 = arith.constant 0 : index
    %50 = vector.load %arg4[%c0_35, %c0_36] : memref<1x128xf32, #tpu.memory_space<vmem>>, vector<1x128xf32>
    %51 = vector.broadcast %50 : vector<1x128xf32> to vector<128x128xf32>
    %52 = arith.addf %49, %51 : vector<128x128xf32>
    %cst_37 = arith.constant 0.000000e+00 : f32
    %53 = vector.broadcast %cst_37 : f32 to vector<128x128xf32>
    %54 = arith.cmpf oge, %52, %53 : vector<128x128xf32>
    %cst_38 = arith.constant 2.000000e-01 : f32
    %55 = vector.broadcast %cst_38 : f32 to vector<128x128xf32>
    %56 = arith.mulf %55, %52 : vector<128x128xf32>
    %57 = arith.select %54, %52, %56 : vector<128x128xi1>, vector<128x128xf32>
    %c0_39 = arith.constant 0 : index
    %c0_40 = arith.constant 0 : index
    %58 = vector.load %arg5[%c0_39, %c0_40] : memref<128x128xf32, #tpu.memory_space<vmem>>, vector<128x128xf32>
    tpu.vector_store %arg5[%c0_39, %c0_40], %57 {strides = array<i32>} : memref<128x128xf32, #tpu.memory_space<vmem>>, vector<128x128xf32>,
    return
  }
  func.func @transform_0(%arg0: i32) -> (i32, i32, i32, i32) {
    %c0_i32 = arith.constant 0 : i32
    %c0_i32_0 = arith.constant 0 : i32
    %c0_i32_1 = arith.constant 0 : i32
    %c0_i32_2 = arith.constant 0 : i32
    %c0_i32_3 = arith.constant 0 : i32
    return %c0_i32, %c0_i32_0, %c0_i32_1, %c0_i32_2 : i32, i32, i32, i32
  }
  func.func @transform_1(%arg0: i32) -> (i32, i32, i32) {
    %c0_i32 = arith.constant 0 : i32
    %c0_i32_0 = arith.constant 0 : i32
    %c0_i32_1 = arith.constant 0 : i32
    %c0_i32_2 = arith.constant 0 : i32
    return %c0_i32, %c0_i32_0, %c0_i32_1 : i32, i32, i32
  }
  func.func @transform_2(%arg0: i32) -> (i32, i32) {
    %c0_i32 = arith.constant 0 : i32
    %c0_i32_0 = arith.constant 0 : i32
    %c0_i32_1 = arith.constant 0 : i32
    return %c0_i32, %c0_i32_0 : i32, i32
  }
  func.func @transform_3(%arg0: i32) -> (i32, i32) {
    %c0_i32 = arith.constant 0 : i32
    %c0_i32_0 = arith.constant 0 : i32
    %c0_i32_1 = arith.constant 0 : i32
    return %c0_i32, %c0_i32_0 : i32, i32
  }
  func.func @transform_4(%arg0: i32) -> (i32, i32) {
    %c0_i32 = arith.constant 0 : i32
    %c0_i32_0 = arith.constant 0 : i32
    %c0_i32_1 = arith.constant 0 : i32
    return %c0_i32, %c0_i32_0 : i32, i32
  }
}

module attributes {stable_mosaic.version = 11 : i64} {
  func.func @_final_kernel(%arg0: i32, %arg1: memref<32x512xbf16, #tpu.memory_space<vmem>>, %arg2: memref<512x64xbf16, #tpu.memory_space<vmem>>, %arg3: memref<1x64xf32, #tpu.memory_space<vmem>>, %arg4: memref<1x64xf32, #tpu.memory_space<vmem>>, %arg5: memref<16x64xf32, #tpu.memory_space<vmem>>, %arg6: memref<2x1xf32, #tpu.memory_space<vmem>>) attributes {dimension_semantics = [#tpu.dimension_semantics<arbitrary>], iteration_bounds = array<i64: 1>, scalar_prefetch = 0 : i64, scratch_operands = 0 : i64, tpu.core_type = #tpu.core_type<tc>, window_params = [{pipeline_mode = #tpu.pipeline_mode<synchronous>, transform_indices = @transform_0, window_bounds = array<i64: 32, 512>}, {pipeline_mode = #tpu.pipeline_mode<synchronous>, transform_indices = @transform_1, window_bounds = array<i64: 512, 64>}, {pipeline_mode = #tpu.pipeline_mode<synchronous>, transform_indices = @transform_2, window_bounds = array<i64: 1, 64>}, {pipeline_mode = #tpu.pipeline_mode<synchronous>, transform_indices = @transform_3, window_bounds = array<i64: 1, 64>}, {pipeline_mode = #tpu.pipeline_mode<synchronous>, transform_indices = @transform_4, window_bounds = array<i64: 16, 64>}, {pipeline_mode = #tpu.pipeline_mode<synchronous>, transform_indices = @transform_5, window_bounds = array<i64: 2, 1>}]} {
    %c0 = arith.constant 0 : index
    %c0_0 = arith.constant 0 : index
    %0 = vector.load %arg1[%c0, %c0_0] : memref<32x512xbf16, #tpu.memory_space<vmem>>, vector<32x512xbf16>
    %c0_1 = arith.constant 0 : index
    %c0_2 = arith.constant 0 : index
    %1 = vector.load %arg2[%c0_1, %c0_2] : memref<512x64xbf16, #tpu.memory_space<vmem>>, vector<512x64xbf16>
    %cst = arith.constant dense<0.000000e+00> : vector<32x64xf32>
    %2 = tpu.matmul %0, %1, %cst {dimension_numbers = #tpu.dot_dimension_numbers<[1], [0], [0], [1], [0, 0, 1, 1], [], []>} : vector<32x512xbf16>, vector<512x64xbf16>, vector<32x64xf32> -> vector<32x64xf32>
    %cst_3 = arith.constant dense<0.000000e+00> : vector<64xf32>
    %3 = vector.multi_reduction <add>, %2, %cst_3 [0] : vector<32x64xf32> to vector<64xf32>
    %4 = vector.shape_cast %3 : vector<64xf32> to vector<1x64xf32>
    %cst_4 = arith.constant 3.200000e+01 : f32
    %5 = vector.broadcast %cst_4 : f32 to vector<1x64xf32>
    %6 = arith.divf %4, %5 : vector<1x64xf32>
    %7 = vector.broadcast %6 : vector<1x64xf32> to vector<32x64xf32>
    %8 = arith.subf %2, %7 : vector<32x64xf32>
    %9 = arith.mulf %8, %8 : vector<32x64xf32>
    %cst_5 = arith.constant dense<0.000000e+00> : vector<64xf32>
    %10 = vector.multi_reduction <add>, %9, %cst_5 [0] : vector<32x64xf32> to vector<64xf32>
    %11 = vector.shape_cast %10 : vector<64xf32> to vector<1x64xf32>
    %cst_6 = arith.constant 3.200000e+01 : f32
    %12 = vector.broadcast %cst_6 : f32 to vector<1x64xf32>
    %13 = arith.divf %11, %12 : vector<1x64xf32>
    %14 = vector.broadcast %6 : vector<1x64xf32> to vector<32x64xf32>
    %15 = arith.subf %2, %14 : vector<32x64xf32>
    %cst_7 = arith.constant 9.99999974E-6 : f32
    %16 = vector.broadcast %cst_7 : f32 to vector<1x64xf32>
    %17 = arith.addf %13, %16 : vector<1x64xf32>
    %18 = math.rsqrt %17 : vector<1x64xf32>
    %19 = vector.broadcast %18 : vector<1x64xf32> to vector<32x64xf32>
    %20 = arith.mulf %15, %19 : vector<32x64xf32>
    %c0_8 = arith.constant 0 : index
    %c0_9 = arith.constant 0 : index
    %21 = vector.load %arg3[%c0_8, %c0_9] : memref<1x64xf32, #tpu.memory_space<vmem>>, vector<1x64xf32>
    %22 = vector.broadcast %21 : vector<1x64xf32> to vector<32x64xf32>
    %23 = arith.mulf %20, %22 : vector<32x64xf32>
    %c0_10 = arith.constant 0 : index
    %c0_11 = arith.constant 0 : index
    %24 = vector.load %arg4[%c0_10, %c0_11] : memref<1x64xf32, #tpu.memory_space<vmem>>, vector<1x64xf32>
    %25 = vector.broadcast %24 : vector<1x64xf32> to vector<32x64xf32>
    %26 = arith.addf %23, %25 : vector<32x64xf32>
    %cst_12 = arith.constant 0.000000e+00 : f32
    %27 = vector.broadcast %cst_12 : f32 to vector<32x64xf32>
    %28 = arith.cmpf oge, %26, %27 : vector<32x64xf32>
    %cst_13 = arith.constant 2.000000e-01 : f32
    %29 = vector.broadcast %cst_13 : f32 to vector<32x64xf32>
    %30 = arith.mulf %29, %26 : vector<32x64xf32>
    %31 = arith.select %28, %26, %30 : vector<32x64xi1>, vector<32x64xf32>
    %32 = vector.shape_cast %31 : vector<32x64xf32> to vector<2x16x64xf32>
    %c0_14 = arith.constant 0 : index
    %c0_15 = arith.constant 0 : index
    %33 = vector.load %arg5[%c0_14, %c0_15] : memref<16x64xf32, #tpu.memory_space<vmem>>, vector<16x64xf32>
    %34 = vector.shape_cast %33 : vector<16x64xf32> to vector<1x16x64xf32>
    %35 = vector.broadcast %34 : vector<1x16x64xf32> to vector<2x16x64xf32>
    %36 = arith.mulf %32, %35 : vector<2x16x64xf32>
    %cst_16 = arith.constant dense<0.000000e+00> : vector<2x16xf32>
    %37 = vector.multi_reduction <add>, %36, %cst_16 [2] : vector<2x16x64xf32> to vector<2x16xf32>
    %cst_17 = arith.constant dense<0.000000e+00> : vector<2xf32>
    %38 = vector.multi_reduction <add>, %37, %cst_17 [1] : vector<2x16xf32> to vector<2xf32>
    %39 = vector.shape_cast %38 : vector<2xf32> to vector<2x1xf32>
    %cst_18 = arith.constant 5.000000e-01 : f32
    %40 = vector.broadcast %cst_18 : f32 to vector<2x1xf32>
    %41 = arith.mulf %40, %39 : vector<2x1xf32>
    %42 = math.tanh %41 : vector<2x1xf32>
    %cst_19 = arith.constant 1.000000e+00 : f32
    %43 = vector.broadcast %cst_19 : f32 to vector<2x1xf32>
    %44 = arith.addf %42, %43 : vector<2x1xf32>
    %cst_20 = arith.constant 5.000000e-01 : f32
    %45 = vector.broadcast %cst_20 : f32 to vector<2x1xf32>
    %46 = arith.mulf %45, %44 : vector<2x1xf32>
    %c0_21 = arith.constant 0 : index
    %c0_22 = arith.constant 0 : index
    %47 = vector.load %arg6[%c0_21, %c0_22] : memref<2x1xf32, #tpu.memory_space<vmem>>, vector<2x1xf32>
    tpu.vector_store %arg6[%c0_21, %c0_22], %46 {strides = array<i32>} : memref<2x1xf32, #tpu.memory_space<vmem>>, vector<2x1xf32>,
    return
  }
  func.func @transform_0(%arg0: i32) -> (i32, i32) {
    %c0_i32 = arith.constant 0 : i32
    %c0_i32_0 = arith.constant 0 : i32
    %c0_i32_1 = arith.constant 0 : i32
    return %c0_i32, %c0_i32_0 : i32, i32
  }
  func.func @transform_1(%arg0: i32) -> (i32, i32) {
    %c0_i32 = arith.constant 0 : i32
    %c0_i32_0 = arith.constant 0 : i32
    %c0_i32_1 = arith.constant 0 : i32
    return %c0_i32, %c0_i32_0 : i32, i32
  }
  func.func @transform_2(%arg0: i32) -> (i32, i32) {
    %c0_i32 = arith.constant 0 : i32
    %c0_i32_0 = arith.constant 0 : i32
    %c0_i32_1 = arith.constant 0 : i32
    return %c0_i32, %c0_i32_0 : i32, i32
  }
  func.func @transform_3(%arg0: i32) -> (i32, i32) {
    %c0_i32 = arith.constant 0 : i32
    %c0_i32_0 = arith.constant 0 : i32
    %c0_i32_1 = arith.constant 0 : i32
    return %c0_i32, %c0_i32_0 : i32, i32
  }
  func.func @transform_4(%arg0: i32) -> (i32, i32) {
    %c0_i32 = arith.constant 0 : i32
    %c0_i32_0 = arith.constant 0 : i32
    %c0_i32_1 = arith.constant 0 : i32
    return %c0_i32, %c0_i32_0 : i32, i32
  }
  func.func @transform_5(%arg0: i32) -> (i32, i32) {
    %c0_i32 = arith.constant 0 : i32
    %c0_i32_0 = arith.constant 0 : i32
    %c0_i32_1 = arith.constant 0 : i32
    return %c0_i32, %c0_i32_0 : i32, i32
  }
}

</mosaic_0001>

<bundles_post_ra>
// kernel: forward.4
= control target key start
LH: loop header
LB: loop body
LE: loop exit
PB: predicated region body
PF: predicated region fallthrough
CT: control target
= control target key end

     0   :  { %s6532_s15 = smov 0   ;;  %s7585_s0 = inlined_call_operand.vmem [shape: f32[2,33,33,12], index: 0, kind: input, shape index: {}]   ;;  %s7586_s1 = inlined_call_operand.vmem [shape: bf16[4,12,128], index: 1, kind: input, shape index: {}]   ;;  %s7587_s2 = inlined_call_operand.vmem [shape: f32[1,128], index: 2, kind: input, shape index: {}]   ;;  %s7588_s3 = inlined_call_operand.vmem [shape: f32[1,128], index: 3, kind: input, shape index: {}]   ;;  %s7589_s4 = inlined_call_operand.vmem [shape: f32[2048,128], index: 4, kind: output, shape index: {}]  }
   0x1 LB: > { %s6538_s16 = sadd.s32 4294967295, %s6505_s15   ;;  %p4790_p0 = scmp.ge.s32.totalorder %s6505_s15, 1  ;;  %s6505_s15 = sphi %s6532_s15, %s14_s15  }
   0x2   : > { %p162_p1 = scmp.lt.s32.totalorder %s6505_s15, 3 }
   0x4   : > { %p163_p2 = pnand %p4790_p0, %p162_p1 }
   0x6   : > { %166 = sbr.rel (%p163_p2) target bundleno = 750 (0x2ee), region = 36 }
   0xd   : > { %v6495_v0 = vld [vmem:[%s7586_s1 + $0x8] sm:$0x3f]   ;;  %vm787_vm0 = vcmask 1045504   ;;  %p188_p3 = scmp.lt.s32.totalorder %s6538_s16, 1  ;;  %v6496_v1 = vld [vmem:[%s7586_s1 + $0x10] sm:$0x3f]  }
   0xe   : > { %6482 = vmatprep.subr.msk.bf16.mxu1 %vm787_vm0, %v6495_v0  ;;  %v789_v2 = vsel %vm787_vm0, %v6495_v0, 0  ;;  %v6497_v3 = vld [vmem:[%s7586_s1] sm:$0x3f]   ;;  %6484 = vmatprep.subr.msk.bf16.mxu0 %vm787_vm0, %v6496_v1  ;;  %v2475_v4 = vsel %vm787_vm0, %v6496_v1, 0  ;;  %v6498_v5 = vld [vmem:[%s7586_s1 + $0x18] sm:$0x3f]  }
   0xf   : > { %5579 = vmatpush3.bf16.msra.mxu1 %v789_v2  ;;  %s189_s19 = scalar_select %p188_p3, %s6538_s16, 1  ;;  %5839 = vmatpush3.bf16.msra.mxu0 %v2475_v4  ;;  %vm594_vm1 = vcmask 97280   ;;  %v1534_v15 = vsel %vm787_vm0, %v6497_v3, 0  ;;  %v3543_v20 = vsel %vm787_vm0, %v6498_v5, 0 }
  0x10   : > { %6483 = vmatprep.subr.msk.bf16.mxu1 %vm787_vm0, %v6497_v3  ;;  %6485 = vmatprep.subr.msk.bf16.mxu0 %vm787_vm0, %v6498_v5  ;;  %s4792_s28 = sshll.u32 %s6538_s16, 7 }
  0x11   : > { %s6486_s22 = smul.u32 1320, %s189_s19  ;;  %p194_p4 = scmp.lt.s32.totalorder %s4792_s28, 255 }
  0x13   : > { %s6564_s27 = scalar_lea.vmem %s7585_s0, %s6486_s22  ;;  %s7609_s28 = smov (!%p194_p4, %s4792_s28), 255 }
  0x14   : > { %v394_v6 = vld [vmem:[%s6564_s27 + $0x1] sm:$0xff]  ;;  %v395_v7 = vld [vmem:[%s6564_s27 + $0x9] sm:$0xff]  ;;  %v396_v11 = vld [vmem:[%s6564_s27 + $0x11] sm:$0xff]  ;;  %s4793_s29 = sshll.u32 %s7609_s28, 3 }
  0x15   : > { %v4926_v8 = vld [vmem:[%s6564_s27 + $0x28] sm:$0xff]  ;;  %v522_v9 = vpack.c.bf16 %v395_v7, %v394_v6  ;;  %v4927_v10 = vld [vmem:[%s6564_s27 + $0x30] sm:$0xff]  ;;  %v397_v12 = vld [vmem:[%s6564_s27 + $0x19] sm:$0xff]  ;;  %s7403_s6 = scalar_lea.vmem %s7589_s4, %s4793_s29 }
  0x16   : > { %v2210_v13 = vpack.c.bf16 %v4927_v10, %v4926_v8  ;;  %v523_v14 = vpack.c.bf16 %v397_v12, %v396_v11  ;;  %v4928_v16 = vld [vmem:[%s6564_s27 + $0x38] sm:$0xff]  ;;  %v4929_v17 = vld [vmem:[%s6564_s27 + $0x40] sm:$0xff]  ;;  %v398_v18 = vld [vmem:[%s6564_s27 + $0x29] sm:$0xff] }
  0x17   : > { %5580 = vmatprep.mubr.msk.bf16.mxu1 %vm594_vm1, %v522_v9  ;;  %v2211_v19 = vpack.c.bf16 %v4929_v17, %v4928_v16  ;;  %v399_v21 = vld [vmem:[%s6564_s27 + $0x31] sm:$0xff]  ;;  %v400_v26 = vld [vmem:[%s6564_s27 + $0x39] sm:$0xff]  ;;  %v401_v27 = vld [vmem:[%s6564_s27 + $0x41] sm:$0xff] }
  0x18   : > { %v4930_v22 = vld [vmem:[%s6564_s27 + $0x50] sm:$0xff]  ;;  %v4931_v23 = vld [vmem:[%s6564_s27 + $0x58] sm:$0xff]  ;;  %5840 = vmatprep.mubr.msk.bf16.mxu0 %vm594_vm1, %v2210_v13  ;;  %5581 = vmatmul.mubr.msk.bf16.vlgmr.msra.gmra.mrb[0].mxu1 %vm594_vm1, %v523_v14  ;;  %v6584_v24 = vpack.c.bf16 %v399_v21, %v398_v18  ;;  %v4932_v28 = vld [vmem:[%s6564_s27 + $0x60] sm:$0xff]  ;;  %v6598_v34 = vpack.c.bf16 %v401_v27, %v400_v26 }
  0x19   : > { %v2212_v25 = vpack.c.bf16 %v4931_v23, %v4930_v22  ;;  %5709 = vmatpush3.bf16.msra.mxu1 %v1534_v15  ;;  %5841 = vmatmul.mubr.msk.bf16.vlgmr.msra.gmra.mrb[0].mxu0 %vm594_vm1, %v2211_v19  ;;  %v4933_v29 = vld [vmem:[%s6564_s27 + $0x68] sm:$0xff]  ;;  %v402_v30 = vld [vmem:[%s6564_s27 + $0x51] sm:$0xff]  ;;  %v403_v31 = vld [vmem:[%s6564_s27 + $0x59] sm:$0xff] }
  0x1a   : > { %5969 = vmatpush3.bf16.msra.mxu0 %v3543_v20  ;;  %5584 = vmatprep.mubr.msk.bf16.mxu1 %vm594_vm1, %v6584_v24  ;;  %v4934_v32 = vld [vmem:[%s6564_s27 + $0x78] sm:$0xff]  ;;  %v4935_v33 = vld [vmem:[%s6564_s27 + $0x80] sm:$0xff]  ;;  %v2213_v35 = vpack.c.bf16 %v4933_v29, %v4932_v28  ;;  %v6600_v36 = vpack.c.bf16 %v403_v31, %v402_v30  ;;  %v405_v39 = vld [vmem:[%s6564_s27 + $0x69] sm:$0xff] }
  0x1b   : > { %5844 = vmatprep.mubr.msk.bf16.mxu0 %vm594_vm1, %v2212_v25  ;;  %v2214_v37 = vpack.c.bf16 %v4935_v33, %v4934_v32  ;;  %v404_v38 = vld [vmem:[%s6564_s27 + $0x61] sm:$0xff]  ;;  %v4937_v41 = vld [vmem:[%s6564_s27 + $0x90] sm:$0xff]  ;;  %v406_v42 = vld [vmem:[%s6564_s27 + $0x79] sm:$0xff] }
  0x1c   : > { %v4936_v40 = vld [vmem:[%s6564_s27 + $0x88] sm:$0xff]  ;;  %v4938_v44 = vld [vmem:[%s6564_s27 + $0xa0] sm:$0xff]  ;;  %v6616_v46 = vpack.c.bf16 %v405_v39, %v404_v38  ;;  %v409_v51 = vld [vmem:[%s6564_s27 + $0x91] sm:$0xff] }
  0x1d   : > { %v407_v43 = vld [vmem:[%s6564_s27 + $0x81] sm:$0xff]  ;;  %v2215_v47 = vpack.c.bf16 %v4937_v41, %v4936_v40  ;;  %v408_v50 = vld [vmem:[%s6564_s27 + $0x89] sm:$0xff]  ;;  %v4941_v53 = vld [vmem:[%s6564_s27 + $0xb8] sm:$0xff] }
  0x1e   : > { %v4939_v45 = vld [vmem:[%s6564_s27 + $0xa8] sm:$0xff]  ;;  %v6618_v48 = vpack.c.bf16 %v407_v43, %v406_v42  ;;  %v4940_v52 = vld [vmem:[%s6564_s27 + $0xb0] sm:$0xff]  ;;  %v6634_v58 = vpack.c.bf16 %v409_v51, %v408_v50  ;;  %v413_v63 = vld [vmem:[%s6564_s27 + $0xb9] sm:$0xff] }
  0x1f   : > { %v2216_v49 = vpack.c.bf16 %v4939_v45, %v4938_v44  ;;  %v410_v54 = vld [vmem:[%s6564_s27 + $0xa1] sm:$0xff]  ;;  %v411_v55 = vld [vmem:[%s6564_s27 + $0xa9] sm:$0xff]  ;;  %v2217_v59 = vpack.c.bf16 %v4941_v53, %v4940_v52  ;;  %v412_v62 = vld [vmem:[%s6564_s27 + $0xb1] sm:$0xff] }
  0x20   : > { %5585 = vmatmul.mubr.msk.bf16.gmra.mrb[4].mxu1 %vm594_vm1, %v6598_v34  ;;  %v4942_v56 = vld [vmem:[%s6564_s27 + $0xc8] sm:$0xff]  ;;  %v4943_v57 = vld [vmem:[%s6564_s27 + $0xd0] sm:$0xff]  ;;  %v6636_v60 = vpack.c.bf16 %v411_v55, %v410_v54  ;;  %v4944_v0 = vld [vmem:[%s6564_s27 + $0xd8] sm:$0xff]  ;;  %v6652_v6 = vpack.c.bf16 %v413_v63, %v412_v62 }
  0x21   : > { %5845 = vmatmul.mubr.msk.bf16.gmra.mrb[4].mxu0 %vm594_vm1, %v2213_v35  ;;  %5588 = vmatprep.mubr.msk.bf16.mxu1 %vm594_vm1, %v6600_v36  ;;  %v2218_v61 = vpack.c.bf16 %v4943_v57, %v4942_v56  ;;  %v4945_v1 = vld [vmem:[%s6564_s27 + $0xe0] sm:$0xff]  ;;  %v414_v2 = vld [vmem:[%s6564_s27 + $0xc9] sm:$0xff]  ;;  %v415_v3 = vld [vmem:[%s6564_s27 + $0xd1] sm:$0xff] }
  0x22   : > { %5848 = vmatprep.mubr.msk.bf16.mxu0 %vm594_vm1, %v2214_v37  ;;  %v4946_v4 = vld [vmem:[%s6564_s27 + $0xf0] sm:$0xff]  ;;  %v4947_v5 = vld [vmem:[%s6564_s27 + $0xf8] sm:$0xff]  ;;  %v2219_v7 = vpack.c.bf16 %v4945_v1, %v4944_v0  ;;  %v6654_v8 = vpack.c.bf16 %v415_v3, %v414_v2  ;;  %v417_v11 = vld [vmem:[%s6564_s27 + $0xe1] sm:$0xff] }
  0x23   : > { %v2220_v9 = vpack.c.bf16 %v4947_v5, %v4946_v4  ;;  %v416_v10 = vld [vmem:[%s6564_s27 + $0xd9] sm:$0xff]  ;;  %v4949_v13 = vld [vmem:[%s6564_s27 + $0x108] sm:$0xff]  ;;  %v418_v14 = vld [vmem:[%s6564_s27 + $0xf1] sm:$0xff] }
  0x24   : > { %v4948_v12 = vld [vmem:[%s6564_s27 + $0x100] sm:$0xff]  ;;  %v4950_v16 = vld [vmem:[%s6564_s27 + $0x118] sm:$0xff]  ;;  %v6670_v18 = vpack.c.bf16 %v417_v11, %v416_v10  ;;  %v421_v23 = vld [vmem:[%s6564_s27 + $0x109] sm:$0xff] }
  0x25   : > { %v419_v15 = vld [vmem:[%s6564_s27 + $0xf9] sm:$0xff]  ;;  %v2221_v19 = vpack.c.bf16 %v4949_v13, %v4948_v12  ;;  %v420_v22 = vld [vmem:[%s6564_s27 + $0x101] sm:$0xff]  ;;  %v4953_v26 = vld [vmem:[%s6564_s27 + $0x130] sm:$0xff] }
  0x26   : > { %v4951_v17 = vld [vmem:[%s6564_s27 + $0x120] sm:$0xff]  ;;  %v6672_v20 = vpack.c.bf16 %v419_v15, %v418_v14  ;;  %v4952_v25 = vld [vmem:[%s6564_s27 + $0x128] sm:$0xff]  ;;  %v6688_v31 = vpack.c.bf16 %v421_v23, %v420_v22  ;;  %v425_v38 = vld [vmem:[%s6564_s27 + $0x131] sm:$0xff] }
  0x27   : > { %v2222_v21 = vpack.c.bf16 %v4951_v17, %v4950_v16  ;;  %v422_v27 = vld [vmem:[%s6564_s27 + $0x119] sm:$0xff]  ;;  %v423_v28 = vld [vmem:[%s6564_s27 + $0x121] sm:$0xff]  ;;  %v2223_v32 = vpack.c.bf16 %v4953_v26, %v4952_v25  ;;  %v424_v37 = vld [vmem:[%s6564_s27 + $0x129] sm:$0xff] }
  0x28   : > { %5589 = vmatmul.mubr.msk.bf16.gmra.mrb[8].mxu1 %vm594_vm1, %v6616_v46  ;;  %v4954_v29 = vld [vmem:[%s6564_s27 + $0x140] sm:$0xff]  ;;  %v4955_v30 = vld [vmem:[%s6564_s27 + $0x148] sm:$0xff]  ;;  %v6690_v33 = vpack.c.bf16 %v423_v28, %v422_v27  ;;  %v4956_v39 = vld [vmem:[%s6564_s27 + $0x150] sm:$0xff]  ;;  %v6706_v45 = vpack.c.bf16 %v425_v38, %v424_v37 }
  0x29   : > { %5849 = vmatmul.mubr.msk.bf16.gmra.mrb[8].mxu0 %vm594_vm1, %v2215_v47  ;;  %5592 = vmatprep.mubr.msk.bf16.mxu1 %vm594_vm1, %v6618_v48  ;;  %v2224_v35 = vpack.c.bf16 %v4955_v30, %v4954_v29  ;;  %v4957_v40 = vld [vmem:[%s6564_s27 + $0x158] sm:$0xff]  ;;  %v426_v41 = vld [vmem:[%s6564_s27 + $0x141] sm:$0xff]  ;;  %v427_v42 = vld [vmem:[%s6564_s27 + $0x149] sm:$0xff] }
  0x2a   : > { %5852 = vmatprep.mubr.msk.bf16.mxu0 %vm594_vm1, %v2216_v49  ;;  %v4958_v43 = vld [vmem:[%s6564_s27 + $0x168] sm:$0xff]  ;;  %v4959_v44 = vld [vmem:[%s6564_s27 + $0x170] sm:$0xff]  ;;  %v2225_v47 = vpack.c.bf16 %v4957_v40, %v4956_v39  ;;  %v6708_v49 = vpack.c.bf16 %v427_v42, %v426_v41  ;;  %v429_v52 = vld [vmem:[%s6564_s27 + $0x159] sm:$0xff] }
  0x2b   : > { %v2226_v50 = vpack.c.bf16 %v4959_v44, %v4958_v43  ;;  %v428_v51 = vld [vmem:[%s6564_s27 + $0x151] sm:$0xff]  ;;  %v4961_v54 = vld [vmem:[%s6564_s27 + $0x180] sm:$0xff]  ;;  %v430_v55 = vld [vmem:[%s6564_s27 + $0x169] sm:$0xff] }
  0x2c   : > { %v4960_v53 = vld [vmem:[%s6564_s27 + $0x178] sm:$0xff]  ;;  %v4962_v57 = vld [vmem:[%s6564_s27 + $0x190] sm:$0xff]  ;;  %v433_v2 = vld [vmem:[%s6564_s27 + $0x181] sm:$0xff] }
  0x2d   : > { %v431_v56 = vld [vmem:[%s6564_s27 + $0x171] sm:$0xff]  ;;  %v2227_v62 = vpack.c.bf16 %v4961_v54, %v4960_v53  ;;  %v432_v1 = vld [vmem:[%s6564_s27 + $0x179] sm:$0xff]  ;;  %v4965_v4 = vld [vmem:[%s6564_s27 + $0x1a8] sm:$0xff] }
  0x2e   : > { %v6726_v63 = vpack.c.bf16 %v431_v56, %v430_v55  ;;  %v4964_v3 = vld [vmem:[%s6564_s27 + $0x1a0] sm:$0xff]  ;;  %v434_v5 = vld [vmem:[%s6564_s27 + $0x191] sm:$0xff]  ;;  %v6742_v11 = vpack.c.bf16 %v433_v2, %v432_v1  ;;  %v437_v16 = vld [vmem:[%s6564_s27 + $0x1a9] sm:$0xff] }
  0x2f   : > { %v4967_v10 = vld [vmem:[%s6564_s27 + $0x1c0] sm:$0xff]  ;;  %v2229_v12 = vpack.c.bf16 %v4965_v4, %v4964_v3  ;;  %v4968_v17 = vld [vmem:[%s6564_s27 + $0x1c8] sm:$0xff]  ;;  %v4973_v37 = vld [vmem:[%s6564_s27 + $0x1f8] sm:$0xff] }
  0x30   : > { %5593 = vmatmul.mubr.msk.bf16.gmra.mrb[12].mxu1 %vm594_vm1, %v6634_v58  ;;  %v436_v15 = vld [vmem:[%s6564_s27 + $0x1a1] sm:$0xff]  ;;  %v440_v30 = vld [vmem:[%s6564_s27 + $0x1c9] sm:$0xff]  ;;  %v447_v55 = vld [vmem:[%s6564_s27 + $0x211] sm:$0xff] }
  0x31   : > { %5853 = vmatmul.mubr.msk.bf16.gmra.mrb[12].mxu0 %vm594_vm1, %v2217_v59  ;;  %5596 = vmatprep.mubr.msk.bf16.mxu1 %vm594_vm1, %v6636_v60  ;;  %v4963_v59 = vld [vmem:[%s6564_s27 + $0x198] sm:$0xff]  ;;  %v439_v22 = vld [vmem:[%s6564_s27 + $0x1c1] sm:$0xff]  ;;  %v6760_v26 = vpack.c.bf16 %v437_v16, %v436_v15  ;;  %v443_v39 = vld [vmem:[%s6564_s27 + $0x1e9] sm:$0xff] }
  0x32   : > { %5856 = vmatprep.mubr.msk.bf16.mxu0 %vm594_vm1, %v2218_v61  ;;  %v6724_v61 = vpack.c.bf16 %v429_v52, %v428_v51  ;;  %v2228_v0 = vpack.c.bf16 %v4963_v59, %v4962_v57  ;;  %v4970_v23 = vld [vmem:[%s6564_s27 + $0x1e0] sm:$0xff]  ;;  %v4971_v25 = vld [vmem:[%s6564_s27 + $0x1e8] sm:$0xff]  ;;  %v4975_v41 = vld [vmem:[%s6564_s27 + $0x210] sm:$0xff] }
  0x33   : > { %v2232_v29 = vpack.c.bf16 %v4971_v25, %v4970_v23  ;;  %v442_v38 = vld [vmem:[%s6564_s27 + $0x1e1] sm:$0xff]  ;;  %v445_v51 = vld [vmem:[%s6564_s27 + $0x1f9] sm:$0xff]  ;;  %v446_v54 = vld [vmem:[%s6564_s27 + $0x209] sm:$0xff] }
  0x34   : > { %v4974_v40 = vld [vmem:[%s6564_s27 + $0x208] sm:$0xff]  ;;  %v6780_v44 = vpack.c.bf16 %v443_v39, %v442_v38  ;;  %v4976_v52 = vld [vmem:[%s6564_s27 + $0x218] sm:$0xff]  ;;  %v4977_v53 = vld [vmem:[%s6564_s27 + $0x220] sm:$0xff] }
  0x35   : > { %v4978_v56 = vld [vmem:[%s6564_s27 + $0x230] sm:$0xff]  ;;  %v4979_v57 = vld [vmem:[%s6564_s27 + $0x238] sm:$0xff]  ;;  %v449_v3 = vld [vmem:[%s6564_s27 + $0x221] sm:$0xff] }
  0x36   : > { %v2236_v1 = vpack.c.bf16 %v4979_v57, %v4978_v56  ;;  %v448_v2 = vld [vmem:[%s6564_s27 + $0x219] sm:$0xff]  ;;  %v4985_v23 = vld [vmem:[%s6564_s27 + $0x270] sm:$0xff] }
  0x37   : > { %v4980_v4 = vld [vmem:[%s6564_s27 + $0x240] sm:$0xff]  ;;  %v456_v39 = vld [vmem:[%s6564_s27 + $0x269] sm:$0xff]  ;;  %v460_v57 = vld [vmem:[%s6564_s27 + $0x291] sm:$0xff] }
  0x38   : > { %5597 = vmatmul.mubr.msk.bf16.gmra.mrb[16].mxu1 %vm594_vm1, %v6652_v6  ;;  %v454_v25 = vld [vmem:[%s6564_s27 + $0x259] sm:$0xff] }
  0x39   : > { %5857 = vmatmul.mubr.msk.bf16.gmra.mrb[16].mxu0 %vm594_vm1, %v2219_v7  ;;  %5600 = vmatprep.mubr.msk.bf16.mxu1 %vm594_vm1, %v6654_v8  ;;  %v435_v7 = vld [vmem:[%s6564_s27 + $0x199] sm:$0xff] }
  0x3a   : > { %5860 = vmatprep.mubr.msk.bf16.mxu0 %vm594_vm1, %v2220_v9  ;;  %v4966_v9 = vld [vmem:[%s6564_s27 + $0x1b8] sm:$0xff]  ;;  %v6744_v13 = vpack.c.bf16 %v435_v7, %v434_v5  ;;  %v4981_v5 = vld [vmem:[%s6564_s27 + $0x248] sm:$0xff] }
  0x3b   : > { %v2230_v14 = vpack.c.bf16 %v4967_v10, %v4966_v9  ;;  %v450_v7 = vld [vmem:[%s6564_s27 + $0x231] sm:$0xff]  ;;  %v451_v9 = vld [vmem:[%s6564_s27 + $0x239] sm:$0xff]  ;;  %v2237_v15 = vpack.c.bf16 %v4981_v5, %v4980_v4 }
  0x3c   : > { %v4982_v10 = vld [vmem:[%s6564_s27 + $0x258] sm:$0xff]  ;;  %v6816_v16 = vpack.c.bf16 %v451_v9, %v450_v7  ;;  %v4994_v5 = vld [vmem:[%s6564_s27 + $0x2d0] sm:$0xff] }
  0x3d   : > { %v463_v4 = vld [vmem:[%s6564_s27 + $0x2b1] sm:$0xff] }
  0x3e   : > { %v4995_v7 = vld [vmem:[%s6564_s27 + $0x2d8] sm:$0xff] }
  0x40   : > { %5601 = vmatmul.mubr.msk.bf16.gmra.mrb[20].mxu1 %vm594_vm1, %v6670_v18 }
  0x41   : > { %5861 = vmatmul.mubr.msk.bf16.gmra.mrb[20].mxu0 %vm594_vm1, %v2221_v19  ;;  %5604 = vmatprep.mubr.msk.bf16.mxu1 %vm594_vm1, %v6672_v20  ;;  %v4969_v19 = vld [vmem:[%s6564_s27 + $0x1d0] sm:$0xff] }
  0x42   : > { %5864 = vmatprep.mubr.msk.bf16.mxu0 %vm594_vm1, %v2222_v21  ;;  %v438_v21 = vld [vmem:[%s6564_s27 + $0x1b9] sm:$0xff]  ;;  %v2231_v27 = vpack.c.bf16 %v4969_v19, %v4968_v17  ;;  %v452_v19 = vld [vmem:[%s6564_s27 + $0x241] sm:$0xff] }
  0x43   : > { %v6762_v28 = vpack.c.bf16 %v439_v22, %v438_v21  ;;  %v453_v21 = vld [vmem:[%s6564_s27 + $0x249] sm:$0xff] }
  0x44   : > { %v4984_v22 = vld [vmem:[%s6564_s27 + $0x268] sm:$0xff] }
  0x48   : > { %5605 = vmatmul.mubr.msk.bf16.gmra.mrb[24].mxu1 %vm594_vm1, %v6688_v31 }
  0x49   : > { %5865 = vmatmul.mubr.msk.bf16.gmra.mrb[24].mxu0 %vm594_vm1, %v2223_v32  ;;  %5608 = vmatprep.mubr.msk.bf16.mxu1 %vm594_vm1, %v6690_v33  ;;  %v441_v32 = vld [vmem:[%s6564_s27 + $0x1d1] sm:$0xff] }
  0x4a   : > { %5868 = vmatprep.mubr.msk.bf16.mxu0 %vm594_vm1, %v2224_v35  ;;  %v4972_v35 = vld [vmem:[%s6564_s27 + $0x1f0] sm:$0xff]  ;;  %v6778_v42 = vpack.c.bf16 %v441_v32, %v440_v30  ;;  %v4987_v30 = vld [vmem:[%s6564_s27 + $0x288] sm:$0xff]  ;;  %v6832_v32 = vpack.c.bf16 %v453_v21, %v452_v19  ;;  %v4996_v21 = vld [vmem:[%s6564_s27 + $0x2e0] sm:$0xff] }
  0x4b   : > { %v2233_v43 = vpack.c.bf16 %v4973_v37, %v4972_v35  ;;  %v2239_v35 = vpack.c.bf16 %v4985_v23, %v4984_v22  ;;  %v465_v19 = vld [vmem:[%s6564_s27 + $0x2c1] sm:$0xff]  ;;  %v466_v23 = vld [vmem:[%s6564_s27 + $0x2d1] sm:$0xff] }
  0x4c   : > { %v4997_v22 = vld [vmem:[%s6564_s27 + $0x2e8] sm:$0xff] }
  0x50   : > { %5609 = vmatmul.mubr.msk.bf16.gmra.mrb[28].mxu1 %vm594_vm1, %v6706_v45 }
  0x51   : > { %5869 = vmatmul.mubr.msk.bf16.gmra.mrb[28].mxu0 %vm594_vm1, %v2225_v47  ;;  %5612 = vmatprep.mubr.msk.bf16.mxu1 %vm594_vm1, %v6708_v49  ;;  %v2234_v47 = vpack.c.bf16 %v4975_v41, %v4974_v40  ;;  %v457_v40 = vld [vmem:[%s6564_s27 + $0x271] sm:$0xff] }
  0x52   : > { %5872 = vmatprep.mubr.msk.bf16.mxu0 %vm594_vm1, %v2226_v50  ;;  %v444_v50 = vld [vmem:[%s6564_s27 + $0x1f1] sm:$0xff] }
  0x53   : > { %v6796_v59 = vpack.c.bf16 %v445_v51, %v444_v50  ;;  %v4988_v41 = vld [vmem:[%s6564_s27 + $0x290] sm:$0xff]  ;;  %v4990_v51 = vld [vmem:[%s6564_s27 + $0x2a8] sm:$0xff] }
  0x54   : > { %v459_v50 = vld [vmem:[%s6564_s27 + $0x289] sm:$0xff] }
  0x58   : > { %5613 = vmatmul.mubr.msk.bf16.gmra.mrb[32].mxu1 %vm594_vm1, %v6724_v61 }
  0x59   : > { %5873 = vmatmul.mubr.msk.bf16.gmra.mrb[32].mxu0 %vm594_vm1, %v2227_v62  ;;  %5616 = vmatprep.mubr.msk.bf16.mxu1 %vm594_vm1, %v6726_v63  ;;  %v2235_v62 = vpack.c.bf16 %v4977_v53, %v4976_v52  ;;  %v4991_v52 = vld [vmem:[%s6564_s27 + $0x2b0] sm:$0xff]  ;;  %v6850_v53 = vpack.c.bf16 %v457_v40, %v456_v39  ;;  %v468_v40 = vld [vmem:[%s6564_s27 + $0x2e1] sm:$0xff] }
  0x5a   : > { %5876 = vmatprep.mubr.msk.bf16.mxu0 %vm594_vm1, %v2228_v0  ;;  %v6798_v0 = vpack.c.bf16 %v447_v55, %v446_v54  ;;  %v2242_v56 = vpack.c.bf16 %v4991_v52, %v4990_v51  ;;  %v471_v51 = vld [vmem:[%s6564_s27 + $0x301] sm:$0xff] }
  0x5b   : > { %v5002_v52 = vld [vmem:[%s6564_s27 + $0x320] sm:$0xff] }
  0x60   : > { %5617 = vmatmul.mubr.msk.bf16.gmra.mrb[36].mxu1 %vm594_vm1, %v6742_v11 }
  0x61   : > { %5877 = vmatmul.mubr.msk.bf16.gmra.mrb[36].mxu0 %vm594_vm1, %v2229_v12  ;;  %5620 = vmatprep.mubr.msk.bf16.mxu1 %vm594_vm1, %v6744_v13  ;;  %v4983_v12 = vld [vmem:[%s6564_s27 + $0x260] sm:$0xff] }
  0x62   : > { %5880 = vmatprep.mubr.msk.bf16.mxu0 %vm594_vm1, %v2230_v14  ;;  %v6814_v14 = vpack.c.bf16 %v449_v3, %v448_v2  ;;  %v2238_v17 = vpack.c.bf16 %v4983_v12, %v4982_v10  ;;  %v4993_v2 = vld [vmem:[%s6564_s27 + $0x2c0] sm:$0xff]  ;;  %v462_v3 = vld [vmem:[%s6564_s27 + $0x2a9] sm:$0xff] }
  0x63   : > { %v6870_v12 = vpack.c.bf16 %v463_v4, %v462_v3  ;;  %v473_v3 = vld [vmem:[%s6564_s27 + $0x311] sm:$0xff] }
  0x64   : > { %v5004_v4 = vld [vmem:[%s6564_s27 + $0x330] sm:$0xff] }
  0x68   : > { %5621 = vmatmul.mubr.msk.bf16.gmra.mrb[40].mxu1 %vm594_vm1, %v6760_v26 }
  0x69   : > { %5881 = vmatmul.mubr.msk.bf16.gmra.mrb[40].mxu0 %vm594_vm1, %v2231_v27  ;;  %5624 = vmatprep.mubr.msk.bf16.mxu1 %vm594_vm1, %v6762_v28  ;;  %v455_v27 = vld [vmem:[%s6564_s27 + $0x261] sm:$0xff] }
  0x6a   : > { %5884 = vmatprep.mubr.msk.bf16.mxu0 %vm594_vm1, %v2232_v29  ;;  %v4986_v29 = vld [vmem:[%s6564_s27 + $0x280] sm:$0xff]  ;;  %v6834_v37 = vpack.c.bf16 %v455_v27, %v454_v25  ;;  %v4998_v27 = vld [vmem:[%s6564_s27 + $0x2f8] sm:$0xff] }
  0x6b   : > { %v2240_v38 = vpack.c.bf16 %v4987_v30, %v4986_v29  ;;  %v467_v25 = vld [vmem:[%s6564_s27 + $0x2d9] sm:$0xff] }
  0x6c   : > { %v4999_v29 = vld [vmem:[%s6564_s27 + $0x300] sm:$0xff] }
  0x6d   : > { %v2246_v39 = vpack.c.bf16 %v4999_v29, %v4998_v27  ;;  %v477_v27 = vld [vmem:[%s6564_s27 + $0x339] sm:$0xff] }
  0x6e   : > { %v5008_v29 = vld [vmem:[%s6564_s27 + $0x358] sm:$0xff] }
  0x70   : > { %5625 = vmatmul.mubr.msk.bf16.gmra.mrb[44].mxu1 %vm594_vm1, %v6778_v42 }
  0x71   : > { %5885 = vmatmul.mubr.msk.bf16.gmra.mrb[44].mxu0 %vm594_vm1, %v2233_v43  ;;  %5628 = vmatprep.mubr.msk.bf16.mxu1 %vm594_vm1, %v6780_v44  ;;  %v4989_v43 = vld [vmem:[%s6564_s27 + $0x298] sm:$0xff] }
  0x72   : > { %5888 = vmatprep.mubr.msk.bf16.mxu0 %vm594_vm1, %v2234_v47  ;;  %v458_v47 = vld [vmem:[%s6564_s27 + $0x281] sm:$0xff]  ;;  %v2241_v54 = vpack.c.bf16 %v4989_v43, %v4988_v41  ;;  %v469_v41 = vld [vmem:[%s6564_s27 + $0x2e9] sm:$0xff] }
  0x73   : > { %v6852_v55 = vpack.c.bf16 %v459_v50, %v458_v47  ;;  %v5000_v43 = vld [vmem:[%s6564_s27 + $0x308] sm:$0xff]  ;;  %v5001_v47 = vld [vmem:[%s6564_s27 + $0x310] sm:$0xff]  ;;  %v470_v50 = vld [vmem:[%s6564_s27 + $0x2f9] sm:$0xff] }
  0x78   : > { %5629 = vmatmul.mubr.msk.bf16.gmra.mrb[48].mxu1 %vm594_vm1, %v6796_v59 }
  0x79   : > { %5889 = vmatmul.mubr.msk.bf16.gmra.mrb[48].mxu0 %vm594_vm1, %v2235_v62  ;;  %5632 = vmatprep.mubr.msk.bf16.mxu1 %vm594_vm1, %v6798_v0  ;;  %v461_v62 = vld [vmem:[%s6564_s27 + $0x299] sm:$0xff] }
  0x7a   : > { %5892 = vmatprep.mubr.msk.bf16.mxu0 %vm594_vm1, %v2236_v1  ;;  %v4992_v1 = vld [vmem:[%s6564_s27 + $0x2b8] sm:$0xff]  ;;  %v6868_v9 = vpack.c.bf16 %v461_v62, %v460_v57  ;;  %v2247_v57 = vpack.c.bf16 %v5001_v47, %v5000_v43  ;;  %v6906_v62 = vpack.c.bf16 %v471_v51, %v470_v50 }
  0x7b   : > { %v2243_v10 = vpack.c.bf16 %v4993_v2, %v4992_v1  ;;  %v472_v2 = vld [vmem:[%s6564_s27 + $0x309] sm:$0xff]  ;;  %v5011_v43 = vld [vmem:[%s6564_s27 + $0x378] sm:$0xff] }
  0x80   : > { %5633 = vmatmul.mubr.msk.bf16.gmra.mrb[52].mxu1 %vm594_vm1, %v6814_v14 }
  0x81   : > { %5893 = vmatmul.mubr.msk.bf16.gmra.mrb[52].mxu0 %vm594_vm1, %v2237_v15  ;;  %5636 = vmatprep.mubr.msk.bf16.mxu1 %vm594_vm1, %v6816_v16  ;;  %v2244_v15 = vpack.c.bf16 %v4995_v7, %v4994_v5  ;;  %v5005_v5 = vld [vmem:[%s6564_s27 + $0x338] sm:$0xff]  ;;  %v474_v7 = vld [vmem:[%s6564_s27 + $0x321] sm:$0xff] }
  0x82   : > { %5896 = vmatprep.mubr.msk.bf16.mxu0 %vm594_vm1, %v2238_v17  ;;  %v464_v17 = vld [vmem:[%s6564_s27 + $0x2b9] sm:$0xff] }
  0x83   : > { %v6886_v30 = vpack.c.bf16 %v465_v19, %v464_v17  ;;  %v5007_v17 = vld [vmem:[%s6564_s27 + $0x350] sm:$0xff]  ;;  %v6922_v19 = vpack.c.bf16 %v473_v3, %v472_v2  ;;  %v5013_v2 = vld [vmem:[%s6564_s27 + $0x388] sm:$0xff] }
  0x84   : > { %v482_v3 = vld [vmem:[%s6564_s27 + $0x371] sm:$0xff] }
  0x88   : > { %5637 = vmatmul.mubr.msk.bf16.gmra.mrb[56].mxu1 %vm594_vm1, %v6832_v32 }
  0x89   : > { %5897 = vmatmul.mubr.msk.bf16.gmra.mrb[56].mxu0 %vm594_vm1, %v2239_v35  ;;  %5640 = vmatprep.mubr.msk.bf16.mxu1 %vm594_vm1, %v6834_v37  ;;  %v2245_v35 = vpack.c.bf16 %v4997_v22, %v4996_v21  ;;  %v2249_v21 = vpack.c.bf16 %v5005_v5, %v5004_v4  ;;  %v483_v4 = vld [vmem:[%s6564_s27 + $0x379] sm:$0xff] }
  0x8a   : > { %5900 = vmatprep.mubr.msk.bf16.mxu0 %vm594_vm1, %v2240_v38  ;;  %v6888_v38 = vpack.c.bf16 %v467_v25, %v466_v23  ;;  %v476_v25 = vld [vmem:[%s6564_s27 + $0x331] sm:$0xff] }
  0x8b   : > { %v6940_v47 = vpack.c.bf16 %v477_v27, %v476_v25  ;;  %v5014_v5 = vld [vmem:[%s6564_s27 + $0x398] sm:$0xff]  ;;  %v485_v25 = vld [vmem:[%s6564_s27 + $0x389] sm:$0xff] }
  0x8c   : > { %v5016_v27 = vld [vmem:[%s6564_s27 + $0x3a8] sm:$0xff] }
  0x90   : > { %5641 = vmatmul.mubr.msk.bf16.gmra.mrb[60].mxu1 %vm594_vm1, %v6850_v53 }
  0x91   : > { %5901 = vmatmul.mubr.msk.bf16.gmra.mrb[60].mxu0 %vm594_vm1, %v2241_v54  ;;  %5644 = vmatprep.mubr.msk.bf16.mxu1 %vm594_vm1, %v6852_v55  ;;  %v5003_v54 = vld [vmem:[%s6564_s27 + $0x328] sm:$0xff] }
  0x92   : > { %5904 = vmatprep.mubr.msk.bf16.mxu0 %vm594_vm1, %v2242_v56  ;;  %v6904_v56 = vpack.c.bf16 %v469_v41, %v468_v40  ;;  %v2248_v1 = vpack.c.bf16 %v5003_v54, %v5002_v52  ;;  %v479_v40 = vld [vmem:[%s6564_s27 + $0x351] sm:$0xff]  ;;  %v480_v54 = vld [vmem:[%s6564_s27 + $0x359] sm:$0xff] }
  0x93   : > { %v5010_v41 = vld [vmem:[%s6564_s27 + $0x370] sm:$0xff] }
  0x94   : > { %v2252_v52 = vpack.c.bf16 %v5011_v43, %v5010_v41  ;;  %v5019_v41 = vld [vmem:[%s6564_s27 + $0x3c8] sm:$0xff] }
  0x98   : > { %5645 = vmatmul.mubr.msk.bf16.gmra.mrb[64].mxu1 %vm594_vm1, %v6868_v9 }
  0x99   : > { %5905 = vmatmul.mubr.msk.bf16.gmra.mrb[64].mxu0 %vm594_vm1, %v2243_v10  ;;  %5648 = vmatprep.mubr.msk.bf16.mxu1 %vm594_vm1, %v6870_v12  ;;  %v475_v10 = vld [vmem:[%s6564_s27 + $0x329] sm:$0xff] }
  0x9a   : > { %5908 = vmatprep.mubr.msk.bf16.mxu0 %vm594_vm1, %v2244_v15  ;;  %v5006_v15 = vld [vmem:[%s6564_s27 + $0x348] sm:$0xff]  ;;  %v6924_v22 = vpack.c.bf16 %v475_v10, %v474_v7  ;;  %v5015_v7 = vld [vmem:[%s6564_s27 + $0x3a0] sm:$0xff] }
  0x9b   : > { %v2250_v23 = vpack.c.bf16 %v5007_v17, %v5006_v15  ;;  %v6960_v17 = vpack.c.bf16 %v483_v4, %v482_v3  ;;  %v5021_v3 = vld [vmem:[%s6564_s27 + $0x3d8] sm:$0xff]  ;;  %v490_v4 = vld [vmem:[%s6564_s27 + $0x3c1] sm:$0xff] }
  0xa0   : > { %5649 = vmatmul.mubr.msk.bf16.gmra.mrb[68].mxu1 %vm594_vm1, %v6886_v30 }
  0xa1   : > { %5909 = vmatmul.mubr.msk.bf16.gmra.mrb[68].mxu0 %vm594_vm1, %v2245_v35  ;;  %5652 = vmatprep.mubr.msk.bf16.mxu1 %vm594_vm1, %v6888_v38  ;;  %v5009_v35 = vld [vmem:[%s6564_s27 + $0x360] sm:$0xff] }
  0xa2   : > { %5912 = vmatprep.mubr.msk.bf16.mxu0 %vm594_vm1, %v2246_v39  ;;  %v478_v39 = vld [vmem:[%s6564_s27 + $0x349] sm:$0xff]  ;;  %v2251_v50 = vpack.c.bf16 %v5009_v35, %v5008_v29  ;;  %v486_v35 = vld [vmem:[%s6564_s27 + $0x399] sm:$0xff] }
  0xa3   : > { %v6942_v51 = vpack.c.bf16 %v479_v40, %v478_v39  ;;  %v5017_v29 = vld [vmem:[%s6564_s27 + $0x3b0] sm:$0xff]  ;;  %v487_v39 = vld [vmem:[%s6564_s27 + $0x3a1] sm:$0xff] }
  0xa4   : > { %v5018_v40 = vld [vmem:[%s6564_s27 + $0x3c0] sm:$0xff] }
  0xa8   : > { %5653 = vmatmul.mubr.msk.bf16.gmra.mrb[72].mxu1 %vm594_vm1, %v6904_v56 }
  0xa9   : > { %5913 = vmatmul.mubr.msk.bf16.gmra.mrb[72].mxu0 %vm594_vm1, %v2247_v57  ;;  %5656 = vmatprep.mubr.msk.bf16.mxu1 %vm594_vm1, %v6906_v62  ;;  %v481_v57 = vld [vmem:[%s6564_s27 + $0x361] sm:$0xff] }
  0xaa   : > { %5916 = vmatprep.mubr.msk.bf16.mxu0 %vm594_vm1, %v2248_v1  ;;  %v5012_v1 = vld [vmem:[%s6564_s27 + $0x380] sm:$0xff]  ;;  %v6958_v10 = vpack.c.bf16 %v481_v57, %v480_v54  ;;  %v2256_v54 = vpack.c.bf16 %v5019_v41, %v5018_v40  ;;  %v488_v57 = vld [vmem:[%s6564_s27 + $0x3a9] sm:$0xff] }
  0xab   : > { %v2253_v15 = vpack.c.bf16 %v5013_v2, %v5012_v1  ;;  %v489_v1 = vld [vmem:[%s6564_s27 + $0x3b1] sm:$0xff]  ;;  %v5025_v40 = vld [vmem:[%s6564_s27 + $0x400] sm:$0xff]  ;;  %v494_v41 = vld [vmem:[%s6564_s27 + $0x3e9] sm:$0xff] }
  0xac   : > { %v5020_v2 = vld [vmem:[%s6564_s27 + $0x3d0] sm:$0xff] }
  0xb0   : > { %5657 = vmatmul.mubr.msk.bf16.gmra.mrb[76].mxu1 %vm594_vm1, %v6922_v19 }
  0xb1   : > { %5917 = vmatmul.mubr.msk.bf16.gmra.mrb[76].mxu0 %vm594_vm1, %v2249_v21  ;;  %5660 = vmatprep.mubr.msk.bf16.mxu1 %vm594_vm1, %v6924_v22  ;;  %v2254_v21 = vpack.c.bf16 %v5015_v7, %v5014_v5  ;;  %v491_v5 = vld [vmem:[%s6564_s27 + $0x3c9] sm:$0xff] }
  0xb2   : > { %5920 = vmatprep.mubr.msk.bf16.mxu0 %vm594_vm1, %v2250_v23  ;;  %v484_v23 = vld [vmem:[%s6564_s27 + $0x381] sm:$0xff] }
  0xb3   : > { %v6976_v43 = vpack.c.bf16 %v485_v25, %v484_v23  ;;  %v5022_v7 = vld [vmem:[%s6564_s27 + $0x3e8] sm:$0xff]  ;;  %v2257_v23 = vpack.c.bf16 %v5021_v3, %v5020_v2  ;;  %v6996_v25 = vpack.c.bf16 %v491_v5, %v490_v4  ;;  %v496_v5 = vld [vmem:[%s6564_s27 + $0x3f9] sm:$0xff] }
  0xb8   : > { %5661 = vmatmul.mubr.msk.bf16.gmra.mrb[80].mxu1 %vm594_vm1, %v6940_v47 }
  0xb9   : > { %5921 = vmatmul.mubr.msk.bf16.gmra.mrb[80].mxu0 %vm594_vm1, %v2251_v50  ;;  %5664 = vmatprep.mubr.msk.bf16.mxu1 %vm594_vm1, %v6942_v51  ;;  %v2255_v50 = vpack.c.bf16 %v5017_v29, %v5016_v27  ;;  %v492_v29 = vld [vmem:[%s6564_s27 + $0x3d1] sm:$0xff] }
  0xba   : > { %5924 = vmatprep.mubr.msk.bf16.mxu0 %vm594_vm1, %v2252_v52  ;;  %v6978_v52 = vpack.c.bf16 %v487_v39, %v486_v35  ;;  %v493_v35 = vld [vmem:[%s6564_s27 + $0x3d9] sm:$0xff] }
  0xbb   : > { %v5024_v39 = vld [vmem:[%s6564_s27 + $0x3f8] sm:$0xff] }
  0xbc   : > { %v2259_v2 = vpack.c.bf16 %v5025_v40, %v5024_v39  ;;  %v5031_v39 = vld [vmem:[%s6564_s27 + $0x440] sm:$0xff] }
  0xc0   : > { %5665 = vmatmul.mubr.msk.bf16.gmra.mrb[84].mxu1 %vm594_vm1, %v6958_v10 }
  0xc1   : > { %5925 = vmatmul.mubr.msk.bf16.gmra.mrb[84].mxu0 %vm594_vm1, %v2253_v15  ;;  %5668 = vmatprep.mubr.msk.bf16.mxu1 %vm594_vm1, %v6960_v17  ;;  %v5023_v15 = vld [vmem:[%s6564_s27 + $0x3f0] sm:$0xff] }
  0xc2   : > { %5928 = vmatprep.mubr.msk.bf16.mxu0 %vm594_vm1, %v2254_v21  ;;  %v6994_v21 = vpack.c.bf16 %v489_v1, %v488_v57  ;;  %v2258_v27 = vpack.c.bf16 %v5023_v15, %v5022_v7  ;;  %v5027_v57 = vld [vmem:[%s6564_s27 + $0x418] sm:$0xff]  ;;  %v7012_v1 = vpack.c.bf16 %v493_v35, %v492_v29  ;;  %v497_v7 = vld [vmem:[%s6564_s27 + $0x401] sm:$0xff] }
  0xc3   : > { %v5028_v15 = vld [vmem:[%s6564_s27 + $0x420] sm:$0xff]  ;;  %v5030_v35 = vld [vmem:[%s6564_s27 + $0x438] sm:$0xff]  ;;  %v7030_v40 = vpack.c.bf16 %v497_v7, %v496_v5  ;;  %v5033_v5 = vld [vmem:[%s6564_s27 + $0x450] sm:$0xff] }
  0xc4   : > { %v499_v29 = vld [vmem:[%s6564_s27 + $0x419] sm:$0xff] }
  0xc5   : > { %7597 = vst [vmem:[#allocation3_spill] sm:$0xff] %v7030_v40  ;;  %v502_v7 = vld [vmem:[%s6564_s27 + $0x439] sm:$0xff] }
  0xc8   : > { %5669 = vmatmul.mubr.msk.bf16.gmra.mrb[88].mxu1 %vm594_vm1, %v6976_v43 }
  0xc9   : > { %5929 = vmatmul.mubr.msk.bf16.gmra.mrb[88].mxu0 %vm594_vm1, %v2255_v50  ;;  %5672 = vmatprep.mubr.msk.bf16.mxu1 %vm594_vm1, %v6978_v52  ;;  %v495_v50 = vld [vmem:[%s6564_s27 + $0x3f1] sm:$0xff] }
  0xca   : > { %5932 = vmatprep.mubr.msk.bf16.mxu0 %vm594_vm1, %v2256_v54  ;;  %v5026_v54 = vld [vmem:[%s6564_s27 + $0x410] sm:$0xff]  ;;  %v7014_v3 = vpack.c.bf16 %v495_v50, %v494_v41 }
  0xcb   : > { %v2260_v4 = vpack.c.bf16 %v5027_v57, %v5026_v54  ;;  %v2262_v54 = vpack.c.bf16 %v5031_v39, %v5030_v35  ;;  %v500_v57 = vld [vmem:[%s6564_s27 + $0x421] sm:$0xff] }
  0xcc   : > { %7596 = vst [vmem:[#allocation2_spill] sm:$0xff] %v7014_v3 }
  0xd0   : > { %5673 = vmatmul.mubr.msk.bf16.gmra.mrb[92].mxu1 %vm594_vm1, %v6994_v21 }
  0xd1   : > { %5933 = vmatmul.mubr.msk.bf16.gmra.mrb[92].mxu0 %vm594_vm1, %v2257_v23  ;;  %5676 = vmatprep.mubr.msk.bf16.mxu1 %vm594_vm1, %v6996_v25  ;;  %v5029_v23 = vld [vmem:[%s6564_s27 + $0x428] sm:$0xff] }
  0xd2   : > { %5936 = vmatprep.mubr.msk.bf16.mxu0 %vm594_vm1, %v2258_v27  ;;  %v498_v27 = vld [vmem:[%s6564_s27 + $0x411] sm:$0xff]  ;;  %v2261_v41 = vpack.c.bf16 %v5029_v23, %v5028_v15  ;;  %v503_v15 = vld [vmem:[%s6564_s27 + $0x441] sm:$0xff] }
  0xd3   : > { %v7032_v50 = vpack.c.bf16 %v499_v29, %v498_v27  ;;  %v5034_v23 = vld [vmem:[%s6564_s27 + $0x460] sm:$0xff]  ;;  %v5035_v27 = vld [vmem:[%s6564_s27 + $0x468] sm:$0xff]  ;;  %v7050_v39 = vpack.c.bf16 %v503_v15, %v502_v7  ;;  %v5039_v7 = vld [vmem:[%s6564_s27 + $0x490] sm:$0xff] }
  0xd5   : > { %7598 = vst [vmem:[#allocation4_spill] sm:$0xff] %v7032_v50  ;;  %7600 = vst [vmem:[#allocation6_spill] sm:$0xff] %v7050_v39 }
  0xd8   : > { %5677 = vmatmul.mubr.msk.bf16.gmra.mrb[96].mxu1 %vm594_vm1, %v7012_v1 }
  0xd9   : > { %5937 = vmatmul.mubr.msk.bf16.gmra.mrb[96].mxu0 %vm594_vm1, %v2259_v2  ;;  %5680 = vmatprep.mubr.msk.bf16.mxu1 %vm594_vm1, %v7014_v3  ;;  %v501_v2 = vld [vmem:[%s6564_s27 + $0x429] sm:$0xff] }
  0xda   : > { %5940 = vmatprep.mubr.msk.bf16.mxu0 %vm594_vm1, %v2260_v4  ;;  %v5032_v4 = vld [vmem:[%s6564_s27 + $0x448] sm:$0xff]  ;;  %v7048_v29 = vpack.c.bf16 %v501_v2, %v500_v57  ;;  %v5037_v57 = vld [vmem:[%s6564_s27 + $0x478] sm:$0xff] }
  0xdb   : > { %v2263_v35 = vpack.c.bf16 %v5033_v5, %v5032_v4  ;;  %v506_v2 = vld [vmem:[%s6564_s27 + $0x461] sm:$0xff]  ;;  %v507_v4 = vld [vmem:[%s6564_s27 + $0x469] sm:$0xff] }
  0xdc   : > { %7599 = vst [vmem:[#allocation5_spill] sm:$0xff] %v7048_v29  ;;  %v5038_v5 = vld [vmem:[%s6564_s27 + $0x488] sm:$0xff] }
  0xdd   : > { %v5045_v3 = vld [vmem:[%s6564_s27 + $0x4c8] sm:$0xff] }
  0xe0   : > { %5681 = vmatmul.mubr.msk.bf16.gmra.mrb[100].mxu1 %vm594_vm1, %v7030_v40  ;;  %v5036_v40 = vld [vmem:[%s6564_s27 + $0x470] sm:$0xff] }
  0xe1   : > { %5941 = vmatmul.mubr.msk.bf16.gmra.mrb[100].mxu0 %vm594_vm1, %v2261_v41  ;;  %5684 = vmatprep.mubr.msk.bf16.mxu1 %vm594_vm1, %v7032_v50  ;;  %v2264_v41 = vpack.c.bf16 %v5035_v27, %v5034_v23  ;;  %v505_v50 = vld [vmem:[%s6564_s27 + $0x451] sm:$0xff]  ;;  %v2265_v23 = vpack.c.bf16 %v5037_v57, %v5036_v40  ;;  %v578_v27 = vpack.c.bf16 %v507_v4, %v506_v2  ;;  %v510_v40 = vld [vmem:[%s6564_s27 + $0x489] sm:$0xff] }
  0xe2   : > { %5944 = vmatprep.mubr.msk.bf16.mxu0 %vm594_vm1, %v2262_v54  ;;  %v504_v54 = vld [vmem:[%s6564_s27 + $0x449] sm:$0xff]  ;;  %v5043_v2 = vld [vmem:[%s6564_s27 + $0x4b8] sm:$0xff] }
  0xe3   : > { %v7066_v15 = vpack.c.bf16 %v505_v50, %v504_v54  ;;  %v5041_v50 = vld [vmem:[%s6564_s27 + $0x4a0] sm:$0xff]  ;;  %v511_v54 = vld [vmem:[%s6564_s27 + $0x491] sm:$0xff] }
  0xe4   : > { %v5042_v57 = vld [vmem:[%s6564_s27 + $0x4b0] sm:$0xff] }
  0xe5   : > { %7601 = vst [vmem:[#allocation7_spill] sm:$0xff] %v7066_v15 }
  0xe8   : > { %5685 = vmatmul.mubr.msk.bf16.gmra.mrb[104].mxu1 %vm594_vm1, %v7048_v29  ;;  %v5040_v29 = vld [vmem:[%s6564_s27 + $0x498] sm:$0xff] }
  0xe9   : > { %5945 = vmatmul.mubr.msk.bf16.gmra.mrb[104].mxu0 %vm594_vm1, %v2263_v35  ;;  %5688 = vmatprep.mubr.msk.bf16.mxu1 %vm594_vm1, %v7050_v39  ;;  %v2266_v35 = vpack.c.bf16 %v5039_v7, %v5038_v5  ;;  %v509_v39 = vld [vmem:[%s6564_s27 + $0x479] sm:$0xff]  ;;  %v2267_v5 = vpack.c.bf16 %v5041_v50, %v5040_v29  ;;  %v580_v7 = vpack.c.bf16 %v511_v54, %v510_v40 }
  0xea   : > { %5948 = vmatprep.mubr.msk.bf16.mxu0 %vm594_vm1, %v2264_v41  ;;  %v508_v41 = vld [vmem:[%s6564_s27 + $0x471] sm:$0xff]  ;;  %v515_v29 = vld [vmem:[%s6564_s27 + $0x4b9] sm:$0xff] }
  0xeb   : > { %v579_v4 = vpack.c.bf16 %v509_v39, %v508_v41  ;;  %v514_v39 = vld [vmem:[%s6564_s27 + $0x4b1] sm:$0xff]  ;;  %v5047_v50 = vld [vmem:[%s6564_s27 + $0x4e0] sm:$0xff] }
  0xec   : > { %v5046_v41 = vld [vmem:[%s6564_s27 + $0x4d8] sm:$0xff] }
  0xf0   : > { %5689 = vmatmul.mubr.msk.bf16.gmra.mrb[108].mxu1 %vm594_vm1, %v7066_v15  ;;  %v5044_v15 = vld [vmem:[%s6564_s27 + $0x4c0] sm:$0xff] }
  0xf1   : > { %5949 = vmatmul.mubr.msk.bf16.gmra.mrb[108].mxu0 %vm594_vm1, %v2265_v23  ;;  %5692 = vmatprep.mubr.msk.bf16.mxu1 %vm594_vm1, %v578_v27  ;;  %v2268_v23 = vpack.c.bf16 %v5043_v2, %v5042_v57  ;;  %v512_v27 = vld [vmem:[%s6564_s27 + $0x499] sm:$0xff]  ;;  %v2269_v54 = vpack.c.bf16 %v5045_v3, %v5044_v15  ;;  %v582_v57 = vpack.c.bf16 %v515_v29, %v514_v39  ;;  %v519_v3 = vld [vmem:[%s6564_s27 + $0x4e1] sm:$0xff] }
  0xf2   : > { %5952 = vmatprep.mubr.msk.bf16.mxu0 %vm594_vm1, %v2266_v35  ;;  %v513_v35 = vld [vmem:[%s6564_s27 + $0x4a1] sm:$0xff]  ;;  %v2270_v2 = vpack.c.bf16 %v5047_v50, %v5046_v41 }
  0xf3   : > { %v581_v40 = vpack.c.bf16 %v513_v35, %v512_v27  ;;  %v518_v27 = vld [vmem:[%s6564_s27 + $0x4d9] sm:$0xff]  ;;  %v5051_v35 = vld [vmem:[%s6564_s27 + $0x508] sm:$0xff] }
  0xf4   : > { %v5050_v15 = vld [vmem:[%s6564_s27 + $0x500] sm:$0xff]  ;;  %v584_v41 = vpack.c.bf16 %v519_v3, %v518_v27  ;;  %v202_v3 = vld [vmem:[%s6564_s27 + $0x10] sm:$0xff] }
  0xf5   : > { %v2272_v50 = vpack.c.bf16 %v5051_v35, %v5050_v15  ;;  %v203_v15 = vld [vmem:[%s6564_s27 + $0x18] sm:$0xff]  ;;  %v204_v35 = vld [vmem:[%s6564_s27 + $0x28] sm:$0xff] }
  0xf8   : > { %5693 = vmatmul.mubr.msk.bf16.gmra.mrb[112].mxu1 %vm594_vm1, %v579_v4  ;;  %v516_v4 = vld [vmem:[%s6564_s27 + $0x4c1] sm:$0xff] }
  0xf9   : > { %5953 = vmatmul.mubr.msk.bf16.gmra.mrb[112].mxu0 %vm594_vm1, %v2267_v5  ;;  %5696 = vmatprep.mubr.msk.bf16.mxu1 %vm594_vm1, %v580_v7  ;;  %v517_v5 = vld [vmem:[%s6564_s27 + $0x4c9] sm:$0xff] }
  0xfa   : > { %5956 = vmatprep.mubr.msk.bf16.mxu0 %vm594_vm1, %v2268_v23  ;;  %v5048_v7 = vld [vmem:[%s6564_s27 + $0x4e8] sm:$0xff]  ;;  %v5049_v23 = vld [vmem:[%s6564_s27 + $0x4f0] sm:$0xff]  ;;  %v583_v39 = vpack.c.bf16 %v517_v5, %v516_v4  ;;  %v200_v4 = vld [vmem:[%s6564_s27] sm:$0xff] }
  0xfb   : > { %v2271_v29 = vpack.c.bf16 %v5049_v23, %v5048_v7  ;;  %v201_v5 = vld [vmem:[%s6564_s27 + $0x8] sm:$0xff] }
  0xfc   : > { %v328_v27 = vpack.c.bf16 %v201_v5, %v200_v4  ;;  %v211_v4 = vld [vmem:[%s6564_s27 + $0x68] sm:$0xff]  ;;  %v213_v5 = vld [vmem:[%s6564_s27 + $0x80] sm:$0xff] }
 0x100   : > { %5697 = vmatmul.mubr.msk.bf16.gmra.mrb[116].mxu1 %vm594_vm1, %v581_v40  ;;  %v520_v40 = vld [vmem:[%s6564_s27 + $0x4e9] sm:$0xff] }
 0x101   : > { %5957 = vmatmul.mubr.msk.bf16.gmra.mrb[116].mxu0 %vm594_vm1, %v2269_v54  ;;  %5700 = vmatprep.mubr.msk.bf16.mxu1 %vm594_vm1, %v582_v57  ;;  %v521_v54 = vld [vmem:[%s6564_s27 + $0x4f1] sm:$0xff] }
 0x102   : > { %5960 = vmatprep.mubr.msk.bf16.mxu0 %vm594_vm1, %v2270_v2  ;;  %v5052_v57 = vld [vmem:[%s6564_s27 + $0x510] sm:$0xff]  ;;  %v5053_v2 = vld [vmem:[%s6564_s27 + $0x518] sm:$0xff]  ;;  %v585_v7 = vpack.c.bf16 %v521_v54, %v520_v40  ;;  %v207_v40 = vld [vmem:[%s6564_s27 + $0x40] sm:$0xff] }
 0x103   : > { %v2273_v23 = vpack.c.bf16 %v5053_v2, %v5052_v57  ;;  %v209_v54 = vld [vmem:[%s6564_s27 + $0x58] sm:$0xff] }
 0x108   : > { %5701 = vmatmul.mubr.msk.bf16.gmra.mrb[120].mxu1 %vm594_vm1, %v583_v39  ;;  %v205_v39 = vld [vmem:[%s6564_s27 + $0x30] sm:$0xff] }
 0x109   : > { %5961 = vmatmul.mubr.msk.bf16.gmra.mrb[120].mxu0 %vm594_vm1, %v2271_v29  ;;  %5704 = vmatprep.mubr.msk.bf16.mxu1 %vm594_vm1, %v584_v41  ;;  %v329_v29 = vpack.c.bf16 %v203_v15, %v202_v3  ;;  %v330_v41 = vpack.c.bf16 %v205_v39, %v204_v35  ;;  %v217_v3 = vld [vmem:[%s6564_s27 + $0xa8] sm:$0xff]  ;;  %v219_v39 = vld [vmem:[%s6564_s27 + $0xb8] sm:$0xff] }
 0x10a   : > { %5964 = vmatprep.mubr.msk.bf16.mxu0 %vm594_vm1, %v2272_v50  ;;  %v206_v50 = vld [vmem:[%s6564_s27 + $0x38] sm:$0xff] }
 0x10b   : > { %v331_v57 = vpack.c.bf16 %v207_v40, %v206_v50  ;;  %v223_v40 = vld [vmem:[%s6564_s27 + $0xe0] sm:$0xff] }
 0x110   : > { %5705 = vmatmul.mubr.msk.bf16.gmra.mrb[124].mxu1 %vm594_vm1, %v585_v7 }
 0x111   : > { %5965 = vmatmul.mubr.msk.bf16.gmra.mrb[124].mxu0 %vm594_vm1, %v2273_v23  ;;  %5710 = vmatprep.mubr.msk.bf16.mxu1 %vm594_vm1, %v328_v27  ;;  %v215_v27 = vld [vmem:[%s6564_s27 + $0x90] sm:$0xff] }
 0x112   : > { %5970 = vmatprep.mubr.msk.bf16.mxu0 %vm594_vm1, %v6584_v24  ;;  %v208_v24 = vld [vmem:[%s6564_s27 + $0x50] sm:$0xff] }
 0x113   : > { %v332_v2 = vpack.c.bf16 %v209_v54, %v208_v24  ;;  %v225_v24 = vld [vmem:[%s6564_s27 + $0xf8] sm:$0xff] }
 0x118   : > { %5711 = vmatmul.mubr.msk.bf16.vlgmr.msra.gmra.mrb[0].mxu1 %vm594_vm1, %v329_v29  ;;  %v221_v29 = vld [vmem:[%s6564_s27 + $0xd0] sm:$0xff] }
 0x119   : > { %5971 = vmatmul.mubr.msk.bf16.vlgmr.msra.gmra.mrb[0].mxu0 %vm594_vm1, %v6598_v34  ;;  %5714 = vmatprep.mubr.msk.bf16.mxu1 %vm594_vm1, %v330_v41  ;;  %v210_v34 = vld [vmem:[%s6564_s27 + $0x60] sm:$0xff] }
 0x11a   : > { %5974 = vmatprep.mubr.msk.bf16.mxu0 %vm594_vm1, %v6600_v36  ;;  %v212_v36 = vld [vmem:[%s6564_s27 + $0x78] sm:$0xff]  ;;  %v333_v7 = vpack.c.bf16 %v211_v4, %v210_v34  ;;  %v229_v34 = vld [vmem:[%s6564_s27 + $0x120] sm:$0xff] }
 0x11b   : > { %v334_v23 = vpack.c.bf16 %v213_v5, %v212_v36  ;;  %v231_v5 = vld [vmem:[%s6564_s27 + $0x130] sm:$0xff] }
 0x120   : > { %5715 = vmatmul.mubr.msk.bf16.gmra.mrb[4].mxu1 %vm594_vm1, %v331_v57 }
 0x121   : > { %5975 = vmatmul.mubr.msk.bf16.gmra.mrb[4].mxu0 %vm594_vm1, %v6616_v46  ;;  %5718 = vmatprep.mubr.msk.bf16.mxu1 %vm594_vm1, %v332_v2  ;;  %v214_v46 = vld [vmem:[%s6564_s27 + $0x88] sm:$0xff] }
 0x122   : > { %5978 = vmatprep.mubr.msk.bf16.mxu0 %vm594_vm1, %v6618_v48  ;;  %v216_v48 = vld [vmem:[%s6564_s27 + $0xa0] sm:$0xff]  ;;  %v335_v15 = vpack.c.bf16 %v215_v27, %v214_v46  ;;  %v227_v2 = vld [vmem:[%s6564_s27 + $0x108] sm:$0xff]  ;;  %v235_v27 = vld [vmem:[%s6564_s27 + $0x158] sm:$0xff] }
 0x123   : > { %v336_v35 = vpack.c.bf16 %v217_v3, %v216_v48  ;;  %v237_v48 = vld [vmem:[%s6564_s27 + $0x170] sm:$0xff] }
 0x128   : > { %5719 = vmatmul.mubr.msk.bf16.gmra.mrb[8].mxu1 %vm594_vm1, %v333_v7  ;;  %v233_v7 = vld [vmem:[%s6564_s27 + $0x148] sm:$0xff] }
 0x129   : > { %5979 = vmatmul.mubr.msk.bf16.gmra.mrb[8].mxu0 %vm594_vm1, %v6634_v58  ;;  %5722 = vmatprep.mubr.msk.bf16.mxu1 %vm594_vm1, %v334_v23  ;;  %v218_v58 = vld [vmem:[%s6564_s27 + $0xb0] sm:$0xff] }
 0x12a   : > { %5982 = vmatprep.mubr.msk.bf16.mxu0 %vm594_vm1, %v6636_v60  ;;  %v220_v60 = vld [vmem:[%s6564_s27 + $0xc8] sm:$0xff]  ;;  %v337_v41 = vpack.c.bf16 %v219_v39, %v218_v58  ;;  %v241_v58 = vld [vmem:[%s6564_s27 + $0x198] sm:$0xff] }
 0x12b   : > { %v338_v50 = vpack.c.bf16 %v221_v29, %v220_v60  ;;  %v243_v29 = vld [vmem:[%s6564_s27 + $0x1a8] sm:$0xff] }
 0x130   : > { %5723 = vmatmul.mubr.msk.bf16.gmra.mrb[12].mxu1 %vm594_vm1, %v335_v15 }
 0x131   : > { %5983 = vmatmul.mubr.msk.bf16.gmra.mrb[12].mxu0 %vm594_vm1, %v6652_v6  ;;  %5726 = vmatprep.mubr.msk.bf16.mxu1 %vm594_vm1, %v336_v35  ;;  %v222_v6 = vld [vmem:[%s6564_s27 + $0xd8] sm:$0xff]  ;;  %v239_v35 = vld [vmem:[%s6564_s27 + $0x180] sm:$0xff] }
 0x132   : > { %5986 = vmatprep.mubr.msk.bf16.mxu0 %vm594_vm1, %v6654_v8  ;;  %v224_v8 = vld [vmem:[%s6564_s27 + $0xf0] sm:$0xff]  ;;  %v339_v54 = vpack.c.bf16 %v223_v40, %v222_v6 }
 0x133   : > { %v340_v57 = vpack.c.bf16 %v225_v24, %v224_v8  ;;  %v247_v40 = vld [vmem:[%s6564_s27 + $0x1d0] sm:$0xff]  ;;  %v249_v8 = vld [vmem:[%s6564_s27 + $0x1e8] sm:$0xff] }
 0x138   : > { %5727 = vmatmul.mubr.msk.bf16.gmra.mrb[16].mxu1 %vm594_vm1, %v337_v41  ;;  %v245_v41 = vld [vmem:[%s6564_s27 + $0x1c0] sm:$0xff] }
 0x139   : > { %5987 = vmatmul.mubr.msk.bf16.gmra.mrb[16].mxu0 %vm594_vm1, %v6670_v18  ;;  %5730 = vmatprep.mubr.msk.bf16.mxu1 %vm594_vm1, %v338_v50  ;;  %v226_v18 = vld [vmem:[%s6564_s27 + $0x100] sm:$0xff] }
 0x13a   : > { %5990 = vmatprep.mubr.msk.bf16.mxu0 %vm594_vm1, %v6672_v20  ;;  %v228_v20 = vld [vmem:[%s6564_s27 + $0x118] sm:$0xff]  ;;  %v341_v4 = vpack.c.bf16 %v227_v2, %v226_v18  ;;  %v253_v18 = vld [vmem:[%s6564_s27 + $0x210] sm:$0xff] }
 0x13b   : > { %v342_v36 = vpack.c.bf16 %v229_v34, %v228_v20  ;;  %v255_v34 = vld [vmem:[%s6564_s27 + $0x220] sm:$0xff] }
 0x140   : > { %5731 = vmatmul.mubr.msk.bf16.gmra.mrb[20].mxu1 %vm594_vm1, %v339_v54 }
 0x141   : > { %5991 = vmatmul.mubr.msk.bf16.gmra.mrb[20].mxu0 %vm594_vm1, %v6688_v31  ;;  %5734 = vmatprep.mubr.msk.bf16.mxu1 %vm594_vm1, %v340_v57  ;;  %v230_v31 = vld [vmem:[%s6564_s27 + $0x128] sm:$0xff]  ;;  %v251_v57 = vld [vmem:[%s6564_s27 + $0x1f8] sm:$0xff] }
 0x142   : > { %5994 = vmatprep.mubr.msk.bf16.mxu0 %vm594_vm1, %v6690_v33  ;;  %v232_v33 = vld [vmem:[%s6564_s27 + $0x140] sm:$0xff]  ;;  %v343_v23 = vpack.c.bf16 %v231_v5, %v230_v31  ;;  %v259_v5 = vld [vmem:[%s6564_s27 + $0x248] sm:$0xff] }
 0x143   : > { %v344_v46 = vpack.c.bf16 %v233_v7, %v232_v33  ;;  %v261_v33 = vld [vmem:[%s6564_s27 + $0x260] sm:$0xff] }
 0x148   : > { %5735 = vmatmul.mubr.msk.bf16.gmra.mrb[24].mxu1 %vm594_vm1, %v341_v4  ;;  %v257_v4 = vld [vmem:[%s6564_s27 + $0x238] sm:$0xff] }
 0x149   : > { %5995 = vmatmul.mubr.msk.bf16.gmra.mrb[24].mxu0 %vm594_vm1, %v6706_v45  ;;  %5738 = vmatprep.mubr.msk.bf16.mxu1 %vm594_vm1, %v342_v36  ;;  %v234_v45 = vld [vmem:[%s6564_s27 + $0x150] sm:$0xff] }
 0x14a   : > { %5998 = vmatprep.mubr.msk.bf16.mxu0 %vm594_vm1, %v6708_v49  ;;  %v236_v49 = vld [vmem:[%s6564_s27 + $0x168] sm:$0xff]  ;;  %v345_v3 = vpack.c.bf16 %v235_v27, %v234_v45 }
 0x14b   : > { %v346_v15 = vpack.c.bf16 %v237_v48, %v236_v49  ;;  %v265_v45 = vld [vmem:[%s6564_s27 + $0x288] sm:$0xff]  ;;  %v267_v48 = vld [vmem:[%s6564_s27 + $0x298] sm:$0xff] }
 0x150   : > { %5739 = vmatmul.mubr.msk.bf16.gmra.mrb[28].mxu1 %vm594_vm1, %v343_v23 }
 0x151   : > { %5999 = vmatmul.mubr.msk.bf16.gmra.mrb[28].mxu0 %vm594_vm1, %v6724_v61  ;;  %5742 = vmatprep.mubr.msk.bf16.mxu1 %vm594_vm1, %v344_v46  ;;  %v238_v61 = vld [vmem:[%s6564_s27 + $0x178] sm:$0xff]  ;;  %v263_v46 = vld [vmem:[%s6564_s27 + $0x270] sm:$0xff] }
 0x152   : > { %6002 = vmatprep.mubr.msk.bf16.mxu0 %vm594_vm1, %v6726_v63  ;;  %v240_v63 = vld [vmem:[%s6564_s27 + $0x190] sm:$0xff]  ;;  %v347_v39 = vpack.c.bf16 %v239_v35, %v238_v61  ;;  %v271_v35 = vld [vmem:[%s6564_s27 + $0x2c0] sm:$0xff] }
 0x153   : > { %v348_v60 = vpack.c.bf16 %v241_v58, %v240_v63  ;;  %v273_v63 = vld [vmem:[%s6564_s27 + $0x2d8] sm:$0xff] }
 0x158   : > { %5743 = vmatmul.mubr.msk.bf16.gmra.mrb[32].mxu1 %vm594_vm1, %v345_v3  ;;  %v269_v3 = vld [vmem:[%s6564_s27 + $0x2b0] sm:$0xff] }
 0x159   : > { %6003 = vmatmul.mubr.msk.bf16.gmra.mrb[32].mxu0 %vm594_vm1, %v6742_v11  ;;  %5746 = vmatprep.mubr.msk.bf16.mxu1 %vm594_vm1, %v346_v15  ;;  %v242_v11 = vld [vmem:[%s6564_s27 + $0x1a0] sm:$0xff] }
 0x15a   : > { %6006 = vmatprep.mubr.msk.bf16.mxu0 %vm594_vm1, %v6744_v13  ;;  %v244_v13 = vld [vmem:[%s6564_s27 + $0x1b8] sm:$0xff]  ;;  %v349_v50 = vpack.c.bf16 %v243_v29, %v242_v11  ;;  %v277_v11 = vld [vmem:[%s6564_s27 + $0x300] sm:$0xff] }
 0x15b   : > { %v350_v6 = vpack.c.bf16 %v245_v41, %v244_v13  ;;  %v279_v41 = vld [vmem:[%s6564_s27 + $0x310] sm:$0xff] }
 0x160   : > { %5747 = vmatmul.mubr.msk.bf16.gmra.mrb[36].mxu1 %vm594_vm1, %v347_v39 }
 0x161   : > { %6007 = vmatmul.mubr.msk.bf16.gmra.mrb[36].mxu0 %vm594_vm1, %v6760_v26  ;;  %5750 = vmatprep.mubr.msk.bf16.mxu1 %vm594_vm1, %v348_v60  ;;  %v246_v26 = vld [vmem:[%s6564_s27 + $0x1c8] sm:$0xff] }
 0x162   : > { %6010 = vmatprep.mubr.msk.bf16.mxu0 %vm594_vm1, %v6762_v28  ;;  %v248_v28 = vld [vmem:[%s6564_s27 + $0x1e0] sm:$0xff]  ;;  %v351_v24 = vpack.c.bf16 %v247_v40, %v246_v26  ;;  %v275_v60 = vld [vmem:[%s6564_s27 + $0x2e8] sm:$0xff]  ;;  %v283_v40 = vld [vmem:[%s6564_s27 + $0x338] sm:$0xff] }
 0x163   : > { %v352_v54 = vpack.c.bf16 %v249_v8, %v248_v28  ;;  %v285_v28 = vld [vmem:[%s6564_s27 + $0x350] sm:$0xff] }
 0x168   : > { %5751 = vmatmul.mubr.msk.bf16.gmra.mrb[40].mxu1 %vm594_vm1, %v349_v50  ;;  %v281_v50 = vld [vmem:[%s6564_s27 + $0x328] sm:$0xff] }
 0x169   : > { %6011 = vmatmul.mubr.msk.bf16.gmra.mrb[40].mxu0 %vm594_vm1, %v6778_v42  ;;  %5754 = vmatprep.mubr.msk.bf16.mxu1 %vm594_vm1, %v350_v6  ;;  %v250_v42 = vld [vmem:[%s6564_s27 + $0x1f0] sm:$0xff] }
 0x16a   : > { %6014 = vmatprep.mubr.msk.bf16.mxu0 %vm594_vm1, %v6780_v44  ;;  %v252_v44 = vld [vmem:[%s6564_s27 + $0x208] sm:$0xff]  ;;  %v353_v2 = vpack.c.bf16 %v251_v57, %v250_v42  ;;  %v289_v42 = vld [vmem:[%s6564_s27 + $0x378] sm:$0xff] }
 0x16b   : > { %v354_v20 = vpack.c.bf16 %v253_v18, %v252_v44  ;;  %v291_v18 = vld [vmem:[%s6564_s27 + $0x388] sm:$0xff] }
 0x170   : > { %5755 = vmatmul.mubr.msk.bf16.gmra.mrb[44].mxu1 %vm594_vm1, %v351_v24 }
 0x171   : > { %6015 = vmatmul.mubr.msk.bf16.gmra.mrb[44].mxu0 %vm594_vm1, %v6796_v59  ;;  %5758 = vmatprep.mubr.msk.bf16.mxu1 %vm594_vm1, %v352_v54  ;;  %v254_v59 = vld [vmem:[%s6564_s27 + $0x218] sm:$0xff]  ;;  %v287_v54 = vld [vmem:[%s6564_s27 + $0x360] sm:$0xff] }
 0x172   : > { %6018 = vmatprep.mubr.msk.bf16.mxu0 %vm594_vm1, %v6798_v0  ;;  %v256_v0 = vld [vmem:[%s6564_s27 + $0x230] sm:$0xff]  ;;  %v355_v36 = vpack.c.bf16 %v255_v34, %v254_v59 }
 0x173   : > { %v356_v31 = vpack.c.bf16 %v257_v4, %v256_v0  ;;  %v295_v34 = vld [vmem:[%s6564_s27 + $0x3b0] sm:$0xff]  ;;  %v297_v0 = vld [vmem:[%s6564_s27 + $0x3c8] sm:$0xff] }
 0x178   : > { %5759 = vmatmul.mubr.msk.bf16.gmra.mrb[48].mxu1 %vm594_vm1, %v353_v2  ;;  %v293_v2 = vld [vmem:[%s6564_s27 + $0x3a0] sm:$0xff] }
 0x179   : > { %6019 = vmatmul.mubr.msk.bf16.gmra.mrb[48].mxu0 %vm594_vm1, %v6814_v14  ;;  %5762 = vmatprep.mubr.msk.bf16.mxu1 %vm594_vm1, %v354_v20  ;;  %v258_v14 = vld [vmem:[%s6564_s27 + $0x240] sm:$0xff] }
 0x17a   : > { %6022 = vmatprep.mubr.msk.bf16.mxu0 %vm594_vm1, %v6816_v16  ;;  %v260_v16 = vld [vmem:[%s6564_s27 + $0x258] sm:$0xff]  ;;  %v357_v7 = vpack.c.bf16 %v259_v5, %v258_v14  ;;  %v7602_v14 = vld [vmem:[#allocation2_spill] sm:$0xff]  ;;  %v301_v5 = vld [vmem:[%s6564_s27 + $0x3f0] sm:$0xff] }
 0x17b   : > { %v358_v23 = vpack.c.bf16 %v261_v33, %v260_v16 }
 0x180   : > { %5763 = vmatmul.mubr.msk.bf16.gmra.mrb[52].mxu1 %vm594_vm1, %v355_v36 }
 0x181   : > { %6023 = vmatmul.mubr.msk.bf16.gmra.mrb[52].mxu0 %vm594_vm1, %v6832_v32  ;;  %5766 = vmatprep.mubr.msk.bf16.mxu1 %vm594_vm1, %v356_v31  ;;  %v262_v32 = vld [vmem:[%s6564_s27 + $0x268] sm:$0xff]  ;;  %v299_v31 = vld [vmem:[%s6564_s27 + $0x3d8] sm:$0xff] }
 0x182   : > { %6026 = vmatprep.mubr.msk.bf16.mxu0 %vm594_vm1, %v6834_v37  ;;  %v264_v37 = vld [vmem:[%s6564_s27 + $0x280] sm:$0xff]  ;;  %v359_v27 = vpack.c.bf16 %v263_v46, %v262_v32  ;;  %v7604_v32 = vld [vmem:[#allocation4_spill] sm:$0xff] }
 0x183   : > { %v360_v49 = vpack.c.bf16 %v265_v45, %v264_v37  ;;  %v304_v46 = vld [vmem:[%s6564_s27 + $0x410] sm:$0xff]  ;;  %v305_v37 = vld [vmem:[%s6564_s27 + $0x418] sm:$0xff] }
 0x188   : > { %5767 = vmatmul.mubr.msk.bf16.gmra.mrb[56].mxu1 %vm594_vm1, %v357_v7  ;;  %v7603_v7 = vld [vmem:[#allocation3_spill] sm:$0xff] }
 0x189   : > { %6027 = vmatmul.mubr.msk.bf16.gmra.mrb[56].mxu0 %vm594_vm1, %v6850_v53  ;;  %5770 = vmatprep.mubr.msk.bf16.mxu1 %vm594_vm1, %v358_v23  ;;  %v266_v53 = vld [vmem:[%s6564_s27 + $0x290] sm:$0xff]  ;;  %v303_v23 = vld [vmem:[%s6564_s27 + $0x400] sm:$0xff] }
 0x18a   : > { %6030 = vmatprep.mubr.msk.bf16.mxu0 %vm594_vm1, %v6852_v55  ;;  %v268_v55 = vld [vmem:[%s6564_s27 + $0x2a8] sm:$0xff]  ;;  %v361_v15 = vpack.c.bf16 %v267_v48, %v266_v53  ;;  %v306_v53 = vld [vmem:[%s6564_s27 + $0x420] sm:$0xff] }
 0x18b   : > { %v362_v61 = vpack.c.bf16 %v269_v3, %v268_v55  ;;  %v307_v48 = vld [vmem:[%s6564_s27 + $0x428] sm:$0xff]  ;;  %v7606_v55 = vld [vmem:[#allocation6_spill] sm:$0xff]  ;;  %v308_v3 = vld [vmem:[%s6564_s27 + $0x438] sm:$0xff] }
 0x190   : > { %5771 = vmatmul.mubr.msk.bf16.gmra.mrb[60].mxu1 %vm594_vm1, %v359_v27  ;;  %v380_v27 = vpack.c.bf16 %v305_v37, %v304_v46 }
 0x191   : > { %6031 = vmatmul.mubr.msk.bf16.gmra.mrb[60].mxu0 %vm594_vm1, %v6868_v9  ;;  %5774 = vmatprep.mubr.msk.bf16.mxu1 %vm594_vm1, %v360_v49  ;;  %v270_v9 = vld [vmem:[%s6564_s27 + $0x2b8] sm:$0xff] }
 0x192   : > { %6034 = vmatprep.mubr.msk.bf16.mxu0 %vm594_vm1, %v6870_v12  ;;  %v272_v12 = vld [vmem:[%s6564_s27 + $0x2d0] sm:$0xff]  ;;  %v363_v58 = vpack.c.bf16 %v271_v35, %v270_v9  ;;  %v7605_v49 = vld [vmem:[#allocation5_spill] sm:$0xff]  ;;  %v381_v35 = vpack.c.bf16 %v307_v48, %v306_v53 }
 0x193   : > { %v364_v39 = vpack.c.bf16 %v273_v63, %v272_v12  ;;  %v5230_v9 = vld [vmem:[%s6564_s27 + $0x469] sm:$0xff] }
 0x198   : > { %5775 = vmatmul.mubr.msk.bf16.gmra.mrb[64].mxu1 %vm594_vm1, %v361_v15  ;;  %v309_v15 = vld [vmem:[%s6564_s27 + $0x440] sm:$0xff] }
 0x199   : > { %6035 = vmatmul.mubr.msk.bf16.gmra.mrb[64].mxu0 %vm594_vm1, %v6886_v30  ;;  %5778 = vmatprep.mubr.msk.bf16.mxu1 %vm594_vm1, %v362_v61  ;;  %v274_v30 = vld [vmem:[%s6564_s27 + $0x2e0] sm:$0xff]  ;;  %v382_v12 = vpack.c.bf16 %v309_v15, %v308_v3 }
 0x19a   : > { %6038 = vmatprep.mubr.msk.bf16.mxu0 %vm594_vm1, %v6888_v38  ;;  %v276_v38 = vld [vmem:[%s6564_s27 + $0x2f8] sm:$0xff]  ;;  %v365_v29 = vpack.c.bf16 %v275_v60, %v274_v30  ;;  %v5229_v61 = vld [vmem:[%s6564_s27 + $0x461] sm:$0xff]  ;;  %v311_v30 = vld [vmem:[%s6564_s27 + $0x450] sm:$0xff] }
 0x19b   : > { %v366_v13 = vpack.c.bf16 %v277_v11, %v276_v38  ;;  %v3332_v63 = vpack.c.bf16 %v5230_v9, %v5229_v61  ;;  %v5231_v60 = vld [vmem:[%s6564_s27 + $0x471] sm:$0xff]  ;;  %v5232_v38 = vld [vmem:[%s6564_s27 + $0x479] sm:$0xff] }
 0x19c   : > { %v312_v11 = vld [vmem:[%s6564_s27 + $0x460] sm:$0xff] }
 0x1a0   : > { %5779 = vmatmul.mubr.msk.bf16.gmra.mrb[68].mxu1 %vm594_vm1, %v363_v58  ;;  %v7607_v58 = vld [vmem:[#allocation7_spill] sm:$0xff] }
 0x1a1   : > { %6039 = vmatmul.mubr.msk.bf16.gmra.mrb[68].mxu0 %vm594_vm1, %v6904_v56  ;;  %5782 = vmatprep.mubr.msk.bf16.mxu1 %vm594_vm1, %v364_v39  ;;  %v278_v56 = vld [vmem:[%s6564_s27 + $0x308] sm:$0xff] }
 0x1a2   : > { %6042 = vmatprep.mubr.msk.bf16.mxu0 %vm594_vm1, %v6906_v62  ;;  %v280_v62 = vld [vmem:[%s6564_s27 + $0x320] sm:$0xff]  ;;  %v367_v6 = vpack.c.bf16 %v279_v41, %v278_v56  ;;  %v310_v39 = vld [vmem:[%s6564_s27 + $0x448] sm:$0xff]  ;;  %v5234_v41 = vld [vmem:[%s6564_s27 + $0x491] sm:$0xff] }
 0x1a3   : > { %v368_v26 = vpack.c.bf16 %v281_v50, %v280_v62  ;;  %v5233_v56 = vld [vmem:[%s6564_s27 + $0x489] sm:$0xff] }
 0x1a8   : > { %5783 = vmatmul.mubr.msk.bf16.gmra.mrb[72].mxu1 %vm594_vm1, %v365_v29  ;;  %v313_v29 = vld [vmem:[%s6564_s27 + $0x468] sm:$0xff] }
 0x1a9   : > { %6043 = vmatmul.mubr.msk.bf16.gmra.mrb[72].mxu0 %vm594_vm1, %v6922_v19  ;;  %5786 = vmatprep.mubr.msk.bf16.mxu1 %vm594_vm1, %v366_v13  ;;  %v282_v19 = vld [vmem:[%s6564_s27 + $0x330] sm:$0xff] }
 0x1aa   : > { %6046 = vmatprep.mubr.msk.bf16.mxu0 %vm594_vm1, %v6924_v22  ;;  %v284_v22 = vld [vmem:[%s6564_s27 + $0x348] sm:$0xff]  ;;  %v369_v8 = vpack.c.bf16 %v283_v40, %v282_v19 }
 0x1ab   : > { %v370_v24 = vpack.c.bf16 %v285_v28, %v284_v22  ;;  %v3333_v22 = vpack.c.bf16 %v5232_v38, %v5231_v60  ;;  %v384_v28 = vpack.c.bf16 %v313_v29, %v312_v11  ;;  %v320_v60 = vld [vmem:[%s6564_s27 + $0x4b0] sm:$0xff]  ;;  %v321_v38 = vld [vmem:[%s6564_s27 + $0x4b8] sm:$0xff] }
 0x1b0   : > { %5787 = vmatmul.mubr.msk.bf16.gmra.mrb[76].mxu1 %vm594_vm1, %v367_v6  ;;  %v383_v6 = vpack.c.bf16 %v311_v30, %v310_v39  ;;  %v5240_v30 = vld [vmem:[%s6564_s27 + $0x4c9] sm:$0xff] }
 0x1b1   : > { %6047 = vmatmul.mubr.msk.bf16.gmra.mrb[76].mxu0 %vm594_vm1, %v6940_v47  ;;  %5790 = vmatprep.mubr.msk.bf16.mxu1 %vm594_vm1, %v368_v26  ;;  %v286_v47 = vld [vmem:[%s6564_s27 + $0x358] sm:$0xff] }
 0x1b2   : > { %6050 = vmatprep.mubr.msk.bf16.mxu0 %vm594_vm1, %v6942_v51  ;;  %v288_v51 = vld [vmem:[%s6564_s27 + $0x370] sm:$0xff]  ;;  %v371_v57 = vpack.c.bf16 %v287_v54, %v286_v47  ;;  %v3334_v54 = vpack.c.bf16 %v5234_v41, %v5233_v56  ;;  %v5242_v56 = vld [vmem:[%s6564_s27 + $0x4e1] sm:$0xff] }
 0x1b3   : > { %v372_v44 = vpack.c.bf16 %v289_v42, %v288_v51 }
 0x1b8   : > { %5791 = vmatmul.mubr.msk.bf16.gmra.mrb[80].mxu1 %vm594_vm1, %v369_v8 }
 0x1b9   : > { %6051 = vmatmul.mubr.msk.bf16.gmra.mrb[80].mxu0 %vm594_vm1, %v6958_v10  ;;  %5794 = vmatprep.mubr.msk.bf16.mxu1 %vm594_vm1, %v370_v24  ;;  %v290_v10 = vld [vmem:[%s6564_s27 + $0x380] sm:$0xff] }
 0x1ba   : > { %6054 = vmatprep.mubr.msk.bf16.mxu0 %vm594_vm1, %v6960_v17  ;;  %v292_v17 = vld [vmem:[%s6564_s27 + $0x398] sm:$0xff]  ;;  %v373_v20 = vpack.c.bf16 %v291_v18, %v290_v10 }
 0x1bb   : > { %v374_v59 = vpack.c.bf16 %v293_v2, %v292_v17  ;;  %v314_v2 = vld [vmem:[%s6564_s27 + $0x470] sm:$0xff] }
 0x1c0   : > { %5795 = vmatmul.mubr.msk.bf16.gmra.mrb[84].mxu1 %vm594_vm1, %v371_v57 }
 0x1c1   : > { %6055 = vmatmul.mubr.msk.bf16.gmra.mrb[84].mxu0 %vm594_vm1, %v6976_v43  ;;  %5798 = vmatprep.mubr.msk.bf16.mxu1 %vm594_vm1, %v372_v44  ;;  %v294_v43 = vld [vmem:[%s6564_s27 + $0x3a8] sm:$0xff] }
 0x1c2   : > { %6058 = vmatprep.mubr.msk.bf16.mxu0 %vm594_vm1, %v6978_v52  ;;  %v296_v52 = vld [vmem:[%s6564_s27 + $0x3c0] sm:$0xff]  ;;  %v375_v4 = vpack.c.bf16 %v295_v34, %v294_v43 }
 0x1c3   : > { %v376_v36 = vpack.c.bf16 %v297_v0, %v296_v52  ;;  %v5236_v52 = vld [vmem:[%s6564_s27 + $0x4a1] sm:$0xff] }
 0x1c4   : > { %v316_v0 = vld [vmem:[%s6564_s27 + $0x488] sm:$0xff] }
 0x1c8   : > { %5799 = vmatmul.mubr.msk.bf16.gmra.mrb[88].mxu1 %vm594_vm1, %v373_v20  ;;  %v315_v20 = vld [vmem:[%s6564_s27 + $0x478] sm:$0xff] }
 0x1c9   : > { %6059 = vmatmul.mubr.msk.bf16.gmra.mrb[88].mxu0 %vm594_vm1, %v6994_v21  ;;  %5802 = vmatprep.mubr.msk.bf16.mxu1 %vm594_vm1, %v374_v59  ;;  %v298_v21 = vld [vmem:[%s6564_s27 + $0x3d0] sm:$0xff]  ;;  %v5235_v59 = vld [vmem:[%s6564_s27 + $0x499] sm:$0xff] }
 0x1ca   : > { %6062 = vmatprep.mubr.msk.bf16.mxu0 %vm594_vm1, %v6996_v25  ;;  %v300_v25 = vld [vmem:[%s6564_s27 + $0x3e8] sm:$0xff]  ;;  %v377_v16 = vpack.c.bf16 %v299_v31, %v298_v21  ;;  %v5237_v31 = vld [vmem:[%s6564_s27 + $0x4b1] sm:$0xff] }
 0x1cb   : > { %v378_v33 = vpack.c.bf16 %v301_v5, %v300_v25 }
 0x1d0   : > { %5803 = vmatmul.mubr.msk.bf16.gmra.mrb[92].mxu1 %vm594_vm1, %v375_v4  ;;  %v317_v4 = vld [vmem:[%s6564_s27 + $0x490] sm:$0xff] }
 0x1d1   : > { %6063 = vmatmul.mubr.msk.bf16.gmra.mrb[92].mxu0 %vm594_vm1, %v7012_v1  ;;  %5806 = vmatprep.mubr.msk.bf16.mxu1 %vm594_vm1, %v376_v36  ;;  %v302_v1 = vld [vmem:[%s6564_s27 + $0x3f8] sm:$0xff]  ;;  %v386_v46 = vpack.c.bf16 %v317_v4, %v316_v0  ;;  %v325_v4 = vld [vmem:[%s6564_s27 + $0x4e0] sm:$0xff] }
 0x1d2   : > { %6066 = vmatprep.mubr.msk.bf16.mxu0 %vm594_vm1, %v7602_v14  ;;  %v379_v45 = vpack.c.bf16 %v303_v23, %v302_v1  ;;  %v5238_v14 = vld [vmem:[%s6564_s27 + $0x4b9] sm:$0xff] }
 0x1d3   : > { %v324_v0 = vld [vmem:[%s6564_s27 + $0x4d8] sm:$0xff] }
 0x1d8   : > { %5807 = vmatmul.mubr.msk.bf16.gmra.mrb[96].mxu1 %vm594_vm1, %v377_v16 }
 0x1d9   : > { %6067 = vmatmul.mubr.msk.bf16.gmra.mrb[96].mxu0 %vm594_vm1, %v7603_v7  ;;  %5810 = vmatprep.mubr.msk.bf16.mxu1 %vm594_vm1, %v378_v33  ;;  %v385_v33 = vpack.c.bf16 %v315_v20, %v314_v2  ;;  %v322_v2 = vld [vmem:[%s6564_s27 + $0x4c0] sm:$0xff]  ;;  %v323_v20 = vld [vmem:[%s6564_s27 + $0x4c8] sm:$0xff] }
 0x1da   : > { %6070 = vmatprep.mubr.msk.bf16.mxu0 %vm594_vm1, %v7604_v32  ;;  %v3335_v32 = vpack.c.bf16 %v5236_v52, %v5235_v59  ;;  %v5243_v59 = vld [vmem:[%s6564_s27 + $0x4e9] sm:$0xff]  ;;  %v5244_v52 = vld [vmem:[%s6564_s27 + $0x4f1] sm:$0xff] }
 0x1e0   : > { %5811 = vmatmul.mubr.msk.bf16.gmra.mrb[100].mxu1 %vm594_vm1, %v379_v45 }
 0x1e1   : > { %6071 = vmatmul.mubr.msk.bf16.gmra.mrb[100].mxu0 %vm594_vm1, %v7605_v49  ;;  %5814 = vmatprep.mubr.msk.bf16.mxu1 %vm594_vm1, %v380_v27  ;;  %v3336_v49 = vpack.c.bf16 %v5238_v14, %v5237_v31  ;;  %v5245_v31 = vld [vmem:[%s6564_s27 + $0x501] sm:$0xff]  ;;  %v5246_v14 = vld [vmem:[%s6564_s27 + $0x509] sm:$0xff] }
 0x1e2   : > { %6074 = vmatprep.mubr.msk.bf16.mxu0 %vm594_vm1, %v7606_v55 }
 0x1e8   : > { %5815 = vmatmul.mubr.msk.bf16.gmra.mrb[104].mxu1 %vm594_vm1, %v381_v35  ;;  %v318_v35 = vld [vmem:[%s6564_s27 + $0x498] sm:$0xff] }
 0x1e9   : > { %6075 = vmatmul.mubr.msk.bf16.gmra.mrb[104].mxu0 %vm594_vm1, %v7607_v58  ;;  %5818 = vmatprep.mubr.msk.bf16.mxu1 %vm594_vm1, %v382_v12  ;;  %v319_v12 = vld [vmem:[%s6564_s27 + $0x4a0] sm:$0xff] }
 0x1ea   : > { %6078 = vmatprep.mubr.msk.bf16.mxu0 %vm594_vm1, %v3332_v63  ;;  %v5239_v63 = vld [vmem:[%s6564_s27 + $0x4c1] sm:$0xff] }
 0x1eb   : > { %v5712_v13 = vpop.f32.mrb[0].mxu1 }
 0x1ec   : > { %v5972_v62 = vpop.f32.mrb[0].mxu0  ;;  %v1570_v50 = vpop.f32.mrb[1].mxu1 }
 0x1ed   : > { %v6098_v26 = vadd.f32 %v5972_v62, %v5712_v13  ;;  %v3579_v19 = vpop.f32.mrb[1].mxu0  ;;  %v5713_v40 = vpop.f32.mrb[2].mxu1  ;;  %v5241_v13 = vld [vmem:[%s6564_s27 + $0x4d9] sm:$0xff] }
 0x1ee   : > { %v6099_v8 = vadd.f32 %v3579_v19, %v1570_v50  ;;  %v5973_v24 = vpop.f32.mrb[2].mxu0  ;;  %v1573_v47 = vpop.f32.mrb[3].mxu1 }
 0x1ef   : > { %vm4220_vm2 = vcmp.ge.f32.partialorder %v6098_v26, 0.0  ;;  %v4348_v51 = vmul.f32 0.2, %v6098_v26  ;;  %v6100_v42 = vadd.f32 %v5973_v24, %v5713_v40  ;;  %v3582_v57 = vpop.f32.mrb[3].mxu0 }
 0x1f0   : > { %vm4218_vm3 = vcmp.ge.f32.partialorder %v6099_v8, 0.0  ;;  %v4346_v44 = vmul.f32 0.2, %v6099_v8  ;;  %v6101_v10 = vadd.f32 %v3582_v57, %v1573_v47  ;;  %5819 = vmatmul.mubr.msk.bf16.gmra.mrb[108].mxu1 %vm594_vm1, %v383_v6  ;;  %v387_v6 = vpack.c.bf16 %v319_v12, %v318_v35  ;;  %v326_v35 = vld [vmem:[%s6564_s27 + $0x4e8] sm:$0xff]  ;;  %v327_v12 = vld [vmem:[%s6564_s27 + $0x4f0] sm:$0xff] }
 0x1f1   : > { %v4476_v18 = vsel %vm4220_vm2, %v6098_v26, %v4348_v51  ;;  %vm4221_vm4 = vcmp.ge.f32.partialorder %v6100_v42, 0.0  ;;  %v4349_v17 = vmul.f32 0.2, %v6100_v42  ;;  %6079 = vmatmul.mubr.msk.bf16.gmra.mrb[108].mxu0 %vm594_vm1, %v3333_v22  ;;  %5822 = vmatprep.mubr.msk.bf16.mxu1 %vm594_vm1, %v384_v28  ;;  %v3337_v22 = vpack.c.bf16 %v5240_v30, %v5239_v63  ;;  %v5248_v30 = vld [vmem:[%s6564_s27 + $0x519] sm:$0xff] }
 0x1f2   : > { %4604 = vst [vmem:[%s7403_s6 + $0x10] sm:$0xff] %v4476_v18  ;;  %v4474_v43 = vsel %vm4218_vm3, %v6099_v8, %v4346_v44  ;;  %vm4219_vm5 = vcmp.ge.f32.partialorder %v6101_v10, 0.0  ;;  %v4347_v34 = vmul.f32 0.2, %v6101_v10  ;;  %6082 = vmatprep.mubr.msk.bf16.mxu0 %vm594_vm1, %v3334_v54  ;;  %v388_v28 = vpack.c.bf16 %v321_v38, %v320_v60 }
 0x1f3   : > { %4602 = vst [vmem:[%s7403_s6] sm:$0xff] %v4474_v43  ;;  %v4477_v36 = vsel %vm4221_vm4, %v6100_v42, %v4349_v17  ;;  %v5716_v21 = vpop.f32.mrb[4].mxu1  ;;  %v3338_v54 = vpack.c.bf16 %v5242_v56, %v5241_v13  ;;  %v391_v56 = vpack.c.bf16 %v327_v12, %v326_v35 }
 0x1f4   : > { %4605 = vst [vmem:[%s7403_s6 + $0x18] sm:$0xff] %v4477_v36  ;;  %v4475_v25 = vsel %vm4219_vm5, %v6101_v10, %v4347_v34  ;;  %v5976_v5 = vpop.f32.mrb[4].mxu0  ;;  %v1586_v16 = vpop.f32.mrb[5].mxu1 }
 0x1f5   : > { %4603 = vst [vmem:[%s7403_s6 + $0x8] sm:$0xff] %v4475_v25  ;;  %v6102_v7 = vadd.f32 %v5976_v5, %v5716_v21  ;;  %v3595_v1 = vpop.f32.mrb[5].mxu0  ;;  %v5717_v23 = vpop.f32.mrb[6].mxu1 }
 0x1f6   : > { %v6103_v37 = vadd.f32 %v3595_v1, %v1586_v16  ;;  %v5977_v45 = vpop.f32.mrb[6].mxu0  ;;  %v1589_v27 = vpop.f32.mrb[7].mxu1 }
 0x1f7   : > { %vm4224_vm6 = vcmp.ge.f32.partialorder %v6102_v7, 0.0  ;;  %v4352_v53 = vmul.f32 0.2, %v6102_v7  ;;  %v6104_v48 = vadd.f32 %v5977_v45, %v5717_v23  ;;  %v3598_v55 = vpop.f32.mrb[7].mxu0 }
 0x1f8   : > { %vm4222_vm7 = vcmp.ge.f32.partialorder %v6103_v37, 0.0  ;;  %v4350_v3 = vmul.f32 0.2, %v6103_v37  ;;  %v6105_v15 = vadd.f32 %v3598_v55, %v1589_v27  ;;  %5823 = vmatmul.mubr.msk.bf16.gmra.mrb[112].mxu1 %vm594_vm1, %v385_v33  ;;  %v389_v33 = vpack.c.bf16 %v323_v20, %v322_v2 }
 0x1f9   : > { %v4480_v61 = vsel %vm4224_vm6, %v6102_v7, %v4352_v53  ;;  %vm4225_vm8 = vcmp.ge.f32.partialorder %v6104_v48, 0.0  ;;  %v4353_v9 = vmul.f32 0.2, %v6104_v48  ;;  %6083 = vmatmul.mubr.msk.bf16.gmra.mrb[112].mxu0 %vm594_vm1, %v3335_v32  ;;  %5826 = vmatprep.mubr.msk.bf16.mxu1 %vm594_vm1, %v386_v46  ;;  %v3339_v32 = vpack.c.bf16 %v5244_v52, %v5243_v59 }
 0x1fa   : > { %4608 = vst [vmem:[%s7403_s6 + $0x30] sm:$0xff] %v4480_v61  ;;  %v4478_v58 = vsel %vm4222_vm7, %v6103_v37, %v4350_v3  ;;  %vm4223_vm9 = vcmp.ge.f32.partialorder %v6105_v15, 0.0  ;;  %v4351_v39 = vmul.f32 0.2, %v6105_v15  ;;  %6086 = vmatprep.mubr.msk.bf16.mxu0 %vm594_vm1, %v3336_v49  ;;  %v390_v46 = vpack.c.bf16 %v325_v4, %v324_v0 }
 0x1fb   : > { %4606 = vst [vmem:[%s7403_s6 + $0x20] sm:$0xff] %v4478_v58  ;;  %v4481_v11 = vsel %vm4225_vm8, %v6104_v48, %v4353_v9  ;;  %v5720_v29 = vpop.f32.mrb[8].mxu1  ;;  %v3340_v49 = vpack.c.bf16 %v5246_v14, %v5245_v31 }
 0x1fc   : > { %4609 = vst [vmem:[%s7403_s6 + $0x38] sm:$0xff] %v4481_v11  ;;  %v4479_v41 = vsel %vm4223_vm9, %v6105_v15, %v4351_v39  ;;  %v5980_v62 = vpop.f32.mrb[8].mxu0  ;;  %v1602_v50 = vpop.f32.mrb[9].mxu1  ;;  %v5247_v39 = vld [vmem:[%s6564_s27 + $0x511] sm:$0xff] }
 0x1fd   : > { %4607 = vst [vmem:[%s7403_s6 + $0x28] sm:$0xff] %v4479_v41  ;;  %v6106_v26 = vadd.f32 %v5980_v62, %v5720_v29  ;;  %v3611_v19 = vpop.f32.mrb[9].mxu0  ;;  %v5721_v40 = vpop.f32.mrb[10].mxu1 }
 0x1fe   : > { %v6107_v8 = vadd.f32 %v3611_v19, %v1602_v50  ;;  %v5981_v24 = vpop.f32.mrb[10].mxu0  ;;  %v1605_v47 = vpop.f32.mrb[11].mxu1 }
 0x1ff   : > { %vm4228_vm10 = vcmp.ge.f32.partialorder %v6106_v26, 0.0  ;;  %v4356_v51 = vmul.f32 0.2, %v6106_v26  ;;  %v6108_v42 = vadd.f32 %v5981_v24, %v5721_v40  ;;  %v3614_v57 = vpop.f32.mrb[11].mxu0 }
 0x200   : > { %vm4226_vm11 = vcmp.ge.f32.partialorder %v6107_v8, 0.0  ;;  %v4354_v44 = vmul.f32 0.2, %v6107_v8  ;;  %v6109_v10 = vadd.f32 %v3614_v57, %v1605_v47  ;;  %5827 = vmatmul.mubr.msk.bf16.gmra.mrb[116].mxu1 %vm594_vm1, %v387_v6  ;;  %v3341_v6 = vpack.c.bf16 %v5248_v30, %v5247_v39 }
 0x201   : > { %v4484_v18 = vsel %vm4228_vm10, %v6106_v26, %v4356_v51  ;;  %vm4229_vm12 = vcmp.ge.f32.partialorder %v6108_v42, 0.0  ;;  %v4357_v17 = vmul.f32 0.2, %v6108_v42  ;;  %6087 = vmatmul.mubr.msk.bf16.gmra.mrb[116].mxu0 %vm594_vm1, %v3337_v22  ;;  %5830 = vmatprep.mubr.msk.bf16.mxu1 %vm594_vm1, %v388_v28 }
 0x202   : > { %4612 = vst [vmem:[%s7403_s6 + $0x50] sm:$0xff] %v4484_v18  ;;  %v4482_v43 = vsel %vm4226_vm11, %v6107_v8, %v4354_v44  ;;  %vm4227_vm13 = vcmp.ge.f32.partialorder %v6109_v10, 0.0  ;;  %v4355_v34 = vmul.f32 0.2, %v6109_v10  ;;  %6090 = vmatprep.mubr.msk.bf16.mxu0 %vm594_vm1, %v3338_v54 }
 0x203   : > { %4610 = vst [vmem:[%s7403_s6 + $0x40] sm:$0xff] %v4482_v43  ;;  %v4485_v36 = vsel %vm4229_vm12, %v6108_v42, %v4357_v17  ;;  %v5724_v21 = vpop.f32.mrb[12].mxu1 }
 0x204   : > { %4613 = vst [vmem:[%s7403_s6 + $0x58] sm:$0xff] %v4485_v36  ;;  %v4483_v25 = vsel %vm4227_vm13, %v6109_v10, %v4355_v34  ;;  %v5984_v5 = vpop.f32.mrb[12].mxu0  ;;  %v1618_v16 = vpop.f32.mrb[13].mxu1 }
 0x205   : > { %4611 = vst [vmem:[%s7403_s6 + $0x48] sm:$0xff] %v4483_v25  ;;  %v6110_v7 = vadd.f32 %v5984_v5, %v5724_v21  ;;  %v3627_v1 = vpop.f32.mrb[13].mxu0  ;;  %v5725_v23 = vpop.f32.mrb[14].mxu1 }
 0x206   : > { %v6111_v37 = vadd.f32 %v3627_v1, %v1618_v16  ;;  %v5985_v45 = vpop.f32.mrb[14].mxu0  ;;  %v1621_v27 = vpop.f32.mrb[15].mxu1 }
 0x207   : > { %vm4232_vm14 = vcmp.ge.f32.partialorder %v6110_v7, 0.0  ;;  %v4360_v53 = vmul.f32 0.2, %v6110_v7  ;;  %v6112_v48 = vadd.f32 %v5985_v45, %v5725_v23  ;;  %v3630_v55 = vpop.f32.mrb[15].mxu0 }
 0x208   : > { %vm4230_vm15 = vcmp.ge.f32.partialorder %v6111_v37, 0.0  ;;  %v4358_v3 = vmul.f32 0.2, %v6111_v37  ;;  %v6113_v15 = vadd.f32 %v3630_v55, %v1621_v27  ;;  %5831 = vmatmul.mubr.msk.bf16.gmra.mrb[120].mxu1 %vm594_vm1, %v389_v33 }
 0x209   : > { %v4488_v61 = vsel %vm4232_vm14, %v6110_v7, %v4360_v53  ;;  %vm4233_vm0 = vcmp.ge.f32.partialorder %v6112_v48, 0.0  ;;  %v4361_v9 = vmul.f32 0.2, %v6112_v48  ;;  %6091 = vmatmul.mubr.msk.bf16.gmra.mrb[120].mxu0 %vm594_vm1, %v3339_v32  ;;  %5834 = vmatprep.mubr.msk.bf16.mxu1 %vm594_vm1, %v390_v46 }
 0x20a   : > { %4616 = vst [vmem:[%s7403_s6 + $0x70] sm:$0xff] %v4488_v61  ;;  %v4486_v63 = vsel %vm4230_vm15, %v6111_v37, %v4358_v3  ;;  %vm4231_vm2 = vcmp.ge.f32.partialorder %v6113_v15, 0.0  ;;  %v4359_v58 = vmul.f32 0.2, %v6113_v15  ;;  %6094 = vmatprep.mubr.msk.bf16.mxu0 %vm594_vm1, %v3340_v49 }
 0x20b   : > { %4614 = vst [vmem:[%s7403_s6 + $0x60] sm:$0xff] %v4486_v63  ;;  %v4489_v60 = vsel %vm4233_vm0, %v6112_v48, %v4361_v9  ;;  %v5728_v38 = vpop.f32.mrb[16].mxu1 }
 0x20c   : > { %4617 = vst [vmem:[%s7403_s6 + $0x78] sm:$0xff] %v4489_v60  ;;  %v4487_v11 = vsel %vm4231_vm2, %v6113_v15, %v4359_v58  ;;  %v5988_v29 = vpop.f32.mrb[16].mxu0  ;;  %v1634_v13 = vpop.f32.mrb[17].mxu1 }
 0x20d   : > { %4615 = vst [vmem:[%s7403_s6 + $0x68] sm:$0xff] %v4487_v11  ;;  %v6114_v41 = vadd.f32 %v5988_v29, %v5728_v38  ;;  %v3643_v62 = vpop.f32.mrb[17].mxu0  ;;  %v5729_v50 = vpop.f32.mrb[18].mxu1 }
 0x20e   : > { %v6115_v26 = vadd.f32 %v3643_v62, %v1634_v13  ;;  %v5989_v19 = vpop.f32.mrb[18].mxu0  ;;  %v1637_v40 = vpop.f32.mrb[19].mxu1 }
 0x20f   : > { %vm4236_vm3 = vcmp.ge.f32.partialorder %v6114_v41, 0.0  ;;  %v4364_v22 = vmul.f32 0.2, %v6114_v41  ;;  %v6116_v28 = vadd.f32 %v5989_v19, %v5729_v50  ;;  %v3646_v8 = vpop.f32.mrb[19].mxu0 }
 0x210   : > { %vm4234_vm4 = vcmp.ge.f32.partialorder %v6115_v26, 0.0  ;;  %v4362_v24 = vmul.f32 0.2, %v6115_v26  ;;  %v6117_v47 = vadd.f32 %v3646_v8, %v1637_v40  ;;  %5835 = vmatmul.mubr.msk.bf16.gmra.mrb[124].mxu1 %vm594_vm1, %v391_v56 }
 0x211   : > { %v4492_v54 = vsel %vm4236_vm3, %v6114_v41, %v4364_v22  ;;  %vm4237_vm5 = vcmp.ge.f32.partialorder %v6116_v28, 0.0  ;;  %v4365_v51 = vmul.f32 0.2, %v6116_v28  ;;  %6095 = vmatmul.mubr.msk.bf16.gmra.mrb[124].mxu0 %vm594_vm1, %v3341_v6 }
 0x212   : > { %4620 = vst [vmem:[%s7403_s6 + $0x90] sm:$0xff] %v4492_v54  ;;  %v4490_v42 = vsel %vm4234_vm4, %v6115_v26, %v4362_v24  ;;  %vm4235_vm6 = vcmp.ge.f32.partialorder %v6117_v47, 0.0  ;;  %v4363_v57 = vmul.f32 0.2, %v6117_v47 }
 0x213   : > { %4618 = vst [vmem:[%s7403_s6 + $0x80] sm:$0xff] %v4490_v42  ;;  %v4493_v44 = vsel %vm4237_vm5, %v6116_v28, %v4365_v51  ;;  %v5732_v10 = vpop.f32.mrb[20].mxu1 }
 0x214   : > { %4621 = vst [vmem:[%s7403_s6 + $0x98] sm:$0xff] %v4493_v44  ;;  %v4491_v18 = vsel %vm4235_vm6, %v6117_v47, %v4363_v57  ;;  %v5992_v17 = vpop.f32.mrb[20].mxu0  ;;  %v1650_v2 = vpop.f32.mrb[21].mxu1 }
 0x215   : > { %4619 = vst [vmem:[%s7403_s6 + $0x88] sm:$0xff] %v4491_v18  ;;  %v6118_v20 = vadd.f32 %v5992_v17, %v5732_v10  ;;  %v3659_v59 = vpop.f32.mrb[21].mxu0  ;;  %v5733_v43 = vpop.f32.mrb[22].mxu1 }
 0x216   : > { %v6119_v34 = vadd.f32 %v3659_v59, %v1650_v2  ;;  %v5993_v52 = vpop.f32.mrb[22].mxu0  ;;  %v1653_v0 = vpop.f32.mrb[23].mxu1 }
 0x217   : > { %vm4240_vm1 = vcmp.ge.f32.partialorder %v6118_v20, 0.0  ;;  %v4368_v4 = vmul.f32 0.2, %v6118_v20  ;;  %v6120_v36 = vadd.f32 %v5993_v52, %v5733_v43  ;;  %v3662_v21 = vpop.f32.mrb[23].mxu0 }
 0x218   : > { %vm4238_vm7 = vcmp.ge.f32.partialorder %v6119_v34, 0.0  ;;  %v4366_v31 = vmul.f32 0.2, %v6119_v34  ;;  %v6121_v14 = vadd.f32 %v3662_v21, %v1653_v0 }
 0x219   : > { %v4496_v25 = vsel %vm4240_vm1, %v6118_v20, %v4368_v4  ;;  %vm4241_vm8 = vcmp.ge.f32.partialorder %v6120_v36, 0.0  ;;  %v4369_v5 = vmul.f32 0.2, %v6120_v36 }
 0x21a   : > { %4624 = vst [vmem:[%s7403_s6 + $0xb0] sm:$0xff] %v4496_v25  ;;  %v4494_v16 = vsel %vm4238_vm7, %v6119_v34, %v4366_v31  ;;  %vm4239_vm9 = vcmp.ge.f32.partialorder %v6121_v14, 0.0  ;;  %v4367_v33 = vmul.f32 0.2, %v6121_v14 }
 0x21b   : > { %4622 = vst [vmem:[%s7403_s6 + $0xa0] sm:$0xff] %v4494_v16  ;;  %v4497_v7 = vsel %vm4241_vm8, %v6120_v36, %v4369_v5  ;;  %v5736_v1 = vpop.f32.mrb[24].mxu1 }
 0x21c   : > { %4625 = vst [vmem:[%s7403_s6 + $0xb8] sm:$0xff] %v4497_v7  ;;  %v4495_v23 = vsel %vm4239_vm9, %v6121_v14, %v4367_v33  ;;  %v5996_v32 = vpop.f32.mrb[24].mxu0  ;;  %v1666_v46 = vpop.f32.mrb[25].mxu1 }
 0x21d   : > { %4623 = vst [vmem:[%s7403_s6 + $0xa8] sm:$0xff] %v4495_v23  ;;  %v6122_v37 = vadd.f32 %v5996_v32, %v5736_v1  ;;  %v3675_v45 = vpop.f32.mrb[25].mxu0  ;;  %v5737_v27 = vpop.f32.mrb[26].mxu1 }
 0x21e   : > { %v6123_v49 = vadd.f32 %v3675_v45, %v1666_v46  ;;  %v5997_v53 = vpop.f32.mrb[26].mxu0  ;;  %v1669_v48 = vpop.f32.mrb[27].mxu1 }
 0x21f   : > { %vm4244_vm10 = vcmp.ge.f32.partialorder %v6122_v37, 0.0  ;;  %v4372_v55 = vmul.f32 0.2, %v6122_v37  ;;  %v6124_v3 = vadd.f32 %v5997_v53, %v5737_v27  ;;  %v3678_v15 = vpop.f32.mrb[27].mxu0 }
 0x220   : > { %vm4242_vm11 = vcmp.ge.f32.partialorder %v6123_v49, 0.0  ;;  %v4370_v61 = vmul.f32 0.2, %v6123_v49  ;;  %v6125_v9 = vadd.f32 %v3678_v15, %v1669_v48 }
 0x221   : > { %v4500_v35 = vsel %vm4244_vm10, %v6122_v37, %v4372_v55  ;;  %vm4245_vm12 = vcmp.ge.f32.partialorder %v6124_v3, 0.0  ;;  %v4373_v12 = vmul.f32 0.2, %v6124_v3 }
 0x222   : > { %4628 = vst [vmem:[%s7403_s6 + $0xd0] sm:$0xff] %v4500_v35  ;;  %v4498_v63 = vsel %vm4242_vm11, %v6123_v49, %v4370_v61  ;;  %vm4243_vm13 = vcmp.ge.f32.partialorder %v6125_v9, 0.0  ;;  %v4371_v58 = vmul.f32 0.2, %v6125_v9 }
 0x223   : > { %4626 = vst [vmem:[%s7403_s6 + $0xc0] sm:$0xff] %v4498_v63  ;;  %v4501_v39 = vsel %vm4245_vm12, %v6124_v3, %v4373_v12  ;;  %v5740_v30 = vpop.f32.mrb[28].mxu1 }
 0x224   : > { %4629 = vst [vmem:[%s7403_s6 + $0xd8] sm:$0xff] %v4501_v39  ;;  %v4499_v60 = vsel %vm4243_vm13, %v6125_v9, %v4371_v58  ;;  %v6000_v38 = vpop.f32.mrb[28].mxu0  ;;  %v1682_v11 = vpop.f32.mrb[29].mxu1 }
 0x225   : > { %4627 = vst [vmem:[%s7403_s6 + $0xc8] sm:$0xff] %v4499_v60  ;;  %v6126_v29 = vadd.f32 %v6000_v38, %v5740_v30  ;;  %v3691_v13 = vpop.f32.mrb[29].mxu0  ;;  %v5741_v56 = vpop.f32.mrb[30].mxu1 }
 0x226   : > { %v6127_v41 = vadd.f32 %v3691_v13, %v1682_v11  ;;  %v6001_v62 = vpop.f32.mrb[30].mxu0  ;;  %v1685_v50 = vpop.f32.mrb[31].mxu1 }
 0x227   : > { %vm4248_vm14 = vcmp.ge.f32.partialorder %v6126_v29, 0.0  ;;  %v4376_v6 = vmul.f32 0.2, %v6126_v29  ;;  %v6128_v26 = vadd.f32 %v6001_v62, %v5741_v56  ;;  %v3694_v19 = vpop.f32.mrb[31].mxu0 }
 0x228   : > { %vm4246_vm15 = vcmp.ge.f32.partialorder %v6127_v41, 0.0  ;;  %v4374_v40 = vmul.f32 0.2, %v6127_v41  ;;  %v6129_v22 = vadd.f32 %v3694_v19, %v1685_v50 }
 0x229   : > { %v4504_v28 = vsel %vm4248_vm14, %v6126_v29, %v4376_v6  ;;  %vm4249_vm0 = vcmp.ge.f32.partialorder %v6128_v26, 0.0  ;;  %v4377_v8 = vmul.f32 0.2, %v6128_v26 }
 0x22a   : > { %4632 = vst [vmem:[%s7403_s6 + $0xf0] sm:$0xff] %v4504_v28  ;;  %v4502_v24 = vsel %vm4246_vm15, %v6127_v41, %v4374_v40  ;;  %vm4247_vm2 = vcmp.ge.f32.partialorder %v6129_v22, 0.0  ;;  %v4375_v47 = vmul.f32 0.2, %v6129_v22 }
 0x22b   : > { %4630 = vst [vmem:[%s7403_s6 + $0xe0] sm:$0xff] %v4502_v24  ;;  %v4505_v54 = vsel %vm4249_vm0, %v6128_v26, %v4377_v8  ;;  %v5744_v51 = vpop.f32.mrb[32].mxu1 }
 0x22c   : > { %4633 = vst [vmem:[%s7403_s6 + $0xf8] sm:$0xff] %v4505_v54  ;;  %v4503_v42 = vsel %vm4247_vm2, %v6129_v22, %v4375_v47  ;;  %v6004_v57 = vpop.f32.mrb[32].mxu0  ;;  %v1698_v44 = vpop.f32.mrb[33].mxu1 }
 0x22d   : > { %4631 = vst [vmem:[%s7403_s6 + $0xe8] sm:$0xff] %v4503_v42  ;;  %v6130_v10 = vadd.f32 %v6004_v57, %v5744_v51  ;;  %v3707_v18 = vpop.f32.mrb[33].mxu0  ;;  %v5745_v17 = vpop.f32.mrb[34].mxu1 }
 0x22e   : > { %v6131_v2 = vadd.f32 %v3707_v18, %v1698_v44  ;;  %v6005_v20 = vpop.f32.mrb[34].mxu0  ;;  %v1701_v59 = vpop.f32.mrb[35].mxu1 }
 0x22f   : > { %vm4252_vm3 = vcmp.ge.f32.partialorder %v6130_v10, 0.0  ;;  %v4380_v43 = vmul.f32 0.2, %v6130_v10  ;;  %v6132_v34 = vadd.f32 %v6005_v20, %v5745_v17  ;;  %v3710_v52 = vpop.f32.mrb[35].mxu0 }
 0x230   : > { %vm4250_vm4 = vcmp.ge.f32.partialorder %v6131_v2, 0.0  ;;  %v4378_v0 = vmul.f32 0.2, %v6131_v2  ;;  %v6133_v4 = vadd.f32 %v3710_v52, %v1701_v59 }
 0x231   : > { %v4508_v36 = vsel %vm4252_vm3, %v6130_v10, %v4380_v43  ;;  %vm4253_vm5 = vcmp.ge.f32.partialorder %v6132_v34, 0.0  ;;  %v4381_v21 = vmul.f32 0.2, %v6132_v34 }
 0x232   : > { %4636 = vst [vmem:[%s7403_s6 + $0x110] sm:$0xff] %v4508_v36  ;;  %v4506_v31 = vsel %vm4250_vm4, %v6131_v2, %v4378_v0  ;;  %vm4251_vm6 = vcmp.ge.f32.partialorder %v6133_v4, 0.0  ;;  %v4379_v14 = vmul.f32 0.2, %v6133_v4 }
 0x233   : > { %4634 = vst [vmem:[%s7403_s6 + $0x100] sm:$0xff] %v4506_v31  ;;  %v4509_v25 = vsel %vm4253_vm5, %v6132_v34, %v4381_v21  ;;  %v5748_v5 = vpop.f32.mrb[36].mxu1 }
 0x234   : > { %4637 = vst [vmem:[%s7403_s6 + $0x118] sm:$0xff] %v4509_v25  ;;  %v4507_v16 = vsel %vm4251_vm6, %v6133_v4, %v4379_v14  ;;  %v6008_v33 = vpop.f32.mrb[36].mxu0  ;;  %v1714_v7 = vpop.f32.mrb[37].mxu1 }
 0x235   : > { %4635 = vst [vmem:[%s7403_s6 + $0x108] sm:$0xff] %v4507_v16  ;;  %v6134_v1 = vadd.f32 %v6008_v33, %v5748_v5  ;;  %v3723_v23 = vpop.f32.mrb[37].mxu0  ;;  %v5749_v32 = vpop.f32.mrb[38].mxu1 }
 0x236   : > { %v6135_v46 = vadd.f32 %v3723_v23, %v1714_v7  ;;  %v6009_v37 = vpop.f32.mrb[38].mxu0  ;;  %v1717_v45 = vpop.f32.mrb[39].mxu1 }
 0x237   : > { %vm4256_vm1 = vcmp.ge.f32.partialorder %v6134_v1, 0.0  ;;  %v4384_v27 = vmul.f32 0.2, %v6134_v1  ;;  %v6136_v49 = vadd.f32 %v6009_v37, %v5749_v32  ;;  %v3726_v53 = vpop.f32.mrb[39].mxu0 }
 0x238   : > { %vm4254_vm7 = vcmp.ge.f32.partialorder %v6135_v46, 0.0  ;;  %v4382_v48 = vmul.f32 0.2, %v6135_v46  ;;  %v6137_v55 = vadd.f32 %v3726_v53, %v1717_v45 }
 0x239   : > { %v4512_v3 = vsel %vm4256_vm1, %v6134_v1, %v4384_v27  ;;  %vm4257_vm8 = vcmp.ge.f32.partialorder %v6136_v49, 0.0  ;;  %v4385_v15 = vmul.f32 0.2, %v6136_v49 }
 0x23a   : > { %4640 = vst [vmem:[%s7403_s6 + $0x130] sm:$0xff] %v4512_v3  ;;  %v4510_v61 = vsel %vm4254_vm7, %v6135_v46, %v4382_v48  ;;  %vm4255_vm9 = vcmp.ge.f32.partialorder %v6137_v55, 0.0  ;;  %v4383_v9 = vmul.f32 0.2, %v6137_v55 }
 0x23b   : > { %4638 = vst [vmem:[%s7403_s6 + $0x120] sm:$0xff] %v4510_v61  ;;  %v4513_v35 = vsel %vm4257_vm8, %v6136_v49, %v4385_v15  ;;  %v5752_v12 = vpop.f32.mrb[40].mxu1 }
 0x23c   : > { %4641 = vst [vmem:[%s7403_s6 + $0x138] sm:$0xff] %v4513_v35  ;;  %v4511_v63 = vsel %vm4255_vm9, %v6137_v55, %v4383_v9  ;;  %v6012_v58 = vpop.f32.mrb[40].mxu0  ;;  %v1730_v39 = vpop.f32.mrb[41].mxu1 }
 0x23d   : > { %4639 = vst [vmem:[%s7403_s6 + $0x128] sm:$0xff] %v4511_v63  ;;  %v6138_v30 = vadd.f32 %v6012_v58, %v5752_v12  ;;  %v3739_v60 = vpop.f32.mrb[41].mxu0  ;;  %v5753_v38 = vpop.f32.mrb[42].mxu1 }
 0x23e   : > { %v6139_v11 = vadd.f32 %v3739_v60, %v1730_v39  ;;  %v6013_v29 = vpop.f32.mrb[42].mxu0  ;;  %v1733_v13 = vpop.f32.mrb[43].mxu1 }
 0x23f   : > { %vm4260_vm10 = vcmp.ge.f32.partialorder %v6138_v30, 0.0  ;;  %v4388_v56 = vmul.f32 0.2, %v6138_v30  ;;  %v6140_v41 = vadd.f32 %v6013_v29, %v5753_v38  ;;  %v3742_v62 = vpop.f32.mrb[43].mxu0 }
 0x240   : > { %vm4258_vm11 = vcmp.ge.f32.partialorder %v6139_v11, 0.0  ;;  %v4386_v50 = vmul.f32 0.2, %v6139_v11  ;;  %v6141_v6 = vadd.f32 %v3742_v62, %v1733_v13 }
 0x241   : > { %v4516_v26 = vsel %vm4260_vm10, %v6138_v30, %v4388_v56  ;;  %vm4261_vm12 = vcmp.ge.f32.partialorder %v6140_v41, 0.0  ;;  %v4389_v19 = vmul.f32 0.2, %v6140_v41 }
 0x242   : > { %4644 = vst [vmem:[%s7403_s6 + $0x150] sm:$0xff] %v4516_v26  ;;  %v4514_v40 = vsel %vm4258_vm11, %v6139_v11, %v4386_v50  ;;  %vm4259_vm13 = vcmp.ge.f32.partialorder %v6141_v6, 0.0  ;;  %v4387_v22 = vmul.f32 0.2, %v6141_v6 }
 0x243   : > { %4642 = vst [vmem:[%s7403_s6 + $0x140] sm:$0xff] %v4514_v40  ;;  %v4517_v28 = vsel %vm4261_vm12, %v6140_v41, %v4389_v19  ;;  %v5756_v8 = vpop.f32.mrb[44].mxu1 }
 0x244   : > { %4645 = vst [vmem:[%s7403_s6 + $0x158] sm:$0xff] %v4517_v28  ;;  %v4515_v24 = vsel %vm4259_vm13, %v6141_v6, %v4387_v22  ;;  %v6016_v47 = vpop.f32.mrb[44].mxu0  ;;  %v1746_v54 = vpop.f32.mrb[45].mxu1 }
 0x245   : > { %4643 = vst [vmem:[%s7403_s6 + $0x148] sm:$0xff] %v4515_v24  ;;  %v6142_v51 = vadd.f32 %v6016_v47, %v5756_v8  ;;  %v3755_v42 = vpop.f32.mrb[45].mxu0  ;;  %v5757_v57 = vpop.f32.mrb[46].mxu1 }
 0x246   : > { %v6143_v44 = vadd.f32 %v3755_v42, %v1746_v54  ;;  %v6017_v10 = vpop.f32.mrb[46].mxu0  ;;  %v1749_v18 = vpop.f32.mrb[47].mxu1 }
 0x247   : > { %vm4264_vm14 = vcmp.ge.f32.partialorder %v6142_v51, 0.0  ;;  %v4392_v17 = vmul.f32 0.2, %v6142_v51  ;;  %v6144_v2 = vadd.f32 %v6017_v10, %v5757_v57  ;;  %v3758_v20 = vpop.f32.mrb[47].mxu0 }
 0x248   : > { %vm4262_vm15 = vcmp.ge.f32.partialorder %v6143_v44, 0.0  ;;  %v4390_v59 = vmul.f32 0.2, %v6143_v44  ;;  %v6145_v43 = vadd.f32 %v3758_v20, %v1749_v18 }
 0x249   : > { %v4520_v34 = vsel %vm4264_vm14, %v6142_v51, %v4392_v17  ;;  %vm4265_vm0 = vcmp.ge.f32.partialorder %v6144_v2, 0.0  ;;  %v4393_v52 = vmul.f32 0.2, %v6144_v2 }
 0x24a   : > { %4648 = vst [vmem:[%s7403_s6 + $0x170] sm:$0xff] %v4520_v34  ;;  %v4518_v0 = vsel %vm4262_vm15, %v6143_v44, %v4390_v59  ;;  %vm4263_vm2 = vcmp.ge.f32.partialorder %v6145_v43, 0.0  ;;  %v4391_v4 = vmul.f32 0.2, %v6145_v43 }
 0x24b   : > { %4646 = vst [vmem:[%s7403_s6 + $0x160] sm:$0xff] %v4518_v0  ;;  %v4521_v36 = vsel %vm4265_vm0, %v6144_v2, %v4393_v52  ;;  %v5760_v21 = vpop.f32.mrb[48].mxu1 }
 0x24c   : > { %4649 = vst [vmem:[%s7403_s6 + $0x178] sm:$0xff] %v4521_v36  ;;  %v4519_v31 = vsel %vm4263_vm2, %v6145_v43, %v4391_v4  ;;  %v6020_v14 = vpop.f32.mrb[48].mxu0  ;;  %v1762_v25 = vpop.f32.mrb[49].mxu1 }
 0x24d   : > { %4647 = vst [vmem:[%s7403_s6 + $0x168] sm:$0xff] %v4519_v31  ;;  %v6146_v5 = vadd.f32 %v6020_v14, %v5760_v21  ;;  %v3771_v16 = vpop.f32.mrb[49].mxu0  ;;  %v5761_v33 = vpop.f32.mrb[50].mxu1 }
 0x24e   : > { %v6147_v7 = vadd.f32 %v3771_v16, %v1762_v25  ;;  %v6021_v1 = vpop.f32.mrb[50].mxu0  ;;  %v1765_v23 = vpop.f32.mrb[51].mxu1 }
 0x24f   : > { %vm4268_vm3 = vcmp.ge.f32.partialorder %v6146_v5, 0.0  ;;  %v4396_v32 = vmul.f32 0.2, %v6146_v5  ;;  %v6148_v46 = vadd.f32 %v6021_v1, %v5761_v33  ;;  %v3774_v37 = vpop.f32.mrb[51].mxu0 }
 0x250   : > { %vm4266_vm4 = vcmp.ge.f32.partialorder %v6147_v7, 0.0  ;;  %v4394_v45 = vmul.f32 0.2, %v6147_v7  ;;  %v6149_v27 = vadd.f32 %v3774_v37, %v1765_v23 }
 0x251   : > { %v4524_v49 = vsel %vm4268_vm3, %v6146_v5, %v4396_v32  ;;  %vm4269_vm5 = vcmp.ge.f32.partialorder %v6148_v46, 0.0  ;;  %v4397_v53 = vmul.f32 0.2, %v6148_v46 }
 0x252   : > { %4652 = vst [vmem:[%s7403_s6 + $0x190] sm:$0xff] %v4524_v49  ;;  %v4522_v48 = vsel %vm4266_vm4, %v6147_v7, %v4394_v45  ;;  %vm4267_vm6 = vcmp.ge.f32.partialorder %v6149_v27, 0.0  ;;  %v4395_v55 = vmul.f32 0.2, %v6149_v27 }
 0x253   : > { %4650 = vst [vmem:[%s7403_s6 + $0x180] sm:$0xff] %v4522_v48  ;;  %v4525_v3 = vsel %vm4269_vm5, %v6148_v46, %v4397_v53  ;;  %v5764_v15 = vpop.f32.mrb[52].mxu1 }
 0x254   : > { %4653 = vst [vmem:[%s7403_s6 + $0x198] sm:$0xff] %v4525_v3  ;;  %v4523_v61 = vsel %vm4267_vm6, %v6149_v27, %v4395_v55  ;;  %v6024_v9 = vpop.f32.mrb[52].mxu0  ;;  %v1778_v35 = vpop.f32.mrb[53].mxu1 }
 0x255   : > { %4651 = vst [vmem:[%s7403_s6 + $0x188] sm:$0xff] %v4523_v61  ;;  %v6150_v12 = vadd.f32 %v6024_v9, %v5764_v15  ;;  %v3787_v63 = vpop.f32.mrb[53].mxu0  ;;  %v5765_v58 = vpop.f32.mrb[54].mxu1 }
 0x256   : > { %v6151_v39 = vadd.f32 %v3787_v63, %v1778_v35  ;;  %v6025_v30 = vpop.f32.mrb[54].mxu0  ;;  %v1781_v60 = vpop.f32.mrb[55].mxu1 }
 0x257   : > { %vm4272_vm1 = vcmp.ge.f32.partialorder %v6150_v12, 0.0  ;;  %v4400_v38 = vmul.f32 0.2, %v6150_v12  ;;  %v6152_v11 = vadd.f32 %v6025_v30, %v5765_v58  ;;  %v3790_v29 = vpop.f32.mrb[55].mxu0 }
 0x258   : > { %vm4270_vm7 = vcmp.ge.f32.partialorder %v6151_v39, 0.0  ;;  %v4398_v13 = vmul.f32 0.2, %v6151_v39  ;;  %v6153_v56 = vadd.f32 %v3790_v29, %v1781_v60 }
 0x259   : > { %v4528_v41 = vsel %vm4272_vm1, %v6150_v12, %v4400_v38  ;;  %vm4273_vm8 = vcmp.ge.f32.partialorder %v6152_v11, 0.0  ;;  %v4401_v62 = vmul.f32 0.2, %v6152_v11 }
 0x25a   : > { %4656 = vst [vmem:[%s7403_s6 + $0x1b0] sm:$0xff] %v4528_v41  ;;  %v4526_v50 = vsel %vm4270_vm7, %v6151_v39, %v4398_v13  ;;  %vm4271_vm9 = vcmp.ge.f32.partialorder %v6153_v56, 0.0  ;;  %v4399_v6 = vmul.f32 0.2, %v6153_v56 }
 0x25b   : > { %4654 = vst [vmem:[%s7403_s6 + $0x1a0] sm:$0xff] %v4526_v50  ;;  %v4529_v26 = vsel %vm4273_vm8, %v6152_v11, %v4401_v62  ;;  %v5768_v19 = vpop.f32.mrb[56].mxu1 }
 0x25c   : > { %4657 = vst [vmem:[%s7403_s6 + $0x1b8] sm:$0xff] %v4529_v26  ;;  %v4527_v40 = vsel %vm4271_vm9, %v6153_v56, %v4399_v6  ;;  %v6028_v22 = vpop.f32.mrb[56].mxu0  ;;  %v1794_v28 = vpop.f32.mrb[57].mxu1 }
 0x25d   : > { %4655 = vst [vmem:[%s7403_s6 + $0x1a8] sm:$0xff] %v4527_v40  ;;  %v6154_v8 = vadd.f32 %v6028_v22, %v5768_v19  ;;  %v3803_v24 = vpop.f32.mrb[57].mxu0  ;;  %v5769_v47 = vpop.f32.mrb[58].mxu1 }
 0x25e   : > { %v6155_v54 = vadd.f32 %v3803_v24, %v1794_v28  ;;  %v6029_v51 = vpop.f32.mrb[58].mxu0  ;;  %v1797_v42 = vpop.f32.mrb[59].mxu1 }
 0x25f   : > { %vm4276_vm10 = vcmp.ge.f32.partialorder %v6154_v8, 0.0  ;;  %v4404_v57 = vmul.f32 0.2, %v6154_v8  ;;  %v6156_v44 = vadd.f32 %v6029_v51, %v5769_v47  ;;  %v3806_v10 = vpop.f32.mrb[59].mxu0 }
 0x260   : > { %vm4274_vm11 = vcmp.ge.f32.partialorder %v6155_v54, 0.0  ;;  %v4402_v18 = vmul.f32 0.2, %v6155_v54  ;;  %v6157_v17 = vadd.f32 %v3806_v10, %v1797_v42 }
 0x261   : > { %v4532_v2 = vsel %vm4276_vm10, %v6154_v8, %v4404_v57  ;;  %vm4277_vm12 = vcmp.ge.f32.partialorder %v6156_v44, 0.0  ;;  %v4405_v20 = vmul.f32 0.2, %v6156_v44 }
 0x262   : > { %4660 = vst [vmem:[%s7403_s6 + $0x1d0] sm:$0xff] %v4532_v2  ;;  %v4530_v59 = vsel %vm4274_vm11, %v6155_v54, %v4402_v18  ;;  %vm4275_vm13 = vcmp.ge.f32.partialorder %v6157_v17, 0.0  ;;  %v4403_v43 = vmul.f32 0.2, %v6157_v17 }
 0x263   : > { %4658 = vst [vmem:[%s7403_s6 + $0x1c0] sm:$0xff] %v4530_v59  ;;  %v4533_v34 = vsel %vm4277_vm12, %v6156_v44, %v4405_v20  ;;  %v5772_v52 = vpop.f32.mrb[60].mxu1 }
 0x264   : > { %4661 = vst [vmem:[%s7403_s6 + $0x1d8] sm:$0xff] %v4533_v34  ;;  %v4531_v0 = vsel %vm4275_vm13, %v6157_v17, %v4403_v43  ;;  %v6032_v4 = vpop.f32.mrb[60].mxu0  ;;  %v1810_v36 = vpop.f32.mrb[61].mxu1 }
 0x265   : > { %4659 = vst [vmem:[%s7403_s6 + $0x1c8] sm:$0xff] %v4531_v0  ;;  %v6158_v21 = vadd.f32 %v6032_v4, %v5772_v52  ;;  %v3819_v31 = vpop.f32.mrb[61].mxu0  ;;  %v5773_v14 = vpop.f32.mrb[62].mxu1 }
 0x266   : > { %v6159_v25 = vadd.f32 %v3819_v31, %v1810_v36  ;;  %v6033_v5 = vpop.f32.mrb[62].mxu0  ;;  %v1813_v16 = vpop.f32.mrb[63].mxu1 }
 0x267   : > { %vm4280_vm14 = vcmp.ge.f32.partialorder %v6158_v21, 0.0  ;;  %v4408_v33 = vmul.f32 0.2, %v6158_v21  ;;  %v6160_v7 = vadd.f32 %v6033_v5, %v5773_v14  ;;  %v3822_v1 = vpop.f32.mrb[63].mxu0 }
 0x268   : > { %vm4278_vm15 = vcmp.ge.f32.partialorder %v6159_v25, 0.0  ;;  %v4406_v23 = vmul.f32 0.2, %v6159_v25  ;;  %v6161_v32 = vadd.f32 %v3822_v1, %v1813_v16 }
 0x269   : > { %v4536_v46 = vsel %vm4280_vm14, %v6158_v21, %v4408_v33  ;;  %vm4281_vm0 = vcmp.ge.f32.partialorder %v6160_v7, 0.0  ;;  %v4409_v37 = vmul.f32 0.2, %v6160_v7 }
 0x26a   : > { %4664 = vst [vmem:[%s7403_s6 + $0x1f0] sm:$0xff] %v4536_v46  ;;  %v4534_v45 = vsel %vm4278_vm15, %v6159_v25, %v4406_v23  ;;  %vm4279_vm2 = vcmp.ge.f32.partialorder %v6161_v32, 0.0  ;;  %v4407_v27 = vmul.f32 0.2, %v6161_v32 }
 0x26b   : > { %4662 = vst [vmem:[%s7403_s6 + $0x1e0] sm:$0xff] %v4534_v45  ;;  %v4537_v49 = vsel %vm4281_vm0, %v6160_v7, %v4409_v37  ;;  %v5776_v53 = vpop.f32.mrb[64].mxu1 }
 0x26c   : > { %4665 = vst [vmem:[%s7403_s6 + $0x1f8] sm:$0xff] %v4537_v49  ;;  %v4535_v48 = vsel %vm4279_vm2, %v6161_v32, %v4407_v27  ;;  %v6036_v55 = vpop.f32.mrb[64].mxu0  ;;  %v1826_v3 = vpop.f32.mrb[65].mxu1 }
 0x26d   : > { %4663 = vst [vmem:[%s7403_s6 + $0x1e8] sm:$0xff] %v4535_v48  ;;  %v6162_v15 = vadd.f32 %v6036_v55, %v5776_v53  ;;  %v3835_v61 = vpop.f32.mrb[65].mxu0  ;;  %v5777_v9 = vpop.f32.mrb[66].mxu1 }
 0x26e   : > { %v6163_v35 = vadd.f32 %v3835_v61, %v1826_v3  ;;  %v6037_v12 = vpop.f32.mrb[66].mxu0  ;;  %v1829_v63 = vpop.f32.mrb[67].mxu1 }
 0x26f   : > { %vm4284_vm3 = vcmp.ge.f32.partialorder %v6162_v15, 0.0  ;;  %v4412_v58 = vmul.f32 0.2, %v6162_v15  ;;  %v6164_v39 = vadd.f32 %v6037_v12, %v5777_v9  ;;  %v3838_v30 = vpop.f32.mrb[67].mxu0 }
 0x270   : > { %vm4282_vm4 = vcmp.ge.f32.partialorder %v6163_v35, 0.0  ;;  %v4410_v60 = vmul.f32 0.2, %v6163_v35  ;;  %v6165_v38 = vadd.f32 %v3838_v30, %v1829_v63 }
 0x271   : > { %v4540_v11 = vsel %vm4284_vm3, %v6162_v15, %v4412_v58  ;;  %vm4285_vm5 = vcmp.ge.f32.partialorder %v6164_v39, 0.0  ;;  %v4413_v29 = vmul.f32 0.2, %v6164_v39 }
 0x272   : > { %4668 = vst [vmem:[%s7403_s6 + $0x210] sm:$0xff] %v4540_v11  ;;  %v4538_v13 = vsel %vm4282_vm4, %v6163_v35, %v4410_v60  ;;  %vm4283_vm6 = vcmp.ge.f32.partialorder %v6165_v38, 0.0  ;;  %v4411_v56 = vmul.f32 0.2, %v6165_v38 }
 0x273   : > { %4666 = vst [vmem:[%s7403_s6 + $0x200] sm:$0xff] %v4538_v13  ;;  %v4541_v41 = vsel %vm4285_vm5, %v6164_v39, %v4413_v29  ;;  %v5780_v62 = vpop.f32.mrb[68].mxu1 }
 0x274   : > { %4669 = vst [vmem:[%s7403_s6 + $0x218] sm:$0xff] %v4541_v41  ;;  %v4539_v50 = vsel %vm4283_vm6, %v6165_v38, %v4411_v56  ;;  %v6040_v6 = vpop.f32.mrb[68].mxu0  ;;  %v1842_v26 = vpop.f32.mrb[69].mxu1 }
 0x275   : > { %4667 = vst [vmem:[%s7403_s6 + $0x208] sm:$0xff] %v4539_v50  ;;  %v6166_v19 = vadd.f32 %v6040_v6, %v5780_v62  ;;  %v3851_v40 = vpop.f32.mrb[69].mxu0  ;;  %v5781_v22 = vpop.f32.mrb[70].mxu1 }
 0x276   : > { %v6167_v28 = vadd.f32 %v3851_v40, %v1842_v26  ;;  %v6041_v8 = vpop.f32.mrb[70].mxu0  ;;  %v1845_v24 = vpop.f32.mrb[71].mxu1 }
 0x277   : > { %vm4288_vm1 = vcmp.ge.f32.partialorder %v6166_v19, 0.0  ;;  %v4416_v47 = vmul.f32 0.2, %v6166_v19  ;;  %v6168_v54 = vadd.f32 %v6041_v8, %v5781_v22  ;;  %v3854_v51 = vpop.f32.mrb[71].mxu0 }
 0x278   : > { %vm4286_vm7 = vcmp.ge.f32.partialorder %v6167_v28, 0.0  ;;  %v4414_v42 = vmul.f32 0.2, %v6167_v28  ;;  %v6169_v57 = vadd.f32 %v3854_v51, %v1845_v24 }
 0x279   : > { %v4544_v44 = vsel %vm4288_vm1, %v6166_v19, %v4416_v47  ;;  %vm4289_vm8 = vcmp.ge.f32.partialorder %v6168_v54, 0.0  ;;  %v4417_v10 = vmul.f32 0.2, %v6168_v54 }
 0x27a   : > { %4672 = vst [vmem:[%s7403_s6 + $0x230] sm:$0xff] %v4544_v44  ;;  %v4542_v18 = vsel %vm4286_vm7, %v6167_v28, %v4414_v42  ;;  %vm4287_vm9 = vcmp.ge.f32.partialorder %v6169_v57, 0.0  ;;  %v4415_v17 = vmul.f32 0.2, %v6169_v57 }
 0x27b   : > { %4670 = vst [vmem:[%s7403_s6 + $0x220] sm:$0xff] %v4542_v18  ;;  %v4545_v2 = vsel %vm4289_vm8, %v6168_v54, %v4417_v10  ;;  %v5784_v20 = vpop.f32.mrb[72].mxu1 }
 0x27c   : > { %4673 = vst [vmem:[%s7403_s6 + $0x238] sm:$0xff] %v4545_v2  ;;  %v4543_v59 = vsel %vm4287_vm9, %v6169_v57, %v4415_v17  ;;  %v6044_v43 = vpop.f32.mrb[72].mxu0  ;;  %v1858_v34 = vpop.f32.mrb[73].mxu1 }
 0x27d   : > { %4671 = vst [vmem:[%s7403_s6 + $0x228] sm:$0xff] %v4543_v59  ;;  %v6170_v52 = vadd.f32 %v6044_v43, %v5784_v20  ;;  %v3867_v0 = vpop.f32.mrb[73].mxu0  ;;  %v5785_v4 = vpop.f32.mrb[74].mxu1 }
 0x27e   : > { %v6171_v36 = vadd.f32 %v3867_v0, %v1858_v34  ;;  %v6045_v21 = vpop.f32.mrb[74].mxu0  ;;  %v1861_v31 = vpop.f32.mrb[75].mxu1 }
 0x27f   : > { %vm4292_vm10 = vcmp.ge.f32.partialorder %v6170_v52, 0.0  ;;  %v4420_v14 = vmul.f32 0.2, %v6170_v52  ;;  %v6172_v25 = vadd.f32 %v6045_v21, %v5785_v4  ;;  %v3870_v5 = vpop.f32.mrb[75].mxu0 }
 0x280   : > { %vm4290_vm11 = vcmp.ge.f32.partialorder %v6171_v36, 0.0  ;;  %v4418_v16 = vmul.f32 0.2, %v6171_v36  ;;  %v6173_v33 = vadd.f32 %v3870_v5, %v1861_v31 }
 0x281   : > { %v4548_v7 = vsel %vm4292_vm10, %v6170_v52, %v4420_v14  ;;  %vm4293_vm12 = vcmp.ge.f32.partialorder %v6172_v25, 0.0  ;;  %v4421_v1 = vmul.f32 0.2, %v6172_v25 }
 0x282   : > { %4676 = vst [vmem:[%s7403_s6 + $0x250] sm:$0xff] %v4548_v7  ;;  %v4546_v23 = vsel %vm4290_vm11, %v6171_v36, %v4418_v16  ;;  %vm4291_vm13 = vcmp.ge.f32.partialorder %v6173_v33, 0.0  ;;  %v4419_v32 = vmul.f32 0.2, %v6173_v33 }
 0x283   : > { %4674 = vst [vmem:[%s7403_s6 + $0x240] sm:$0xff] %v4546_v23  ;;  %v4549_v46 = vsel %vm4293_vm12, %v6172_v25, %v4421_v1  ;;  %v5788_v37 = vpop.f32.mrb[76].mxu1 }
 0x284   : > { %4677 = vst [vmem:[%s7403_s6 + $0x258] sm:$0xff] %v4549_v46  ;;  %v4547_v45 = vsel %vm4291_vm13, %v6173_v33, %v4419_v32  ;;  %v6048_v27 = vpop.f32.mrb[76].mxu0  ;;  %v1874_v49 = vpop.f32.mrb[77].mxu1 }
 0x285   : > { %4675 = vst [vmem:[%s7403_s6 + $0x248] sm:$0xff] %v4547_v45  ;;  %v6174_v53 = vadd.f32 %v6048_v27, %v5788_v37  ;;  %v3883_v48 = vpop.f32.mrb[77].mxu0  ;;  %v5789_v55 = vpop.f32.mrb[78].mxu1 }
 0x286   : > { %v6175_v3 = vadd.f32 %v3883_v48, %v1874_v49  ;;  %v6049_v15 = vpop.f32.mrb[78].mxu0  ;;  %v1877_v61 = vpop.f32.mrb[79].mxu1 }
 0x287   : > { %vm4296_vm14 = vcmp.ge.f32.partialorder %v6174_v53, 0.0  ;;  %v4424_v9 = vmul.f32 0.2, %v6174_v53  ;;  %v6176_v35 = vadd.f32 %v6049_v15, %v5789_v55  ;;  %v3886_v12 = vpop.f32.mrb[79].mxu0 }
 0x288   : > { %vm4294_vm15 = vcmp.ge.f32.partialorder %v6175_v3, 0.0  ;;  %v4422_v63 = vmul.f32 0.2, %v6175_v3  ;;  %v6177_v58 = vadd.f32 %v3886_v12, %v1877_v61 }
 0x289   : > { %v4552_v39 = vsel %vm4296_vm14, %v6174_v53, %v4424_v9  ;;  %vm4297_vm0 = vcmp.ge.f32.partialorder %v6176_v35, 0.0  ;;  %v4425_v30 = vmul.f32 0.2, %v6176_v35 }
 0x28a   : > { %4680 = vst [vmem:[%s7403_s6 + $0x270] sm:$0xff] %v4552_v39  ;;  %v4550_v60 = vsel %vm4294_vm15, %v6175_v3, %v4422_v63  ;;  %vm4295_vm2 = vcmp.ge.f32.partialorder %v6177_v58, 0.0  ;;  %v4423_v38 = vmul.f32 0.2, %v6177_v58 }
 0x28b   : > { %4678 = vst [vmem:[%s7403_s6 + $0x260] sm:$0xff] %v4550_v60  ;;  %v4553_v11 = vsel %vm4297_vm0, %v6176_v35, %v4425_v30  ;;  %v5792_v29 = vpop.f32.mrb[80].mxu1 }
 0x28c   : > { %4681 = vst [vmem:[%s7403_s6 + $0x278] sm:$0xff] %v4553_v11  ;;  %v4551_v13 = vsel %vm4295_vm2, %v6177_v58, %v4423_v38  ;;  %v6052_v56 = vpop.f32.mrb[80].mxu0  ;;  %v1890_v41 = vpop.f32.mrb[81].mxu1 }
 0x28d   : > { %4679 = vst [vmem:[%s7403_s6 + $0x268] sm:$0xff] %v4551_v13  ;;  %v6178_v62 = vadd.f32 %v6052_v56, %v5792_v29  ;;  %v3899_v50 = vpop.f32.mrb[81].mxu0  ;;  %v5793_v6 = vpop.f32.mrb[82].mxu1 }
 0x28e   : > { %v6179_v26 = vadd.f32 %v3899_v50, %v1890_v41  ;;  %v6053_v19 = vpop.f32.mrb[82].mxu0  ;;  %v1893_v40 = vpop.f32.mrb[83].mxu1 }
 0x28f   : > { %vm4300_vm3 = vcmp.ge.f32.partialorder %v6178_v62, 0.0  ;;  %v4428_v22 = vmul.f32 0.2, %v6178_v62  ;;  %v6180_v28 = vadd.f32 %v6053_v19, %v5793_v6  ;;  %v3902_v8 = vpop.f32.mrb[83].mxu0 }
 0x290   : > { %vm4298_vm4 = vcmp.ge.f32.partialorder %v6179_v26, 0.0  ;;  %v4426_v24 = vmul.f32 0.2, %v6179_v26  ;;  %v6181_v47 = vadd.f32 %v3902_v8, %v1893_v40 }
 0x291   : > { %v4556_v54 = vsel %vm4300_vm3, %v6178_v62, %v4428_v22  ;;  %vm4301_vm5 = vcmp.ge.f32.partialorder %v6180_v28, 0.0  ;;  %v4429_v51 = vmul.f32 0.2, %v6180_v28 }
 0x292   : > { %4684 = vst [vmem:[%s7403_s6 + $0x290] sm:$0xff] %v4556_v54  ;;  %v4554_v42 = vsel %vm4298_vm4, %v6179_v26, %v4426_v24  ;;  %vm4299_vm6 = vcmp.ge.f32.partialorder %v6181_v47, 0.0  ;;  %v4427_v57 = vmul.f32 0.2, %v6181_v47 }
 0x293   : > { %4682 = vst [vmem:[%s7403_s6 + $0x280] sm:$0xff] %v4554_v42  ;;  %v4557_v44 = vsel %vm4301_vm5, %v6180_v28, %v4429_v51  ;;  %v5796_v10 = vpop.f32.mrb[84].mxu1 }
 0x294   : > { %4685 = vst [vmem:[%s7403_s6 + $0x298] sm:$0xff] %v4557_v44  ;;  %v4555_v18 = vsel %vm4299_vm6, %v6181_v47, %v4427_v57  ;;  %v6056_v17 = vpop.f32.mrb[84].mxu0  ;;  %v1906_v2 = vpop.f32.mrb[85].mxu1 }
 0x295   : > { %4683 = vst [vmem:[%s7403_s6 + $0x288] sm:$0xff] %v4555_v18  ;;  %v6182_v20 = vadd.f32 %v6056_v17, %v5796_v10  ;;  %v3915_v59 = vpop.f32.mrb[85].mxu0  ;;  %v5797_v43 = vpop.f32.mrb[86].mxu1 }
 0x296   : > { %v6183_v34 = vadd.f32 %v3915_v59, %v1906_v2  ;;  %v6057_v52 = vpop.f32.mrb[86].mxu0  ;;  %v1909_v0 = vpop.f32.mrb[87].mxu1 }
 0x297   : > { %vm4304_vm1 = vcmp.ge.f32.partialorder %v6182_v20, 0.0  ;;  %v4432_v4 = vmul.f32 0.2, %v6182_v20  ;;  %v6184_v36 = vadd.f32 %v6057_v52, %v5797_v43  ;;  %v3918_v21 = vpop.f32.mrb[87].mxu0 }
 0x298   : > { %vm4302_vm7 = vcmp.ge.f32.partialorder %v6183_v34, 0.0  ;;  %v4430_v31 = vmul.f32 0.2, %v6183_v34  ;;  %v6185_v14 = vadd.f32 %v3918_v21, %v1909_v0 }
 0x299   : > { %v4560_v25 = vsel %vm4304_vm1, %v6182_v20, %v4432_v4  ;;  %vm4305_vm8 = vcmp.ge.f32.partialorder %v6184_v36, 0.0  ;;  %v4433_v5 = vmul.f32 0.2, %v6184_v36 }
 0x29a   : > { %4688 = vst [vmem:[%s7403_s6 + $0x2b0] sm:$0xff] %v4560_v25  ;;  %v4558_v16 = vsel %vm4302_vm7, %v6183_v34, %v4430_v31  ;;  %vm4303_vm9 = vcmp.ge.f32.partialorder %v6185_v14, 0.0  ;;  %v4431_v33 = vmul.f32 0.2, %v6185_v14 }
 0x29b   : > { %4686 = vst [vmem:[%s7403_s6 + $0x2a0] sm:$0xff] %v4558_v16  ;;  %v4561_v7 = vsel %vm4305_vm8, %v6184_v36, %v4433_v5  ;;  %v5800_v1 = vpop.f32.mrb[88].mxu1 }
 0x29c   : > { %4689 = vst [vmem:[%s7403_s6 + $0x2b8] sm:$0xff] %v4561_v7  ;;  %v4559_v23 = vsel %vm4303_vm9, %v6185_v14, %v4431_v33  ;;  %v6060_v32 = vpop.f32.mrb[88].mxu0  ;;  %v1922_v46 = vpop.f32.mrb[89].mxu1 }
 0x29d   : > { %4687 = vst [vmem:[%s7403_s6 + $0x2a8] sm:$0xff] %v4559_v23  ;;  %v6186_v37 = vadd.f32 %v6060_v32, %v5800_v1  ;;  %v3931_v45 = vpop.f32.mrb[89].mxu0  ;;  %v5801_v27 = vpop.f32.mrb[90].mxu1 }
 0x29e   : > { %v6187_v49 = vadd.f32 %v3931_v45, %v1922_v46  ;;  %v6061_v53 = vpop.f32.mrb[90].mxu0  ;;  %v1925_v48 = vpop.f32.mrb[91].mxu1 }
 0x29f   : > { %vm4308_vm10 = vcmp.ge.f32.partialorder %v6186_v37, 0.0  ;;  %v4436_v55 = vmul.f32 0.2, %v6186_v37  ;;  %v6188_v3 = vadd.f32 %v6061_v53, %v5801_v27  ;;  %v3934_v15 = vpop.f32.mrb[91].mxu0 }
 0x2a0   : > { %vm4306_vm11 = vcmp.ge.f32.partialorder %v6187_v49, 0.0  ;;  %v4434_v61 = vmul.f32 0.2, %v6187_v49  ;;  %v6189_v9 = vadd.f32 %v3934_v15, %v1925_v48 }
 0x2a1   : > { %v4564_v35 = vsel %vm4308_vm10, %v6186_v37, %v4436_v55  ;;  %vm4309_vm12 = vcmp.ge.f32.partialorder %v6188_v3, 0.0  ;;  %v4437_v12 = vmul.f32 0.2, %v6188_v3 }
 0x2a2   : > { %4692 = vst [vmem:[%s7403_s6 + $0x2d0] sm:$0xff] %v4564_v35  ;;  %v4562_v63 = vsel %vm4306_vm11, %v6187_v49, %v4434_v61  ;;  %vm4307_vm13 = vcmp.ge.f32.partialorder %v6189_v9, 0.0  ;;  %v4435_v58 = vmul.f32 0.2, %v6189_v9 }
 0x2a3   : > { %4690 = vst [vmem:[%s7403_s6 + $0x2c0] sm:$0xff] %v4562_v63  ;;  %v4565_v39 = vsel %vm4309_vm12, %v6188_v3, %v4437_v12  ;;  %v5804_v30 = vpop.f32.mrb[92].mxu1 }
 0x2a4   : > { %4693 = vst [vmem:[%s7403_s6 + $0x2d8] sm:$0xff] %v4565_v39  ;;  %v4563_v60 = vsel %vm4307_vm13, %v6189_v9, %v4435_v58  ;;  %v6064_v38 = vpop.f32.mrb[92].mxu0  ;;  %v1938_v11 = vpop.f32.mrb[93].mxu1 }
 0x2a5   : > { %4691 = vst [vmem:[%s7403_s6 + $0x2c8] sm:$0xff] %v4563_v60  ;;  %v6190_v29 = vadd.f32 %v6064_v38, %v5804_v30  ;;  %v3947_v13 = vpop.f32.mrb[93].mxu0  ;;  %v5805_v56 = vpop.f32.mrb[94].mxu1 }
 0x2a6   : > { %v6191_v41 = vadd.f32 %v3947_v13, %v1938_v11  ;;  %v6065_v62 = vpop.f32.mrb[94].mxu0  ;;  %v1941_v50 = vpop.f32.mrb[95].mxu1 }
 0x2a7   : > { %vm4312_vm14 = vcmp.ge.f32.partialorder %v6190_v29, 0.0  ;;  %v4440_v6 = vmul.f32 0.2, %v6190_v29  ;;  %v6192_v26 = vadd.f32 %v6065_v62, %v5805_v56  ;;  %v3950_v19 = vpop.f32.mrb[95].mxu0 }
 0x2a8   : > { %vm4310_vm15 = vcmp.ge.f32.partialorder %v6191_v41, 0.0  ;;  %v4438_v40 = vmul.f32 0.2, %v6191_v41  ;;  %v6193_v22 = vadd.f32 %v3950_v19, %v1941_v50 }
 0x2a9   : > { %v4568_v28 = vsel %vm4312_vm14, %v6190_v29, %v4440_v6  ;;  %vm4313_vm0 = vcmp.ge.f32.partialorder %v6192_v26, 0.0  ;;  %v4441_v8 = vmul.f32 0.2, %v6192_v26 }
 0x2aa   : > { %4696 = vst [vmem:[%s7403_s6 + $0x2f0] sm:$0xff] %v4568_v28  ;;  %v4566_v24 = vsel %vm4310_vm15, %v6191_v41, %v4438_v40  ;;  %vm4311_vm2 = vcmp.ge.f32.partialorder %v6193_v22, 0.0  ;;  %v4439_v47 = vmul.f32 0.2, %v6193_v22 }
 0x2ab   : > { %4694 = vst [vmem:[%s7403_s6 + $0x2e0] sm:$0xff] %v4566_v24  ;;  %v4569_v54 = vsel %vm4313_vm0, %v6192_v26, %v4441_v8  ;;  %v5808_v51 = vpop.f32.mrb[96].mxu1 }
 0x2ac   : > { %4697 = vst [vmem:[%s7403_s6 + $0x2f8] sm:$0xff] %v4569_v54  ;;  %v4567_v42 = vsel %vm4311_vm2, %v6193_v22, %v4439_v47  ;;  %v6068_v57 = vpop.f32.mrb[96].mxu0  ;;  %v1954_v44 = vpop.f32.mrb[97].mxu1 }
 0x2ad   : > { %4695 = vst [vmem:[%s7403_s6 + $0x2e8] sm:$0xff] %v4567_v42  ;;  %v6194_v10 = vadd.f32 %v6068_v57, %v5808_v51  ;;  %v3963_v18 = vpop.f32.mrb[97].mxu0  ;;  %v5809_v17 = vpop.f32.mrb[98].mxu1 }
 0x2ae   : > { %v6195_v2 = vadd.f32 %v3963_v18, %v1954_v44  ;;  %v6069_v20 = vpop.f32.mrb[98].mxu0  ;;  %v1957_v59 = vpop.f32.mrb[99].mxu1 }
 0x2af   : > { %vm4316_vm3 = vcmp.ge.f32.partialorder %v6194_v10, 0.0  ;;  %v4444_v43 = vmul.f32 0.2, %v6194_v10  ;;  %v6196_v34 = vadd.f32 %v6069_v20, %v5809_v17  ;;  %v3966_v52 = vpop.f32.mrb[99].mxu0 }
 0x2b0   : > { %vm4314_vm4 = vcmp.ge.f32.partialorder %v6195_v2, 0.0  ;;  %v4442_v0 = vmul.f32 0.2, %v6195_v2  ;;  %v6197_v4 = vadd.f32 %v3966_v52, %v1957_v59 }
 0x2b1   : > { %v4572_v36 = vsel %vm4316_vm3, %v6194_v10, %v4444_v43  ;;  %vm4317_vm5 = vcmp.ge.f32.partialorder %v6196_v34, 0.0  ;;  %v4445_v21 = vmul.f32 0.2, %v6196_v34 }
 0x2b2   : > { %4700 = vst [vmem:[%s7403_s6 + $0x310] sm:$0xff] %v4572_v36  ;;  %v4570_v31 = vsel %vm4314_vm4, %v6195_v2, %v4442_v0  ;;  %vm4315_vm6 = vcmp.ge.f32.partialorder %v6197_v4, 0.0  ;;  %v4443_v14 = vmul.f32 0.2, %v6197_v4 }
 0x2b3   : > { %4698 = vst [vmem:[%s7403_s6 + $0x300] sm:$0xff] %v4570_v31  ;;  %v4573_v25 = vsel %vm4317_vm5, %v6196_v34, %v4445_v21  ;;  %v5812_v5 = vpop.f32.mrb[100].mxu1 }
 0x2b4   : > { %4701 = vst [vmem:[%s7403_s6 + $0x318] sm:$0xff] %v4573_v25  ;;  %v4571_v16 = vsel %vm4315_vm6, %v6197_v4, %v4443_v14  ;;  %v6072_v33 = vpop.f32.mrb[100].mxu0  ;;  %v1970_v7 = vpop.f32.mrb[101].mxu1 }
 0x2b5   : > { %4699 = vst [vmem:[%s7403_s6 + $0x308] sm:$0xff] %v4571_v16  ;;  %v6198_v1 = vadd.f32 %v6072_v33, %v5812_v5  ;;  %v3979_v23 = vpop.f32.mrb[101].mxu0  ;;  %v5813_v32 = vpop.f32.mrb[102].mxu1 }
 0x2b6   : > { %v6199_v46 = vadd.f32 %v3979_v23, %v1970_v7  ;;  %v6073_v37 = vpop.f32.mrb[102].mxu0  ;;  %v1973_v45 = vpop.f32.mrb[103].mxu1 }
 0x2b7   : > { %vm4320_vm1 = vcmp.ge.f32.partialorder %v6198_v1, 0.0  ;;  %v4448_v27 = vmul.f32 0.2, %v6198_v1  ;;  %v6200_v49 = vadd.f32 %v6073_v37, %v5813_v32  ;;  %v3982_v53 = vpop.f32.mrb[103].mxu0 }
 0x2b8   : > { %vm4318_vm7 = vcmp.ge.f32.partialorder %v6199_v46, 0.0  ;;  %v4446_v48 = vmul.f32 0.2, %v6199_v46  ;;  %v6201_v55 = vadd.f32 %v3982_v53, %v1973_v45 }
 0x2b9   : > { %v4576_v3 = vsel %vm4320_vm1, %v6198_v1, %v4448_v27  ;;  %vm4321_vm8 = vcmp.ge.f32.partialorder %v6200_v49, 0.0  ;;  %v4449_v15 = vmul.f32 0.2, %v6200_v49 }
 0x2ba   : > { %4704 = vst [vmem:[%s7403_s6 + $0x330] sm:$0xff] %v4576_v3  ;;  %v4574_v61 = vsel %vm4318_vm7, %v6199_v46, %v4446_v48  ;;  %vm4319_vm9 = vcmp.ge.f32.partialorder %v6201_v55, 0.0  ;;  %v4447_v9 = vmul.f32 0.2, %v6201_v55 }
 0x2bb   : > { %4702 = vst [vmem:[%s7403_s6 + $0x320] sm:$0xff] %v4574_v61  ;;  %v4577_v35 = vsel %vm4321_vm8, %v6200_v49, %v4449_v15  ;;  %v5816_v12 = vpop.f32.mrb[104].mxu1 }
 0x2bc   : > { %4705 = vst [vmem:[%s7403_s6 + $0x338] sm:$0xff] %v4577_v35  ;;  %v4575_v63 = vsel %vm4319_vm9, %v6201_v55, %v4447_v9  ;;  %v6076_v58 = vpop.f32.mrb[104].mxu0  ;;  %v1986_v39 = vpop.f32.mrb[105].mxu1 }
 0x2bd   : > { %4703 = vst [vmem:[%s7403_s6 + $0x328] sm:$0xff] %v4575_v63  ;;  %v6202_v30 = vadd.f32 %v6076_v58, %v5816_v12  ;;  %v3995_v60 = vpop.f32.mrb[105].mxu0  ;;  %v5817_v38 = vpop.f32.mrb[106].mxu1 }
 0x2be   : > { %v6203_v11 = vadd.f32 %v3995_v60, %v1986_v39  ;;  %v6077_v29 = vpop.f32.mrb[106].mxu0  ;;  %v1989_v13 = vpop.f32.mrb[107].mxu1 }
 0x2bf   : > { %vm4324_vm10 = vcmp.ge.f32.partialorder %v6202_v30, 0.0  ;;  %v4452_v56 = vmul.f32 0.2, %v6202_v30  ;;  %v6204_v41 = vadd.f32 %v6077_v29, %v5817_v38  ;;  %v3998_v62 = vpop.f32.mrb[107].mxu0 }
 0x2c0   : > { %vm4322_vm11 = vcmp.ge.f32.partialorder %v6203_v11, 0.0  ;;  %v4450_v50 = vmul.f32 0.2, %v6203_v11  ;;  %v6205_v6 = vadd.f32 %v3998_v62, %v1989_v13 }
 0x2c1   : > { %v4580_v26 = vsel %vm4324_vm10, %v6202_v30, %v4452_v56  ;;  %vm4325_vm12 = vcmp.ge.f32.partialorder %v6204_v41, 0.0  ;;  %v4453_v19 = vmul.f32 0.2, %v6204_v41 }
 0x2c2   : > { %4708 = vst [vmem:[%s7403_s6 + $0x350] sm:$0xff] %v4580_v26  ;;  %v4578_v40 = vsel %vm4322_vm11, %v6203_v11, %v4450_v50  ;;  %vm4323_vm13 = vcmp.ge.f32.partialorder %v6205_v6, 0.0  ;;  %v4451_v22 = vmul.f32 0.2, %v6205_v6 }
 0x2c3   : > { %4706 = vst [vmem:[%s7403_s6 + $0x340] sm:$0xff] %v4578_v40  ;;  %v4581_v28 = vsel %vm4325_vm12, %v6204_v41, %v4453_v19  ;;  %v5820_v8 = vpop.f32.mrb[108].mxu1 }
 0x2c4   : > { %4709 = vst [vmem:[%s7403_s6 + $0x358] sm:$0xff] %v4581_v28  ;;  %v4579_v24 = vsel %vm4323_vm13, %v6205_v6, %v4451_v22  ;;  %v6080_v47 = vpop.f32.mrb[108].mxu0  ;;  %v2002_v54 = vpop.f32.mrb[109].mxu1 }
 0x2c5   : > { %4707 = vst [vmem:[%s7403_s6 + $0x348] sm:$0xff] %v4579_v24  ;;  %v6206_v51 = vadd.f32 %v6080_v47, %v5820_v8  ;;  %v4011_v42 = vpop.f32.mrb[109].mxu0  ;;  %v5821_v57 = vpop.f32.mrb[110].mxu1 }
 0x2c6   : > { %v6207_v44 = vadd.f32 %v4011_v42, %v2002_v54  ;;  %v6081_v10 = vpop.f32.mrb[110].mxu0  ;;  %v2005_v18 = vpop.f32.mrb[111].mxu1 }
 0x2c7   : > { %vm4328_vm14 = vcmp.ge.f32.partialorder %v6206_v51, 0.0  ;;  %v4456_v17 = vmul.f32 0.2, %v6206_v51  ;;  %v6208_v2 = vadd.f32 %v6081_v10, %v5821_v57  ;;  %v4014_v20 = vpop.f32.mrb[111].mxu0 }
 0x2c8   : > { %vm4326_vm15 = vcmp.ge.f32.partialorder %v6207_v44, 0.0  ;;  %v4454_v59 = vmul.f32 0.2, %v6207_v44  ;;  %v6209_v43 = vadd.f32 %v4014_v20, %v2005_v18 }
 0x2c9   : > { %v4584_v34 = vsel %vm4328_vm14, %v6206_v51, %v4456_v17  ;;  %vm4329_vm0 = vcmp.ge.f32.partialorder %v6208_v2, 0.0  ;;  %v4457_v52 = vmul.f32 0.2, %v6208_v2 }
 0x2ca   : > { %4712 = vst [vmem:[%s7403_s6 + $0x370] sm:$0xff] %v4584_v34  ;;  %v4582_v0 = vsel %vm4326_vm15, %v6207_v44, %v4454_v59  ;;  %vm4327_vm2 = vcmp.ge.f32.partialorder %v6209_v43, 0.0  ;;  %v4455_v4 = vmul.f32 0.2, %v6209_v43 }
 0x2cb   : > { %4710 = vst [vmem:[%s7403_s6 + $0x360] sm:$0xff] %v4582_v0  ;;  %v4585_v36 = vsel %vm4329_vm0, %v6208_v2, %v4457_v52  ;;  %v5824_v21 = vpop.f32.mrb[112].mxu1 }
 0x2cc   : > { %4713 = vst [vmem:[%s7403_s6 + $0x378] sm:$0xff] %v4585_v36  ;;  %v4583_v31 = vsel %vm4327_vm2, %v6209_v43, %v4455_v4  ;;  %v6084_v14 = vpop.f32.mrb[112].mxu0  ;;  %v2018_v25 = vpop.f32.mrb[113].mxu1 }
 0x2cd   : > { %4711 = vst [vmem:[%s7403_s6 + $0x368] sm:$0xff] %v4583_v31  ;;  %v6210_v5 = vadd.f32 %v6084_v14, %v5824_v21  ;;  %v4027_v16 = vpop.f32.mrb[113].mxu0  ;;  %v5825_v33 = vpop.f32.mrb[114].mxu1 }
 0x2ce   : > { %v6211_v7 = vadd.f32 %v4027_v16, %v2018_v25  ;;  %v6085_v1 = vpop.f32.mrb[114].mxu0  ;;  %v2021_v23 = vpop.f32.mrb[115].mxu1 }
 0x2cf   : > { %vm4332_vm3 = vcmp.ge.f32.partialorder %v6210_v5, 0.0  ;;  %v4460_v32 = vmul.f32 0.2, %v6210_v5  ;;  %v6212_v46 = vadd.f32 %v6085_v1, %v5825_v33  ;;  %v4030_v37 = vpop.f32.mrb[115].mxu0 }
 0x2d0   : > { %vm4330_vm4 = vcmp.ge.f32.partialorder %v6211_v7, 0.0  ;;  %v4458_v45 = vmul.f32 0.2, %v6211_v7  ;;  %v6213_v27 = vadd.f32 %v4030_v37, %v2021_v23 }
 0x2d1   : > { %v4588_v49 = vsel %vm4332_vm3, %v6210_v5, %v4460_v32  ;;  %vm4333_vm5 = vcmp.ge.f32.partialorder %v6212_v46, 0.0  ;;  %v4461_v53 = vmul.f32 0.2, %v6212_v46 }
 0x2d2   : > { %4716 = vst [vmem:[%s7403_s6 + $0x390] sm:$0xff] %v4588_v49  ;;  %v4586_v48 = vsel %vm4330_vm4, %v6211_v7, %v4458_v45  ;;  %vm4331_vm6 = vcmp.ge.f32.partialorder %v6213_v27, 0.0  ;;  %v4459_v55 = vmul.f32 0.2, %v6213_v27 }
 0x2d3   : > { %4714 = vst [vmem:[%s7403_s6 + $0x380] sm:$0xff] %v4586_v48  ;;  %v4589_v3 = vsel %vm4333_vm5, %v6212_v46, %v4461_v53  ;;  %v5828_v15 = vpop.f32.mrb[116].mxu1 }
 0x2d4   : > { %4717 = vst [vmem:[%s7403_s6 + $0x398] sm:$0xff] %v4589_v3  ;;  %v4587_v61 = vsel %vm4331_vm6, %v6213_v27, %v4459_v55  ;;  %v6088_v9 = vpop.f32.mrb[116].mxu0  ;;  %v2034_v35 = vpop.f32.mrb[117].mxu1 }
 0x2d5   : > { %4715 = vst [vmem:[%s7403_s6 + $0x388] sm:$0xff] %v4587_v61  ;;  %v6214_v12 = vadd.f32 %v6088_v9, %v5828_v15  ;;  %v4043_v63 = vpop.f32.mrb[117].mxu0  ;;  %v5829_v58 = vpop.f32.mrb[118].mxu1 }
 0x2d6   : > { %v6215_v39 = vadd.f32 %v4043_v63, %v2034_v35  ;;  %v6089_v30 = vpop.f32.mrb[118].mxu0  ;;  %v2037_v60 = vpop.f32.mrb[119].mxu1 }
 0x2d7   : > { %vm4336_vm1 = vcmp.ge.f32.partialorder %v6214_v12, 0.0  ;;  %v4464_v38 = vmul.f32 0.2, %v6214_v12  ;;  %v6216_v11 = vadd.f32 %v6089_v30, %v5829_v58  ;;  %v4046_v29 = vpop.f32.mrb[119].mxu0 }
 0x2d8   : > { %vm4334_vm7 = vcmp.ge.f32.partialorder %v6215_v39, 0.0  ;;  %v4462_v13 = vmul.f32 0.2, %v6215_v39  ;;  %v6217_v56 = vadd.f32 %v4046_v29, %v2037_v60 }
 0x2d9   : > { %v4592_v41 = vsel %vm4336_vm1, %v6214_v12, %v4464_v38  ;;  %vm4337_vm8 = vcmp.ge.f32.partialorder %v6216_v11, 0.0  ;;  %v4465_v62 = vmul.f32 0.2, %v6216_v11 }
 0x2da   : > { %4720 = vst [vmem:[%s7403_s6 + $0x3b0] sm:$0xff] %v4592_v41  ;;  %v4590_v50 = vsel %vm4334_vm7, %v6215_v39, %v4462_v13  ;;  %vm4335_vm9 = vcmp.ge.f32.partialorder %v6217_v56, 0.0  ;;  %v4463_v6 = vmul.f32 0.2, %v6217_v56 }
 0x2db   : > { %4718 = vst [vmem:[%s7403_s6 + $0x3a0] sm:$0xff] %v4590_v50  ;;  %v4593_v26 = vsel %vm4337_vm8, %v6216_v11, %v4465_v62  ;;  %v5832_v19 = vpop.f32.mrb[120].mxu1 }
 0x2dc   : > { %4721 = vst [vmem:[%s7403_s6 + $0x3b8] sm:$0xff] %v4593_v26  ;;  %v4591_v40 = vsel %vm4335_vm9, %v6217_v56, %v4463_v6  ;;  %v6092_v22 = vpop.f32.mrb[120].mxu0  ;;  %v2050_v28 = vpop.f32.mrb[121].mxu1 }
 0x2dd   : > { %4719 = vst [vmem:[%s7403_s6 + $0x3a8] sm:$0xff] %v4591_v40  ;;  %v6218_v8 = vadd.f32 %v6092_v22, %v5832_v19  ;;  %v4059_v24 = vpop.f32.mrb[121].mxu0  ;;  %v5833_v47 = vpop.f32.mrb[122].mxu1 }
 0x2de   : > { %v6219_v54 = vadd.f32 %v4059_v24, %v2050_v28  ;;  %v6093_v51 = vpop.f32.mrb[122].mxu0  ;;  %v2053_v42 = vpop.f32.mrb[123].mxu1 }
 0x2df   : > { %vm4340_vm10 = vcmp.ge.f32.partialorder %v6218_v8, 0.0  ;;  %v4468_v57 = vmul.f32 0.2, %v6218_v8  ;;  %v6220_v44 = vadd.f32 %v6093_v51, %v5833_v47  ;;  %v4062_v10 = vpop.f32.mrb[123].mxu0 }
 0x2e0   : > { %vm4338_vm11 = vcmp.ge.f32.partialorder %v6219_v54, 0.0  ;;  %v4466_v18 = vmul.f32 0.2, %v6219_v54  ;;  %v6221_v17 = vadd.f32 %v4062_v10, %v2053_v42 }
 0x2e1   : > { %v4596_v2 = vsel %vm4340_vm10, %v6218_v8, %v4468_v57  ;;  %vm4341_vm12 = vcmp.ge.f32.partialorder %v6220_v44, 0.0  ;;  %v4469_v20 = vmul.f32 0.2, %v6220_v44 }
 0x2e2   : > { %4724 = vst [vmem:[%s7403_s6 + $0x3d0] sm:$0xff] %v4596_v2  ;;  %v4594_v59 = vsel %vm4338_vm11, %v6219_v54, %v4466_v18  ;;  %vm4339_vm13 = vcmp.ge.f32.partialorder %v6221_v17, 0.0  ;;  %v4467_v43 = vmul.f32 0.2, %v6221_v17 }
 0x2e3   : > { %4722 = vst [vmem:[%s7403_s6 + $0x3c0] sm:$0xff] %v4594_v59  ;;  %v4597_v34 = vsel %vm4341_vm12, %v6220_v44, %v4469_v20  ;;  %v5836_v52 = vpop.f32.mrb[124].mxu1 }
 0x2e4   : > { %4725 = vst [vmem:[%s7403_s6 + $0x3d8] sm:$0xff] %v4597_v34  ;;  %v4595_v0 = vsel %vm4339_vm13, %v6221_v17, %v4467_v43  ;;  %v6096_v4 = vpop.f32.mrb[124].mxu0  ;;  %v2066_v36 = vpop.f32.mrb[125].mxu1 }
 0x2e5   : > { %4723 = vst [vmem:[%s7403_s6 + $0x3c8] sm:$0xff] %v4595_v0  ;;  %v6222_v21 = vadd.f32 %v6096_v4, %v5836_v52  ;;  %v4075_v31 = vpop.f32.mrb[125].mxu0  ;;  %v5837_v14 = vpop.f32.mrb[126].mxu1 }
 0x2e6   : > { %v6223_v25 = vadd.f32 %v4075_v31, %v2066_v36  ;;  %v6097_v5 = vpop.f32.mrb[126].mxu0  ;;  %v2069_v16 = vpop.f32.mrb[127].mxu1 }
 0x2e7   : > { %vm4344_vm14 = vcmp.ge.f32.partialorder %v6222_v21, 0.0  ;;  %v4472_v33 = vmul.f32 0.2, %v6222_v21  ;;  %v6224_v7 = vadd.f32 %v6097_v5, %v5837_v14  ;;  %v4078_v1 = vpop.f32.mrb[127].mxu0 }
 0x2e8   : > { %vm4342_vm15 = vcmp.ge.f32.partialorder %v6223_v25, 0.0  ;;  %v4470_v23 = vmul.f32 0.2, %v6223_v25  ;;  %v6225_v32 = vadd.f32 %v4078_v1, %v2069_v16 }
 0x2e9   : > { %v4600_v46 = vsel %vm4344_vm14, %v6222_v21, %v4472_v33  ;;  %vm4345_vm0 = vcmp.ge.f32.partialorder %v6224_v7, 0.0  ;;  %v4473_v37 = vmul.f32 0.2, %v6224_v7 }
 0x2ea   : > { %4728 = vst [vmem:[%s7403_s6 + $0x3f0] sm:$0xff] %v4600_v46  ;;  %v4598_v45 = vsel %vm4342_vm15, %v6223_v25, %v4470_v23  ;;  %vm4343_vm2 = vcmp.ge.f32.partialorder %v6225_v32, 0.0  ;;  %v4471_v27 = vmul.f32 0.2, %v6225_v32 }
 0x2eb   : > { %4726 = vst [vmem:[%s7403_s6 + $0x3e0] sm:$0xff] %v4598_v45  ;;  %v4601_v49 = vsel %vm4345_vm0, %v6224_v7, %v4473_v37 }
 0x2ec   : > { %4729 = vst [vmem:[%s7403_s6 + $0x3f8] sm:$0xff] %v4601_v49  ;;  %v4599_v53 = vsel %vm4343_vm2, %v6225_v32, %v4471_v27 }
 0x2ed   : > { %4727 = vst [vmem:[%s7403_s6 + $0x3e8] sm:$0xff] %v4599_v53 }
 0x2ee PF: > { %s14_s15 = sadd.s32 1, %s6505_s15  }
 0x2ef   : > { %p11_p5 = scmp.ge.s32.totalorder %s14_s15, 4  }
 0x2f1   :  { %13 = sbr.rel (!%p11_p5) target bundleno = 1 (0x1), region = 70 }

// kernel: forward.5
= control target key start
LH: loop header
LB: loop body
LE: loop exit
PB: predicated region body
PF: predicated region fallthrough
CT: control target
= control target key end

     0   :  { %vm231_vm0 = vcmask 261120   ;;  %s6555_s1 = inlined_call_operand.vmem [shape: bf16[4,32,128], index: 1, kind: input, shape index: {}]   ;;  %s6556_s0 = inlined_call_operand.vmem [shape: f32[2,17,17,32], index: 0, kind: input, shape index: {}]   ;;  %s6557_s2 = inlined_call_operand.vmem [shape: f32[1,128], index: 2, kind: input, shape index: {}]   ;;  %s6558_s3 = inlined_call_operand.vmem [shape: f32[1,128], index: 3, kind: input, shape index: {}]   ;;  %s6559_s4 = inlined_call_operand.vmem [shape: f32[512,128], index: 4, kind: output, shape index: {}]  }
   0x1   :  { %v3754_v0 = vld [vmem:[%s6555_s1 + $0x10] sm:$0xff]   ;;  %v3755_v1 = vld [vmem:[%s6555_s1 + $0x20] sm:$0xff]   ;;  %v3756_v2 = vld [vmem:[%s6555_s1 + $0x18] sm:$0xff]  }
   0x2   :  { %3290 = vmatprep.subr.bf16.mxu1 %v3754_v0  ;;  %3426 = vmatprep.subr.bf16.mxu0 %v3755_v1  ;;  %v3757_v3 = vld [vmem:[%s6555_s1 + $0x28] sm:$0xff]   ;;  %v2948_v6 = vld [vmem:[%s6556_s0 + $0x18] sm:$0xff]  ;;  %v2949_v8 = vld [vmem:[%s6556_s0 + $0x20] sm:$0xff] }
   0x3   :  { %3291 = vmatpush3.bf16.msra.mxu1 %v3754_v0  ;;  %3427 = vmatpush3.bf16.msra.mxu0 %v3755_v1  ;;  %v118_v4 = vld [vmem:[%s6556_s0 + $0x1] sm:$0xff]  ;;  %v119_v5 = vld [vmem:[%s6556_s0 + $0x9] sm:$0xff]  ;;  %v120_v9 = vld [vmem:[%s6556_s0 + $0x19] sm:$0xff]  ;;  %v3819_v11 = vpack.c.bf16 %v2949_v8, %v2948_v6 }
   0x4   :  { %3292 = vmatprep.subr.bf16.mxu1 %v3756_v2  ;;  %3428 = vmatprep.subr.bf16.mxu0 %v3757_v3  ;;  %v182_v7 = vpack.c.bf16 %v119_v5, %v118_v4  ;;  %v121_v10 = vld [vmem:[%s6556_s0 + $0x21] sm:$0xff]  ;;  %v2950_v14 = vld [vmem:[%s6556_s0 + $0x30] sm:$0xff]  ;;  %v2951_v15 = vld [vmem:[%s6556_s0 + $0x38] sm:$0xff] }
   0x5   :  { %v3821_v12 = vpack.c.bf16 %v121_v10, %v120_v9  ;;  %v3758_v13 = vld [vmem:[%s6555_s1] sm:$0xff]   ;;  %3430 = vmatprep.mubr.msk.bf16.mxu0 %vm231_vm0, %v3819_v11  ;;  %v3835_v16 = vpack.c.bf16 %v2951_v15, %v2950_v14  ;;  %v3759_v17 = vld [vmem:[%s6555_s1 + $0x30] sm:$0xff]   ;;  %v2952_v20 = vld [vmem:[%s6556_s0 + $0x48] sm:$0xff] }
   0x6   :  { %3294 = vmatprep.mubr.msk.bf16.mxu1 %vm231_vm0, %v182_v7  ;;  %v122_v18 = vld [vmem:[%s6556_s0 + $0x31] sm:$0xff]  ;;  %v123_v19 = vld [vmem:[%s6556_s0 + $0x39] sm:$0xff]  ;;  %v124_v24 = vld [vmem:[%s6556_s0 + $0x49] sm:$0xff] }
   0x7   :  { %3293 = vmatpush3.bf16.msra.mxu1 %v3756_v2  ;;  %3429 = vmatpush3.bf16.msra.mxu0 %v3757_v3  ;;  %v2953_v21 = vld [vmem:[%s6556_s0 + $0x50] sm:$0xff]  ;;  %v3854_v22 = vpack.c.bf16 %v123_v19, %v122_v18  ;;  %v2954_v26 = vld [vmem:[%s6556_s0 + $0x60] sm:$0xff]  ;;  %v2955_v27 = vld [vmem:[%s6556_s0 + $0x68] sm:$0xff] }
   0x8   :  { %3358 = vmatprep.subr.bf16.mxu1 %v3758_v13  ;;  %3494 = vmatprep.subr.bf16.mxu0 %v3759_v17  ;;  %v3856_v23 = vpack.c.bf16 %v2953_v21, %v2952_v20  ;;  %v125_v25 = vld [vmem:[%s6556_s0 + $0x51] sm:$0xff]  ;;  %v126_v28 = vld [vmem:[%s6556_s0 + $0x61] sm:$0xff]  ;;  %v127_v29 = vld [vmem:[%s6556_s0 + $0x69] sm:$0xff]  ;;  %v3890_v33 = vpack.c.bf16 %v2955_v27, %v2954_v26 }
   0x9   :  { %v2956_v30 = vld [vmem:[%s6556_s0 + $0x78] sm:$0xff]  ;;  %v2957_v31 = vld [vmem:[%s6556_s0 + $0x80] sm:$0xff]  ;;  %v3888_v32 = vpack.c.bf16 %v125_v25, %v124_v24  ;;  %v3892_v34 = vpack.c.bf16 %v127_v29, %v126_v28  ;;  %v2958_v38 = vld [vmem:[%s6556_s0 + $0x90] sm:$0xff] }
   0xa   :  { %3295 = vmatmul.mubr.msk.bf16.vlgmr.msra.gmra.mrb[0].mxu1 %vm231_vm0, %v3821_v12  ;;  %3431 = vmatmul.mubr.msk.bf16.vlgmr.msra.gmra.mrb[0].mxu0 %vm231_vm0, %v3835_v16  ;;  %v3894_v35 = vpack.c.bf16 %v2957_v31, %v2956_v30  ;;  %v128_v36 = vld [vmem:[%s6556_s0 + $0x79] sm:$0xff]  ;;  %v129_v37 = vld [vmem:[%s6556_s0 + $0x81] sm:$0xff]  ;;  %v130_v40 = vld [vmem:[%s6556_s0 + $0x91] sm:$0xff] }
   0xb   :  { %3359 = vmatpush3.bf16.msra.mxu1 %v3758_v13  ;;  %3495 = vmatpush3.bf16.msra.mxu0 %v3759_v17  ;;  %v2959_v39 = vld [vmem:[%s6556_s0 + $0x98] sm:$0xff]  ;;  %v2960_v42 = vld [vmem:[%s6556_s0 + $0xa8] sm:$0xff]  ;;  %v2961_v43 = vld [vmem:[%s6556_s0 + $0xb0] sm:$0xff]  ;;  %v3928_v44 = vpack.c.bf16 %v129_v37, %v128_v36 }
   0xc   :  { %3298 = vmatprep.mubr.msk.bf16.mxu1 %vm231_vm0, %v3854_v22  ;;  %3434 = vmatprep.mubr.msk.bf16.mxu0 %vm231_vm0, %v3856_v23  ;;  %v131_v41 = vld [vmem:[%s6556_s0 + $0x99] sm:$0xff]  ;;  %v3930_v45 = vpack.c.bf16 %v2959_v39, %v2958_v38  ;;  %v3934_v47 = vpack.c.bf16 %v2961_v43, %v2960_v42  ;;  %v132_v48 = vld [vmem:[%s6556_s0 + $0xa9] sm:$0xff]  ;;  %v133_v49 = vld [vmem:[%s6556_s0 + $0xb1] sm:$0xff] }
   0xd   :  { %v3932_v46 = vpack.c.bf16 %v131_v41, %v130_v40  ;;  %v2962_v50 = vld [vmem:[%s6556_s0 + $0xc0] sm:$0xff]  ;;  %v2963_v51 = vld [vmem:[%s6556_s0 + $0xc8] sm:$0xff]  ;;  %v2964_v54 = vld [vmem:[%s6556_s0 + $0xd8] sm:$0xff]  ;;  %v3968_v56 = vpack.c.bf16 %v133_v49, %v132_v48 }
   0xe   :  { %v134_v52 = vld [vmem:[%s6556_s0 + $0xc1] sm:$0xff]  ;;  %v135_v53 = vld [vmem:[%s6556_s0 + $0xc9] sm:$0xff]  ;;  %v3973_v58 = vpack.c.bf16 %v2963_v51, %v2962_v50  ;;  %v3761_v60 = vld [vmem:[%s6555_s1 + $0x38] sm:$0xff]  }
   0xf   :  { %v2965_v55 = vld [vmem:[%s6556_s0 + $0xe0] sm:$0xff]  ;;  %v3760_v57 = vld [vmem:[%s6555_s1 + $0x8] sm:$0xff]   ;;  %v3975_v59 = vpack.c.bf16 %v135_v53, %v134_v52  ;;  %3496 = vmatprep.subr.bf16.mxu0 %v3761_v60  ;;  %v2966_v0 = vld [vmem:[%s6556_s0 + $0xf0] sm:$0xff] }
  0x10   :  { %v3980_v61 = vpack.c.bf16 %v2965_v55, %v2964_v54  ;;  %3360 = vmatprep.subr.bf16.mxu1 %v3760_v57  ;;  %3497 = vmatpush3.bf16.msra.mxu0 %v3761_v60  ;;  %v136_v62 = vld [vmem:[%s6556_s0 + $0xd9] sm:$0xff]  ;;  %v137_v63 = vld [vmem:[%s6556_s0 + $0xe1] sm:$0xff]  ;;  %v138_v2 = vld [vmem:[%s6556_s0 + $0xf1] sm:$0xff] }
  0x11   :  { %3361 = vmatpush3.bf16.msra.mxu1 %v3760_v57  ;;  %v2967_v1 = vld [vmem:[%s6556_s0 + $0xf8] sm:$0xff]  ;;  %v2968_v4 = vld [vmem:[%s6556_s0 + $0x108] sm:$0xff]  ;;  %v2969_v5 = vld [vmem:[%s6556_s0 + $0x110] sm:$0xff]  ;;  %v4014_v6 = vpack.c.bf16 %v137_v63, %v136_v62 }
  0x12   :  { %3299 = vmatmul.mubr.msk.bf16.gmra.mrb[4].mxu1 %vm231_vm0, %v3888_v32  ;;  %3435 = vmatmul.mubr.msk.bf16.gmra.mrb[4].mxu0 %vm231_vm0, %v3890_v33  ;;  %v139_v3 = vld [vmem:[%s6556_s0 + $0xf9] sm:$0xff]  ;;  %v4016_v7 = vpack.c.bf16 %v2967_v1, %v2966_v0  ;;  %v4020_v9 = vpack.c.bf16 %v2969_v5, %v2968_v4  ;;  %v140_v10 = vld [vmem:[%s6556_s0 + $0x109] sm:$0xff]  ;;  %v141_v13 = vld [vmem:[%s6556_s0 + $0x111] sm:$0xff] }
  0x13   :  { %3302 = vmatprep.mubr.msk.bf16.mxu1 %vm231_vm0, %v3892_v34  ;;  %3438 = vmatprep.mubr.msk.bf16.mxu0 %vm231_vm0, %v3894_v35  ;;  %v4018_v8 = vpack.c.bf16 %v139_v3, %v138_v2  ;;  %v2970_v14 = vld [vmem:[%s6556_s0 + $0x120] sm:$0xff]  ;;  %v2971_v15 = vld [vmem:[%s6556_s0 + $0x128] sm:$0xff]  ;;  %v2972_v19 = vld [vmem:[%s6556_s0 + $0x138] sm:$0xff]  ;;  %v4054_v21 = vpack.c.bf16 %v141_v13, %v140_v10 }
  0x14   :  { %v142_v17 = vld [vmem:[%s6556_s0 + $0x121] sm:$0xff]  ;;  %v143_v18 = vld [vmem:[%s6556_s0 + $0x129] sm:$0xff]  ;;  %v4056_v24 = vpack.c.bf16 %v2971_v15, %v2970_v14  ;;  %v144_v27 = vld [vmem:[%s6556_s0 + $0x139] sm:$0xff] }
  0x15   :  { %v2973_v20 = vld [vmem:[%s6556_s0 + $0x140] sm:$0xff]  ;;  %v4058_v25 = vpack.c.bf16 %v143_v18, %v142_v17  ;;  %v2974_v29 = vld [vmem:[%s6556_s0 + $0x150] sm:$0xff]  ;;  %v2975_v30 = vld [vmem:[%s6556_s0 + $0x158] sm:$0xff] }
  0x16   :  { %v4060_v26 = vpack.c.bf16 %v2973_v20, %v2972_v19  ;;  %v145_v28 = vld [vmem:[%s6556_s0 + $0x141] sm:$0xff]  ;;  %v146_v31 = vld [vmem:[%s6556_s0 + $0x151] sm:$0xff]  ;;  %v147_v36 = vld [vmem:[%s6556_s0 + $0x159] sm:$0xff]  ;;  %v4096_v40 = vpack.c.bf16 %v2975_v30, %v2974_v29 }
  0x17   :  { %v2976_v37 = vld [vmem:[%s6556_s0 + $0x168] sm:$0xff]  ;;  %v2977_v38 = vld [vmem:[%s6556_s0 + $0x170] sm:$0xff]  ;;  %v4094_v39 = vpack.c.bf16 %v145_v28, %v144_v27  ;;  %v4098_v41 = vpack.c.bf16 %v147_v36, %v146_v31  ;;  %v2978_v49 = vld [vmem:[%s6556_s0 + $0x180] sm:$0xff] }
  0x18   :  { %v4100_v42 = vpack.c.bf16 %v2977_v38, %v2976_v37  ;;  %v148_v43 = vld [vmem:[%s6556_s0 + $0x169] sm:$0xff]  ;;  %v149_v48 = vld [vmem:[%s6556_s0 + $0x171] sm:$0xff]  ;;  %v150_v51 = vld [vmem:[%s6556_s0 + $0x199] sm:$0xff] }
  0x19   :  { %v2979_v50 = vld [vmem:[%s6556_s0 + $0x188] sm:$0xff]  ;;  %v2980_v53 = vld [vmem:[%s6556_s0 + $0x1b0] sm:$0xff]  ;;  %v2981_v54 = vld [vmem:[%s6556_s0 + $0x1b8] sm:$0xff]  ;;  %v4134_v55 = vpack.c.bf16 %v149_v48, %v148_v43 }
  0x1a   :  { %3303 = vmatmul.mubr.msk.bf16.gmra.mrb[8].mxu1 %vm231_vm0, %v3928_v44  ;;  %3439 = vmatmul.mubr.msk.bf16.gmra.mrb[8].mxu0 %vm231_vm0, %v3930_v45  ;;  %v151_v52 = vld [vmem:[%s6556_s0 + $0x1a1] sm:$0xff]  ;;  %v1094_v57 = vpack.c.bf16 %v2979_v50, %v2978_v49  ;;  %v4136_v62 = vpack.c.bf16 %v2981_v54, %v2980_v53  ;;  %v152_v63 = vld [vmem:[%s6556_s0 + $0x1b1] sm:$0xff]  ;;  %v153_v0 = vld [vmem:[%s6556_s0 + $0x1b9] sm:$0xff] }
  0x1b   :  { %3306 = vmatprep.mubr.msk.bf16.mxu1 %vm231_vm0, %v3932_v46  ;;  %3442 = vmatprep.mubr.msk.bf16.mxu0 %vm231_vm0, %v3934_v47  ;;  %v198_v60 = vpack.c.bf16 %v151_v52, %v150_v51  ;;  %v2982_v1 = vld [vmem:[%s6556_s0 + $0x1c8] sm:$0xff]  ;;  %v2983_v2 = vld [vmem:[%s6556_s0 + $0x1d0] sm:$0xff]  ;;  %v2984_v5 = vld [vmem:[%s6556_s0 + $0x1e0] sm:$0xff]  ;;  %v4168_v13 = vpack.c.bf16 %v153_v0, %v152_v63 }
  0x1c   :  { %v154_v3 = vld [vmem:[%s6556_s0 + $0x1c9] sm:$0xff]  ;;  %v155_v4 = vld [vmem:[%s6556_s0 + $0x1d1] sm:$0xff]  ;;  %v4170_v14 = vpack.c.bf16 %v2983_v2, %v2982_v1  ;;  %v156_v18 = vld [vmem:[%s6556_s0 + $0x1e1] sm:$0xff] }
  0x1d   :  { %v2985_v10 = vld [vmem:[%s6556_s0 + $0x1e8] sm:$0xff]  ;;  %v4172_v15 = vpack.c.bf16 %v155_v4, %v154_v3  ;;  %v2986_v20 = vld [vmem:[%s6556_s0 + $0x1f8] sm:$0xff]  ;;  %v2987_v27 = vld [vmem:[%s6556_s0 + $0x200] sm:$0xff] }
  0x1e   :  { %v4174_v17 = vpack.c.bf16 %v2985_v10, %v2984_v5  ;;  %v157_v19 = vld [vmem:[%s6556_s0 + $0x1e9] sm:$0xff]  ;;  %v158_v28 = vld [vmem:[%s6556_s0 + $0x1f9] sm:$0xff]  ;;  %v159_v29 = vld [vmem:[%s6556_s0 + $0x201] sm:$0xff]  ;;  %v4210_v37 = vpack.c.bf16 %v2987_v27, %v2986_v20 }
  0x1f   :  { %v2988_v30 = vld [vmem:[%s6556_s0 + $0x210] sm:$0xff]  ;;  %v2989_v31 = vld [vmem:[%s6556_s0 + $0x218] sm:$0xff]  ;;  %v4208_v36 = vpack.c.bf16 %v157_v19, %v156_v18  ;;  %v4212_v38 = vpack.c.bf16 %v159_v29, %v158_v28  ;;  %v2990_v50 = vld [vmem:[%s6556_s0 + $0x228] sm:$0xff] }
  0x20   :  { %v4214_v43 = vpack.c.bf16 %v2989_v31, %v2988_v30  ;;  %v160_v48 = vld [vmem:[%s6556_s0 + $0x211] sm:$0xff]  ;;  %v161_v49 = vld [vmem:[%s6556_s0 + $0x219] sm:$0xff]  ;;  %v162_v52 = vld [vmem:[%s6556_s0 + $0x229] sm:$0xff] }
  0x21   :  { %v2991_v51 = vld [vmem:[%s6556_s0 + $0x230] sm:$0xff]  ;;  %v2992_v54 = vld [vmem:[%s6556_s0 + $0x240] sm:$0xff]  ;;  %v2994_v4 = vld [vmem:[%s6556_s0 + $0x258] sm:$0xff] }
  0x22   :  { %3307 = vmatmul.mubr.msk.bf16.gmra.mrb[12].mxu1 %vm231_vm0, %v3968_v56  ;;  %3443 = vmatmul.mubr.msk.bf16.gmra.mrb[12].mxu0 %vm231_vm0, %v3973_v58  ;;  %v163_v53 = vld [vmem:[%s6556_s0 + $0x231] sm:$0xff]  ;;  %v4250_v63 = vpack.c.bf16 %v2991_v51, %v2990_v50  ;;  %v164_v2 = vld [vmem:[%s6556_s0 + $0x241] sm:$0xff]  ;;  %v165_v3 = vld [vmem:[%s6556_s0 + $0x249] sm:$0xff] }
  0x23   :  { %3310 = vmatprep.mubr.msk.bf16.mxu1 %vm231_vm0, %v3975_v59  ;;  %3446 = vmatprep.mubr.msk.bf16.mxu0 %vm231_vm0, %v3980_v61  ;;  %v4252_v0 = vpack.c.bf16 %v163_v53, %v162_v52  ;;  %v2995_v5 = vld [vmem:[%s6556_s0 + $0x260] sm:$0xff]  ;;  %v2996_v19 = vld [vmem:[%s6556_s0 + $0x270] sm:$0xff]  ;;  %v2997_v20 = vld [vmem:[%s6556_s0 + $0x278] sm:$0xff]  ;;  %v4288_v27 = vpack.c.bf16 %v165_v3, %v164_v2 }
  0x24   :  { %v166_v10 = vld [vmem:[%s6556_s0 + $0x259] sm:$0xff]  ;;  %v167_v18 = vld [vmem:[%s6556_s0 + $0x261] sm:$0xff]  ;;  %v4290_v28 = vpack.c.bf16 %v2995_v5, %v2994_v4  ;;  %v4294_v30 = vpack.c.bf16 %v2997_v20, %v2996_v19  ;;  %v168_v31 = vld [vmem:[%s6556_s0 + $0x271] sm:$0xff] }
  0x25   :  { %v4292_v29 = vpack.c.bf16 %v167_v18, %v166_v10  ;;  %v2999_v50 = vld [vmem:[%s6556_s0 + $0x290] sm:$0xff]  ;;  %v3000_v53 = vld [vmem:[%s6556_s0 + $0x2a0] sm:$0xff]  ;;  %v3002_v18 = vld [vmem:[%s6556_s0 + $0x2b8] sm:$0xff] }
  0x26   :  { %v170_v51 = vld [vmem:[%s6556_s0 + $0x289] sm:$0xff]  ;;  %v171_v52 = vld [vmem:[%s6556_s0 + $0x291] sm:$0xff]  ;;  %v172_v5 = vld [vmem:[%s6556_s0 + $0x2a1] sm:$0xff] }
  0x27   :  { %v4332_v3 = vpack.c.bf16 %v171_v52, %v170_v51  ;;  %v173_v10 = vld [vmem:[%s6556_s0 + $0x2a9] sm:$0xff]  ;;  %v3003_v19 = vld [vmem:[%s6556_s0 + $0x2c0] sm:$0xff] }
  0x28   :  { %v174_v20 = vld [vmem:[%s6556_s0 + $0x2b9] sm:$0xff]  ;;  %v4370_v51 = vpack.c.bf16 %v3003_v19, %v3002_v18  ;;  %v3007_v18 = vld [vmem:[%s6556_s0 + $0x2f0] sm:$0xff] }
  0x29   :  { %v178_v19 = vld [vmem:[%s6556_s0 + $0x2e9] sm:$0xff] }
  0x2a   :  { %3311 = vmatmul.mubr.msk.bf16.gmra.mrb[16].mxu1 %vm231_vm0, %v4014_v6  ;;  %3447 = vmatmul.mubr.msk.bf16.gmra.mrb[16].mxu0 %vm231_vm0, %v4016_v7  ;;  %6625 = vst [vmem:[#allocation2_spill] sm:$0xff] %v4370_v51 }
  0x2b   :  { %3314 = vmatprep.mubr.msk.bf16.mxu1 %vm231_vm0, %v4018_v8  ;;  %3450 = vmatprep.mubr.msk.bf16.mxu0 %vm231_vm0, %v4020_v9 }
  0x32   :  { %3315 = vmatmul.mubr.msk.bf16.gmra.mrb[20].mxu1 %vm231_vm0, %v4054_v21  ;;  %3451 = vmatmul.mubr.msk.bf16.gmra.mrb[20].mxu0 %vm231_vm0, %v4056_v24 }
  0x33   :  { %3318 = vmatprep.mubr.msk.bf16.mxu1 %vm231_vm0, %v4058_v25  ;;  %3454 = vmatprep.mubr.msk.bf16.mxu0 %vm231_vm0, %v4060_v26 }
  0x3a   :  { %3319 = vmatmul.mubr.msk.bf16.gmra.mrb[24].mxu1 %vm231_vm0, %v4094_v39  ;;  %3455 = vmatmul.mubr.msk.bf16.gmra.mrb[24].mxu0 %vm231_vm0, %v4096_v40 }
  0x3b   :  { %3322 = vmatprep.mubr.msk.bf16.mxu1 %vm231_vm0, %v4098_v41  ;;  %3458 = vmatprep.mubr.msk.bf16.mxu0 %vm231_vm0, %v4100_v42 }
  0x42   :  { %3323 = vmatmul.mubr.msk.bf16.gmra.mrb[28].mxu1 %vm231_vm0, %v4134_v55  ;;  %3459 = vmatmul.mubr.msk.bf16.gmra.mrb[28].mxu0 %vm231_vm0, %v1094_v57  ;;  %v2993_v57 = vld [vmem:[%s6556_s0 + $0x248] sm:$0xff] }
  0x43   :  { %3326 = vmatprep.mubr.msk.bf16.mxu1 %vm231_vm0, %v198_v60  ;;  %3462 = vmatprep.mubr.msk.bf16.mxu0 %vm231_vm0, %v4136_v62  ;;  %v4248_v60 = vpack.c.bf16 %v161_v49, %v160_v48  ;;  %v4254_v1 = vpack.c.bf16 %v2993_v57, %v2992_v54  ;;  %v169_v48 = vld [vmem:[%s6556_s0 + $0x279] sm:$0xff]  ;;  %v2998_v49 = vld [vmem:[%s6556_s0 + $0x288] sm:$0xff] }
  0x44   :  { %v3001_v54 = vld [vmem:[%s6556_s0 + $0x2a8] sm:$0xff]  ;;  %v4328_v57 = vpack.c.bf16 %v169_v48, %v168_v31  ;;  %v4330_v2 = vpack.c.bf16 %v2999_v50, %v2998_v49  ;;  %v3004_v48 = vld [vmem:[%s6556_s0 + $0x2d0] sm:$0xff]  ;;  %v3005_v49 = vld [vmem:[%s6556_s0 + $0x2d8] sm:$0xff]  ;;  %v4368_v50 = vpack.c.bf16 %v173_v10, %v172_v5 }
  0x45   :  { %v4334_v4 = vpack.c.bf16 %v3001_v54, %v3000_v53  ;;  %v175_v31 = vld [vmem:[%s6556_s0 + $0x2c1] sm:$0xff]  ;;  %v4374_v53 = vpack.c.bf16 %v3005_v49, %v3004_v48  ;;  %v176_v54 = vld [vmem:[%s6556_s0 + $0x2d1] sm:$0xff]  ;;  %v177_v5 = vld [vmem:[%s6556_s0 + $0x2d9] sm:$0xff] }
  0x46   :  { %v4372_v52 = vpack.c.bf16 %v175_v31, %v174_v20  ;;  %v3006_v10 = vld [vmem:[%s6556_s0 + $0x2e8] sm:$0xff]  ;;  %v179_v20 = vld [vmem:[%s6556_s0 + $0x2f1] sm:$0xff]  ;;  %v3008_v31 = vld [vmem:[%s6556_s0 + $0x300] sm:$0xff]  ;;  %v4408_v49 = vpack.c.bf16 %v177_v5, %v176_v54 }
  0x47   :  { %6627 = vst [vmem:[#allocation4_spill] sm:$0xff] %v4374_v53  ;;  %v3009_v48 = vld [vmem:[%s6556_s0 + $0x308] sm:$0xff] }
  0x48   :  { %6626 = vst [vmem:[#allocation3_spill] sm:$0xff] %v4372_v52  ;;  %v180_v54 = vld [vmem:[%s6556_s0 + $0x301] sm:$0xff]  ;;  %v181_v5 = vld [vmem:[%s6556_s0 + $0x309] sm:$0xff] }
  0x4a   :  { %3327 = vmatmul.mubr.msk.bf16.gmra.mrb[32].mxu1 %vm231_vm0, %v4168_v13  ;;  %3463 = vmatmul.mubr.msk.bf16.gmra.mrb[32].mxu0 %vm231_vm0, %v4170_v14 }
  0x4b   :  { %3330 = vmatprep.mubr.msk.bf16.mxu1 %vm231_vm0, %v4172_v15  ;;  %3466 = vmatprep.mubr.msk.bf16.mxu0 %vm231_vm0, %v4174_v17 }
  0x52   :  { %3331 = vmatmul.mubr.msk.bf16.gmra.mrb[36].mxu1 %vm231_vm0, %v4208_v36  ;;  %3467 = vmatmul.mubr.msk.bf16.gmra.mrb[36].mxu0 %vm231_vm0, %v4210_v37 }
  0x53   :  { %3334 = vmatprep.mubr.msk.bf16.mxu1 %vm231_vm0, %v4212_v38  ;;  %3470 = vmatprep.mubr.msk.bf16.mxu0 %vm231_vm0, %v4214_v43 }
  0x5a   :  { %3335 = vmatmul.mubr.msk.bf16.gmra.mrb[40].mxu1 %vm231_vm0, %v4248_v60  ;;  %3471 = vmatmul.mubr.msk.bf16.gmra.mrb[40].mxu0 %vm231_vm0, %v4250_v63 }
  0x5b   :  { %3338 = vmatprep.mubr.msk.bf16.mxu1 %vm231_vm0, %v4252_v0  ;;  %3474 = vmatprep.mubr.msk.bf16.mxu0 %vm231_vm0, %v4254_v1 }
  0x62   :  { %3339 = vmatmul.mubr.msk.bf16.gmra.mrb[44].mxu1 %vm231_vm0, %v4288_v27  ;;  %3475 = vmatmul.mubr.msk.bf16.gmra.mrb[44].mxu0 %vm231_vm0, %v4290_v28 }
  0x63   :  { %3342 = vmatprep.mubr.msk.bf16.mxu1 %vm231_vm0, %v4292_v29  ;;  %3478 = vmatprep.mubr.msk.bf16.mxu0 %vm231_vm0, %v4294_v30 }
  0x6a   :  { %3343 = vmatmul.mubr.msk.bf16.gmra.mrb[48].mxu1 %vm231_vm0, %v4328_v57  ;;  %3479 = vmatmul.mubr.msk.bf16.gmra.mrb[48].mxu0 %vm231_vm0, %v4330_v2 }
  0x6b   :  { %3346 = vmatprep.mubr.msk.bf16.mxu1 %vm231_vm0, %v4332_v3  ;;  %3482 = vmatprep.mubr.msk.bf16.mxu0 %vm231_vm0, %v4334_v4 }
  0x72   :  { %3347 = vmatmul.mubr.msk.bf16.gmra.mrb[52].mxu1 %vm231_vm0, %v4368_v50  ;;  %3483 = vmatmul.mubr.msk.bf16.gmra.mrb[52].mxu0 %vm231_vm0, %v4370_v51  ;;  %v4412_v51 = vpack.c.bf16 %v179_v20, %v178_v19  ;;  %v18_v19 = vld [vmem:[%s6556_s0] sm:$0xff]  ;;  %v19_v20 = vld [vmem:[%s6556_s0 + $0x8] sm:$0xff] }
  0x73   :  { %3350 = vmatprep.mubr.msk.bf16.mxu1 %vm231_vm0, %v4372_v52  ;;  %3486 = vmatprep.mubr.msk.bf16.mxu0 %vm231_vm0, %v4374_v53  ;;  %v4410_v53 = vpack.c.bf16 %v3007_v18, %v3006_v10  ;;  %v4414_v52 = vpack.c.bf16 %v3009_v48, %v3008_v31  ;;  %v3010_v10 = vld [vmem:[%s6556_s0 + $0x318] sm:$0xff]  ;;  %v3011_v18 = vld [vmem:[%s6556_s0 + $0x320] sm:$0xff]  ;;  %v4442_v31 = vpack.c.bf16 %v181_v5, %v180_v54 }
  0x74   :  { %v1110_v48 = vpack.c.bf16 %v3011_v18, %v3010_v10 }
  0x75   :  { %6628 = vst [vmem:[#allocation5_spill] sm:$0xff] %v4410_v53 }
  0x7a   :  { %3351 = vmatmul.mubr.msk.bf16.gmra.mrb[56].mxu1 %vm231_vm0, %v4408_v49  ;;  %3487 = vmatmul.mubr.msk.bf16.gmra.mrb[56].mxu0 %vm231_vm0, %v4410_v53  ;;  %v82_v53 = vpack.c.bf16 %v19_v20, %v18_v19 }
  0x7b   :  { %3354 = vmatprep.mubr.msk.bf16.mxu1 %vm231_vm0, %v4412_v51  ;;  %3490 = vmatprep.mubr.msk.bf16.mxu0 %vm231_vm0, %v4414_v52 }
  0x82   :  { %3355 = vmatmul.mubr.msk.bf16.gmra.mrb[60].mxu1 %vm231_vm0, %v4442_v31  ;;  %3491 = vmatmul.mubr.msk.bf16.gmra.mrb[60].mxu0 %vm231_vm0, %v1110_v48 }
  0x83   :  { %3362 = vmatprep.mubr.msk.bf16.mxu1 %vm231_vm0, %v82_v53  ;;  %3498 = vmatprep.mubr.msk.bf16.mxu0 %vm231_vm0, %v3821_v12  ;;  %v3081_v12 = vld [vmem:[%s6556_s0 + $0x189] sm:$0xff] }
  0x8a   :  { %3363 = vmatmul.mubr.msk.bf16.vlgmr.msra.gmra.mrb[0].mxu1 %vm231_vm0, %v3819_v11  ;;  %3499 = vmatmul.mubr.msk.bf16.vlgmr.msra.gmra.mrb[0].mxu0 %vm231_vm0, %v3854_v22  ;;  %v3080_v11 = vld [vmem:[%s6556_s0 + $0x181] sm:$0xff] }
  0x8b   :  { %3366 = vmatprep.mubr.msk.bf16.mxu1 %vm231_vm0, %v3835_v16  ;;  %3502 = vmatprep.mubr.msk.bf16.mxu0 %vm231_vm0, %v3888_v32  ;;  %v50_v16 = vld [vmem:[%s6556_s0 + $0x198] sm:$0xff]  ;;  %v51_v22 = vld [vmem:[%s6556_s0 + $0x1a0] sm:$0xff] }
  0x8c   :  { %v98_v32 = vpack.c.bf16 %v51_v22, %v50_v16 }
  0x92   :  { %3367 = vmatmul.mubr.msk.bf16.gmra.mrb[4].mxu1 %vm231_vm0, %v3856_v23  ;;  %3503 = vmatmul.mubr.msk.bf16.gmra.mrb[4].mxu0 %vm231_vm0, %v3892_v34  ;;  %v1656_v23 = vpack.c.bf16 %v3081_v12, %v3080_v11  ;;  %v6630_v34 = vld [vmem:[#allocation2_spill] sm:$0xff] }
  0x93   :  { %3370 = vmatprep.mubr.msk.bf16.mxu1 %vm231_vm0, %v3890_v33  ;;  %3506 = vmatprep.mubr.msk.bf16.mxu0 %vm231_vm0, %v3928_v44  ;;  %v6629_v33 = vld [vmem:[#allocation3_spill] sm:$0xff]  ;;  %v6632_v44 = vld [vmem:[#allocation5_spill] sm:$0xff] }
  0x9a   :  { %3371 = vmatmul.mubr.msk.bf16.gmra.mrb[8].mxu1 %vm231_vm0, %v3894_v35  ;;  %3507 = vmatmul.mubr.msk.bf16.gmra.mrb[8].mxu0 %vm231_vm0, %v3932_v46  ;;  %v6631_v35 = vld [vmem:[#allocation4_spill] sm:$0xff]  ;;  %v3113_v46 = vld [vmem:[%s6556_s0 + $0x321] sm:$0xff] }
  0x9b   :  { %3374 = vmatprep.mubr.msk.bf16.mxu1 %vm231_vm0, %v3930_v45  ;;  %3510 = vmatprep.mubr.msk.bf16.mxu0 %vm231_vm0, %v3968_v56  ;;  %v3112_v45 = vld [vmem:[%s6556_s0 + $0x319] sm:$0xff] }
  0xa2   :  { %3375 = vmatmul.mubr.msk.bf16.gmra.mrb[12].mxu1 %vm231_vm0, %v3934_v47  ;;  %3511 = vmatmul.mubr.msk.bf16.gmra.mrb[12].mxu0 %vm231_vm0, %v3975_v59  ;;  %v1672_v47 = vpack.c.bf16 %v3113_v46, %v3112_v45 }
  0xa3   :  { %3378 = vmatprep.mubr.msk.bf16.mxu1 %vm231_vm0, %v3973_v58  ;;  %3514 = vmatprep.mubr.msk.bf16.mxu0 %vm231_vm0, %v4014_v6 }
  0xaa   :  { %3379 = vmatmul.mubr.msk.bf16.gmra.mrb[16].mxu1 %vm231_vm0, %v3980_v61  ;;  %3515 = vmatmul.mubr.msk.bf16.gmra.mrb[16].mxu0 %vm231_vm0, %v4018_v8 }
  0xab   :  { %3382 = vmatprep.mubr.msk.bf16.mxu1 %vm231_vm0, %v4016_v7  ;;  %3518 = vmatprep.mubr.msk.bf16.mxu0 %vm231_vm0, %v4054_v21 }
  0xb2   :  { %3383 = vmatmul.mubr.msk.bf16.gmra.mrb[20].mxu1 %vm231_vm0, %v4020_v9  ;;  %3519 = vmatmul.mubr.msk.bf16.gmra.mrb[20].mxu0 %vm231_vm0, %v4058_v25 }
  0xb3   :  { %3386 = vmatprep.mubr.msk.bf16.mxu1 %vm231_vm0, %v4056_v24  ;;  %3522 = vmatprep.mubr.msk.bf16.mxu0 %vm231_vm0, %v4094_v39 }
  0xba   :  { %3387 = vmatmul.mubr.msk.bf16.gmra.mrb[24].mxu1 %vm231_vm0, %v4060_v26  ;;  %3523 = vmatmul.mubr.msk.bf16.gmra.mrb[24].mxu0 %vm231_vm0, %v4098_v41 }
  0xbb   :  { %3390 = vmatprep.mubr.msk.bf16.mxu1 %vm231_vm0, %v4096_v40  ;;  %3526 = vmatprep.mubr.msk.bf16.mxu0 %vm231_vm0, %v4134_v55 }
  0xc2   :  { %3391 = vmatmul.mubr.msk.bf16.gmra.mrb[28].mxu1 %vm231_vm0, %v4100_v42  ;;  %3527 = vmatmul.mubr.msk.bf16.gmra.mrb[28].mxu0 %vm231_vm0, %v1656_v23 }
  0xc3   :  { %3394 = vmatprep.mubr.msk.bf16.mxu1 %vm231_vm0, %v98_v32  ;;  %3530 = vmatprep.mubr.msk.bf16.mxu0 %vm231_vm0, %v4168_v13 }
  0xca   :  { %3395 = vmatmul.mubr.msk.bf16.gmra.mrb[32].mxu1 %vm231_vm0, %v4136_v62  ;;  %3531 = vmatmul.mubr.msk.bf16.gmra.mrb[32].mxu0 %vm231_vm0, %v4172_v15 }
  0xcb   :  { %3398 = vmatprep.mubr.msk.bf16.mxu1 %vm231_vm0, %v4170_v14  ;;  %3534 = vmatprep.mubr.msk.bf16.mxu0 %vm231_vm0, %v4208_v36 }
  0xd2   :  { %3399 = vmatmul.mubr.msk.bf16.gmra.mrb[36].mxu1 %vm231_vm0, %v4174_v17  ;;  %3535 = vmatmul.mubr.msk.bf16.gmra.mrb[36].mxu0 %vm231_vm0, %v4212_v38 }
  0xd3   :  { %3402 = vmatprep.mubr.msk.bf16.mxu1 %vm231_vm0, %v4210_v37  ;;  %3538 = vmatprep.mubr.msk.bf16.mxu0 %vm231_vm0, %v4248_v60 }
  0xda   :  { %3403 = vmatmul.mubr.msk.bf16.gmra.mrb[40].mxu1 %vm231_vm0, %v4214_v43  ;;  %3539 = vmatmul.mubr.msk.bf16.gmra.mrb[40].mxu0 %vm231_vm0, %v4252_v0 }
  0xdb   :  { %3406 = vmatprep.mubr.msk.bf16.mxu1 %vm231_vm0, %v4250_v63  ;;  %3542 = vmatprep.mubr.msk.bf16.mxu0 %vm231_vm0, %v4288_v27 }
  0xe2   :  { %3407 = vmatmul.mubr.msk.bf16.gmra.mrb[44].mxu1 %vm231_vm0, %v4254_v1  ;;  %3543 = vmatmul.mubr.msk.bf16.gmra.mrb[44].mxu0 %vm231_vm0, %v4292_v29 }
  0xe3   :  { %3410 = vmatprep.mubr.msk.bf16.mxu1 %vm231_vm0, %v4290_v28  ;;  %3546 = vmatprep.mubr.msk.bf16.mxu0 %vm231_vm0, %v4328_v57 }
  0xea   :  { %3411 = vmatmul.mubr.msk.bf16.gmra.mrb[48].mxu1 %vm231_vm0, %v4294_v30  ;;  %3547 = vmatmul.mubr.msk.bf16.gmra.mrb[48].mxu0 %vm231_vm0, %v4332_v3 }
  0xeb   :  { %3414 = vmatprep.mubr.msk.bf16.mxu1 %vm231_vm0, %v4330_v2  ;;  %3550 = vmatprep.mubr.msk.bf16.mxu0 %vm231_vm0, %v4368_v50 }
  0xf2   :  { %3415 = vmatmul.mubr.msk.bf16.gmra.mrb[52].mxu1 %vm231_vm0, %v4334_v4  ;;  %3551 = vmatmul.mubr.msk.bf16.gmra.mrb[52].mxu0 %vm231_vm0, %v6629_v33 }
  0xf3   :  { %3418 = vmatprep.mubr.msk.bf16.mxu1 %vm231_vm0, %v6630_v34  ;;  %3554 = vmatprep.mubr.msk.bf16.mxu0 %vm231_vm0, %v4408_v49 }
  0xfa   :  { %3419 = vmatmul.mubr.msk.bf16.gmra.mrb[56].mxu1 %vm231_vm0, %v6631_v35  ;;  %3555 = vmatmul.mubr.msk.bf16.gmra.mrb[56].mxu0 %vm231_vm0, %v4412_v51 }
  0xfb   :  { %3422 = vmatprep.mubr.msk.bf16.mxu1 %vm231_vm0, %v6632_v44  ;;  %3558 = vmatprep.mubr.msk.bf16.mxu0 %vm231_vm0, %v4442_v31 }
 0x102   :  { %3423 = vmatmul.mubr.msk.bf16.gmra.mrb[60].mxu1 %vm231_vm0, %v4414_v52  ;;  %3559 = vmatmul.mubr.msk.bf16.gmra.mrb[60].mxu0 %vm231_vm0, %v1672_v47 }
 0x15d   :  { %v3364_v56 = vpop.f32.mrb[0].mxu1  ;;  %v3500_v58 = vpop.f32.mrb[0].mxu0 }
 0x15e   :  { %v759_v59 = vpop.f32.mrb[1].mxu1  ;;  %v4589_v61 = vadd.f32 %v3500_v58, %v3364_v56  ;;  %v1820_v6 = vpop.f32.mrb[1].mxu0 }
 0x15f   :  { %v3365_v7 = vpop.f32.mrb[2].mxu1  ;;  %v4591_v8 = vadd.f32 %v1820_v6, %v759_v59  ;;  %v3501_v9 = vpop.f32.mrb[2].mxu0 }
 0x160   :  { %v762_v21 = vpop.f32.mrb[3].mxu1  ;;  %v4593_v24 = vadd.f32 %v3501_v9, %v3365_v7  ;;  %v1823_v25 = vpop.f32.mrb[3].mxu0 }
 0x161   :  { %v4595_v26 = vadd.f32 %v1823_v25, %v762_v21 }
 0x163   :  { %v2139_v39 = vadd.f32 %v4595_v26, %v4591_v8 }
 0x165   :  { %v3368_v40 = vpop.f32.mrb[4].mxu1  ;;  %v2140_v41 = vadd.f32 %v4589_v61, %v2139_v39  ;;  %v3504_v42 = vpop.f32.mrb[4].mxu0 }
 0x166   :  { %v775_v55 = vpop.f32.mrb[5].mxu1  ;;  %v4600_v62 = vadd.f32 %v3504_v42, %v3368_v40  ;;  %v1836_v13 = vpop.f32.mrb[5].mxu0 }
 0x167   :  { %v3369_v14 = vpop.f32.mrb[6].mxu1  ;;  %v4602_v15 = vadd.f32 %v1836_v13, %v775_v55  ;;  %v2141_v17 = vadd.f32 %v4593_v24, %v2140_v41  ;;  %v3505_v36 = vpop.f32.mrb[6].mxu0 }
 0x168   :  { %v778_v37 = vpop.f32.mrb[7].mxu1  ;;  %v4605_v38 = vadd.f32 %v3505_v36, %v3369_v14  ;;  %v1839_v43 = vpop.f32.mrb[7].mxu0 }
 0x169   :  { %v2142_v60 = vadd.f32 %v4602_v15, %v2141_v17  ;;  %v4608_v63 = vadd.f32 %v1839_v43, %v778_v37 }
 0x16b   :  { %v2143_v0 = vadd.f32 %v4608_v63, %v2142_v60 }
 0x16d   :  { %v3372_v1 = vpop.f32.mrb[8].mxu1  ;;  %v2144_v27 = vadd.f32 %v4600_v62, %v2143_v0  ;;  %v3508_v28 = vpop.f32.mrb[8].mxu0 }
 0x16e   :  { %v791_v29 = vpop.f32.mrb[9].mxu1  ;;  %v4612_v30 = vadd.f32 %v3508_v28, %v3372_v1  ;;  %v1852_v57 = vpop.f32.mrb[9].mxu0 }
 0x16f   :  { %v3373_v2 = vpop.f32.mrb[10].mxu1  ;;  %v4614_v3 = vadd.f32 %v1852_v57, %v791_v29  ;;  %v2145_v4 = vadd.f32 %v4605_v38, %v2144_v27  ;;  %v3509_v50 = vpop.f32.mrb[10].mxu0 }
 0x170   :  { %v794_v51 = vpop.f32.mrb[11].mxu1  ;;  %v4617_v52 = vadd.f32 %v3509_v50, %v3373_v2  ;;  %v1855_v53 = vpop.f32.mrb[11].mxu0 }
 0x171   :  { %v2146_v49 = vadd.f32 %v4614_v3, %v2145_v4  ;;  %v4620_v54 = vadd.f32 %v1855_v53, %v794_v51 }
 0x173   :  { %v2147_v5 = vadd.f32 %v4620_v54, %v2146_v49 }
 0x175   :  { %v3376_v10 = vpop.f32.mrb[12].mxu1  ;;  %v2148_v18 = vadd.f32 %v4612_v30, %v2147_v5  ;;  %v3512_v19 = vpop.f32.mrb[12].mxu0 }
 0x176   :  { %v807_v20 = vpop.f32.mrb[13].mxu1  ;;  %v4624_v31 = vadd.f32 %v3512_v19, %v3376_v10  ;;  %v1868_v48 = vpop.f32.mrb[13].mxu0 }
 0x177   :  { %v3377_v11 = vpop.f32.mrb[14].mxu1  ;;  %v4626_v12 = vadd.f32 %v1868_v48, %v807_v20  ;;  %v2149_v16 = vadd.f32 %v4617_v52, %v2148_v18  ;;  %v3513_v22 = vpop.f32.mrb[14].mxu0 }
 0x178   :  { %v810_v23 = vpop.f32.mrb[15].mxu1  ;;  %v4629_v32 = vadd.f32 %v3513_v22, %v3377_v11  ;;  %v1871_v33 = vpop.f32.mrb[15].mxu0 }
 0x179   :  { %v2150_v34 = vadd.f32 %v4626_v12, %v2149_v16  ;;  %v4632_v35 = vadd.f32 %v1871_v33, %v810_v23 }
 0x17b   :  { %v2151_v44 = vadd.f32 %v4632_v35, %v2150_v34 }
 0x17d   :  { %v3380_v45 = vpop.f32.mrb[16].mxu1  ;;  %v2152_v46 = vadd.f32 %v4624_v31, %v2151_v44  ;;  %v3516_v47 = vpop.f32.mrb[16].mxu0 }
 0x17e   :  { %v823_v56 = vpop.f32.mrb[17].mxu1  ;;  %v4636_v58 = vadd.f32 %v3516_v47, %v3380_v45  ;;  %v1884_v59 = vpop.f32.mrb[17].mxu0 }
 0x17f   :  { %v3381_v6 = vpop.f32.mrb[18].mxu1  ;;  %v4638_v7 = vadd.f32 %v1884_v59, %v823_v56  ;;  %v2153_v9 = vadd.f32 %v4629_v32, %v2152_v46  ;;  %v3517_v21 = vpop.f32.mrb[18].mxu0 }
 0x180   :  { %v826_v25 = vpop.f32.mrb[19].mxu1  ;;  %v4641_v39 = vadd.f32 %v3517_v21, %v3381_v6  ;;  %v1887_v40 = vpop.f32.mrb[19].mxu0 }
 0x181   :  { %v2154_v41 = vadd.f32 %v4638_v7, %v2153_v9  ;;  %v4644_v42 = vadd.f32 %v1887_v40, %v826_v25 }
 0x183   :  { %v2155_v55 = vadd.f32 %v4644_v42, %v2154_v41 }
 0x185   :  { %v3384_v13 = vpop.f32.mrb[20].mxu1  ;;  %v2156_v14 = vadd.f32 %v4636_v58, %v2155_v55  ;;  %v3520_v17 = vpop.f32.mrb[20].mxu0 }
 0x186   :  { %v839_v36 = vpop.f32.mrb[21].mxu1  ;;  %v4648_v37 = vadd.f32 %v3520_v17, %v3384_v13  ;;  %v1900_v43 = vpop.f32.mrb[21].mxu0 }
 0x187   :  { %v3385_v60 = vpop.f32.mrb[22].mxu1  ;;  %v4650_v0 = vadd.f32 %v1900_v43, %v839_v36  ;;  %v2157_v1 = vadd.f32 %v4641_v39, %v2156_v14  ;;  %v3521_v27 = vpop.f32.mrb[22].mxu0 }
 0x188   :  { %v842_v28 = vpop.f32.mrb[23].mxu1  ;;  %v4653_v29 = vadd.f32 %v3521_v27, %v3385_v60  ;;  %v1903_v57 = vpop.f32.mrb[23].mxu0 }
 0x189   :  { %v2158_v2 = vadd.f32 %v4650_v0, %v2157_v1  ;;  %v4656_v4 = vadd.f32 %v1903_v57, %v842_v28 }
 0x18b   :  { %v2159_v50 = vadd.f32 %v4656_v4, %v2158_v2 }
 0x18d   :  { %v3388_v51 = vpop.f32.mrb[24].mxu1  ;;  %v2160_v53 = vadd.f32 %v4648_v37, %v2159_v50  ;;  %v3524_v49 = vpop.f32.mrb[24].mxu0 }
 0x18e   :  { %v855_v5 = vpop.f32.mrb[25].mxu1  ;;  %v4660_v10 = vadd.f32 %v3524_v49, %v3388_v51  ;;  %v1916_v18 = vpop.f32.mrb[25].mxu0 }
 0x18f   :  { %v3389_v19 = vpop.f32.mrb[26].mxu1  ;;  %v4662_v20 = vadd.f32 %v1916_v18, %v855_v5  ;;  %v2161_v48 = vadd.f32 %v4653_v29, %v2160_v53  ;;  %v3525_v11 = vpop.f32.mrb[26].mxu0 }
 0x190   :  { %6633 = vst [vmem:[#allocation3_spill] sm:$0xff] %v4660_v10  ;;  %v858_v16 = vpop.f32.mrb[27].mxu1  ;;  %v4665_v22 = vadd.f32 %v3525_v11, %v3389_v19  ;;  %v1919_v23 = vpop.f32.mrb[27].mxu0 }
 0x191   :  { %v2162_v33 = vadd.f32 %v4662_v20, %v2161_v48  ;;  %v4668_v34 = vadd.f32 %v1919_v23, %v858_v16 }
 0x192   :  { %6634 = vst [vmem:[#allocation2_spill] sm:$0xff] %v4665_v22 }
 0x193   :  { %6635 = vst [vmem:[#allocation4_spill] sm:$0xff] %v4668_v34  ;;  %v2163_v44 = vadd.f32 %v4668_v34, %v2162_v33 }
 0x195   :  { %v3392_v45 = vpop.f32.mrb[28].mxu1  ;;  %v2164_v46 = vadd.f32 %v4660_v10, %v2163_v44  ;;  %v3528_v47 = vpop.f32.mrb[28].mxu0 }
 0x196   :  { %v871_v56 = vpop.f32.mrb[29].mxu1  ;;  %v4672_v59 = vadd.f32 %v3528_v47, %v3392_v45  ;;  %v1932_v6 = vpop.f32.mrb[29].mxu0 }
 0x197   :  { %v3393_v9 = vpop.f32.mrb[30].mxu1  ;;  %v4674_v21 = vadd.f32 %v1932_v6, %v871_v56  ;;  %v2165_v25 = vadd.f32 %v4665_v22, %v2164_v46  ;;  %v3529_v40 = vpop.f32.mrb[30].mxu0 }
 0x198   :  { %6636 = vst [vmem:[#allocation5_spill] sm:$0xff] %v4672_v59  ;;  %v874_v41 = vpop.f32.mrb[31].mxu1  ;;  %v4677_v55 = vadd.f32 %v3529_v40, %v3393_v9  ;;  %v1935_v13 = vpop.f32.mrb[31].mxu0 }
 0x199   :  { %6637 = vst [vmem:[#allocation6_spill] sm:$0xff] %v4674_v21  ;;  %v2166_v14 = vadd.f32 %v4674_v21, %v2165_v25  ;;  %v4680_v17 = vadd.f32 %v1935_v13, %v874_v41 }
 0x19a   :  { %6638 = vst [vmem:[#allocation7_spill] sm:$0xff] %v4677_v55 }
 0x19b   :  { %6639 = vst [vmem:[#allocation8_spill] sm:$0xff] %v4680_v17  ;;  %v2167_v36 = vadd.f32 %v4680_v17, %v2166_v14 }
 0x19d   :  { %v3396_v43 = vpop.f32.mrb[32].mxu1  ;;  %v2168_v60 = vadd.f32 %v4672_v59, %v2167_v36  ;;  %v3532_v1 = vpop.f32.mrb[32].mxu0 }
 0x19e   :  { %v887_v27 = vpop.f32.mrb[33].mxu1  ;;  %v4684_v28 = vadd.f32 %v3532_v1, %v3396_v43  ;;  %v1948_v57 = vpop.f32.mrb[33].mxu0 }
 0x19f   :  { %v3397_v2 = vpop.f32.mrb[34].mxu1  ;;  %v4686_v50 = vadd.f32 %v1948_v57, %v887_v27  ;;  %v2169_v51 = vadd.f32 %v4677_v55, %v2168_v60  ;;  %v3533_v53 = vpop.f32.mrb[34].mxu0 }
 0x1a0   :  { %6640 = vst [vmem:[#allocation9_spill] sm:$0xff] %v4684_v28  ;;  %v890_v49 = vpop.f32.mrb[35].mxu1  ;;  %v4689_v5 = vadd.f32 %v3533_v53, %v3397_v2  ;;  %v1951_v18 = vpop.f32.mrb[35].mxu0 }
 0x1a1   :  { %6641 = vst [vmem:[#allocation10_spill] sm:$0xff] %v4686_v50  ;;  %v2170_v19 = vadd.f32 %v4686_v50, %v2169_v51  ;;  %v4692_v48 = vadd.f32 %v1951_v18, %v890_v49 }
 0x1a2   :  { %6642 = vst [vmem:[#allocation11_spill] sm:$0xff] %v4689_v5 }
 0x1a3   :  { %6643 = vst [vmem:[#allocation12_spill] sm:$0xff] %v4692_v48  ;;  %v2171_v11 = vadd.f32 %v4692_v48, %v2170_v19 }
 0x1a5   :  { %v3400_v16 = vpop.f32.mrb[36].mxu1  ;;  %v2172_v23 = vadd.f32 %v4684_v28, %v2171_v11  ;;  %v3536_v33 = vpop.f32.mrb[36].mxu0 }
 0x1a6   :  { %v903_v44 = vpop.f32.mrb[37].mxu1  ;;  %v4696_v45 = vadd.f32 %v3536_v33, %v3400_v16  ;;  %v1964_v46 = vpop.f32.mrb[37].mxu0 }
 0x1a7   :  { %v3401_v47 = vpop.f32.mrb[38].mxu1  ;;  %v4698_v56 = vadd.f32 %v1964_v46, %v903_v44  ;;  %v2173_v6 = vadd.f32 %v4689_v5, %v2172_v23  ;;  %v3537_v9 = vpop.f32.mrb[38].mxu0 }
 0x1a8   :  { %6644 = vst [vmem:[#allocation13_spill] sm:$0xff] %v4696_v45  ;;  %v906_v25 = vpop.f32.mrb[39].mxu1  ;;  %v4701_v40 = vadd.f32 %v3537_v9, %v3401_v47  ;;  %v1967_v41 = vpop.f32.mrb[39].mxu0 }
 0x1a9   :  { %6645 = vst [vmem:[#allocation14_spill] sm:$0xff] %v4698_v56  ;;  %v2174_v13 = vadd.f32 %v4698_v56, %v2173_v6  ;;  %v4704_v14 = vadd.f32 %v1967_v41, %v906_v25 }
 0x1aa   :  { %6646 = vst [vmem:[#allocation15_spill] sm:$0xff] %v4701_v40 }
 0x1ab   :  { %6647 = vst [vmem:[#allocation16_spill] sm:$0xff] %v4704_v14  ;;  %v2175_v36 = vadd.f32 %v4704_v14, %v2174_v13 }
 0x1ad   :  { %v3404_v43 = vpop.f32.mrb[40].mxu1  ;;  %v2176_v60 = vadd.f32 %v4696_v45, %v2175_v36  ;;  %v3540_v1 = vpop.f32.mrb[40].mxu0 }
 0x1ae   :  { %v919_v27 = vpop.f32.mrb[41].mxu1  ;;  %v4708_v57 = vadd.f32 %v3540_v1, %v3404_v43  ;;  %v1980_v2 = vpop.f32.mrb[41].mxu0 }
 0x1af   :  { %v3405_v51 = vpop.f32.mrb[42].mxu1  ;;  %v4710_v53 = vadd.f32 %v1980_v2, %v919_v27  ;;  %v2177_v49 = vadd.f32 %v4701_v40, %v2176_v60  ;;  %v3541_v18 = vpop.f32.mrb[42].mxu0 }
 0x1b0   :  { %6648 = vst [vmem:[#allocation17_spill] sm:$0xff] %v4708_v57  ;;  %v922_v19 = vpop.f32.mrb[43].mxu1  ;;  %v4713_v11 = vadd.f32 %v3541_v18, %v3405_v51  ;;  %v1983_v16 = vpop.f32.mrb[43].mxu0 }
 0x1b1   :  { %6649 = vst [vmem:[#allocation18_spill] sm:$0xff] %v4710_v53  ;;  %v2178_v23 = vadd.f32 %v4710_v53, %v2177_v49  ;;  %v4716_v33 = vadd.f32 %v1983_v16, %v922_v19 }
 0x1b2   :  { %6650 = vst [vmem:[#allocation19_spill] sm:$0xff] %v4713_v11 }
 0x1b3   :  { %6651 = vst [vmem:[#allocation20_spill] sm:$0xff] %v4716_v33  ;;  %v2179_v44 = vadd.f32 %v4716_v33, %v2178_v23 }
 0x1b5   :  { %v3408_v46 = vpop.f32.mrb[44].mxu1  ;;  %v2180_v47 = vadd.f32 %v4708_v57, %v2179_v44  ;;  %v3544_v6 = vpop.f32.mrb[44].mxu0 }
 0x1b6   :  { %v935_v9 = vpop.f32.mrb[45].mxu1  ;;  %v4720_v25 = vadd.f32 %v3544_v6, %v3408_v46  ;;  %v1996_v41 = vpop.f32.mrb[45].mxu0 }
 0x1b7   :  { %v3409_v13 = vpop.f32.mrb[46].mxu1  ;;  %v4722_v36 = vadd.f32 %v1996_v41, %v935_v9  ;;  %v2181_v43 = vadd.f32 %v4713_v11, %v2180_v47  ;;  %v3545_v60 = vpop.f32.mrb[46].mxu0 }
 0x1b8   :  { %v938_v1 = vpop.f32.mrb[47].mxu1  ;;  %v4725_v27 = vadd.f32 %v3545_v60, %v3409_v13  ;;  %v1999_v2 = vpop.f32.mrb[47].mxu0 }
 0x1b9   :  { %6652 = vst [vmem:[#allocation21_spill] sm:$0xff] %v4722_v36  ;;  %v2182_v51 = vadd.f32 %v4722_v36, %v2181_v43  ;;  %v4728_v49 = vadd.f32 %v1999_v2, %v938_v1 }
 0x1bb   :  { %v2183_v18 = vadd.f32 %v4728_v49, %v2182_v51 }
 0x1bd   :  { %v3412_v19 = vpop.f32.mrb[48].mxu1  ;;  %v2184_v16 = vadd.f32 %v4720_v25, %v2183_v18  ;;  %v3548_v23 = vpop.f32.mrb[48].mxu0 }
 0x1be   :  { %v951_v44 = vpop.f32.mrb[49].mxu1  ;;  %v4732_v46 = vadd.f32 %v3548_v23, %v3412_v19  ;;  %v2012_v6 = vpop.f32.mrb[49].mxu0 }
 0x1bf   :  { %v3413_v47 = vpop.f32.mrb[50].mxu1  ;;  %v4734_v9 = vadd.f32 %v2012_v6, %v951_v44  ;;  %v2185_v41 = vadd.f32 %v4725_v27, %v2184_v16  ;;  %v3549_v13 = vpop.f32.mrb[50].mxu0 }
 0x1c0   :  { %v954_v60 = vpop.f32.mrb[51].mxu1  ;;  %v4737_v43 = vadd.f32 %v3549_v13, %v3413_v47  ;;  %v2015_v1 = vpop.f32.mrb[51].mxu0 }
 0x1c1   :  { %v2186_v2 = vadd.f32 %v4734_v9, %v2185_v41  ;;  %v4740_v51 = vadd.f32 %v2015_v1, %v954_v60 }
 0x1c3   :  { %v2187_v18 = vadd.f32 %v4740_v51, %v2186_v2 }
 0x1c5   :  { %v3416_v36 = vpop.f32.mrb[52].mxu1  ;;  %v2188_v19 = vadd.f32 %v4732_v46, %v2187_v18  ;;  %v3552_v23 = vpop.f32.mrb[52].mxu0 }
 0x1c6   :  { %v967_v11 = vpop.f32.mrb[53].mxu1  ;;  %v3614_v44 = vadd.f32 %v3552_v23, %v3416_v36  ;;  %v2028_v6 = vpop.f32.mrb[53].mxu0 }
 0x1c7   :  { %v3417_v57 = vpop.f32.mrb[54].mxu1  ;;  %v3615_v16 = vadd.f32 %v2028_v6, %v967_v11  ;;  %v2189_v33 = vadd.f32 %v4737_v43, %v2188_v19  ;;  %v3553_v47 = vpop.f32.mrb[54].mxu0 }
 0x1c8   :  { %v970_v13 = vpop.f32.mrb[55].mxu1  ;;  %v3616_v53 = vadd.f32 %v3553_v47, %v3417_v57  ;;  %v2031_v40 = vpop.f32.mrb[55].mxu0 }
 0x1c9   :  { %v2190_v41 = vadd.f32 %v3615_v16, %v2189_v33  ;;  %v3617_v60 = vadd.f32 %v2031_v40, %v970_v13 }
 0x1cb   :  { %v2191_v1 = vadd.f32 %v3617_v60, %v2190_v41 }
 0x1cd   :  { %v3420_v45 = vpop.f32.mrb[56].mxu1  ;;  %v2192_v2 = vadd.f32 %v3614_v44, %v2191_v1  ;;  %v3556_v14 = vpop.f32.mrb[56].mxu0 }
 0x1ce   :  { %v983_v56 = vpop.f32.mrb[57].mxu1  ;;  %v3618_v18 = vadd.f32 %v3556_v14, %v3420_v45  ;;  %v2044_v5 = vpop.f32.mrb[57].mxu0 }
 0x1cf   :  { %v3421_v28 = vpop.f32.mrb[58].mxu1  ;;  %v3619_v36 = vadd.f32 %v2044_v5, %v983_v56  ;;  %v2193_v23 = vadd.f32 %v3616_v53, %v2192_v2  ;;  %v3557_v48 = vpop.f32.mrb[58].mxu0 }
 0x1d0   :  { %v986_v11 = vpop.f32.mrb[59].mxu1  ;;  %v3620_v6 = vadd.f32 %v3557_v48, %v3421_v28  ;;  %v2047_v19 = vpop.f32.mrb[59].mxu0 }
 0x1d1   :  { %v2194_v50 = vadd.f32 %v3619_v36, %v2193_v23  ;;  %v3621_v55 = vadd.f32 %v2047_v19, %v986_v11 }
 0x1d3   :  { %v2195_v57 = vadd.f32 %v3621_v55, %v2194_v50 }
 0x1d5   :  { %v3424_v47 = vpop.f32.mrb[60].mxu1  ;;  %v2196_v33 = vadd.f32 %v3618_v18, %v2195_v57  ;;  %v3560_v40 = vpop.f32.mrb[60].mxu0 }
 0x1d6   :  { %v999_v13 = vpop.f32.mrb[61].mxu1  ;;  %v3622_v41 = vadd.f32 %v3560_v40, %v3424_v47  ;;  %v2060_v1 = vpop.f32.mrb[61].mxu0 }
 0x1d7   :  { %v3425_v59 = vpop.f32.mrb[62].mxu1  ;;  %v3623_v17 = vadd.f32 %v2060_v1, %v999_v13  ;;  %v2197_v45 = vadd.f32 %v3620_v6, %v2196_v33  ;;  %v3561_v14 = vpop.f32.mrb[62].mxu0 }
 0x1d8   :  { %v1002_v21 = vpop.f32.mrb[63].mxu1  ;;  %v3624_v5 = vadd.f32 %v3561_v14, %v3425_v59  ;;  %v2063_v56 = vpop.f32.mrb[63].mxu0 }
 0x1d9   :  { %v2198_v2 = vadd.f32 %v3623_v17, %v2197_v45  ;;  %v3625_v22 = vadd.f32 %v2063_v56, %v1002_v21 }
 0x1db   :  { %v2199_v28 = vadd.f32 %v3625_v22, %v2198_v2 }
 0x1dd   :  { %v2200_v48 = vadd.f32 %v3622_v41, %v2199_v28 }
 0x1df   :  { %v2201_v23 = vadd.f32 %v3624_v5, %v2200_v48 }
 0x1e1   :  { %v2202_v11 = vrot.slane %v2201_v23, 4 }
 0x1e3   :  { %v2203_v50 = vadd.f32 %v2202_v11, %v2201_v23 }
 0x1e5   :  { %v2204_v19 = vrot.slane %v2203_v50, 2 }
 0x1e7   :  { %v2205_v57 = vadd.f32 %v2204_v19, %v2203_v50 }
 0x1e9   :  { %v2206_v10 = vrot.slane %v2205_v57, 1 }
 0x1eb   :  { %v2207_v34 = vadd.f32 %v2206_v10, %v2205_v57 }
 0x1ed   :  { %v4745_v47 = vmul.f32 0.001953125, %v2207_v34 }
 0x1ef   :  { %v4749_v33 = vsub.f32 %v4728_v49, %v4745_v47  ;;  %v4753_v59 = vsub.f32 %v4720_v25, %v4745_v47  ;;  %v4757_v21 = vsub.f32 %v4725_v27, %v4745_v47  ;;  %v4761_v40 = vsub.f32 %v4734_v9, %v4745_v47 }
 0x1f0   :  { %v4765_v10 = vsub.f32 %v4740_v51, %v4745_v47  ;;  %v4769_v34 = vsub.f32 %v4732_v46, %v4745_v47  ;;  %v4773_v25 = vsub.f32 %v4737_v43, %v4745_v47  ;;  %v4776_v49 = vsub.f32 %v3615_v16, %v4745_v47 }
 0x1f1   :  { %v4779_v27 = vsub.f32 %v3617_v60, %v4745_v47  ;;  %v4782_v9 = vsub.f32 %v3614_v44, %v4745_v47  ;;  %v4785_v51 = vsub.f32 %v3616_v53, %v4745_v47  ;;  %v4788_v13 = vsub.f32 %v3619_v36, %v4745_v47 }
 0x1f2   :  { %v4791_v46 = vsub.f32 %v3621_v55, %v4745_v47  ;;  %v4794_v43 = vsub.f32 %v3618_v18, %v4745_v47  ;;  %v4797_v16 = vsub.f32 %v3620_v6, %v4745_v47  ;;  %v4800_v60 = vsub.f32 %v3623_v17, %v4745_v47 }
 0x1f3   :  { %6653 = vst [vmem:[#allocation22_spill] sm:$0xff] %v4788_v13  ;;  %v4803_v44 = vsub.f32 %v3625_v22, %v4745_v47  ;;  %v4806_v53 = vsub.f32 %v3622_v41, %v4745_v47  ;;  %v4809_v36 = vsub.f32 %v3624_v5, %v4745_v47  ;;  %v4813_v55 = vsub.f32 %v4591_v8, %v4745_v47 }
 0x1f4   :  { %6654 = vst [vmem:[#allocation23_spill] sm:$0xff] %v4791_v46  ;;  %6655 = vst [vmem:[#allocation24_spill] sm:$0xff] %v4794_v43  ;;  %v4817_v18 = vsub.f32 %v4595_v26, %v4745_v47  ;;  %v4821_v17 = vsub.f32 %v4589_v61, %v4745_v47  ;;  %v4829_v41 = vsub.f32 %v4593_v24, %v4745_v47 }
 0x1f5   :  { %6656 = vst [vmem:[#allocation25_spill] sm:$0xff] %v4797_v16  ;;  %6657 = vst [vmem:[#allocation26_spill] sm:$0xff] %v4800_v60  ;;  %v2274_v22 = vmul.f32 %v4813_v55, %v4813_v55  ;;  %v4833_v8 = vsub.f32 %v4602_v15, %v4745_v47  ;;  %v4839_v61 = vsub.f32 %v4608_v63, %v4745_v47 }
 0x1f6   :  { %v2275_v6 = vmul.f32 %v4817_v18, %v4817_v18  ;;  %v2276_v26 = vmul.f32 %v4821_v17, %v4821_v17  ;;  %v2277_v45 = vmul.f32 %v4829_v41, %v4829_v41  ;;  %v4845_v24 = vsub.f32 %v4600_v62, %v4745_v47 }
 0x1f7   :  { %v2278_v15 = vmul.f32 %v4833_v8, %v4833_v8  ;;  %v4851_v56 = vsub.f32 %v4605_v38, %v4745_v47  ;;  %v2279_v63 = vmul.f32 %v4839_v61, %v4839_v61  ;;  %v4857_v28 = vsub.f32 %v4614_v3, %v4745_v47 }
 0x1f8   :  { %v2338_v1 = vadd.f32 %v2275_v6, %v2274_v22  ;;  %v2280_v62 = vmul.f32 %v4845_v24, %v4845_v24  ;;  %v4863_v23 = vsub.f32 %v4620_v54, %v4745_v47  ;;  %v4869_v50 = vsub.f32 %v4612_v30, %v4745_v47 }
 0x1f9   :  { %v2281_v38 = vmul.f32 %v4851_v56, %v4851_v56  ;;  %v2282_v3 = vmul.f32 %v4857_v28, %v4857_v28  ;;  %v4875_v57 = vsub.f32 %v4617_v52, %v4745_v47  ;;  %v4881_v6 = vsub.f32 %v4626_v12, %v4745_v47 }
 0x1fa   :  { %v2339_v14 = vadd.f32 %v2338_v1, %v2276_v26  ;;  %v2283_v54 = vmul.f32 %v4863_v23, %v4863_v23  ;;  %v2284_v30 = vmul.f32 %v4869_v50, %v4869_v50  ;;  %v4887_v1 = vsub.f32 %v4632_v35, %v4745_v47 }
 0x1fb   :  { %v2285_v52 = vmul.f32 %v4875_v57, %v4875_v57  ;;  %v2286_v12 = vmul.f32 %v4881_v6, %v4881_v6 }
 0x1fc   :  { %v2340_v5 = vadd.f32 %v2339_v14, %v2277_v45  ;;  %v4893_v14 = vsub.f32 %v4624_v31, %v4745_v47  ;;  %v2287_v35 = vmul.f32 %v4887_v1, %v4887_v1 }
 0x1fe   :  { %v2341_v2 = vadd.f32 %v2340_v5, %v2278_v15  ;;  %v4899_v5 = vsub.f32 %v4629_v32, %v4745_v47  ;;  %v2288_v31 = vmul.f32 %v4893_v14, %v4893_v14 }
 0x200   :  { %v2342_v48 = vadd.f32 %v2341_v2, %v2279_v63  ;;  %v4905_v2 = vsub.f32 %v4638_v7, %v4745_v47  ;;  %v2289_v32 = vmul.f32 %v4899_v5, %v4899_v5 }
 0x202   :  { %v2343_v11 = vadd.f32 %v2342_v48, %v2280_v62  ;;  %v4911_v48 = vsub.f32 %v4644_v42, %v4745_v47  ;;  %v2290_v7 = vmul.f32 %v4905_v2, %v4905_v2 }
 0x204   :  { %v2344_v19 = vadd.f32 %v2343_v11, %v2281_v38  ;;  %v4917_v11 = vsub.f32 %v4636_v58, %v4745_v47  ;;  %v2291_v42 = vmul.f32 %v4911_v48, %v4911_v48 }
 0x206   :  { %v2345_v22 = vadd.f32 %v2344_v19, %v2282_v3  ;;  %v4923_v19 = vsub.f32 %v4641_v39, %v4745_v47  ;;  %v2292_v58 = vmul.f32 %v4917_v11, %v4917_v11 }
 0x208   :  { %v2346_v26 = vadd.f32 %v2345_v22, %v2283_v54  ;;  %v4929_v22 = vsub.f32 %v4650_v0, %v4745_v47  ;;  %v2293_v39 = vmul.f32 %v4923_v19, %v4923_v19 }
 0x20a   :  { %v2347_v45 = vadd.f32 %v2346_v26, %v2284_v30  ;;  %v4935_v26 = vsub.f32 %v4656_v4, %v4745_v47  ;;  %v2294_v0 = vmul.f32 %v4929_v22, %v4929_v22 }
 0x20c   :  { %v2348_v15 = vadd.f32 %v2347_v45, %v2285_v52  ;;  %v4941_v45 = vsub.f32 %v4648_v37, %v4745_v47  ;;  %v2295_v4 = vmul.f32 %v4935_v26, %v4935_v26 }
 0x20e   :  { %v2349_v63 = vadd.f32 %v2348_v15, %v2286_v12  ;;  %v4947_v15 = vsub.f32 %v4653_v29, %v4745_v47  ;;  %v2296_v37 = vmul.f32 %v4941_v45, %v4941_v45 }
 0x210   :  { %v2350_v62 = vadd.f32 %v2349_v63, %v2287_v35  ;;  %v4953_v63 = vsub.f32 %v4662_v20, %v4745_v47  ;;  %v2297_v29 = vmul.f32 %v4947_v15, %v4947_v15 }
 0x212   :  { %v2351_v38 = vadd.f32 %v2350_v62, %v2288_v31  ;;  %v6658_v62 = vld [vmem:[#allocation4_spill] sm:$0xff]  ;;  %v2298_v20 = vmul.f32 %v4953_v63, %v4953_v63 }
 0x214   :  { %v2352_v3 = vadd.f32 %v2351_v38, %v2289_v32  ;;  %v4959_v32 = vsub.f32 %v6658_v62, %v4745_v47 }
 0x216   :  { %v2353_v54 = vadd.f32 %v2352_v3, %v2290_v7  ;;  %v6659_v7 = vld [vmem:[#allocation3_spill] sm:$0xff] }
 0x217   :  { %v4965_v3 = vsub.f32 %v6659_v7, %v4745_v47 }
 0x218   :  { %v2354_v30 = vadd.f32 %v2353_v54, %v2291_v42  ;;  %v6660_v54 = vld [vmem:[#allocation2_spill] sm:$0xff] }
 0x21a   :  { %v2355_v52 = vadd.f32 %v2354_v30, %v2292_v58  ;;  %v4971_v58 = vsub.f32 %v6660_v54, %v4745_v47  ;;  %v2299_v30 = vmul.f32 %v4959_v32, %v4959_v32 }
 0x21c   :  { %v2356_v12 = vadd.f32 %v2355_v52, %v2293_v39  ;;  %v6661_v52 = vld [vmem:[#allocation6_spill] sm:$0xff] }
 0x21e   :  { %v2357_v35 = vadd.f32 %v2356_v12, %v2294_v0  ;;  %v4977_v0 = vsub.f32 %v6661_v52, %v4745_v47  ;;  %v2300_v12 = vmul.f32 %v4965_v3, %v4965_v3  ;;  %v6669_v52 = vld [vmem:[#allocation10_spill] sm:$0xff] }
 0x220   :  { %v2358_v31 = vadd.f32 %v2357_v35, %v2295_v4  ;;  %6662 = vst [vmem:[#allocation4_spill] sm:$0xff] %v4977_v0  ;;  %v6663_v35 = vld [vmem:[#allocation8_spill] sm:$0xff]  ;;  %v2302_v7 = vmul.f32 %v4977_v0, %v4977_v0 }
 0x222   :  { %v2359_v38 = vadd.f32 %v2358_v31, %v2296_v37  ;;  %v4983_v37 = vsub.f32 %v6663_v35, %v4745_v47  ;;  %v2301_v31 = vmul.f32 %v4971_v58, %v4971_v58  ;;  %v5001_v35 = vsub.f32 %v6669_v52, %v4745_v47  ;;  %v6675_v52 = vld [vmem:[#allocation11_spill] sm:$0xff] }
 0x224   :  { %v2360_v42 = vadd.f32 %v2359_v38, %v2297_v29  ;;  %6664 = vst [vmem:[#allocation3_spill] sm:$0xff] %v4983_v37  ;;  %v6665_v29 = vld [vmem:[#allocation5_spill] sm:$0xff]  ;;  %6670 = vst [vmem:[#allocation8_spill] sm:$0xff] %v5001_v35 }
 0x225   :  { %v4989_v38 = vsub.f32 %v6665_v29, %v4745_v47  ;;  %v6671_v29 = vld [vmem:[#allocation12_spill] sm:$0xff] }
 0x226   :  { %v2361_v39 = vadd.f32 %v2360_v42, %v2298_v20  ;;  %v6667_v42 = vld [vmem:[#allocation7_spill] sm:$0xff]  ;;  %v5007_v0 = vsub.f32 %v6671_v29, %v4745_v47  ;;  %v6677_v29 = vld [vmem:[#allocation14_spill] sm:$0xff] }
 0x227   :  { %6666 = vst [vmem:[#allocation2_spill] sm:$0xff] %v4989_v38  ;;  %v4995_v54 = vsub.f32 %v6667_v42, %v4745_v47  ;;  %v6673_v42 = vld [vmem:[#allocation9_spill] sm:$0xff] }
 0x228   :  { %v2362_v4 = vadd.f32 %v2361_v39, %v2299_v30  ;;  %v2303_v30 = vmul.f32 %v4983_v37, %v4983_v37  ;;  %6672 = vst [vmem:[#allocation5_spill] sm:$0xff] %v5007_v0  ;;  %v5013_v37 = vsub.f32 %v6673_v42, %v4745_v47  ;;  %v6679_v42 = vld [vmem:[#allocation16_spill] sm:$0xff] }
 0x229   :  { %6668 = vst [vmem:[#allocation6_spill] sm:$0xff] %v4995_v54 }
 0x22a   :  { %v2363_v62 = vadd.f32 %v2362_v4, %v2300_v12  ;;  %v2304_v12 = vmul.f32 %v4989_v38, %v4989_v38  ;;  %6674 = vst [vmem:[#allocation7_spill] sm:$0xff] %v5013_v37  ;;  %v5019_v38 = vsub.f32 %v6675_v52, %v4745_v47  ;;  %v6681_v52 = vld [vmem:[#allocation13_spill] sm:$0xff] }
 0x22c   :  { %v2364_v20 = vadd.f32 %v2363_v62, %v2301_v31  ;;  %v2305_v31 = vmul.f32 %v4995_v54, %v4995_v54  ;;  %6676 = vst [vmem:[#allocation10_spill] sm:$0xff] %v5019_v38  ;;  %v5025_v54 = vsub.f32 %v6677_v29, %v4745_v47  ;;  %v6683_v29 = vld [vmem:[#allocation15_spill] sm:$0xff] }
 0x22e   :  { %v2365_v39 = vadd.f32 %v2364_v20, %v2302_v7  ;;  %v2306_v7 = vmul.f32 %v5001_v35, %v5001_v35  ;;  %6678 = vst [vmem:[#allocation12_spill] sm:$0xff] %v5025_v54  ;;  %v5031_v35 = vsub.f32 %v6679_v42, %v4745_v47  ;;  %v6685_v42 = vld [vmem:[#allocation18_spill] sm:$0xff] }
 0x230   :  { %v2366_v4 = vadd.f32 %v2365_v39, %v2303_v30  ;;  %v2307_v30 = vmul.f32 %v5007_v0, %v5007_v0  ;;  %6680 = vst [vmem:[#allocation9_spill] sm:$0xff] %v5031_v35  ;;  %v5037_v0 = vsub.f32 %v6681_v52, %v4745_v47  ;;  %v6686_v52 = vld [vmem:[#allocation20_spill] sm:$0xff] }
 0x232   :  { %v2367_v62 = vadd.f32 %v2366_v4, %v2304_v12  ;;  %v2308_v12 = vmul.f32 %v5013_v37, %v5013_v37  ;;  %6682 = vst [vmem:[#allocation11_spill] sm:$0xff] %v5037_v0  ;;  %v5043_v37 = vsub.f32 %v6683_v29, %v4745_v47  ;;  %v6688_v29 = vld [vmem:[#allocation17_spill] sm:$0xff] }
 0x234   :  { %v2368_v20 = vadd.f32 %v2367_v62, %v2305_v31  ;;  %v2309_v31 = vmul.f32 %v5019_v38, %v5019_v38  ;;  %6684 = vst [vmem:[#allocation14_spill] sm:$0xff] %v5043_v37  ;;  %v5049_v38 = vsub.f32 %v6685_v42, %v4745_v47  ;;  %v6689_v42 = vld [vmem:[#allocation19_spill] sm:$0xff] }
 0x236   :  { %v2369_v39 = vadd.f32 %v2368_v20, %v2306_v7  ;;  %v2310_v7 = vmul.f32 %v5025_v54, %v5025_v54  ;;  %v5055_v54 = vsub.f32 %v6686_v52, %v4745_v47  ;;  %v6690_v52 = vld [vmem:[#allocation21_spill] sm:$0xff] }
 0x238   :  { %v2370_v4 = vadd.f32 %v2369_v39, %v2307_v30  ;;  %v2311_v30 = vmul.f32 %v5031_v35, %v5031_v35  ;;  %6687 = vst [vmem:[#allocation16_spill] sm:$0xff] %v5055_v54  ;;  %v5061_v35 = vsub.f32 %v6688_v29, %v4745_v47 }
 0x23a   :  { %v2371_v62 = vadd.f32 %v2370_v4, %v2308_v12  ;;  %v2312_v12 = vmul.f32 %v5037_v0, %v5037_v0  ;;  %v5067_v0 = vsub.f32 %v6689_v42, %v4745_v47 }
 0x23c   :  { %v2372_v20 = vadd.f32 %v2371_v62, %v2309_v31  ;;  %v2313_v31 = vmul.f32 %v5043_v37, %v5043_v37  ;;  %v5073_v37 = vsub.f32 %v6690_v52, %v4745_v47  ;;  %v2317_v29 = vmul.f32 %v5067_v0, %v5067_v0 }
 0x23d   :  { %v2320_v47 = vmul.f32 %v4753_v59, %v4753_v59  ;;  %v2321_v52 = vmul.f32 %v4757_v21, %v4757_v21 }
 0x23e   :  { %v2373_v39 = vadd.f32 %v2372_v20, %v2310_v7  ;;  %v2314_v7 = vmul.f32 %v5049_v38, %v5049_v38 }
 0x240   :  { %v2374_v4 = vadd.f32 %v2373_v39, %v2311_v30  ;;  %v2315_v30 = vmul.f32 %v5055_v54, %v5055_v54  ;;  %v2319_v54 = vmul.f32 %v4749_v33, %v4749_v33 }
 0x242   :  { %v2375_v62 = vadd.f32 %v2374_v4, %v2312_v12  ;;  %v2316_v12 = vmul.f32 %v5061_v35, %v5061_v35 }
 0x244   :  { %v2376_v20 = vadd.f32 %v2375_v62, %v2313_v31  ;;  %v2318_v62 = vmul.f32 %v5073_v37, %v5073_v37 }
 0x246   :  { %v2377_v39 = vadd.f32 %v2376_v20, %v2314_v7 }
 0x248   :  { %v2378_v4 = vadd.f32 %v2377_v39, %v2315_v30  ;;  %v2322_v39 = vmul.f32 %v4761_v40, %v4761_v40 }
 0x24a   :  { %v2379_v31 = vadd.f32 %v2378_v4, %v2316_v12  ;;  %v2323_v4 = vmul.f32 %v4765_v10, %v4765_v10 }
 0x24c   :  { %v2380_v42 = vadd.f32 %v2379_v31, %v2317_v29  ;;  %v2324_v31 = vmul.f32 %v4769_v34, %v4769_v34 }
 0x24e   :  { %v2381_v7 = vadd.f32 %v2380_v42, %v2318_v62  ;;  %v2325_v42 = vmul.f32 %v4773_v25, %v4773_v25 }
 0x250   :  { %v2382_v20 = vadd.f32 %v2381_v7, %v2319_v54  ;;  %v2326_v7 = vmul.f32 %v4776_v49, %v4776_v49 }
 0x252   :  { %v2383_v30 = vadd.f32 %v2382_v20, %v2320_v47  ;;  %v2327_v20 = vmul.f32 %v4779_v27, %v4779_v27 }
 0x254   :  { %v2384_v12 = vadd.f32 %v2383_v30, %v2321_v52  ;;  %v2328_v30 = vmul.f32 %v4782_v9, %v4782_v9 }
 0x256   :  { %v2385_v29 = vadd.f32 %v2384_v12, %v2322_v39  ;;  %v2329_v12 = vmul.f32 %v4785_v51, %v4785_v51 }
 0x258   :  { %v2386_v62 = vadd.f32 %v2385_v29, %v2323_v4  ;;  %v2330_v29 = vmul.f32 %v4788_v13, %v4788_v13 }
 0x25a   :  { %v2387_v54 = vadd.f32 %v2386_v62, %v2324_v31  ;;  %v2331_v62 = vmul.f32 %v4791_v46, %v4791_v46 }
 0x25c   :  { %v2388_v47 = vadd.f32 %v2387_v54, %v2325_v42  ;;  %v2332_v54 = vmul.f32 %v4794_v43, %v4794_v43 }
 0x25e   :  { %v2389_v52 = vadd.f32 %v2388_v47, %v2326_v7  ;;  %v2333_v47 = vmul.f32 %v4797_v16, %v4797_v16 }
 0x260   :  { %v2390_v39 = vadd.f32 %v2389_v52, %v2327_v20  ;;  %v2334_v52 = vmul.f32 %v4800_v60, %v4800_v60 }
 0x262   :  { %v2391_v4 = vadd.f32 %v2390_v39, %v2328_v30  ;;  %v2335_v39 = vmul.f32 %v4803_v44, %v4803_v44 }
 0x264   :  { %v2392_v31 = vadd.f32 %v2391_v4, %v2329_v12  ;;  %v2336_v4 = vmul.f32 %v4806_v53, %v4806_v53 }
 0x266   :  { %v2393_v42 = vadd.f32 %v2392_v31, %v2330_v29  ;;  %v2337_v31 = vmul.f32 %v4809_v36, %v4809_v36 }
 0x268   :  { %v2394_v7 = vadd.f32 %v2393_v42, %v2331_v62 }
 0x26a   :  { %v2395_v20 = vadd.f32 %v2394_v7, %v2332_v54 }
 0x26c   :  { %v2396_v30 = vadd.f32 %v2395_v20, %v2333_v47 }
 0x26e   :  { %v2397_v12 = vadd.f32 %v2396_v30, %v2334_v52 }
 0x270   :  { %v2398_v29 = vadd.f32 %v2397_v12, %v2335_v39  ;;  %v6695_v39 = vld [vmem:[#allocation3_spill] sm:$0xff]  ;;  %v6696_v12 = vld [vmem:[#allocation2_spill] sm:$0xff] }
 0x272   :  { %v2399_v62 = vadd.f32 %v2398_v29, %v2336_v4  ;;  %v6697_v4 = vld [vmem:[#allocation6_spill] sm:$0xff]  ;;  %v6698_v29 = vld [vmem:[#allocation8_spill] sm:$0xff] }
 0x274   :  { %v2400_v42 = vadd.f32 %v2399_v62, %v2337_v31  ;;  %v6699_v31 = vld [vmem:[#allocation5_spill] sm:$0xff] }
 0x276   :  { %v2401_v43 = vrot.slane %v2400_v42, 4 }
 0x278   :  { %v2402_v16 = vadd.f32 %v2401_v43, %v2400_v42  ;;  %v6700_v42 = vld [vmem:[#allocation7_spill] sm:$0xff] }
 0x27a   :  { %v2403_v54 = vrot.slane %v2402_v16, 2 }
 0x27c   :  { %v2404_v7 = vadd.f32 %v2403_v54, %v2402_v16 }
 0x27e   :  { %v2405_v46 = vrot.slane %v2404_v7, 1 }
 0x280   :  { %v2406_v60 = vadd.f32 %v2405_v46, %v2404_v7  ;;  %v6701_v7 = vld [vmem:[#allocation10_spill] sm:$0xff] }
 0x282   :  { %v2407_v47 = vmul.f32 0.001953125, %v2406_v60 }
 0x284   :  { %v2408_v20 = vadd.f32 1e-05, %v2407_v47 }
 0x286   :  { %3762 = vrsqrt.f32 %v2408_v20  ;;  %v6702_v20 = vld [vmem:[#allocation12_spill] sm:$0xff] }
 0x290   :  { %v5119_v13 = vpop.eup %3762 }
 0x291   :  { %v5123_v52 = vmul.f32 %v5119_v13, %v4813_v55  ;;  %v5127_v30 = vmul.f32 %v5119_v13, %v4817_v18  ;;  %v5131_v43 = vmul.f32 %v5119_v13, %v4821_v17  ;;  %v5135_v46 = vmul.f32 %v5119_v13, %v4829_v41 }
 0x292   :  { %v5139_v16 = vmul.f32 %v5119_v13, %v4803_v44  ;;  %v5143_v60 = vmul.f32 %v5119_v13, %v4806_v53  ;;  %v5147_v55 = vmul.f32 %v5119_v13, %v4809_v36  ;;  %v5151_v18 = vmul.f32 %v5119_v13, %v4833_v8 }
 0x293   :  { %v5155_v17 = vmul.f32 %v5119_v13, %v4839_v61  ;;  %v5159_v44 = vmul.f32 %v5119_v13, %v4845_v24  ;;  %v5163_v53 = vmul.f32 %v5119_v13, %v4851_v56  ;;  %v5167_v36 = vmul.f32 %v5119_v13, %v4857_v28 }
 0x294   :  { %6691 = vst [vmem:[#allocation13_spill] sm:$0xff] %v5139_v16  ;;  %6692 = vst [vmem:[#allocation15_spill] sm:$0xff] %v5143_v60  ;;  %v5171_v41 = vmul.f32 %v5119_v13, %v4863_v23  ;;  %v5175_v8 = vmul.f32 %v5119_v13, %v4869_v50  ;;  %v5179_v61 = vmul.f32 %v5119_v13, %v4875_v57  ;;  %v6706_v60 = vld [vmem:[#allocation16_spill] sm:$0xff] }
 0x295   :  { %6693 = vst [vmem:[#allocation18_spill] sm:$0xff] %v5147_v55  ;;  %v5183_v24 = vmul.f32 %v5119_v13, %v4881_v6  ;;  %v5187_v56 = vmul.f32 %v5119_v13, %v4887_v1  ;;  %v5191_v28 = vmul.f32 %v5119_v13, %v4893_v14  ;;  %v5195_v23 = vmul.f32 %v5119_v13, %v4899_v5  ;;  %v6705_v55 = vld [vmem:[#allocation14_spill] sm:$0xff] }
 0x296   :  { %v5199_v50 = vmul.f32 %v5119_v13, %v4905_v2  ;;  %v5203_v57 = vmul.f32 %v5119_v13, %v4911_v48  ;;  %v5207_v6 = vmul.f32 %v5119_v13, %v4917_v11  ;;  %v5211_v1 = vmul.f32 %v5119_v13, %v4923_v19 }
 0x297   :  { %v5215_v14 = vmul.f32 %v5119_v13, %v4929_v22  ;;  %v5219_v5 = vmul.f32 %v5119_v13, %v4935_v26  ;;  %v5223_v2 = vmul.f32 %v5119_v13, %v4941_v45  ;;  %v5227_v48 = vmul.f32 %v5119_v13, %v4947_v15  ;;  %v6694_v45 = vld [vmem:[#allocation4_spill] sm:$0xff] }
 0x298   :  { %v5231_v11 = vmul.f32 %v5119_v13, %v4953_v63  ;;  %v5235_v19 = vmul.f32 %v5119_v13, %v4959_v32  ;;  %v5239_v22 = vmul.f32 %v5119_v13, %v4965_v3  ;;  %v5243_v26 = vmul.f32 %v5119_v13, %v4971_v58 }
 0x299   :  { %v5247_v15 = vmul.f32 %v5119_v13, %v6694_v45  ;;  %v5251_v63 = vmul.f32 %v5119_v13, %v6695_v39  ;;  %v5255_v32 = vmul.f32 %v5119_v13, %v6696_v12  ;;  %v5259_v3 = vmul.f32 %v5119_v13, %v6697_v4  ;;  %v6703_v39 = vld [vmem:[#allocation9_spill] sm:$0xff]  ;;  %v6704_v4 = vld [vmem:[#allocation11_spill] sm:$0xff] }
 0x29a   :  { %v5263_v58 = vmul.f32 %v5119_v13, %v6698_v29  ;;  %v5267_v62 = vmul.f32 %v5119_v13, %v6699_v31  ;;  %v5271_v54 = vmul.f32 %v5119_v13, %v6700_v42  ;;  %v5275_v47 = vmul.f32 %v5119_v13, %v6701_v7 }
 0x29b   :  { %v2446_v45 = vmul.f32 %v5119_v13, %v6702_v20  ;;  %v2447_v12 = vmul.f32 %v5119_v13, %v6703_v39  ;;  %v2448_v29 = vmul.f32 %v5119_v13, %v6704_v4  ;;  %v5285_v31 = vmul.f32 %v5119_v13, %v6705_v55 }
 0x29c   :  { %v5289_v42 = vmul.f32 %v5119_v13, %v5049_v38  ;;  %v5293_v7 = vmul.f32 %v5119_v13, %v6706_v60  ;;  %v5297_v20 = vmul.f32 %v5119_v13, %v5061_v35  ;;  %v5301_v39 = vmul.f32 %v5119_v13, %v5067_v0 }
 0x29d   :  { %v5305_v55 = vmul.f32 %v5119_v13, %v5073_v37  ;;  %v5309_v38 = vmul.f32 %v5119_v13, %v4749_v33  ;;  %v5313_v60 = vmul.f32 %v5119_v13, %v4753_v59  ;;  %v5317_v35 = vmul.f32 %v5119_v13, %v4757_v21  ;;  %v5338_v21 = vld [vmem:[%s6557_s2] ss:$0 sm:$0xff] }
 0x29e   :  { %v5321_v0 = vmul.f32 %v5119_v13, %v4761_v40  ;;  %v5325_v37 = vmul.f32 %v5119_v13, %v4765_v10  ;;  %v5329_v33 = vmul.f32 %v5119_v13, %v4769_v34  ;;  %v5333_v59 = vmul.f32 %v5119_v13, %v4773_v25  ;;  %v6711_v25 = vld [vmem:[#allocation22_spill] sm:$0xff] }
 0x29f   :  { %v2462_v40 = vmul.f32 %v5119_v13, %v4776_v49  ;;  %v2463_v10 = vmul.f32 %v5119_v13, %v4779_v27  ;;  %v2464_v4 = vmul.f32 %v5119_v13, %v4782_v9  ;;  %v5348_v34 = vmul.f32 %v5119_v13, %v4785_v51  ;;  %v6714_v27 = vld [vmem:[#allocation25_spill] sm:$0xff]  ;;  %v6715_v9 = vld [vmem:[#allocation26_spill] sm:$0xff] }
 0x2a0   :  { %6707 = vst [vmem:[#allocation20_spill] sm:$0xff] %v5321_v0  ;;  %6708 = vst [vmem:[#allocation17_spill] sm:$0xff] %v5325_v37  ;;  %v5352_v16 = vmul.f32 %v5119_v13, %v6711_v25  ;;  %v6713_v37 = vld [vmem:[#allocation24_spill] sm:$0xff]  ;;  %v5364_v0 = vmul.f32 %v5119_v13, %v6714_v27  ;;  %v5368_v51 = vmul.f32 %v5119_v13, %v6715_v9 }
 0x2a1   :  { %6709 = vst [vmem:[#allocation19_spill] sm:$0xff] %v5329_v33  ;;  %6710 = vst [vmem:[#allocation21_spill] sm:$0xff] %v5333_v59  ;;  %v6712_v59 = vld [vmem:[#allocation23_spill] sm:$0xff]  ;;  %v5360_v49 = vmul.f32 %v5119_v13, %v6713_v37  ;;  %v5372_v25 = vmul.f32 %v5338_v21, %v5123_v52  ;;  %v5380_v37 = vmul.f32 %v5338_v21, %v5131_v43 }
 0x2a2   :  { %v5356_v33 = vmul.f32 %v5119_v13, %v6712_v59  ;;  %v5376_v59 = vmul.f32 %v5338_v21, %v5127_v30  ;;  %v5384_v27 = vmul.f32 %v5338_v21, %v5135_v46  ;;  %v5388_v13 = vmul.f32 %v5338_v21, %v5151_v18 }
 0x2a3   :  { %v5392_v52 = vmul.f32 %v5338_v21, %v5155_v17  ;;  %v5396_v30 = vmul.f32 %v5338_v21, %v5159_v44  ;;  %v5400_v43 = vmul.f32 %v5338_v21, %v5163_v53  ;;  %v5404_v46 = vmul.f32 %v5338_v21, %v5167_v36 }
 0x2a4   :  { %v5408_v18 = vmul.f32 %v5338_v21, %v5171_v41  ;;  %v5412_v17 = vmul.f32 %v5338_v21, %v5175_v8  ;;  %v5416_v44 = vmul.f32 %v5338_v21, %v5179_v61  ;;  %v5420_v53 = vmul.f32 %v5338_v21, %v5183_v24 }
 0x2a5   :  { %v5424_v36 = vmul.f32 %v5338_v21, %v5187_v56  ;;  %v5428_v41 = vmul.f32 %v5338_v21, %v5191_v28  ;;  %v5432_v8 = vmul.f32 %v5338_v21, %v5195_v23  ;;  %v5436_v61 = vmul.f32 %v5338_v21, %v5199_v50 }
 0x2a6   :  { %v5440_v24 = vmul.f32 %v5338_v21, %v5203_v57  ;;  %v5444_v56 = vmul.f32 %v5338_v21, %v5207_v6  ;;  %v5448_v28 = vmul.f32 %v5338_v21, %v5211_v1  ;;  %v5452_v23 = vmul.f32 %v5338_v21, %v5215_v14 }
 0x2a7   :  { %v5456_v50 = vmul.f32 %v5338_v21, %v5219_v5  ;;  %v5460_v57 = vmul.f32 %v5338_v21, %v5223_v2  ;;  %v5464_v6 = vmul.f32 %v5338_v21, %v5227_v48  ;;  %v5468_v1 = vmul.f32 %v5338_v21, %v5231_v11 }
 0x2a8   :  { %v5472_v14 = vmul.f32 %v5338_v21, %v5235_v19  ;;  %v5476_v5 = vmul.f32 %v5338_v21, %v5239_v22  ;;  %v5480_v2 = vmul.f32 %v5338_v21, %v5243_v26  ;;  %v5484_v48 = vmul.f32 %v5338_v21, %v5247_v15 }
 0x2a9   :  { %v5488_v11 = vmul.f32 %v5338_v21, %v5251_v63  ;;  %v5492_v19 = vmul.f32 %v5338_v21, %v5255_v32  ;;  %v5496_v22 = vmul.f32 %v5338_v21, %v5259_v3  ;;  %v5500_v26 = vmul.f32 %v5338_v21, %v5263_v58 }
 0x2aa   :  { %v5504_v15 = vmul.f32 %v5338_v21, %v5267_v62  ;;  %v5508_v63 = vmul.f32 %v5338_v21, %v5271_v54  ;;  %v5512_v32 = vmul.f32 %v5338_v21, %v5275_v47  ;;  %v5515_v9 = vmul.f32 %v5338_v21, %v2446_v45 }
 0x2ab   :  { %v5518_v3 = vmul.f32 %v5338_v21, %v2447_v12  ;;  %v5521_v58 = vmul.f32 %v5338_v21, %v2448_v29  ;;  %v5525_v62 = vmul.f32 %v5338_v21, %v5285_v31  ;;  %v5529_v54 = vmul.f32 %v5338_v21, %v5289_v42 }
 0x2ac   :  { %v5533_v47 = vmul.f32 %v5338_v21, %v5293_v7  ;;  %v5537_v45 = vmul.f32 %v5338_v21, %v5297_v20  ;;  %v5541_v12 = vmul.f32 %v5338_v21, %v5301_v39  ;;  %v5545_v29 = vmul.f32 %v5338_v21, %v5305_v55  ;;  %v6720_v20 = vld [vmem:[#allocation20_spill] sm:$0xff] }
 0x2ad   :  { %v5549_v31 = vmul.f32 %v5338_v21, %v5309_v38  ;;  %v5553_v42 = vmul.f32 %v5338_v21, %v5313_v60  ;;  %v5557_v7 = vmul.f32 %v5338_v21, %v5317_v35  ;;  %v5561_v39 = vmul.f32 %v5338_v21, %v6720_v20 }
 0x2ae   :  { %6716 = vst [vmem:[#allocation4_spill] sm:$0xff] %v5541_v12  ;;  %6717 = vst [vmem:[#allocation3_spill] sm:$0xff] %v5545_v29  ;;  %v6721_v12 = vld [vmem:[#allocation17_spill] sm:$0xff]  ;;  %v6722_v29 = vld [vmem:[#allocation19_spill] sm:$0xff]  ;;  %v5579_v35 = vmul.f32 %v5338_v21, %v2463_v10  ;;  %v5582_v20 = vmul.f32 %v5338_v21, %v2464_v4  ;;  %v5603_v10 = vmul.f32 %v5338_v21, %v5360_v49 }
 0x2af   :  { %6718 = vst [vmem:[#allocation2_spill] sm:$0xff] %v5549_v31  ;;  %6719 = vst [vmem:[#allocation6_spill] sm:$0xff] %v5553_v42  ;;  %v5565_v55 = vmul.f32 %v5338_v21, %v6721_v12  ;;  %v5569_v38 = vmul.f32 %v5338_v21, %v6722_v29  ;;  %v6723_v31 = vld [vmem:[#allocation21_spill] sm:$0xff]  ;;  %v5576_v42 = vmul.f32 %v5338_v21, %v2462_v40  ;;  %v5587_v12 = vld [vmem:[%s6558_s3] ss:$0 sm:$0xff] }
 0x2b0   :  { %v5573_v60 = vmul.f32 %v5338_v21, %v6723_v31  ;;  %v5591_v29 = vmul.f32 %v5338_v21, %v5348_v34  ;;  %v5595_v31 = vmul.f32 %v5338_v21, %v5352_v16  ;;  %v5599_v40 = vmul.f32 %v5338_v21, %v5356_v33 }
 0x2b1   :  { %v5607_v4 = vmul.f32 %v5338_v21, %v5364_v0  ;;  %v5611_v34 = vmul.f32 %v5338_v21, %v5368_v51  ;;  %v5627_v0 = vadd.f32 %v5587_v12, %v5372_v25  ;;  %v5631_v51 = vadd.f32 %v5587_v12, %v5376_v59 }
 0x2b2   :  { %6724 = vst [vmem:[#allocation8_spill] sm:$0xff] %v5591_v29  ;;  %6725 = vst [vmem:[#allocation5_spill] sm:$0xff] %v5595_v31  ;;  %v6727_v29 = vld [vmem:[#allocation13_spill] sm:$0xff]  ;;  %v6728_v31 = vld [vmem:[#allocation15_spill] sm:$0xff]  ;;  %v5647_v25 = vadd.f32 %v5587_v12, %v5392_v52  ;;  %v5651_v59 = vadd.f32 %v5587_v12, %v5396_v30  ;;  %v5667_v52 = vadd.f32 %v5587_v12, %v5412_v17 }
 0x2b3   :  { %6726 = vst [vmem:[#allocation7_spill] sm:$0xff] %v5599_v40  ;;  %v5615_v16 = vmul.f32 %v5338_v21, %v6727_v29  ;;  %v5619_v33 = vmul.f32 %v5338_v21, %v6728_v31  ;;  %v6729_v40 = vld [vmem:[#allocation18_spill] sm:$0xff]  ;;  %v5635_v29 = vadd.f32 %v5587_v12, %v5380_v37  ;;  %v5639_v31 = vadd.f32 %v5587_v12, %v5384_v27 }
 0x2b4   :  { %v5623_v49 = vmul.f32 %v5338_v21, %v6729_v40  ;;  %v5643_v21 = vadd.f32 %v5587_v12, %v5388_v13  ;;  %v5655_v37 = vadd.f32 %v5587_v12, %v5400_v43  ;;  %v5659_v27 = vadd.f32 %v5587_v12, %v5404_v46 }
 0x2b5   :  { %v5663_v13 = vadd.f32 %v5587_v12, %v5408_v18  ;;  %v5671_v30 = vadd.f32 %v5587_v12, %v5416_v44  ;;  %v5675_v43 = vadd.f32 %v5587_v12, %v5420_v53  ;;  %v5679_v46 = vadd.f32 %v5587_v12, %v5424_v36  ;;  %v6733_v40 = vld [vmem:[#allocation4_spill] sm:$0xff] }
 0x2b6   :  { %v5683_v18 = vadd.f32 %v5587_v12, %v5428_v41  ;;  %v5687_v17 = vadd.f32 %v5587_v12, %v5432_v8  ;;  %v5691_v44 = vadd.f32 %v5587_v12, %v5436_v61  ;;  %v5695_v53 = vadd.f32 %v5587_v12, %v5440_v24 }
 0x2b7   :  { %v5699_v36 = vadd.f32 %v5587_v12, %v5444_v56  ;;  %v5703_v41 = vadd.f32 %v5587_v12, %v5448_v28  ;;  %v5707_v8 = vadd.f32 %v5587_v12, %v5452_v23  ;;  %v5711_v61 = vadd.f32 %v5587_v12, %v5456_v50 }
 0x2b8   :  { %v5715_v24 = vadd.f32 %v5587_v12, %v5460_v57  ;;  %v5719_v56 = vadd.f32 %v5587_v12, %v5464_v6  ;;  %v5723_v28 = vadd.f32 %v5587_v12, %v5468_v1  ;;  %v5727_v23 = vadd.f32 %v5587_v12, %v5472_v14 }
 0x2b9   :  { %v5731_v50 = vadd.f32 %v5587_v12, %v5476_v5  ;;  %v5735_v57 = vadd.f32 %v5587_v12, %v5480_v2  ;;  %v5739_v6 = vadd.f32 %v5587_v12, %v5484_v48  ;;  %v5743_v1 = vadd.f32 %v5587_v12, %v5488_v11 }
 0x2ba   :  { %v5747_v14 = vadd.f32 %v5587_v12, %v5492_v19  ;;  %v5751_v5 = vadd.f32 %v5587_v12, %v5496_v22  ;;  %v5755_v2 = vadd.f32 %v5587_v12, %v5500_v26  ;;  %v5759_v48 = vadd.f32 %v5587_v12, %v5504_v15 }
 0x2bb   :  { %v5763_v11 = vadd.f32 %v5587_v12, %v5508_v63  ;;  %v5767_v19 = vadd.f32 %v5587_v12, %v5512_v32  ;;  %v5771_v22 = vadd.f32 %v5587_v12, %v5515_v9  ;;  %v5775_v26 = vadd.f32 %v5587_v12, %v5518_v3 }
 0x2bc   :  { %v5779_v15 = vadd.f32 %v5587_v12, %v5521_v58  ;;  %v5783_v63 = vadd.f32 %v5587_v12, %v5525_v62  ;;  %v5787_v32 = vadd.f32 %v5587_v12, %v5529_v54  ;;  %v5791_v9 = vadd.f32 %v5587_v12, %v5533_v47 }
 0x2bd   :  { %v5795_v3 = vadd.f32 %v5587_v12, %v5537_v45  ;;  %v5799_v58 = vadd.f32 %v5587_v12, %v6733_v40  ;;  %v5815_v45 = vadd.f32 %v5587_v12, %v5557_v7  ;;  %v5819_v40 = vadd.f32 %v5587_v12, %v5561_v39 }
 0x2be   :  { %6730 = vst [vmem:[#allocation10_spill] sm:$0xff] %v5779_v15  ;;  %6731 = vst [vmem:[#allocation12_spill] sm:$0xff] %v5783_v63  ;;  %v6734_v15 = vld [vmem:[#allocation3_spill] sm:$0xff]  ;;  %v6735_v63 = vld [vmem:[#allocation2_spill] sm:$0xff]  ;;  %v5835_v7 = vadd.f32 %v5587_v12, %v5576_v42  ;;  %v5839_v39 = vadd.f32 %v5587_v12, %v5579_v35  ;;  %v5859_v35 = vadd.f32 %v5587_v12, %v5603_v10  ;;  %vm2616_vm1 = vcmp.ge.f32.partialorder %v5627_v0, 0.0 }
 0x2bf   :  { %6732 = vst [vmem:[#allocation9_spill] sm:$0xff] %v5787_v32  ;;  %v5803_v62 = vadd.f32 %v5587_v12, %v6734_v15  ;;  %v5807_v54 = vadd.f32 %v5587_v12, %v6735_v63  ;;  %v6736_v32 = vld [vmem:[#allocation6_spill] sm:$0xff]  ;;  %v5823_v15 = vadd.f32 %v5587_v12, %v5565_v55  ;;  %v5827_v63 = vadd.f32 %v5587_v12, %v5569_v38 }
 0x2c0   :  { %v5811_v47 = vadd.f32 %v5587_v12, %v6736_v32  ;;  %v5831_v32 = vadd.f32 %v5587_v12, %v5573_v60  ;;  %6740 = vst [vmem:[#allocation22_spill] sm:$0xff] %v5839_v39  ;;  %v5843_v55 = vadd.f32 %v5587_v12, %v5582_v20  ;;  %6748 = vst [vmem:[#allocation20_spill] sm:$0xff] %v5859_v35  ;;  %vm2617_vm2 = vcmp.ge.f32.partialorder %v5631_v51, 0.0 }
 0x2c1   :  { %6737 = vst [vmem:[#allocation11_spill] sm:$0xff] %v5823_v15  ;;  %6738 = vst [vmem:[#allocation14_spill] sm:$0xff] %v5827_v63  ;;  %v6742_v15 = vld [vmem:[#allocation8_spill] sm:$0xff]  ;;  %v6744_v63 = vld [vmem:[#allocation5_spill] sm:$0xff]  ;;  %v5863_v20 = vadd.f32 %v5587_v12, %v5607_v4  ;;  %vm2618_vm3 = vcmp.ge.f32.partialorder %v5635_v29, 0.0  ;;  %vm2619_vm4 = vcmp.ge.f32.partialorder %v5639_v31, 0.0  ;;  %v5884_v10 = vadd.f32 %v5587_v12, %v5619_v33 }
 0x2c2   :  { %6739 = vst [vmem:[#allocation16_spill] sm:$0xff] %v5831_v32  ;;  %6741 = vst [vmem:[#allocation23_spill] sm:$0xff] %v5843_v55  ;;  %v5847_v38 = vadd.f32 %v5587_v12, %v6742_v15  ;;  %v5851_v60 = vadd.f32 %v5587_v12, %v6744_v63  ;;  %v6746_v32 = vld [vmem:[#allocation7_spill] sm:$0xff]  ;;  %v5867_v15 = vadd.f32 %v5587_v12, %v5611_v34  ;;  %vm2620_vm5 = vcmp.ge.f32.partialorder %v5643_v21, 0.0 }
 0x2c3   :  { %v5855_v42 = vadd.f32 %v5587_v12, %v6746_v32  ;;  %6749 = vst [vmem:[#allocation17_spill] sm:$0xff] %v5863_v20  ;;  %v5871_v63 = vadd.f32 %v5587_v12, %v5615_v16  ;;  %vm2621_vm6 = vcmp.ge.f32.partialorder %v5647_v25, 0.0  ;;  %vm2622_vm7 = vcmp.ge.f32.partialorder %v5651_v59, 0.0  ;;  %6752 = vst [vmem:[#allocation13_spill] sm:$0xff] %v5884_v10 }
 0x2c4   :  { %6743 = vst [vmem:[#allocation24_spill] sm:$0xff] %v5847_v38  ;;  %6745 = vst [vmem:[#allocation25_spill] sm:$0xff] %v5851_v60  ;;  %vm2623_vm8 = vcmp.ge.f32.partialorder %v5655_v37, 0.0  ;;  %vm2624_vm9 = vcmp.ge.f32.partialorder %v5659_v27, 0.0  ;;  %vm2625_vm10 = vcmp.ge.f32.partialorder %v5663_v13, 0.0  ;;  %v5892_v32 = vadd.f32 %v5587_v12, %v5623_v49 }
 0x2c5   :  { %6747 = vst [vmem:[#allocation26_spill] sm:$0xff] %v5855_v42  ;;  %6750 = vst [vmem:[#allocation19_spill] sm:$0xff] %v5867_v15  ;;  %v2680_v4 = vmul.f32 0.2, %v5627_v0  ;;  %v2681_v34 = vmul.f32 0.2, %v5631_v51 }
 0x2c6   :  { %6751 = vst [vmem:[#allocation21_spill] sm:$0xff] %v5871_v63  ;;  %v2682_v16 = vmul.f32 0.2, %v5635_v29  ;;  %6753 = vst [vmem:[#allocation15_spill] sm:$0xff] %v5892_v32  ;;  %vm2626_vm11 = vcmp.ge.f32.partialorder %v5667_v52, 0.0  ;;  %vm2627_vm12 = vcmp.ge.f32.partialorder %v5671_v30, 0.0 }
 0x2c7   :  { %v2683_v63 = vmul.f32 0.2, %v5639_v31  ;;  %v2684_v15 = vmul.f32 0.2, %v5643_v21  ;;  %v2685_v33 = vmul.f32 0.2, %v5647_v25  ;;  %v2744_v12 = vsel %vm2616_vm1, %v5627_v0, %v2680_v4 }
 0x2c8   :  { %v2686_v10 = vmul.f32 0.2, %v5651_v59  ;;  %v2687_v20 = vmul.f32 0.2, %v5655_v37  ;;  %v2688_v35 = vmul.f32 0.2, %v5659_v27  ;;  %v2745_v60 = vsel %vm2617_vm2, %v5631_v51, %v2681_v34  ;;  %2808 = vst [vmem:[%s6559_s4] sm:$0xff] %v2744_v12 }
 0x2c9   :  { %vm2628_vm13 = vcmp.ge.f32.partialorder %v5675_v43, 0.0  ;;  %v2689_v49 = vmul.f32 0.2, %v5663_v13  ;;  %v5908_v32 = vmul.f32 0.2, %v5667_v52  ;;  %vm2629_vm14 = vcmp.ge.f32.partialorder %v5679_v46, 0.0 }
 0x2ca   :  { %v5911_v42 = vmul.f32 0.2, %v5671_v30  ;;  %v5921_v0 = vmul.f32 0.2, %v5675_v43  ;;  %v5924_v4 = vmul.f32 0.2, %v5679_v46  ;;  %v2746_v55 = vsel %vm2618_vm3, %v5635_v29, %v2682_v16 }
 0x2cb   :  { %v5927_v38 = vmul.f32 0.2, %v5683_v18  ;;  %2809 = vst [vmem:[%s6559_s4 + $0x8] sm:$0xff] %v2745_v60  ;;  %vm2630_vm15 = vcmp.ge.f32.partialorder %v5683_v18, 0.0  ;;  %v5937_v51 = vmul.f32 0.2, %v5687_v17  ;;  %v2747_v39 = vsel %vm2619_vm4, %v5639_v31, %v2683_v63 }
 0x2cc   :  { %v5940_v34 = vmul.f32 0.2, %v5691_v44  ;;  %v5943_v12 = vmul.f32 0.2, %v5695_v53  ;;  %2810 = vst [vmem:[%s6559_s4 + $0x10] sm:$0xff] %v2746_v55  ;;  %vm2631_vm0 = vcmp.ge.f32.partialorder %v5687_v17, 0.0 }
 0x2cd   :  { %v5953_v29 = vmul.f32 0.2, %v5699_v36  ;;  %v5956_v60 = vmul.f32 0.2, %v5703_v41  ;;  %v5959_v16 = vmul.f32 0.2, %v5707_v8 }
 0x2ce   :  { %6754 = vst [vmem:[#allocation18_spill] sm:$0xff] %v5943_v12  ;;  %v2748_v12 = vsel %vm2620_vm5, %v5643_v21, %v2684_v15  ;;  %2811 = vst [vmem:[%s6559_s4 + $0x18] sm:$0xff] %v2747_v39  ;;  %vm2632_vm1 = vcmp.ge.f32.partialorder %v5691_v44, 0.0  ;;  %v5969_v31 = vmul.f32 0.2, %v5711_v61  ;;  %vm2633_vm2 = vcmp.ge.f32.partialorder %v5695_v53, 0.0 }
 0x2cf   :  { %6755 = vst [vmem:[#allocation4_spill] sm:$0xff] %v5959_v16  ;;  %v5972_v55 = vmul.f32 0.2, %v5715_v24  ;;  %v5975_v63 = vmul.f32 0.2, %v5719_v56  ;;  %v2749_v16 = vsel %vm2621_vm6, %v5647_v25, %v2685_v33  ;;  %2812 = vst [vmem:[%s6559_s4 + $0x20] sm:$0xff] %v2748_v12 }
 0x2d0   :  { %v5985_v21 = vmul.f32 0.2, %v5723_v28  ;;  %v5988_v39 = vmul.f32 0.2, %v5727_v23  ;;  %v5991_v15 = vmul.f32 0.2, %v5731_v50 }
 0x2d1   :  { %6756 = vst [vmem:[#allocation3_spill] sm:$0xff] %v5975_v63  ;;  %v2750_v63 = vsel %vm2622_vm7, %v5651_v59, %v2686_v10  ;;  %2813 = vst [vmem:[%s6559_s4 + $0x28] sm:$0xff] %v2749_v16  ;;  %vm2634_vm3 = vcmp.ge.f32.partialorder %v5699_v36, 0.0  ;;  %v6001_v25 = vmul.f32 0.2, %v5735_v57  ;;  %vm2635_vm4 = vcmp.ge.f32.partialorder %v5703_v41, 0.0 }
 0x2d2   :  { %6757 = vst [vmem:[#allocation2_spill] sm:$0xff] %v5991_v15  ;;  %v6004_v33 = vmul.f32 0.2, %v5739_v6  ;;  %v6007_v12 = vmul.f32 0.2, %v5743_v1  ;;  %v2751_v15 = vsel %vm2623_vm8, %v5655_v37, %v2687_v20  ;;  %2814 = vst [vmem:[%s6559_s4 + $0x30] sm:$0xff] %v2750_v63  ;;  %v2752_v37 = vsel %vm2624_vm9, %v5659_v27, %v2688_v35 }
 0x2d3   :  { %v6019_v59 = vmul.f32 0.2, %v5747_v14  ;;  %v6022_v10 = vmul.f32 0.2, %v5751_v5  ;;  %v6025_v16 = vmul.f32 0.2, %v5755_v2  ;;  %v2753_v35 = vsel %vm2625_vm10, %v5663_v13, %v2689_v49 }
 0x2d4   :  { %2815 = vst [vmem:[%s6559_s4 + $0x38] sm:$0xff] %v2751_v15  ;;  %vm2638_vm7 = vcmp.ge.f32.partialorder %v5715_v24, 0.0  ;;  %v6038_v20 = vmul.f32 0.2, %v5759_v48  ;;  %v6041_v63 = vmul.f32 0.2, %v5763_v11  ;;  %v2754_v49 = vsel %vm2626_vm11, %v5667_v52, %v5908_v32 }
 0x2d5   :  { %v6044_v27 = vmul.f32 0.2, %v5767_v19  ;;  %2816 = vst [vmem:[%s6559_s4 + $0x40] sm:$0xff] %v2752_v37  ;;  %vm2642_vm9 = vcmp.ge.f32.partialorder %v5731_v50, 0.0  ;;  %v6057_v15 = vmul.f32 0.2, %v5771_v22  ;;  %v2755_v32 = vsel %vm2627_vm12, %v5671_v30, %v5911_v42 }
 0x2d6   :  { %6758 = vst [vmem:[#allocation6_spill] sm:$0xff] %v6041_v63  ;;  %v6762_v63 = vld [vmem:[#allocation10_spill] sm:$0xff]  ;;  %2817 = vst [vmem:[%s6559_s4 + $0x48] sm:$0xff] %v2753_v35  ;;  %vm2646_vm10 = vcmp.ge.f32.partialorder %v5747_v14, 0.0  ;;  %v6764_v37 = vld [vmem:[#allocation12_spill] sm:$0xff]  ;;  %vm2650_vm11 = vcmp.ge.f32.partialorder %v5763_v11, 0.0  ;;  %v2756_v42 = vsel %vm2628_vm13, %v5675_v43, %v5921_v0  ;;  %v2757_v0 = vsel %vm2629_vm14, %v5679_v46, %v5924_v4 }
 0x2d7   :  { %6759 = vst [vmem:[#allocation8_spill] sm:$0xff] %v6044_v27  ;;  %6760 = vst [vmem:[#allocation5_spill] sm:$0xff] %v6057_v15  ;;  %v6060_v27 = vmul.f32 0.2, %v5775_v26  ;;  %v6063_v13 = vmul.f32 0.2, %v6762_v63  ;;  %v2758_v4 = vsel %vm2630_vm15, %v5683_v18, %v5927_v38  ;;  %v2759_v38 = vsel %vm2631_vm0, %v5687_v17, %v5937_v51 }
 0x2d8   :  { %v6083_v52 = vmul.f32 0.2, %v5791_v9  ;;  %2818 = vst [vmem:[%s6559_s4 + $0x50] sm:$0xff] %v2754_v49  ;;  %v6097_v35 = vmul.f32 0.2, %v5795_v3  ;;  %2819 = vst [vmem:[%s6559_s4 + $0x58] sm:$0xff] %v2755_v32  ;;  %v2760_v51 = vsel %vm2632_vm1, %v5691_v44, %v5940_v34 }
 0x2d9   :  { %6761 = vst [vmem:[#allocation7_spill] sm:$0xff] %v6060_v27  ;;  %6763 = vst [vmem:[#allocation10_spill] sm:$0xff] %v6063_v13  ;;  %v6077_v27 = vmul.f32 0.2, %v6764_v37  ;;  %v6765_v13 = vld [vmem:[#allocation9_spill] sm:$0xff]  ;;  %vm2654_vm12 = vcmp.ge.f32.partialorder %v6762_v63, 0.0 }
 0x2da   :  { %v6080_v15 = vmul.f32 0.2, %v6765_v13  ;;  %6766 = vst [vmem:[#allocation12_spill] sm:$0xff] %v6083_v52  ;;  %v6100_v52 = vmul.f32 0.2, %v5799_v58  ;;  %2820 = vst [vmem:[%s6559_s4 + $0x60] sm:$0xff] %v2756_v42 }
 0x2db   :  { %v6103_v30 = vmul.f32 0.2, %v5803_v62  ;;  %v6117_v49 = vmul.f32 0.2, %v5807_v54  ;;  %v6123_v43 = vmul.f32 0.2, %v5815_v45 }
 0x2dc   :  { %vm2658_vm13 = vcmp.ge.f32.partialorder %v5795_v3, 0.0  ;;  %v6137_v32 = vmul.f32 0.2, %v5819_v40  ;;  %2821 = vst [vmem:[%s6559_s4 + $0x68] sm:$0xff] %v2757_v0  ;;  %vm2662_vm14 = vcmp.ge.f32.partialorder %v5811_v47, 0.0  ;;  %v6776_v42 = vld [vmem:[#allocation16_spill] sm:$0xff] }
 0x2dd   :  { %6767 = vst [vmem:[#allocation9_spill] sm:$0xff] %v6103_v30  ;;  %6768 = vst [vmem:[#allocation27_spill] sm:$0xff] %v6117_v49  ;;  %v6120_v30 = vmul.f32 0.2, %v5811_v47  ;;  %v6774_v49 = vld [vmem:[#allocation14_spill] sm:$0xff]  ;;  %v6781_v0 = vld [vmem:[#allocation23_spill] sm:$0xff] }
 0x2de   :  { %6770 = vst [vmem:[#allocation29_spill] sm:$0xff] %v6123_v43  ;;  %6771 = vst [vmem:[#allocation30_spill] sm:$0xff] %v6137_v32  ;;  %v6772_v43 = vld [vmem:[#allocation11_spill] sm:$0xff]  ;;  %v6143_v46 = vmul.f32 0.2, %v6774_v49  ;;  %v6779_v32 = vld [vmem:[#allocation22_spill] sm:$0xff] }
 0x2df   :  { %6769 = vst [vmem:[#allocation28_spill] sm:$0xff] %v6120_v30  ;;  %v6140_v30 = vmul.f32 0.2, %v6772_v43  ;;  %v6163_v18 = vmul.f32 0.2, %v6779_v32  ;;  %2822 = vst [vmem:[%s6559_s4 + $0x70] sm:$0xff] %v2758_v4 }
 0x2e0   :  { %6775 = vst [vmem:[#allocation14_spill] sm:$0xff] %v6143_v46  ;;  %v6160_v46 = vmul.f32 0.2, %v5835_v7  ;;  %vm2666_vm15 = vcmp.ge.f32.partialorder %v6774_v49, 0.0  ;;  %v6785_v43 = vld [vmem:[#allocation25_spill] sm:$0xff]  ;;  %2823 = vst [vmem:[%s6559_s4 + $0x78] sm:$0xff] %v2759_v38 }
 0x2e1   :  { %6773 = vst [vmem:[#allocation31_spill] sm:$0xff] %v6140_v30  ;;  %v6157_v30 = vmul.f32 0.2, %v6776_v42  ;;  %6780 = vst [vmem:[#allocation33_spill] sm:$0xff] %v6163_v18  ;;  %v6783_v18 = vld [vmem:[#allocation24_spill] sm:$0xff]  ;;  %vm2670_vm0 = vcmp.ge.f32.partialorder %v6781_v0, 0.0 }
 0x2e2   :  { %6778 = vst [vmem:[#allocation32_spill] sm:$0xff] %v6160_v46  ;;  %v6177_v46 = vmul.f32 0.2, %v6781_v0  ;;  %v6183_v17 = vmul.f32 0.2, %v6785_v43  ;;  %v6787_v4 = vld [vmem:[#allocation26_spill] sm:$0xff] }
 0x2e3   :  { %6777 = vst [vmem:[#allocation16_spill] sm:$0xff] %v6157_v30  ;;  %v6180_v30 = vmul.f32 0.2, %v6783_v18  ;;  %v6791_v32 = vld [vmem:[#allocation17_spill] sm:$0xff]  ;;  %v6793_v34 = vld [vmem:[#allocation18_spill] sm:$0xff]  ;;  %2824 = vst [vmem:[%s6559_s4 + $0x80] sm:$0xff] %v2760_v51  ;;  %v2762_v51 = vsel %vm2634_vm3, %v5699_v36, %v5953_v29 }
 0x2e4   :  { %6782 = vst [vmem:[#allocation23_spill] sm:$0xff] %v6177_v46  ;;  %6786 = vst [vmem:[#allocation34_spill] sm:$0xff] %v6183_v17  ;;  %v6789_v17 = vld [vmem:[#allocation20_spill] sm:$0xff]  ;;  %v6203_v44 = vmul.f32 0.2, %v6791_v32  ;;  %v2761_v38 = vsel %vm2633_vm2, %v5695_v53, %v6793_v34  ;;  %vm2675_vm5 = vcmp.ge.f32.partialorder %v6791_v32, 0.0 }
 0x2e5   :  { %6784 = vst [vmem:[#allocation24_spill] sm:$0xff] %v6180_v30  ;;  %v6197_v30 = vmul.f32 0.2, %v6787_v4  ;;  %v6200_v46 = vmul.f32 0.2, %v6789_v17  ;;  %vm2674_vm1 = vcmp.ge.f32.partialorder %v6789_v17, 0.0 }
 0x2e6   :  { %6792 = vst [vmem:[#allocation17_spill] sm:$0xff] %v6203_v44  ;;  %v6794_v4 = vld [vmem:[#allocation19_spill] sm:$0xff]  ;;  %v6796_v43 = vld [vmem:[#allocation13_spill] sm:$0xff]  ;;  %2825 = vst [vmem:[%s6559_s4 + $0x88] sm:$0xff] %v2761_v38  ;;  %vm6800_vm3 = vcmp.ge.f32.partialorder %v5707_v8, 0.0  ;;  %vm6801_vm6 = vcmp.ge.f32.partialorder %v5711_v61, 0.0  ;;  %v2766_v38 = vsel %vm2638_vm7, %v5715_v24, %v5972_v55 }
 0x2e7   :  { %6788 = vst [vmem:[#allocation35_spill] sm:$0xff] %v6197_v30  ;;  %6790 = vst [vmem:[#allocation20_spill] sm:$0xff] %v6200_v46  ;;  %v6795_v30 = vld [vmem:[#allocation21_spill] sm:$0xff]  ;;  %v6217_v46 = vmul.f32 0.2, %v6794_v4  ;;  %vm2678_vm2 = vcmp.ge.f32.partialorder %v6796_v43, 0.0  ;;  %v2765_v29 = vsel %vm6801_vm6, %v5711_v61, %v5969_v31 }
 0x2e8   :  { %v6220_v44 = vmul.f32 0.2, %v6795_v30  ;;  %v6223_v53 = vmul.f32 0.2, %v6796_v43  ;;  %v6798_v34 = vld [vmem:[#allocation15_spill] sm:$0xff]  ;;  %v6799_v30 = vld [vmem:[#allocation4_spill] sm:$0xff] }
 0x2e9   :  { %vm2679_vm8 = vcmp.ge.f32.partialorder %v6798_v34, 0.0  ;;  %v6235_v4 = vmul.f32 0.2, %v6798_v34  ;;  %v2764_v36 = vsel %vm6800_vm3, %v5707_v8, %v6799_v30  ;;  %2826 = vst [vmem:[%s6559_s4 + $0x90] sm:$0xff] %v2762_v51  ;;  %vm6804_vm3 = vcmp.ge.f32.partialorder %v5723_v28, 0.0  ;;  %2829 = vst [vmem:[%s6559_s4 + $0xa8] sm:$0xff] %v2765_v29 }
 0x2ea   :  { %6797 = vst [vmem:[#allocation18_spill] sm:$0xff] %v6223_v53  ;;  %v2763_v53 = vsel %vm2635_vm4, %v5703_v41, %v5956_v60  ;;  %v6802_v41 = vld [vmem:[#allocation3_spill] sm:$0xff]  ;;  %vm6803_vm4 = vcmp.ge.f32.partialorder %v5719_v56, 0.0  ;;  %v2768_v8 = vsel %vm6804_vm3, %v5723_v28, %v5985_v21  ;;  %vm6805_vm6 = vcmp.ge.f32.partialorder %v5727_v23, 0.0  ;;  %2828 = vst [vmem:[%s6559_s4 + $0xa0] sm:$0xff] %v2764_v36  ;;  %v6806_v24 = vld [vmem:[#allocation2_spill] sm:$0xff] }
 0x2eb   :  { %v2767_v60 = vsel %vm6803_vm4, %v5719_v56, %v6802_v41  ;;  %v2769_v61 = vsel %vm6805_vm6, %v5727_v23, %v5988_v39  ;;  %2827 = vst [vmem:[%s6559_s4 + $0x98] sm:$0xff] %v2763_v53  ;;  %v2770_v56 = vsel %vm2642_vm9, %v5731_v50, %v6806_v24  ;;  %vm6807_vm7 = vcmp.ge.f32.partialorder %v5735_v57, 0.0  ;;  %2830 = vst [vmem:[%s6559_s4 + $0xb0] sm:$0xff] %v2766_v38  ;;  %v6816_v55 = vld [vmem:[#allocation5_spill] sm:$0xff]  ;;  %v6818_v39 = vld [vmem:[#allocation7_spill] sm:$0xff] }
 0x2ec   :  { %v2771_v28 = vsel %vm6807_vm7, %v5735_v57, %v6001_v25  ;;  %vm6808_vm4 = vcmp.ge.f32.partialorder %v5739_v6, 0.0  ;;  %vm6809_vm3 = vcmp.ge.f32.partialorder %v5743_v1, 0.0  ;;  %2831 = vst [vmem:[%s6559_s4 + $0xb8] sm:$0xff] %v2767_v60  ;;  %2832 = vst [vmem:[%s6559_s4 + $0xc0] sm:$0xff] %v2768_v8  ;;  %v2774_v50 = vsel %vm2646_vm10, %v5747_v14, %v6019_v59  ;;  %v6813_v14 = vld [vmem:[#allocation6_spill] sm:$0xff]  ;;  %v6841_v30 = vld [vmem:[#allocation32_spill] sm:$0xff] }
 0x2ed   :  { %v2772_v23 = vsel %vm6808_vm4, %v5739_v6, %v6004_v33  ;;  %v2773_v31 = vsel %vm6809_vm3, %v5743_v1, %v6007_v12  ;;  %2833 = vst [vmem:[%s6559_s4 + $0xc8] sm:$0xff] %v2769_v61  ;;  %vm6810_vm9 = vcmp.ge.f32.partialorder %v5751_v5, 0.0  ;;  %vm6811_vm6 = vcmp.ge.f32.partialorder %v5755_v2, 0.0  ;;  %2834 = vst [vmem:[%s6559_s4 + $0xd0] sm:$0xff] %v2770_v56  ;;  %v6823_v33 = vld [vmem:[#allocation12_spill] sm:$0xff]  ;;  %v6843_v51 = vld [vmem:[#allocation33_spill] sm:$0xff] }
 0x2ee   :  { %v2775_v57 = vsel %vm6810_vm9, %v5751_v5, %v6022_v10  ;;  %v2776_v6 = vsel %vm6811_vm6, %v5755_v2, %v6025_v16  ;;  %vm6812_vm7 = vcmp.ge.f32.partialorder %v5759_v48, 0.0  ;;  %2835 = vst [vmem:[%s6559_s4 + $0xd8] sm:$0xff] %v2771_v28  ;;  %2836 = vst [vmem:[%s6559_s4 + $0xe0] sm:$0xff] %v2772_v23  ;;  %v2778_v5 = vsel %vm2650_vm11, %v5763_v11, %v6813_v14  ;;  %v6814_v2 = vld [vmem:[#allocation8_spill] sm:$0xff]  ;;  %v6820_v11 = vld [vmem:[#allocation10_spill] sm:$0xff] }
 0x2ef   :  { %v2777_v1 = vsel %vm6812_vm7, %v5759_v48, %v6038_v20  ;;  %2837 = vst [vmem:[%s6559_s4 + $0xe8] sm:$0xff] %v2773_v31  ;;  %vm6815_vm10 = vcmp.ge.f32.partialorder %v5767_v19, 0.0  ;;  %vm6817_vm4 = vcmp.ge.f32.partialorder %v5771_v22, 0.0  ;;  %vm6819_vm3 = vcmp.ge.f32.partialorder %v5775_v26, 0.0  ;;  %2838 = vst [vmem:[%s6559_s4 + $0xf0] sm:$0xff] %v2774_v50  ;;  %v6826_v10 = vld [vmem:[#allocation9_spill] sm:$0xff] }
 0x2f0   :  { %v2779_v48 = vsel %vm6815_vm10, %v5767_v19, %v6814_v2  ;;  %v2780_v21 = vsel %vm6817_vm4, %v5771_v22, %v6816_v55  ;;  %v2781_v25 = vsel %vm6819_vm3, %v5775_v26, %v6818_v39  ;;  %2839 = vst [vmem:[%s6559_s4 + $0xf8] sm:$0xff] %v2775_v57  ;;  %2840 = vst [vmem:[%s6559_s4 + $0x100] sm:$0xff] %v2776_v6  ;;  %vm6821_vm11 = vcmp.ge.f32.partialorder %v6764_v37, 0.0  ;;  %v6828_v20 = vld [vmem:[#allocation27_spill] sm:$0xff]  ;;  %v6844_v36 = vld [vmem:[#allocation22_spill] sm:$0xff] }
 0x2f1   :  { %2841 = vst [vmem:[%s6559_s4 + $0x108] sm:$0xff] %v2777_v1  ;;  %v2782_v19 = vsel %vm2654_vm12, %v6762_v63, %v6820_v11  ;;  %v2783_v22 = vsel %vm6821_vm11, %v6764_v37, %v6077_v27  ;;  %vm6822_vm9 = vcmp.ge.f32.partialorder %v6765_v13, 0.0  ;;  %vm6824_vm6 = vcmp.ge.f32.partialorder %v5791_v9, 0.0  ;;  %2842 = vst [vmem:[%s6559_s4 + $0x110] sm:$0xff] %v2778_v5  ;;  %v6833_v27 = vld [vmem:[#allocation30_spill] sm:$0xff]  ;;  %v6836_v37 = vld [vmem:[#allocation11_spill] sm:$0xff] }
 0x2f2   :  { %v2784_v26 = vsel %vm6822_vm9, %v6765_v13, %v6080_v15  ;;  %v2785_v12 = vsel %vm6824_vm6, %v5791_v9, %v6823_v33  ;;  %2843 = vst [vmem:[%s6559_s4 + $0x118] sm:$0xff] %v2779_v48  ;;  %2844 = vst [vmem:[%s6559_s4 + $0x120] sm:$0xff] %v2780_v21  ;;  %v2786_v9 = vsel %vm2658_vm13, %v5795_v3, %v6097_v35  ;;  %vm6825_vm12 = vcmp.ge.f32.partialorder %v5799_v58, 0.0  ;;  %v6830_v3 = vld [vmem:[#allocation28_spill] sm:$0xff]  ;;  %v6835_v13 = vld [vmem:[#allocation31_spill] sm:$0xff] }
 0x2f3   :  { %2845 = vst [vmem:[%s6559_s4 + $0x128] sm:$0xff] %v2781_v25  ;;  %v2787_v59 = vsel %vm6825_vm12, %v5799_v58, %v6100_v52  ;;  %vm6827_vm7 = vcmp.ge.f32.partialorder %v5803_v62, 0.0  ;;  %vm6829_vm10 = vcmp.ge.f32.partialorder %v5807_v54, 0.0  ;;  %2846 = vst [vmem:[%s6559_s4 + $0x130] sm:$0xff] %v2782_v19  ;;  %v2790_v58 = vsel %vm2662_vm14, %v5811_v47, %v6830_v3  ;;  %v6838_v47 = vld [vmem:[#allocation14_spill] sm:$0xff]  ;;  %v6850_v60 = vld [vmem:[#allocation25_spill] sm:$0xff] }
 0x2f4   :  { %v2788_v16 = vsel %vm6827_vm7, %v5803_v62, %v6826_v10  ;;  %v2789_v63 = vsel %vm6829_vm10, %v5807_v54, %v6828_v20  ;;  %2847 = vst [vmem:[%s6559_s4 + $0x138] sm:$0xff] %v2783_v22  ;;  %2848 = vst [vmem:[%s6559_s4 + $0x140] sm:$0xff] %v2784_v26  ;;  %v6831_v62 = vld [vmem:[#allocation29_spill] sm:$0xff]  ;;  %vm6832_vm13 = vcmp.ge.f32.partialorder %v5815_v45, 0.0  ;;  %vm6834_vm4 = vcmp.ge.f32.partialorder %v5819_v40, 0.0  ;;  %v6849_v41 = vld [vmem:[#allocation34_spill] sm:$0xff] }
 0x2f5   :  { %2849 = vst [vmem:[%s6559_s4 + $0x148] sm:$0xff] %v2785_v12  ;;  %v2791_v54 = vsel %vm6832_vm13, %v5815_v45, %v6831_v62  ;;  %v2792_v15 = vsel %vm6834_vm4, %v5819_v40, %v6833_v27  ;;  %vm6837_vm3 = vcmp.ge.f32.partialorder %v6836_v37, 0.0  ;;  %2850 = vst [vmem:[%s6559_s4 + $0x150] sm:$0xff] %v2786_v9  ;;  %v2794_v45 = vsel %vm2666_vm15, %v6774_v49, %v6838_v47  ;;  %v6839_v40 = vld [vmem:[#allocation16_spill] sm:$0xff]  ;;  %v6852_v61 = vld [vmem:[#allocation35_spill] sm:$0xff] }
 0x2f6   :  { %v2793_v52 = vsel %vm6837_vm3, %v6836_v37, %v6835_v13  ;;  %2851 = vst [vmem:[%s6559_s4 + $0x158] sm:$0xff] %v2787_v59  ;;  %2852 = vst [vmem:[%s6559_s4 + $0x160] sm:$0xff] %v2788_v16  ;;  %vm6840_vm14 = vcmp.ge.f32.partialorder %v6776_v42, 0.0  ;;  %vm6842_vm11 = vcmp.ge.f32.partialorder %v5835_v7, 0.0  ;;  %vm6845_vm9 = vcmp.ge.f32.partialorder %v6844_v36, 0.0  ;;  %v6853_v24 = vld [vmem:[#allocation26_spill] sm:$0xff] }
 0x2f7   :  { %2853 = vst [vmem:[%s6559_s4 + $0x168] sm:$0xff] %v2789_v63  ;;  %v2795_v35 = vsel %vm6840_vm14, %v6776_v42, %v6839_v40  ;;  %v2796_v53 = vsel %vm6842_vm11, %v5835_v7, %v6841_v30  ;;  %v2797_v29 = vsel %vm6845_vm9, %v6844_v36, %v6843_v51  ;;  %2854 = vst [vmem:[%s6559_s4 + $0x170] sm:$0xff] %v2790_v58  ;;  %v6846_v7 = vld [vmem:[#allocation23_spill] sm:$0xff]  ;;  %v6847_v42 = vld [vmem:[#allocation24_spill] sm:$0xff]  ;;  %vm6848_vm15 = vcmp.ge.f32.partialorder %v6783_v18, 0.0 }
 0x2f8   :  { %2855 = vst [vmem:[%s6559_s4 + $0x178] sm:$0xff] %v2791_v54  ;;  %2856 = vst [vmem:[%s6559_s4 + $0x180] sm:$0xff] %v2792_v15  ;;  %v2798_v49 = vsel %vm2670_vm0, %v6781_v0, %v6846_v7  ;;  %v2799_v38 = vsel %vm6848_vm15, %v6783_v18, %v6847_v42  ;;  %vm6851_vm6 = vcmp.ge.f32.partialorder %v6850_v60, 0.0  ;;  %vm6854_vm12 = vcmp.ge.f32.partialorder %v6853_v24, 0.0  ;;  %v6855_v18 = vld [vmem:[#allocation20_spill] sm:$0xff]  ;;  %v6856_v28 = vld [vmem:[#allocation17_spill] sm:$0xff] }
 0x2f9   :  { %2857 = vst [vmem:[%s6559_s4 + $0x188] sm:$0xff] %v2793_v52  ;;  %v2800_v8 = vsel %vm6851_vm6, %v6850_v60, %v6849_v41  ;;  %v2801_v56 = vsel %vm6854_vm12, %v6853_v24, %v6852_v61  ;;  %2858 = vst [vmem:[%s6559_s4 + $0x190] sm:$0xff] %v2794_v45  ;;  %v2802_v0 = vsel %vm2674_vm1, %v6789_v17, %v6855_v18  ;;  %v6857_v31 = vld [vmem:[#allocation19_spill] sm:$0xff]  ;;  %v6859_v57 = vld [vmem:[#allocation21_spill] sm:$0xff] }
 0x2fa   :  { %2859 = vst [vmem:[%s6559_s4 + $0x198] sm:$0xff] %v2795_v35  ;;  %2860 = vst [vmem:[%s6559_s4 + $0x1a0] sm:$0xff] %v2796_v53  ;;  %v2803_v23 = vsel %vm2675_vm5, %v6791_v32, %v6856_v28  ;;  %vm6858_vm0 = vcmp.ge.f32.partialorder %v6857_v31, 0.0  ;;  %vm6860_vm7 = vcmp.ge.f32.partialorder %v6859_v57, 0.0  ;;  %v6861_v32 = vld [vmem:[#allocation18_spill] sm:$0xff]  ;;  %v2807_v17 = vsel %vm2679_vm8, %v6798_v34, %v6235_v4 }
 0x2fb   :  { %2861 = vst [vmem:[%s6559_s4 + $0x1a8] sm:$0xff] %v2797_v29  ;;  %v2804_v50 = vsel %vm6858_vm0, %v6857_v31, %v6217_v46  ;;  %v2805_v6 = vsel %vm6860_vm7, %v6859_v57, %v6220_v44  ;;  %2862 = vst [vmem:[%s6559_s4 + $0x1b0] sm:$0xff] %v2798_v49  ;;  %v2806_v46 = vsel %vm2678_vm2, %v6796_v43, %v6861_v32 }
 0x2fc   :  { %2863 = vst [vmem:[%s6559_s4 + $0x1b8] sm:$0xff] %v2799_v38  ;;  %2864 = vst [vmem:[%s6559_s4 + $0x1c0] sm:$0xff] %v2800_v8 }
 0x2fd   :  { %2865 = vst [vmem:[%s6559_s4 + $0x1c8] sm:$0xff] %v2801_v56  ;;  %2866 = vst [vmem:[%s6559_s4 + $0x1d0] sm:$0xff] %v2802_v0 }
 0x2fe   :  { %2867 = vst [vmem:[%s6559_s4 + $0x1d8] sm:$0xff] %v2803_v23  ;;  %2868 = vst [vmem:[%s6559_s4 + $0x1e0] sm:$0xff] %v2804_v50 }
 0x2ff   :  { %2869 = vst [vmem:[%s6559_s4 + $0x1e8] sm:$0xff] %v2805_v6  ;;  %2870 = vst [vmem:[%s6559_s4 + $0x1f0] sm:$0xff] %v2806_v46 }
 0x300   :  { %2871 = vst [vmem:[%s6559_s4 + $0x1f8] sm:$0xff] %v2807_v17 }

// kernel: forward.6
= control target key start
LH: loop header
LB: loop body
LE: loop exit
PB: predicated region body
PF: predicated region fallthrough
CT: control target
= control target key end

     0   :  { %vm107_vm0 = vcmask 523264   ;;  %s1651_s1 = inlined_call_operand.vmem [shape: bf16[4,64,128], index: 1, kind: input, shape index: {}]   ;;  %s1652_s0 = inlined_call_operand.vmem [shape: f32[2,9,9,64], index: 0, kind: input, shape index: {}]   ;;  %s1653_s2 = inlined_call_operand.vmem [shape: f32[1,128], index: 2, kind: input, shape index: {}]   ;;  %s1654_s3 = inlined_call_operand.vmem [shape: f32[1,128], index: 3, kind: input, shape index: {}]   ;;  %s1655_s4 = inlined_call_operand.vmem [shape: f32[128,128], index: 4, kind: output, shape index: {}]  }
   0x1   :  { %v1270_v0 = vld [vmem:[%s1651_s1 + $0x20] sm:$0xff]   ;;  %v1272_v2 = vld [vmem:[%s1651_s1 + $0x28] sm:$0xff]   ;;  %v1274_v4 = vld [vmem:[%s1651_s1 + $0x30] sm:$0xff]  }
   0x2   :  { %v1271_v1 = vld [vmem:[%s1651_s1 + $0x40] sm:$0xff]   ;;  %1126 = vmatprep.subr.bf16.mxu1 %v1270_v0  ;;  %v1273_v3 = vld [vmem:[%s1651_s1 + $0x48] sm:$0xff]   ;;  %v1275_v5 = vld [vmem:[%s1651_s1 + $0x50] sm:$0xff]  }
   0x3   :  { %1174 = vmatprep.subr.bf16.mxu0 %v1271_v1  ;;  %1127 = vmatpush3.bf16.msra.mxu1 %v1270_v0  ;;  %v1276_v6 = vld [vmem:[%s1651_s1 + $0x38] sm:$0xff]   ;;  %v50_v7 = vld [vmem:[%s1652_s0 + $0x1] sm:$0xff]  ;;  %v1345_v9 = vld [vmem:[%s1652_s0 + $0x10] sm:$0xff] }
   0x4   :  { %1175 = vmatpush3.bf16.msra.mxu0 %v1271_v1  ;;  %1128 = vmatprep.subr.bf16.mxu1 %v1272_v2  ;;  %v1340_v8 = vld [vmem:[%s1652_s0 + $0x11] sm:$0xff]  ;;  %v1354_v12 = vld [vmem:[%s1652_s0 + $0x20] sm:$0xff]  ;;  %v1280_v30 = vld [vmem:[%s1651_s1 + $0x8] sm:$0xff]  }
   0x5   :  { %1176 = vmatprep.subr.bf16.mxu0 %v1273_v3  ;;  %v1277_v10 = vld [vmem:[%s1651_s1 + $0x58] sm:$0xff]   ;;  %v66_v11 = vpack.c.bf16 %v1340_v8, %v50_v7  ;;  %v391_v13 = vpack.c.bf16 %v1354_v12, %v1345_v9  ;;  %v1361_v14 = vld [vmem:[%s1652_s0 + $0x21] sm:$0xff]  ;;  %v1375_v17 = vld [vmem:[%s1652_s0 + $0x30] sm:$0xff] }
   0x6   :  { %v1367_v15 = vld [vmem:[%s1652_s0 + $0x31] sm:$0xff]  ;;  %v1278_v16 = vld [vmem:[%s1651_s1] sm:$0xff]   ;;  %v1281_v33 = vld [vmem:[%s1651_s1 + $0x68] sm:$0xff]  }
   0x7   :  { %1129 = vmatpush3.bf16.msra.mxu1 %v1272_v2  ;;  %1134 = vmatprep.mubr.msk.bf16.mxu1 %vm107_vm0, %v66_v11  ;;  %v1380_v18 = vld [vmem:[%s1652_s0 + $0x40] sm:$0xff]  ;;  %v1394_v21 = vld [vmem:[%s1652_s0 + $0x51] sm:$0xff]  ;;  %v67_v22 = vpack.c.bf16 %v1367_v15, %v1361_v14  ;;  %v585_v2 = vpack.c.bf16 %v1361_v14, %v1340_v8 }
   0x8   :  { %1177 = vmatpush3.bf16.msra.mxu0 %v1273_v3  ;;  %1130 = vmatprep.subr.bf16.mxu1 %v1274_v4  ;;  %v1279_v19 = vld [vmem:[%s1651_s1 + $0x60] sm:$0xff]   ;;  %v1401_v23 = vld [vmem:[%s1652_s0 + $0x50] sm:$0xff]  ;;  %v392_v25 = vpack.c.bf16 %v1380_v18, %v1375_v17  ;;  %v1284_v44 = vld [vmem:[%s1651_s1 + $0x18] sm:$0xff]   ;;  %v35_v3 = vpack.c.bf16 %v1375_v17, %v1354_v12 }
   0x9   :  { %1178 = vmatprep.subr.bf16.mxu0 %v1275_v5  ;;  %1182 = vmatprep.mubr.msk.bf16.mxu0 %vm107_vm0, %v391_v13  ;;  %v1389_v20 = vld [vmem:[%s1652_s0 + $0x41] sm:$0xff]  ;;  %v1422_v29 = vld [vmem:[%s1652_s0 + $0x71] sm:$0xff] }
   0xa   :  { %v1406_v24 = vld [vmem:[%s1652_s0 + $0x60] sm:$0xff]  ;;  %v68_v26 = vpack.c.bf16 %v1394_v21, %v1389_v20  ;;  %v1431_v31 = vld [vmem:[%s1652_s0 + $0x70] sm:$0xff]  ;;  %v1285_v45 = vld [vmem:[%s1651_s1 + $0x78] sm:$0xff]  }
   0xb   :  { %1131 = vmatpush3.bf16.msra.mxu1 %v1274_v4  ;;  %v393_v27 = vpack.c.bf16 %v1406_v24, %v1401_v23  ;;  %v1417_v28 = vld [vmem:[%s1652_s0 + $0x61] sm:$0xff]  ;;  %v58_v34 = vld [vmem:[%s1652_s0 + $0x91] sm:$0xff]  ;;  %v586_v4 = vpack.c.bf16 %v1389_v20, %v1367_v15 }
   0xc   :  { %1179 = vmatpush3.bf16.msra.mxu0 %v1275_v5  ;;  %1132 = vmatprep.subr.bf16.mxu1 %v1276_v6  ;;  %v1011_v32 = vld [vmem:[%s1652_s0 + $0x80] sm:$0xff]  ;;  %v1457_v37 = vld [vmem:[%s1652_s0 + $0xb0] sm:$0xff]  ;;  %v69_v40 = vpack.c.bf16 %v1422_v29, %v1417_v28  ;;  %v36_v5 = vpack.c.bf16 %v1401_v23, %v1380_v18 }
   0xd   :  { %1180 = vmatprep.subr.bf16.mxu0 %v1277_v10  ;;  %v1446_v35 = vld [vmem:[%s1652_s0 + $0xa1] sm:$0xff]  ;;  %v1282_v38 = vld [vmem:[%s1651_s1 + $0x10] sm:$0xff]   ;;  %v394_v41 = vpack.c.bf16 %v1011_v32, %v1431_v31 }
   0xe   :  { %v1452_v36 = vld [vmem:[%s1652_s0 + $0xa0] sm:$0xff]  ;;  %v1283_v39 = vld [vmem:[%s1651_s1 + $0x70] sm:$0xff]   ;;  %v70_v42 = vpack.c.bf16 %v1446_v35, %v58_v34 }
   0xf   :  { %1133 = vmatpush3.bf16.msra.mxu1 %v1276_v6  ;;  %v395_v43 = vpack.c.bf16 %v1457_v37, %v1452_v36  ;;  %v60_v46 = vld [vmem:[%s1652_s0 + $0xb1] sm:$0xff]  ;;  %v61_v47 = vld [vmem:[%s1652_s0 + $0xc1] sm:$0xff]  ;;  %v587_v6 = vpack.c.bf16 %v1417_v28, %v1394_v21 }
  0x10   :  { %1181 = vmatpush3.bf16.msra.mxu0 %v1277_v10  ;;  %1150 = vmatprep.subr.bf16.mxu1 %v1278_v16  ;;  %v1014_v48 = vld [vmem:[%s1652_s0 + $0xc0] sm:$0xff]  ;;  %v1015_v49 = vld [vmem:[%s1652_s0 + $0xd0] sm:$0xff]  ;;  %v71_v54 = vpack.c.bf16 %v61_v47, %v60_v46  ;;  %v589_v12 = vpack.c.bf16 %v60_v46, %v1446_v35 }
  0x11   :  { %1198 = vmatprep.subr.bf16.mxu0 %v1279_v19  ;;  %v62_v50 = vld [vmem:[%s1652_s0 + $0xd1] sm:$0xff]  ;;  %v63_v51 = vld [vmem:[%s1652_s0 + $0xe1] sm:$0xff]  ;;  %v396_v55 = vpack.c.bf16 %v1015_v49, %v1014_v48  ;;  %v39_v13 = vpack.c.bf16 %v1014_v48, %v1457_v37 }
  0x12   :  { %1135 = vmatmul.mubr.msk.bf16.vlgmr.msra.gmra.mrb[0].mxu1 %vm107_vm0, %v67_v22  ;;  %v1016_v52 = vld [vmem:[%s1652_s0 + $0xe0] sm:$0xff]  ;;  %v1017_v53 = vld [vmem:[%s1652_s0 + $0xf0] sm:$0xff]  ;;  %v72_v56 = vpack.c.bf16 %v63_v51, %v62_v50  ;;  %v590_v14 = vpack.c.bf16 %v62_v50, %v61_v47 }
  0x13   :  { %1183 = vmatmul.mubr.msk.bf16.vlgmr.msra.gmra.mrb[0].mxu0 %vm107_vm0, %v392_v25  ;;  %1151 = vmatpush3.bf16.msra.mxu1 %v1278_v16  ;;  %v397_v57 = vpack.c.bf16 %v1017_v53, %v1016_v52  ;;  %v64_v58 = vld [vmem:[%s1652_s0 + $0xf1] sm:$0xff]  ;;  %v65_v59 = vld [vmem:[%s1652_s0 + $0x101] sm:$0xff]  ;;  %v40_v15 = vpack.c.bf16 %v1016_v52, %v1015_v49 }
  0x14   :  { %1199 = vmatpush3.bf16.msra.mxu0 %v1279_v19  ;;  %1138 = vmatprep.mubr.msk.bf16.mxu1 %vm107_vm0, %v68_v26  ;;  %v1018_v60 = vld [vmem:[%s1652_s0 + $0x100] sm:$0xff]  ;;  %v1019_v61 = vld [vmem:[%s1652_s0 + $0x110] sm:$0xff]  ;;  %v73_v63 = vpack.c.bf16 %v65_v59, %v64_v58  ;;  %v591_v16 = vpack.c.bf16 %v64_v58, %v63_v51 }
  0x15   :  { %1186 = vmatprep.mubr.msk.bf16.mxu0 %vm107_vm0, %v393_v27  ;;  %1152 = vmatprep.subr.bf16.mxu1 %v1280_v30  ;;  %v18_v62 = vld [vmem:[%s1652_s0] sm:$0xff]  ;;  %v398_v0 = vpack.c.bf16 %v1019_v61, %v1018_v60  ;;  %v26_v8 = vld [vmem:[%s1652_s0 + $0x90] sm:$0xff]  ;;  %v41_v18 = vpack.c.bf16 %v1018_v60, %v1017_v53 }
  0x16   :  { %1200 = vmatprep.subr.bf16.mxu0 %v1281_v33  ;;  %v34_v1 = vpack.c.bf16 %v1345_v9, %v18_v62  ;;  %v1047_v7 = vld [vmem:[%s1652_s0 + $0x81] sm:$0xff]  ;;  %v37_v9 = vpack.c.bf16 %v1431_v31, %v1406_v24  ;;  %v38_v11 = vpack.c.bf16 %v1452_v36, %v26_v8  ;;  %v1055_v17 = vld [vmem:[%s1652_s0 + $0x111] sm:$0xff] }
  0x17   :  { %1153 = vmatpush3.bf16.msra.mxu1 %v1280_v30  ;;  %v588_v10 = vpack.c.bf16 %v1047_v7, %v1422_v29  ;;  %v592_v19 = vpack.c.bf16 %v1055_v17, %v65_v59 }
  0x18   :  { %1201 = vmatpush3.bf16.msra.mxu0 %v1281_v33  ;;  %1154 = vmatprep.subr.bf16.mxu1 %v1282_v38 }
  0x19   :  { %1202 = vmatprep.subr.bf16.mxu0 %v1283_v39 }
  0x1a   :  { %1139 = vmatmul.mubr.msk.bf16.gmra.mrb[4].mxu1 %vm107_vm0, %v69_v40 }
  0x1b   :  { %1187 = vmatmul.mubr.msk.bf16.gmra.mrb[4].mxu0 %vm107_vm0, %v394_v41  ;;  %1142 = vmatprep.mubr.msk.bf16.mxu1 %vm107_vm0, %v70_v42 }
  0x1c   :  { %1190 = vmatprep.mubr.msk.bf16.mxu0 %vm107_vm0, %v395_v43  ;;  %1155 = vmatpush3.bf16.msra.mxu1 %v1282_v38 }
  0x1d   :  { %1203 = vmatpush3.bf16.msra.mxu0 %v1283_v39  ;;  %1156 = vmatprep.subr.bf16.mxu1 %v1284_v44 }
  0x1e   :  { %1204 = vmatprep.subr.bf16.mxu0 %v1285_v45 }
  0x20   :  { %1157 = vmatpush3.bf16.msra.mxu1 %v1284_v44 }
  0x21   :  { %1205 = vmatpush3.bf16.msra.mxu0 %v1285_v45 }
  0x22   :  { %1143 = vmatmul.mubr.msk.bf16.gmra.mrb[8].mxu1 %vm107_vm0, %v71_v54 }
  0x23   :  { %1191 = vmatmul.mubr.msk.bf16.gmra.mrb[8].mxu0 %vm107_vm0, %v396_v55  ;;  %1146 = vmatprep.mubr.msk.bf16.mxu1 %vm107_vm0, %v72_v56 }
  0x24   :  { %1194 = vmatprep.mubr.msk.bf16.mxu0 %vm107_vm0, %v397_v57 }
  0x2a   :  { %1147 = vmatmul.mubr.msk.bf16.gmra.mrb[12].mxu1 %vm107_vm0, %v73_v63 }
  0x2b   :  { %1195 = vmatmul.mubr.msk.bf16.gmra.mrb[12].mxu0 %vm107_vm0, %v398_v0  ;;  %1158 = vmatprep.mubr.msk.bf16.mxu1 %vm107_vm0, %v34_v1 }
  0x2c   :  { %1206 = vmatprep.mubr.msk.bf16.mxu0 %vm107_vm0, %v585_v2 }
  0x32   :  { %1159 = vmatmul.mubr.msk.bf16.vlgmr.msra.gmra.mrb[0].mxu1 %vm107_vm0, %v35_v3 }
  0x33   :  { %1207 = vmatmul.mubr.msk.bf16.vlgmr.msra.gmra.mrb[0].mxu0 %vm107_vm0, %v586_v4  ;;  %1162 = vmatprep.mubr.msk.bf16.mxu1 %vm107_vm0, %v36_v5 }
  0x34   :  { %1210 = vmatprep.mubr.msk.bf16.mxu0 %vm107_vm0, %v587_v6 }
  0x3a   :  { %1163 = vmatmul.mubr.msk.bf16.gmra.mrb[4].mxu1 %vm107_vm0, %v37_v9 }
  0x3b   :  { %1211 = vmatmul.mubr.msk.bf16.gmra.mrb[4].mxu0 %vm107_vm0, %v588_v10  ;;  %1166 = vmatprep.mubr.msk.bf16.mxu1 %vm107_vm0, %v38_v11 }
  0x3c   :  { %1214 = vmatprep.mubr.msk.bf16.mxu0 %vm107_vm0, %v589_v12 }
  0x42   :  { %1167 = vmatmul.mubr.msk.bf16.gmra.mrb[8].mxu1 %vm107_vm0, %v39_v13 }
  0x43   :  { %1215 = vmatmul.mubr.msk.bf16.gmra.mrb[8].mxu0 %vm107_vm0, %v590_v14  ;;  %1170 = vmatprep.mubr.msk.bf16.mxu1 %vm107_vm0, %v40_v15 }
  0x44   :  { %1218 = vmatprep.mubr.msk.bf16.mxu0 %vm107_vm0, %v591_v16 }
  0x4a   :  { %1171 = vmatmul.mubr.msk.bf16.gmra.mrb[12].mxu1 %vm107_vm0, %v41_v18 }
  0x4b   :  { %1219 = vmatmul.mubr.msk.bf16.gmra.mrb[12].mxu0 %vm107_vm0, %v592_v19 }
 0x105   :  { %v1160_v20 = vpop.f32.mrb[0].mxu1 }
 0x106   :  { %v1208_v21 = vpop.f32.mrb[0].mxu0  ;;  %v311_v22 = vpop.f32.mrb[1].mxu1 }
 0x107   :  { %v1569_v23 = vadd.f32 %v1208_v21, %v1160_v20  ;;  %v684_v24 = vpop.f32.mrb[1].mxu0  ;;  %v1161_v25 = vpop.f32.mrb[2].mxu1 }
 0x108   :  { %v1571_v26 = vadd.f32 %v684_v24, %v311_v22  ;;  %v1209_v27 = vpop.f32.mrb[2].mxu0  ;;  %v314_v28 = vpop.f32.mrb[3].mxu1 }
 0x109   :  { %v1573_v29 = vadd.f32 %v1209_v27, %v1161_v25  ;;  %v687_v30 = vpop.f32.mrb[3].mxu0 }
 0x10a   :  { %v1225_v31 = vadd.f32 %v687_v30, %v314_v28 }
 0x10c   :  { %v763_v32 = vadd.f32 %v1225_v31, %v1571_v26 }
 0x10d   :  { %v1164_v33 = vpop.f32.mrb[4].mxu1 }
 0x10e   :  { %v764_v34 = vadd.f32 %v1569_v23, %v763_v32  ;;  %v1212_v35 = vpop.f32.mrb[4].mxu0  ;;  %v327_v36 = vpop.f32.mrb[5].mxu1 }
 0x10f   :  { %v1226_v37 = vadd.f32 %v1212_v35, %v1164_v33  ;;  %v700_v38 = vpop.f32.mrb[5].mxu0  ;;  %v1165_v39 = vpop.f32.mrb[6].mxu1 }
 0x110   :  { %v1227_v40 = vadd.f32 %v700_v38, %v327_v36  ;;  %v765_v41 = vadd.f32 %v1573_v29, %v764_v34  ;;  %v1213_v42 = vpop.f32.mrb[6].mxu0  ;;  %v330_v43 = vpop.f32.mrb[7].mxu1 }
 0x111   :  { %v1228_v44 = vadd.f32 %v1213_v42, %v1165_v39  ;;  %v703_v45 = vpop.f32.mrb[7].mxu0 }
 0x112   :  { %v766_v46 = vadd.f32 %v1227_v40, %v765_v41  ;;  %v1229_v47 = vadd.f32 %v703_v45, %v330_v43 }
 0x114   :  { %v767_v48 = vadd.f32 %v1229_v47, %v766_v46 }
 0x115   :  { %v1168_v49 = vpop.f32.mrb[8].mxu1 }
 0x116   :  { %v768_v50 = vadd.f32 %v1226_v37, %v767_v48  ;;  %v1216_v51 = vpop.f32.mrb[8].mxu0  ;;  %v343_v52 = vpop.f32.mrb[9].mxu1 }
 0x117   :  { %v1230_v53 = vadd.f32 %v1216_v51, %v1168_v49  ;;  %v716_v54 = vpop.f32.mrb[9].mxu0  ;;  %v1169_v55 = vpop.f32.mrb[10].mxu1 }
 0x118   :  { %v1231_v56 = vadd.f32 %v716_v54, %v343_v52  ;;  %v769_v57 = vadd.f32 %v1228_v44, %v768_v50  ;;  %v1217_v58 = vpop.f32.mrb[10].mxu0  ;;  %v346_v59 = vpop.f32.mrb[11].mxu1 }
 0x119   :  { %v1232_v60 = vadd.f32 %v1217_v58, %v1169_v55  ;;  %v719_v61 = vpop.f32.mrb[11].mxu0 }
 0x11a   :  { %v770_v62 = vadd.f32 %v1231_v56, %v769_v57  ;;  %v1233_v63 = vadd.f32 %v719_v61, %v346_v59 }
 0x11c   :  { %v771_v0 = vadd.f32 %v1233_v63, %v770_v62 }
 0x11d   :  { %v1172_v1 = vpop.f32.mrb[12].mxu1 }
 0x11e   :  { %v772_v2 = vadd.f32 %v1230_v53, %v771_v0  ;;  %v1220_v3 = vpop.f32.mrb[12].mxu0  ;;  %v359_v4 = vpop.f32.mrb[13].mxu1 }
 0x11f   :  { %v1234_v5 = vadd.f32 %v1220_v3, %v1172_v1  ;;  %v732_v6 = vpop.f32.mrb[13].mxu0  ;;  %v1173_v7 = vpop.f32.mrb[14].mxu1 }
 0x120   :  { %v1235_v8 = vadd.f32 %v732_v6, %v359_v4  ;;  %v773_v9 = vadd.f32 %v1232_v60, %v772_v2  ;;  %v1221_v10 = vpop.f32.mrb[14].mxu0  ;;  %v362_v11 = vpop.f32.mrb[15].mxu1 }
 0x121   :  { %v1236_v12 = vadd.f32 %v1221_v10, %v1173_v7  ;;  %v735_v13 = vpop.f32.mrb[15].mxu0 }
 0x122   :  { %v774_v14 = vadd.f32 %v1235_v8, %v773_v9  ;;  %v1237_v15 = vadd.f32 %v735_v13, %v362_v11 }
 0x124   :  { %v775_v16 = vadd.f32 %v1237_v15, %v774_v14 }
 0x126   :  { %v776_v17 = vadd.f32 %v1234_v5, %v775_v16 }
 0x128   :  { %v777_v18 = vadd.f32 %v1236_v12, %v776_v17 }
 0x12a   :  { %v778_v19 = vrot.slane %v777_v18, 4 }
 0x12c   :  { %v779_v20 = vadd.f32 %v778_v19, %v777_v18 }
 0x12e   :  { %v780_v21 = vrot.slane %v779_v20, 2 }
 0x130   :  { %v781_v22 = vadd.f32 %v780_v21, %v779_v20 }
 0x132   :  { %v782_v24 = vrot.slane %v781_v22, 1 }
 0x134   :  { %v783_v25 = vadd.f32 %v782_v24, %v781_v22 }
 0x136   :  { %v785_v27 = vmul.f32 0.0078125, %v783_v25 }
 0x138   :  { %v786_v28 = vsub.f32 %v1571_v26, %v785_v27  ;;  %v787_v30 = vsub.f32 %v1225_v31, %v785_v27  ;;  %v788_v32 = vsub.f32 %v1569_v23, %v785_v27  ;;  %v789_v33 = vsub.f32 %v1573_v29, %v785_v27 }
 0x139   :  { %v790_v34 = vsub.f32 %v1227_v40, %v785_v27  ;;  %v791_v35 = vsub.f32 %v1229_v47, %v785_v27  ;;  %v792_v36 = vsub.f32 %v1226_v37, %v785_v27  ;;  %v793_v38 = vsub.f32 %v1228_v44, %v785_v27 }
 0x13a   :  { %v794_v39 = vsub.f32 %v1231_v56, %v785_v27  ;;  %v795_v41 = vsub.f32 %v1233_v63, %v785_v27  ;;  %v796_v42 = vsub.f32 %v1230_v53, %v785_v27  ;;  %v797_v43 = vsub.f32 %v1232_v60, %v785_v27 }
 0x13b   :  { %v798_v45 = vsub.f32 %v1235_v8, %v785_v27  ;;  %v799_v46 = vsub.f32 %v1237_v15, %v785_v27  ;;  %v800_v48 = vsub.f32 %v1234_v5, %v785_v27  ;;  %v801_v49 = vsub.f32 %v1236_v12, %v785_v27 }
 0x13c   :  { %v802_v50 = vmul.f32 %v786_v28, %v786_v28  ;;  %v803_v51 = vmul.f32 %v787_v30, %v787_v30  ;;  %v804_v26 = vmul.f32 %v788_v32, %v788_v32  ;;  %v805_v52 = vmul.f32 %v789_v33, %v789_v33 }
 0x13d   :  { %v806_v54 = vmul.f32 %v790_v34, %v790_v34  ;;  %v807_v40 = vmul.f32 %v791_v35, %v791_v35  ;;  %v808_v37 = vmul.f32 %v792_v36, %v792_v36  ;;  %v809_v55 = vmul.f32 %v793_v38, %v793_v38 }
 0x13e   :  { %v818_v31 = vadd.f32 %v803_v51, %v802_v50  ;;  %v810_v53 = vmul.f32 %v794_v39, %v794_v39  ;;  %v811_v58 = vmul.f32 %v795_v41, %v795_v41  ;;  %v812_v60 = vmul.f32 %v796_v42, %v796_v42  ;;  %v1076_v50 = vld [vmem:[%s1653_s2] ss:$0 sm:$0xff] }
 0x13f   :  { %v813_v62 = vmul.f32 %v797_v43, %v797_v43  ;;  %v814_v0 = vmul.f32 %v798_v45, %v798_v45  ;;  %v815_v2 = vmul.f32 %v799_v46, %v799_v46  ;;  %v816_v4 = vmul.f32 %v800_v48, %v800_v48 }
 0x140   :  { %v819_v23 = vadd.f32 %v818_v31, %v804_v26  ;;  %v817_v6 = vmul.f32 %v801_v49, %v801_v49 }
 0x142   :  { %v820_v29 = vadd.f32 %v819_v23, %v805_v52 }
 0x144   :  { %v821_v47 = vadd.f32 %v820_v29, %v806_v54 }
 0x146   :  { %v822_v44 = vadd.f32 %v821_v47, %v807_v40  ;;  %v1077_v47 = vld [vmem:[%s1654_s3] ss:$0 sm:$0xff] }
 0x148   :  { %v823_v56 = vadd.f32 %v822_v44, %v808_v37 }
 0x14a   :  { %v824_v57 = vadd.f32 %v823_v56, %v809_v55 }
 0x14c   :  { %v825_v59 = vadd.f32 %v824_v57, %v810_v53 }
 0x14e   :  { %v826_v61 = vadd.f32 %v825_v59, %v811_v58 }
 0x150   :  { %v827_v63 = vadd.f32 %v826_v61, %v812_v60 }
 0x152   :  { %v828_v1 = vadd.f32 %v827_v63, %v813_v62 }
 0x154   :  { %v829_v3 = vadd.f32 %v828_v1, %v814_v0 }
 0x156   :  { %v830_v5 = vadd.f32 %v829_v3, %v815_v2 }
 0x158   :  { %v831_v7 = vadd.f32 %v830_v5, %v816_v4 }
 0x15a   :  { %v832_v8 = vadd.f32 %v831_v7, %v817_v6 }
 0x15c   :  { %v833_v9 = vrot.slane %v832_v8, 4 }
 0x15e   :  { %v834_v10 = vadd.f32 %v833_v9, %v832_v8 }
 0x160   :  { %v835_v11 = vrot.slane %v834_v10, 2 }
 0x162   :  { %v836_v12 = vadd.f32 %v835_v11, %v834_v10 }
 0x164   :  { %v837_v13 = vrot.slane %v836_v12, 1 }
 0x166   :  { %v838_v14 = vadd.f32 %v837_v13, %v836_v12 }
 0x168   :  { %v839_v15 = vmul.f32 0.0078125, %v838_v14 }
 0x16a   :  { %v840_v16 = vadd.f32 1e-05, %v839_v15 }
 0x16c   :  { %1286 = vrsqrt.f32 %v840_v16 }
 0x176   :  { %v1287_v17 = vpop.eup %1286 }
 0x177   :  { %v842_v18 = vmul.f32 %v1287_v17, %v786_v28  ;;  %v843_v19 = vmul.f32 %v1287_v17, %v787_v30  ;;  %v844_v20 = vmul.f32 %v1287_v17, %v788_v32  ;;  %v845_v21 = vmul.f32 %v1287_v17, %v789_v33 }
 0x178   :  { %v846_v22 = vmul.f32 %v1287_v17, %v790_v34  ;;  %v847_v24 = vmul.f32 %v1287_v17, %v791_v35  ;;  %v848_v25 = vmul.f32 %v1287_v17, %v792_v36  ;;  %v849_v27 = vmul.f32 %v1287_v17, %v793_v38 }
 0x179   :  { %v850_v51 = vmul.f32 %v1287_v17, %v794_v39  ;;  %v851_v26 = vmul.f32 %v1287_v17, %v795_v41  ;;  %v852_v31 = vmul.f32 %v1287_v17, %v796_v42  ;;  %v853_v52 = vmul.f32 %v1287_v17, %v797_v43 }
 0x17a   :  { %v854_v23 = vmul.f32 %v1287_v17, %v798_v45  ;;  %v855_v54 = vmul.f32 %v1287_v17, %v799_v46  ;;  %v856_v29 = vmul.f32 %v1287_v17, %v800_v48  ;;  %v857_v40 = vmul.f32 %v1287_v17, %v801_v49 }
 0x17b   :  { %v865_v28 = vmul.f32 %v1076_v50, %v842_v18  ;;  %v866_v30 = vmul.f32 %v1076_v50, %v843_v19  ;;  %v867_v32 = vmul.f32 %v1076_v50, %v844_v20  ;;  %v868_v33 = vmul.f32 %v1076_v50, %v845_v21 }
 0x17c   :  { %v869_v34 = vmul.f32 %v1076_v50, %v846_v22  ;;  %v870_v35 = vmul.f32 %v1076_v50, %v847_v24  ;;  %v871_v36 = vmul.f32 %v1076_v50, %v848_v25  ;;  %v872_v38 = vmul.f32 %v1076_v50, %v849_v27 }
 0x17d   :  { %v873_v39 = vmul.f32 %v1076_v50, %v850_v51  ;;  %v874_v41 = vmul.f32 %v1076_v50, %v851_v26  ;;  %v875_v42 = vmul.f32 %v1076_v50, %v852_v31  ;;  %v876_v43 = vmul.f32 %v1076_v50, %v853_v52 }
 0x17e   :  { %v877_v45 = vmul.f32 %v1076_v50, %v854_v23  ;;  %v878_v46 = vmul.f32 %v1076_v50, %v855_v54  ;;  %v879_v48 = vmul.f32 %v1076_v50, %v856_v29  ;;  %v880_v49 = vmul.f32 %v1076_v50, %v857_v40 }
 0x17f   :  { %v888_v37 = vadd.f32 %v1077_v47, %v865_v28  ;;  %v889_v44 = vadd.f32 %v1077_v47, %v866_v30  ;;  %v890_v55 = vadd.f32 %v1077_v47, %v867_v32  ;;  %v891_v56 = vadd.f32 %v1077_v47, %v868_v33 }
 0x180   :  { %v892_v53 = vadd.f32 %v1077_v47, %v869_v34  ;;  %v893_v57 = vadd.f32 %v1077_v47, %v870_v35  ;;  %v894_v58 = vadd.f32 %v1077_v47, %v871_v36  ;;  %v895_v59 = vadd.f32 %v1077_v47, %v872_v38 }
 0x181   :  { %v896_v60 = vadd.f32 %v1077_v47, %v873_v39  ;;  %v897_v61 = vadd.f32 %v1077_v47, %v874_v41  ;;  %v898_v62 = vadd.f32 %v1077_v47, %v875_v42  ;;  %v899_v63 = vadd.f32 %v1077_v47, %v876_v43 }
 0x182   :  { %v900_v0 = vadd.f32 %v1077_v47, %v877_v45  ;;  %v901_v1 = vadd.f32 %v1077_v47, %v878_v46  ;;  %v902_v2 = vadd.f32 %v1077_v47, %v879_v48  ;;  %v903_v3 = vadd.f32 %v1077_v47, %v880_v49 }
 0x183   :  { %vm904_vm1 = vcmp.ge.f32.partialorder %v888_v37, 0.0  ;;  %vm905_vm2 = vcmp.ge.f32.partialorder %v889_v44, 0.0  ;;  %vm906_vm3 = vcmp.ge.f32.partialorder %v890_v55, 0.0  ;;  %vm907_vm4 = vcmp.ge.f32.partialorder %v891_v56, 0.0 }
 0x184   :  { %vm908_vm5 = vcmp.ge.f32.partialorder %v892_v53, 0.0  ;;  %vm909_vm6 = vcmp.ge.f32.partialorder %v893_v57, 0.0  ;;  %vm910_vm7 = vcmp.ge.f32.partialorder %v894_v58, 0.0  ;;  %vm911_vm8 = vcmp.ge.f32.partialorder %v895_v59, 0.0 }
 0x185   :  { %vm912_vm9 = vcmp.ge.f32.partialorder %v896_v60, 0.0  ;;  %vm913_vm10 = vcmp.ge.f32.partialorder %v897_v61, 0.0  ;;  %vm914_vm11 = vcmp.ge.f32.partialorder %v898_v62, 0.0  ;;  %vm915_vm12 = vcmp.ge.f32.partialorder %v899_v63, 0.0 }
 0x186   :  { %vm916_vm13 = vcmp.ge.f32.partialorder %v900_v0, 0.0  ;;  %vm917_vm14 = vcmp.ge.f32.partialorder %v901_v1, 0.0  ;;  %vm918_vm15 = vcmp.ge.f32.partialorder %v902_v2, 0.0  ;;  %vm919_vm0 = vcmp.ge.f32.partialorder %v903_v3, 0.0 }
 0x187   :  { %v920_v4 = vmul.f32 0.2, %v888_v37  ;;  %v921_v5 = vmul.f32 0.2, %v889_v44  ;;  %v922_v6 = vmul.f32 0.2, %v890_v55 }
 0x188   :  { %v923_v7 = vmul.f32 0.2, %v891_v56  ;;  %v924_v8 = vmul.f32 0.2, %v892_v53  ;;  %v925_v9 = vmul.f32 0.2, %v893_v57 }
 0x189   :  { %v926_v10 = vmul.f32 0.2, %v894_v58  ;;  %v927_v11 = vmul.f32 0.2, %v895_v59  ;;  %v928_v12 = vmul.f32 0.2, %v896_v60  ;;  %v936_v13 = vsel %vm904_vm1, %v888_v37, %v920_v4 }
 0x18a   :  { %v929_v14 = vmul.f32 0.2, %v897_v61  ;;  %v930_v15 = vmul.f32 0.2, %v898_v62  ;;  %v931_v16 = vmul.f32 0.2, %v899_v63  ;;  %v937_v17 = vsel %vm905_vm2, %v889_v44, %v921_v5  ;;  %952 = vst [vmem:[%s1655_s4] sm:$0xff] %v936_v13 }
 0x18b   :  { %v932_v18 = vmul.f32 0.2, %v900_v0  ;;  %v933_v19 = vmul.f32 0.2, %v901_v1  ;;  %v934_v20 = vmul.f32 0.2, %v902_v2  ;;  %v938_v21 = vsel %vm906_vm3, %v890_v55, %v922_v6 }
 0x18c   :  { %953 = vst [vmem:[%s1655_s4 + $0x8] sm:$0xff] %v937_v17  ;;  %v935_v22 = vmul.f32 0.2, %v903_v3  ;;  %v939_v24 = vsel %vm907_vm4, %v891_v56, %v923_v7  ;;  %v940_v25 = vsel %vm908_vm5, %v892_v53, %v924_v8  ;;  %v941_v27 = vsel %vm909_vm6, %v893_v57, %v925_v9  ;;  %954 = vst [vmem:[%s1655_s4 + $0x10] sm:$0xff] %v938_v21 }
 0x18d   :  { %v942_v50 = vsel %vm910_vm7, %v894_v58, %v926_v10  ;;  %v943_v51 = vsel %vm911_vm8, %v895_v59, %v927_v11  ;;  %v944_v26 = vsel %vm912_vm9, %v896_v60, %v928_v12  ;;  %v945_v31 = vsel %vm913_vm10, %v897_v61, %v929_v14  ;;  %955 = vst [vmem:[%s1655_s4 + $0x18] sm:$0xff] %v939_v24 }
 0x18e   :  { %956 = vst [vmem:[%s1655_s4 + $0x20] sm:$0xff] %v940_v25  ;;  %957 = vst [vmem:[%s1655_s4 + $0x28] sm:$0xff] %v941_v27  ;;  %v946_v52 = vsel %vm914_vm11, %v898_v62, %v930_v15  ;;  %v947_v23 = vsel %vm915_vm12, %v899_v63, %v931_v16  ;;  %v948_v54 = vsel %vm916_vm13, %v900_v0, %v932_v18 }
 0x18f   :  { %v949_v29 = vsel %vm917_vm14, %v901_v1, %v933_v19  ;;  %958 = vst [vmem:[%s1655_s4 + $0x30] sm:$0xff] %v942_v50  ;;  %959 = vst [vmem:[%s1655_s4 + $0x38] sm:$0xff] %v943_v51  ;;  %v950_v40 = vsel %vm918_vm15, %v902_v2, %v934_v20  ;;  %v951_v28 = vsel %vm919_vm0, %v903_v3, %v935_v22 }
 0x190   :  { %960 = vst [vmem:[%s1655_s4 + $0x40] sm:$0xff] %v944_v26  ;;  %961 = vst [vmem:[%s1655_s4 + $0x48] sm:$0xff] %v945_v31 }
 0x191   :  { %962 = vst [vmem:[%s1655_s4 + $0x50] sm:$0xff] %v946_v52  ;;  %963 = vst [vmem:[%s1655_s4 + $0x58] sm:$0xff] %v947_v23 }
 0x192   :  { %964 = vst [vmem:[%s1655_s4 + $0x60] sm:$0xff] %v948_v54  ;;  %965 = vst [vmem:[%s1655_s4 + $0x68] sm:$0xff] %v949_v29 }
 0x193   :  { %966 = vst [vmem:[%s1655_s4 + $0x70] sm:$0xff] %v950_v40  ;;  %967 = vst [vmem:[%s1655_s4 + $0x78] sm:$0xff] %v951_v28 }

// kernel: forward.7
= control target key start
LH: loop header
LB: loop body
LE: loop exit
PB: predicated region body
PF: predicated region fallthrough
CT: control target
= control target key end

     0   :  { %vm423_vm0 = vcmask 523264   ;;  %vm534_vm5 = vcmask 130112   ;;  %vm545_vm6 = vcmask 1041409   ;;  %vm548_vm7 = vcmask 123904   ;;  %s885_s1 = inlined_call_operand.vmem [shape: bf16[512,64], index: 1, kind: input, shape index: {}]   ;;  %s886_s0 = inlined_call_operand.vmem [shape: bf16[32,512], index: 0, kind: input, shape index: {}]   ;;  %s887_s2 = inlined_call_operand.vmem [shape: f32[1,64], index: 2, kind: input, shape index: {}]   ;;  %s888_s3 = inlined_call_operand.vmem [shape: f32[1,64], index: 3, kind: input, shape index: {}]   ;;  %s889_s4 = inlined_call_operand.vmem [shape: f32[16,64], index: 4, kind: input, shape index: {}]   ;;  %s890_s5 = inlined_call_operand.vmem [shape: f32[2,1], index: 5, kind: output, shape index: {}]  }
   0x1   :  { %v660_v0 = vld [vmem:[%s885_s1 + $0x40] sm:$0xff]   ;;  %v664_v4 = vld [vmem:[%s885_s1 + $0x48] sm:$0xff]   ;;  %v668_v8 = vld [vmem:[%s885_s1 + $0x50] sm:$0xff]   ;;  %vm556_vm8 = vcmask 1024  }
   0x2   :  { %v661_v1 = vld [vmem:[%s885_s1 + $0xc0] sm:$0xff]   ;;  %604 = vmatprep.subr.bf16.mxu0 %v660_v0  ;;  %v665_v5 = vld [vmem:[%s885_s1 + $0xc8] sm:$0xff]   ;;  %v669_v9 = vld [vmem:[%s885_s1 + $0xd0] sm:$0xff]  }
   0x3   :  { %v662_v2 = vld [vmem:[%s885_s1] sm:$0xff]   ;;  %632 = vmatprep.subr.bf16.mxu1 %v661_v1  ;;  %v666_v6 = vld [vmem:[%s885_s1 + $0x8] sm:$0xff]   ;;  %v670_v10 = vld [vmem:[%s885_s1 + $0x10] sm:$0xff]  }
   0x4   :  { %v663_v3 = vld [vmem:[%s885_s1 + $0x80] sm:$0xff]   ;;  %605 = vmatpush3.bf16.msra.mxu0 %v662_v2  ;;  %v667_v7 = vld [vmem:[%s885_s1 + $0x88] sm:$0xff]   ;;  %v671_v11 = vld [vmem:[%s885_s1 + $0x90] sm:$0xff]  }
   0x5   :  { %633 = vmatpush3.bf16.msra.mxu1 %v663_v3  ;;  %606 = vmatprep.subr.bf16.mxu0 %v664_v4  ;;  %v672_v12 = vld [vmem:[%s885_s1 + $0x58] sm:$0xff]   ;;  %v676_v16 = vld [vmem:[%s885_s1 + $0x60] sm:$0xff]   ;;  %v680_v20 = vld [vmem:[%s885_s1 + $0x68] sm:$0xff]  }
   0x6   :  { %634 = vmatprep.subr.bf16.mxu1 %v665_v5  ;;  %v673_v13 = vld [vmem:[%s885_s1 + $0xd8] sm:$0xff]   ;;  %v677_v17 = vld [vmem:[%s885_s1 + $0xe0] sm:$0xff]   ;;  %v681_v21 = vld [vmem:[%s885_s1 + $0xe8] sm:$0xff]  }
   0x7   :  { %v674_v14 = vld [vmem:[%s885_s1 + $0x18] sm:$0xff]   ;;  %v678_v18 = vld [vmem:[%s885_s1 + $0x20] sm:$0xff]   ;;  %v682_v22 = vld [vmem:[%s885_s1 + $0x28] sm:$0xff]  }
   0x8   :  { %607 = vmatpush3.bf16.msra.mxu0 %v666_v6  ;;  %v675_v15 = vld [vmem:[%s885_s1 + $0x98] sm:$0xff]   ;;  %v679_v19 = vld [vmem:[%s885_s1 + $0xa0] sm:$0xff]   ;;  %v683_v23 = vld [vmem:[%s885_s1 + $0xa8] sm:$0xff]  }
   0x9   :  { %635 = vmatpush3.bf16.msra.mxu1 %v667_v7  ;;  %608 = vmatprep.subr.bf16.mxu0 %v668_v8  ;;  %v684_v24 = vld [vmem:[%s885_s1 + $0x70] sm:$0xff]   ;;  %v688_v28 = vld [vmem:[%s885_s1 + $0x78] sm:$0xff]  }
   0xa   :  { %636 = vmatprep.subr.bf16.mxu1 %v669_v9  ;;  %v685_v25 = vld [vmem:[%s885_s1 + $0xf0] sm:$0xff]   ;;  %v689_v29 = vld [vmem:[%s885_s1 + $0xf8] sm:$0xff]  }
   0xb   :  { %v686_v26 = vld [vmem:[%s885_s1 + $0x30] sm:$0xff]   ;;  %v690_v30 = vld [vmem:[%s885_s1 + $0x38] sm:$0xff]  }
   0xc   :  { %609 = vmatpush3.bf16.msra.mxu0 %v670_v10  ;;  %v687_v27 = vld [vmem:[%s885_s1 + $0xb0] sm:$0xff]   ;;  %v691_v31 = vld [vmem:[%s885_s1 + $0xb8] sm:$0xff]  }
   0xd   :  { %637 = vmatpush3.bf16.msra.mxu1 %v671_v11  ;;  %610 = vmatprep.subr.bf16.mxu0 %v672_v12  ;;  %v692_v32 = vld [vmem:[%s886_s0] ss:$16 sps:$4 sm:$0xff]   ;;  %v694_v33 = vld [vmem:[%s886_s0 + $0x4] ss:$16 sps:$4 sm:$0xff]   ;;  %v695_v34 = vld [vmem:[%s886_s0 + $0x8] ss:$16 sps:$4 sm:$0xff]  }
   0xe   :  { %638 = vmatprep.subr.bf16.mxu1 %v673_v13  ;;  %v697_v35 = vld [vmem:[%s886_s0 + $0xc] ss:$16 sps:$4 sm:$0xff]   ;;  %357 = vmatprep.mubr.bf16.mxu0 %v694_v33  ;;  %v698_v36 = vld [vmem:[%s886_s0 + $0x24] ss:$16 sps:$4 sm:$0xff]   ;;  %v702_v38 = vld [vmem:[%s886_s0 + $0x20] ss:$16 sps:$4 sm:$0xff]  }
   0xf   :  { %406 = vmatprep.mubr.bf16.mxu1 %v697_v35  ;;  %v700_v37 = vld [vmem:[%s886_s0 + $0x2c] ss:$16 sps:$4 sm:$0xff]   ;;  %v703_v39 = vld [vmem:[%s886_s0 + $0x28] ss:$16 sps:$4 sm:$0xff]  }
  0x10   :  { %611 = vmatpush3.bf16.msra.mxu0 %v674_v14 }
  0x11   :  { %639 = vmatpush3.bf16.msra.mxu1 %v675_v15  ;;  %612 = vmatprep.subr.bf16.mxu0 %v676_v16 }
  0x12   :  { %640 = vmatprep.subr.bf16.mxu1 %v677_v17 }
  0x14   :  { %613 = vmatpush3.bf16.msra.mxu0 %v678_v18 }
  0x15   :  { %641 = vmatpush3.bf16.msra.mxu1 %v679_v19  ;;  %614 = vmatprep.subr.bf16.mxu0 %v680_v20 }
  0x16   :  { %642 = vmatprep.subr.bf16.mxu1 %v681_v21 }
  0x18   :  { %615 = vmatpush3.bf16.msra.mxu0 %v682_v22 }
  0x19   :  { %643 = vmatpush3.bf16.msra.mxu1 %v683_v23  ;;  %616 = vmatprep.subr.bf16.mxu0 %v684_v24 }
  0x1a   :  { %644 = vmatprep.subr.bf16.mxu1 %v685_v25 }
  0x1c   :  { %617 = vmatpush3.bf16.msra.mxu0 %v686_v26 }
  0x1d   :  { %645 = vmatpush3.bf16.msra.mxu1 %v687_v27  ;;  %618 = vmatprep.subr.bf16.mxu0 %v688_v28 }
  0x1e   :  { %646 = vmatprep.subr.bf16.mxu1 %v689_v29 }
  0x20   :  { %619 = vmatpush3.bf16.msra.mxu0 %v690_v30 }
  0x21   :  { %647 = vmatpush3.bf16.msra.mxu1 %v691_v31 }
  0x23   :  { %358 = vmatmul.mubr.bf16.vlgmr.msra.gmra.mrb[0].mxu0 %v692_v32 }
  0x24   :  { %407 = vmatmul.mubr.bf16.vlgmr.msra.gmra.mrb[0].mxu1 %v695_v34  ;;  %365 = vmatprep.mubr.bf16.mxu0 %v698_v36 }
  0x25   :  { %414 = vmatprep.mubr.bf16.mxu1 %v700_v37 }
  0x2b   :  { %366 = vmatmul.mubr.bf16.gmra.mrb[4].mxu0 %v702_v38 }
  0x2c   :  { %415 = vmatmul.mubr.bf16.gmra.mrb[4].mxu1 %v703_v39 }
  0xf6   :  { %v620_v40 = vpop.f32.mrb[0].mxu0 }
  0xf7   :  { %v648_v41 = vpop.f32.mrb[0].mxu1  ;;  %v621_v42 = vpop.f32.mrb[1].mxu0 }
  0xf8   :  { %v622_v43 = vadd.f32 %v621_v42, %v620_v40  ;;  %v649_v44 = vpop.f32.mrb[1].mxu1  ;;  %v623_v45 = vpop.f32.mrb[2].mxu0  ;;  %v602_v42 = vld [vmem:[%s887_s2] ss:$0 sm:$0xff] }
  0xf9   :  { %v650_v46 = vadd.f32 %v649_v44, %v648_v41  ;;  %v651_v47 = vpop.f32.mrb[2].mxu1  ;;  %v624_v48 = vpop.f32.mrb[3].mxu0 }
  0xfa   :  { %v625_v49 = vadd.f32 %v624_v48, %v623_v45  ;;  %v652_v50 = vpop.f32.mrb[3].mxu1 }
  0xfb   :  { %v409_v51 = vadd.f32 %v650_v46, %v622_v43  ;;  %v653_v52 = vadd.f32 %v652_v50, %v651_v47  ;;  %v603_v47 = vld [vmem:[%s888_s3] ss:$0 sm:$0xff] }
  0xfd   :  { %v412_v53 = vadd.f32 %v653_v52, %v625_v49  ;;  %v424_v55 = vsel %vm423_vm0, %v409_v51, 0.0 }
  0xfe   :  { %v626_v54 = vpop.f32.mrb[4].mxu0 }
  0xff   :  { %v425_v56 = vsel %vm423_vm0, %v412_v53, 0.0  ;;  %v654_v57 = vpop.f32.mrb[4].mxu1  ;;  %v627_v58 = vpop.f32.mrb[5].mxu0 }
 0x100   :  { %v426_v59 = vadd.f32 %v425_v56, %v424_v55  ;;  %v628_v60 = vadd.f32 %v627_v58, %v626_v54  ;;  %v655_v61 = vpop.f32.mrb[5].mxu1  ;;  %v629_v62 = vpop.f32.mrb[6].mxu0  ;;  %v501_v56 = vld [vmem:[%s889_s4] sm:$0xff] }
 0x101   :  { %v656_v63 = vadd.f32 %v655_v61, %v654_v57  ;;  %v657_v0 = vpop.f32.mrb[6].mxu1  ;;  %v630_v1 = vpop.f32.mrb[7].mxu0 }
 0x102   :  { %v631_v2 = vadd.f32 %v630_v1, %v629_v62  ;;  %v658_v3 = vpop.f32.mrb[7].mxu1 }
 0x103   :  { %v417_v4 = vadd.f32 %v656_v63, %v628_v60  ;;  %v659_v5 = vadd.f32 %v658_v3, %v657_v0  ;;  %v502_v63 = vld [vmem:[%s889_s4 + $0x8] sm:$0xff] }
 0x105   :  { %v427_v6 = vsel %vm423_vm0, %v417_v4, 0.0  ;;  %v420_v7 = vadd.f32 %v659_v5, %v631_v2 }
 0x106   :  { %v428_v8 = vadd.f32 %v427_v6, %v426_v59 }
 0x107   :  { %v429_v9 = vsel %vm423_vm0, %v420_v7, 0.0 }
 0x108   :  { %v430_v10 = vadd.f32 %v429_v9, %v428_v8 }
 0x10a   :  { %v431_v11 = vrot.slane %v430_v10, 4 }
 0x10c   :  { %v432_v12 = vadd.f32 %v431_v11, %v430_v10  ;;  %v523_v10 = vlaneseq }
 0x10e   :  { %v433_v13 = vrot.slane %v432_v12, 2  ;;  %v524_v11 = vand.u32 127, %v523_v10 }
 0x110   :  { %v434_v14 = vadd.f32 %v433_v13, %v432_v12  ;;  %v526_v12 = vshrl.u32 %v523_v10, 7  ;;  %v529_v13 = vadd.s32 4294967288, %v524_v11 }
 0x112   :  { %v435_v15 = vrot.slane %v434_v14, 1 }
 0x114   :  { %v436_v16 = vadd.f32 %v435_v15, %v434_v14 }
 0x116   :  { %v438_v17 = vmul.f32 0.03125, %v436_v16  ;;  %v527_v16 = vsub.s32 %v524_v11, %v526_v12 }
 0x118   :  { %v439_v18 = vsub.f32 %v409_v51, %v438_v17  ;;  %v440_v19 = vsub.f32 %v412_v53, %v438_v17  ;;  %v441_v20 = vsub.f32 %v417_v4, %v438_v17  ;;  %v442_v21 = vsub.f32 %v420_v7, %v438_v17 }
 0x119   :  { %v532_v17 = vsub.s32 %v529_v13, %v526_v12 }
 0x11a   :  { %v443_v22 = vmul.f32 %v439_v18, %v439_v18  ;;  %v444_v23 = vmul.f32 %v440_v19, %v440_v19  ;;  %v445_v24 = vmul.f32 %v441_v20, %v441_v20  ;;  %v446_v25 = vmul.f32 %v442_v21, %v442_v21 }
 0x11c   :  { %v447_v26 = vsel %vm423_vm0, %v443_v22, 0.0  ;;  %v448_v27 = vsel %vm423_vm0, %v444_v23, 0.0  ;;  %v450_v29 = vsel %vm423_vm0, %v445_v24, 0.0  ;;  %v452_v31 = vsel %vm423_vm0, %v446_v25, 0.0 }
 0x11d   :  { %v449_v28 = vadd.f32 %v448_v27, %v447_v26 }
 0x11f   :  { %v451_v30 = vadd.f32 %v450_v29, %v449_v28 }
 0x121   :  { %v453_v32 = vadd.f32 %v452_v31, %v451_v30 }
 0x123   :  { %v454_v33 = vrot.slane %v453_v32, 4 }
 0x125   :  { %v455_v34 = vadd.f32 %v454_v33, %v453_v32 }
 0x127   :  { %v456_v35 = vrot.slane %v455_v34, 2 }
 0x129   :  { %v457_v36 = vadd.f32 %v456_v35, %v455_v34 }
 0x12b   :  { %v458_v37 = vrot.slane %v457_v36, 1 }
 0x12d   :  { %v459_v38 = vadd.f32 %v458_v37, %v457_v36 }
 0x12f   :  { %v460_v39 = vmul.f32 0.03125, %v459_v38 }
 0x131   :  { %v461_v40 = vadd.f32 1e-05, %v460_v39 }
 0x133   :  { %704 = vrsqrt.f32 %v461_v40 }
 0x13d   :  { %v705_v41 = vpop.eup %704 }
 0x13e   :  { %v466_v43 = vmul.f32 %v705_v41, %v442_v21  ;;  %v465_v44 = vmul.f32 %v705_v41, %v441_v20  ;;  %v463_v45 = vmul.f32 %v705_v41, %v439_v18  ;;  %v464_v46 = vmul.f32 %v705_v41, %v440_v19 }
 0x140   :  { %v477_v48 = vmul.f32 %v602_v42, %v466_v43  ;;  %v476_v49 = vmul.f32 %v602_v42, %v465_v44  ;;  %v474_v50 = vmul.f32 %v602_v42, %v463_v45  ;;  %v475_v51 = vmul.f32 %v602_v42, %v464_v46 }
 0x142   :  { %v487_v52 = vadd.f32 %v603_v47, %v476_v49  ;;  %v485_v53 = vadd.f32 %v603_v47, %v474_v50  ;;  %v488_v54 = vadd.f32 %v603_v47, %v477_v48  ;;  %v486_v55 = vadd.f32 %v603_v47, %v475_v51 }
 0x144   :  { %vm491_vm1 = vcmp.ge.f32.partialorder %v487_v52, 0.0  ;;  %v495_v57 = vmul.f32 0.2, %v487_v52  ;;  %vm489_vm2 = vcmp.ge.f32.partialorder %v485_v53, 0.0  ;;  %v493_v58 = vmul.f32 0.2, %v485_v53 }
 0x145   :  { %vm492_vm3 = vcmp.ge.f32.partialorder %v488_v54, 0.0  ;;  %v496_v59 = vmul.f32 0.2, %v488_v54  ;;  %vm490_vm4 = vcmp.ge.f32.partialorder %v486_v55, 0.0  ;;  %v494_v60 = vmul.f32 0.2, %v486_v55 }
 0x146   :  { %v499_v61 = vsel %vm491_vm1, %v487_v52, %v495_v57  ;;  %v497_v62 = vsel %vm489_vm2, %v485_v53, %v493_v58 }
 0x147   :  { %v505_v0 = vmul.f32 %v501_v56, %v499_v61  ;;  %v503_v1 = vmul.f32 %v501_v56, %v497_v62  ;;  %v500_v2 = vsel %vm492_vm3, %v488_v54, %v496_v59  ;;  %v498_v3 = vsel %vm490_vm4, %v486_v55, %v494_v60 }
 0x148   :  { %v506_v6 = vmul.f32 %v502_v63, %v500_v2  ;;  %v504_v7 = vmul.f32 %v502_v63, %v498_v3 }
 0x149   :  { %v513_v4 = vsel %vm423_vm0, %v505_v0, 0.0  ;;  %v507_v5 = vsel %vm423_vm0, %v503_v1, 0.0 }
 0x14a   :  { %514 = vadd.xlane.f32.xlu1 %v513_v4  ;;  %508 = vadd.xlane.f32.xlu0 %v507_v5  ;;  %v516_v8 = vsel %vm423_vm0, %v506_v6, 0.0  ;;  %v510_v9 = vsel %vm423_vm0, %v504_v7, 0.0 }
 0x14e   :  { %517 = vadd.xlane.f32.xlu1 %v516_v8  ;;  %511 = vadd.xlane.f32.xlu0 %v510_v9 }
 0x1d7   :  { %v515_v14 = vpop.xlane.xlu1 %514  ;;  %v509_v15 = vpop.xlane.xlu0 %508 }
 0x1d8   :  { %v539_v20 = vrot.slane %v515_v14, %v527_v16  ;;  %v528_v21 = vrot.slane %v509_v15, %v527_v16 }
 0x1db   :  { %v518_v18 = vpop.xlane.xlu1 %517  ;;  %v512_v19 = vpop.xlane.xlu0 %511 }
 0x1dc   :  { %v543_v22 = vrot.slane %v518_v18, %v532_v17  ;;  %v533_v23 = vrot.slane %v512_v19, %v532_v17 }
 0x1de   :  { %v535_v24 = vsel %vm534_vm5, %v533_v23, %v528_v21  ;;  %v544_v25 = vsel %vm534_vm5, %v543_v22, %v539_v20 }
 0x1df   :  { %v546_v26 = vsel %vm545_vm6, %v544_v25, %v535_v24 }
 0x1e0   :  { %v549_v27 = vsel %vm548_vm7, %v546_v26, 0.0 }
 0x1e1   :  { %550 = vadd.xlane.f32.xlu0 %v549_v27 }
 0x26e   :  { %v551_v28 = vpop.xlane.xlu0 %550 }
 0x26f   :  { %v552_v29 = vmul.f32 0.5, %v551_v28 }
 0x271   :  { %706 = vtanh.f32 %v552_v29 }
 0x27b   :  { %v707_v30 = vpop.eup %706 }
 0x27c   :  { %v554_v31 = vadd.f32 1.0, %v707_v30 }
 0x27e   :  { %v555_v32 = vmul.f32 0.5, %v554_v31 }
 0x280   :  { %557 = vst.msk [vmem:[%s890_s5] sm:$0x3] %vm556_vm8, %v555_v32 }

</bundles_post_ra>
